<compile_context>
chip_gen: v5e
topology: v5e:2x2
jax: 0.10.0
libtpu: 0.0.40
codegen_flags: <defaults>
</compile_context>

<pallas_src>
import jax
import jax.numpy as jnp
from jax.experimental import pallas as pl
from jax.experimental.pallas import tpu as pltpu

SIZE = 512
NUM_CLASSES = 6
NUM_GGNN_LAYERS = 3
NC_PAD = 128  # NUM_CLASSES padded to one lane width


def _round_up(x, m):
    return (x + m - 1) // m * m


# --------------------------------------------------------------------------
# Fused kernel: feature heads + GatedGraphConv(3 layers) + sigmoid + fc.
#   step 0   : h0 = relu(feat @ W_head)          (head biases folded in)
#   each step: gi = (A @ h) @ (W_l @ W_ih) + b_ih ;  gh = h @ W_hh + b_hh
#              r = sig(gi_r+gh_r); z = sig(gi_z+gh_z)
#              n = tanh(gi_n + r*gh_n);  h = (1-z)*n + z*h
#   last step: res = sigmoid(h) ;  logits = res @ W_fc + b_fc
# --------------------------------------------------------------------------
def _group_graph_kernel(feat_ref, a_ref, whead_ref, wmsg_ref, whh_ref,
                        bih_ref, bhh_ref, wfc_ref, bfc_ref,
                        h0_ref, res_ref, logits_ref, h_scr):
    step = pl.program_id(0)

    @pl.when(step == 0)
    def _init():
        # Feature heads (tiny K); biases live in the indicator columns.
        h0 = jnp.dot(feat_ref[...].astype(jnp.bfloat16), whead_ref[...],
                     preferred_element_type=jnp.float32)
        h0 = jnp.maximum(h0, 0.0)
        h0_ref[...] = h0
        h_scr[...] = h0

    h = h_scr[...]                       # f32 GRU state, carried across layers
    h_bf16 = h.astype(jnp.bfloat16)      # single cast, reused for both dots

    # m = A @ (h @ W_l); gi = m @ W_ih + b_ih  ==  (A@h) @ (W_l@W_ih) + b_ih
    ah = jnp.dot(a_ref[...], h_bf16, preferred_element_type=jnp.float32)
    gi = jnp.dot(ah.astype(jnp.bfloat16), wmsg_ref[0],
                 preferred_element_type=jnp.float32) + bih_ref[...]
    gh = jnp.dot(h_bf16, whh_ref[...],
                 preferred_element_type=jnp.float32) + bhh_ref[...]

    # GRUCell — state and elementwise math stay in f32.
    r = jax.nn.sigmoid(gi[:, :SIZE] + gh[:, :SIZE])
    z = jax.nn.sigmoid(gi[:, SIZE:2 * SIZE] + gh[:, SIZE:2 * SIZE])
    n = jnp.tanh(gi[:, 2 * SIZE:] + r * gh[:, 2 * SIZE:])
    h_new = (1.0 - z) * n + z * h
    h_scr[...] = h_new

    @pl.when(step == pl.num_programs(0) - 1)
    def _final():
        res = jax.nn.sigmoid(h_new)
        res_ref[...] = res
        logits_ref[...] = (
            jnp.dot(res.astype(jnp.bfloat16), wfc_ref[...],
                    preferred_element_type=jnp.float32) + bfc_ref[...])


def _cost_estimate(n_pad, k_aug):
    flops = (
        2 * n_pad * k_aug * SIZE
        + NUM_GGNN_LAYERS * (2 * n_pad * n_pad * SIZE
                             + 2 * 2 * n_pad * SIZE * 3 * SIZE)
        + 2 * n_pad * SIZE * NC_PAD)
    transcendentals = NUM_GGNN_LAYERS * n_pad * 3 * SIZE + n_pad * SIZE
    bytes_accessed = (
        n_pad * k_aug * 4                      # node features (f32)
        + n_pad * n_pad * 2                    # adjacency (bf16)
        + k_aug * SIZE * 2                     # w_head (bf16)
        + NUM_GGNN_LAYERS * SIZE * 3 * SIZE * 2  # w_msg (bf16)
        + SIZE * 3 * SIZE * 2                  # w_hh (bf16)
        + 2 * 3 * SIZE * 4                     # b_ih, b_hh
        + SIZE * NC_PAD * 2 + NC_PAD * 4       # w_fc, b_fc
        + 2 * n_pad * SIZE * 4 + n_pad * NC_PAD * 4)  # outputs
    return pl.CostEstimate(flops=flops, transcendentals=transcendentals,
                           bytes_accessed=bytes_accessed)


def group_graph_pallas(kparams, node_feat, adj_bf16):
    n_pad, k_aug = node_feat.shape
    c2 = lambda l: (0, 0)  # constant (resident) 2-D blocks
    return pl.pallas_call(
        _group_graph_kernel,
        out_shape=(
            jax.ShapeDtypeStruct((n_pad, SIZE), jnp.float32),    # h0 (head outputs)
            jax.ShapeDtypeStruct((n_pad, SIZE), jnp.float32),    # sigmoid(result)
            jax.ShapeDtypeStruct((n_pad, NC_PAD), jnp.float32),  # fc logits
        ),
        grid_spec=pltpu.PrefetchScalarGridSpec(
            num_scalar_prefetch=0,
            grid=(NUM_GGNN_LAYERS,),
            in_specs=[
                pl.BlockSpec((n_pad, k_aug), c2),                    # node feats (f32)
                pl.BlockSpec((n_pad, n_pad), c2),                    # adjacency (bf16)
                pl.BlockSpec((k_aug, SIZE), c2),                     # W_head (bf16)
                pl.BlockSpec((1, SIZE, 3 * SIZE), lambda l: (l, 0, 0)),  # W_l@W_ih slab, streamed per layer
                pl.BlockSpec((SIZE, 3 * SIZE), c2),                  # W_hh (bf16)
                pl.BlockSpec((1, 3 * SIZE), c2),                     # b_ih
                pl.BlockSpec((1, 3 * SIZE), c2),                     # b_hh
                pl.BlockSpec((SIZE, NC_PAD), c2),                    # W_fc (bf16)
                pl.BlockSpec((1, NC_PAD), c2),                       # b_fc
            ],
            out_specs=(
                pl.BlockSpec((n_pad, SIZE), c2),
                pl.BlockSpec((n_pad, SIZE), c2),
                pl.BlockSpec((n_pad, NC_PAD), c2),
            ),
            scratch_shapes=[pltpu.VMEM((n_pad, SIZE), jnp.float32)],  # carried GRU state
        ),
        compiler_params=pltpu.CompilerParams(
            dimension_semantics=("arbitrary",),
            vmem_limit_bytes=16 * 1024 * 1024),
        cost_estimate=_cost_estimate(n_pad, k_aug),
    )(node_feat, adj_bf16, kparams["w_head"], kparams["w_msg"], kparams["w_hh"],
      kparams["b_ih"], kparams["b_hh"], kparams["w_fc"], kparams["b_fc"])


# --------------------------------------------------------------------------
# Pure-JAX reference (same math, f32) for a tolerance-asserted parity check.
# --------------------------------------------------------------------------
def _group_graph_ref(kparams, node_feat, adj):
    w_head = kparams["w_head"].astype(jnp.float32)
    w_msg = kparams["w_msg"].astype(jnp.float32)
    w_hh = kparams["w_hh"].astype(jnp.float32)
    w_fc = kparams["w_fc"].astype(jnp.float32)
    h = jnp.maximum(node_feat @ w_head, 0.0)
    h0 = h
    for l in range(NUM_GGNN_LAYERS):
        gi = (adj @ h) @ w_msg[l] + kparams["b_ih"]
        gh = h @ w_hh + kparams["b_hh"]
        r = jax.nn.sigmoid(gi[:, :SIZE] + gh[:, :SIZE])
        z = jax.nn.sigmoid(gi[:, SIZE:2 * SIZE] + gh[:, SIZE:2 * SIZE])
        n = jnp.tanh(gi[:, 2 * SIZE:] + r * gh[:, 2 * SIZE:])
        h = (1.0 - z) * n + z * h
    res = jax.nn.sigmoid(h)
    logits = res @ w_fc + kparams["b_fc"]
    return h0, res, logits


# --------------------------------------------------------------------------
# groupGraph.forward (glue: pooling, graph assembly, row filtering)
# --------------------------------------------------------------------------
def group_graph_forward(kparams, pair, person_a, person_b, bbox, full_im,
                        img_rel_num, edge_index):
    # TODO(synk): the real `person_pair` / `resnet50` backbones are external
    # modules not provided here; stood in by GAP + linear heads producing the
    # same (num_pairs, SIZE) / (batch, SIZE) feature shapes.  nn.Dropout() is
    # identity at inference time.
    pp_feat = jnp.concatenate(
        [pair.mean(axis=(2, 3)), person_a.mean(axis=(2, 3)),
         person_b.mean(axis=(2, 3)), bbox.astype(jnp.float32)], axis=1)
    grp_feat = full_im.mean(axis=(2, 3))
    P, k_pp = pp_feat.shape
    B, c_in = grp_feat.shape

    # Augmented raw node features: [pp cols | grp cols | is_pair | is_group].
    # The two indicator columns select the proper head bias inside the kernel.
    pair_rows = jnp.concatenate(
        [pp_feat, jnp.zeros((P, c_in), jnp.float32),
         jnp.ones((P, 1), jnp.float32), jnp.zeros((P, 1), jnp.float32)], axis=1)
    grp_rows = jnp.concatenate(
        [jnp.zeros((B, k_pp), jnp.float32), grp_feat,
         jnp.zeros((B, 1), jnp.float32), jnp.ones((B, 1), jnp.float32)], axis=1)

    # Assemble input_graph exactly like the torch loop:
    #   [pairs of img 0] + [group feat 0] + [pairs of img 1] + [group feat 1] ...
    feats, pair_idx, grp_idx = [], [], []
    count, node = 0, 0
    for b, rel in enumerate(img_rel_num):
        feats.append(pair_rows[count:count + rel])
        pair_idx.extend(range(node, node + rel))
        count += rel
        node += rel
        feats.append(grp_rows[b:b + 1])
        grp_idx.append(node)
        node += 1
    node_feat = jnp.concatenate(feats, axis=0)
    n = node_feat.shape[0]
    n_pad = _round_up(n, 8)
    node_feat = jnp.zeros((n_pad, node_feat.shape[1]), jnp.float32).at[:n].set(node_feat)

    # Dense adjacency: A[target, source] = 1 (message j -> i, aggr='add').
    # Padded rows/cols stay zero, so pad nodes cannot contaminate real nodes.
    src, tgt = edge_index[0], edge_index[1]
    adj = jnp.zeros((n_pad, n_pad), jnp.float32).at[tgt, src].add(1.0)

    h0, res, logits = group_graph_pallas(kparams, node_feat, adj.astype(jnp.bfloat16))

    # Parity check vs pure-JAX f32 reference (bf16 weight/activation path).
    h0_r, res_r, logits_r = _group_graph_ref(kparams, node_feat, adj)
    assert float(jnp.max(jnp.abs(h0 - h0_r))) < 0.15
    assert float(jnp.max(jnp.abs(res - res_r))) < 0.15
    assert float(jnp.max(jnp.abs(logits - logits_r))) < 0.15

    grp_idx = jnp.asarray(grp_idx, jnp.int32)
    keep = jnp.asarray(pair_idx, jnp.int32)     # drop trailing group node per image
    group_feature = h0[grp_idx]                 # == self.group(full_im)
    result_filter = res[keep]
    fc_groupClass = logits[keep][:, :NUM_CLASSES]   # row-select commutes with fc
    return fc_groupClass, group_feature, result_filter


# --------------------------------------------------------------------------
# Parameters: raw (torch-like) init + one-time kernel-ready preprocessing.
# --------------------------------------------------------------------------
def init_params(key, in_channels):
    ks = jax.random.split(key, 10)
    s = 0.05
    return {
        "w_pp": s * jax.random.normal(ks[0], (3 * in_channels + 4, SIZE), jnp.float32),
        "b_pp": s * jax.random.normal(ks[1], (SIZE,), jnp.float32),
        "w_grp": s * jax.random.normal(ks[2], (in_channels, SIZE), jnp.float32),
        "b_grp": s * jax.random.normal(ks[3], (SIZE,), jnp.float32),
        "w_ggnn": s * jax.random.normal(ks[4], (NUM_GGNN_LAYERS, SIZE, SIZE), jnp.float32),
        "wih": s * jax.random.normal(ks[5], (SIZE, 3 * SIZE), jnp.float32),
        "whh": s * jax.random.normal(ks[6], (SIZE, 3 * SIZE), jnp.float32),
        "bih": s * jax.random.normal(ks[7], (1, 3 * SIZE), jnp.float32),
        "bhh": s * jax.random.normal(ks[8], (1, 3 * SIZE), jnp.float32),
        "w_fc": s * jax.random.normal(ks[9], (SIZE, NUM_CLASSES), jnp.float32),
        "b_fc": jnp.zeros((NUM_CLASSES,), jnp.float32),
    }


def prepare_params(params):
    """One-time weight preprocessing: fold W_l into W_ih, fold head biases into
    the head weight via indicator rows, pad fc to 128 lanes, cast big weights
    to bf16 (accumulation stays f32 inside the kernel)."""
    w_msg = jnp.einsum("lij,jk->lik", params["w_ggnn"], params["wih"])  # (L, S, 3S)
    w_fc = jnp.zeros((SIZE, NC_PAD), jnp.float32).at[:, :NUM_CLASSES].set(params["w_fc"])
    b_fc = jnp.zeros((1, NC_PAD), jnp.float32).at[0, :NUM_CLASSES].set(params["b_fc"])
    w_head = jnp.concatenate(
        [params["w_pp"], params["w_grp"],
         params["b_pp"][None, :], params["b_grp"][None, :]], axis=0)
    return {
        "w_head": w_head.astype(jnp.bfloat16),
        "w_msg": w_msg.astype(jnp.bfloat16),
        "w_hh": params["whh"].astype(jnp.bfloat16),
        "b_ih": params["bih"].astype(jnp.float32),
        "b_hh": params["bhh"].astype(jnp.float32),
        "w_fc": w_fc.astype(jnp.bfloat16),
        "b_fc": b_fc,
    }


if __name__ == "__main__":
    key = jax.random.PRNGKey(0)
    k_in, k_par = jax.random.split(key)
    kp, ka, kb, kbox, kim = jax.random.split(k_in, 5)

    B = 2                      # images in the batch
    C, H, W = 4, 16, 16        # small NCHW images
    img_rel_num = [3, 2]       # person-pairs per image (static python ints)
    P = sum(img_rel_num)       # total person pairs = 5

    pair = jax.random.normal(kp, (P, C, H, W), jnp.float32)
    person_a = jax.random.normal(ka, (P, C, H, W), jnp.float32)
    person_b = jax.random.normal(kb, (P, C, H, W), jnp.float32)
    bbox = jax.random.uniform(kbox, (P, 4), jnp.float32)
    full_im = jax.random.normal(kim, (B, C, H, W), jnp.float32)

    # edge_index: fully connected (both directions, no self loops) within each
    # image's subgraph of (rel pair nodes + 1 group node).
    edges = []
    count = 0
    for rel in img_rel_num:
        node_ids = list(range(count, count + rel + 1))
        for i in node_ids:
            for j in node_ids:
                if i != j:
                    edges.append((i, j))
        count += rel + 1
    edge_index = jnp.asarray(edges, jnp.int32).T  # (2, E), row0=src, row1=tgt

    params = prepare_params(init_params(k_par, C))

    fc_groupClass, group_feature, result_filter = group_graph_forward(
        params, pair, person_a, person_b, bbox, full_im, img_rel_num, edge_index)

    jax.block_until_ready((fc_groupClass, group_feature, result_filter))

    assert fc_groupClass.shape == (P, NUM_CLASSES)
    assert group_feature.shape == (B, SIZE)
    assert result_filter.shape == (P, SIZE)
    assert bool(jnp.all(jnp.isfinite(fc_groupClass)))
    assert bool(jnp.all(jnp.isfinite(group_feature)))
    assert bool(jnp.all(jnp.isfinite(result_filter)))
    print("KERNEL_OK")
</pallas_src>

<mosaic_0001>
module attributes {stable_mosaic.version = 11 : i64} {
  func.func @_group_graph_kernel(%arg0: i32, %arg1: memref<8x22xf32, #tpu.memory_space<vmem>>, %arg2: memref<8x8xbf16, #tpu.memory_space<vmem>>, %arg3: memref<22x512xbf16, #tpu.memory_space<vmem>>, %arg4: memref<1x512x1536xbf16, #tpu.memory_space<vmem>>, %arg5: memref<512x1536xbf16, #tpu.memory_space<vmem>>, %arg6: memref<1x1536xf32, #tpu.memory_space<vmem>>, %arg7: memref<1x1536xf32, #tpu.memory_space<vmem>>, %arg8: memref<512x128xbf16, #tpu.memory_space<vmem>>, %arg9: memref<1x128xf32, #tpu.memory_space<vmem>>, %arg10: memref<8x512xf32, #tpu.memory_space<vmem>>, %arg11: memref<8x512xf32, #tpu.memory_space<vmem>>, %arg12: memref<8x128xf32, #tpu.memory_space<vmem>>, %arg13: memref<8x512xf32, #tpu.memory_space<vmem>>) attributes {dimension_semantics = [#tpu.dimension_semantics<arbitrary>], iteration_bounds = array<i64: 3>, scalar_prefetch = 0 : i64, scratch_operands = 1 : i64, tpu.core_type = #tpu.core_type<tc>, window_params = [{pipeline_mode = #tpu.pipeline_mode<synchronous>, transform_indices = @transform_0, window_bounds = array<i64: 8, 22>}, {pipeline_mode = #tpu.pipeline_mode<synchronous>, transform_indices = @transform_1, window_bounds = array<i64: 8, 8>}, {pipeline_mode = #tpu.pipeline_mode<synchronous>, transform_indices = @transform_2, window_bounds = array<i64: 22, 512>}, {transform_indices = @transform_3, window_bounds = array<i64: 1, 512, 1536>}, {pipeline_mode = #tpu.pipeline_mode<synchronous>, transform_indices = @transform_4, window_bounds = array<i64: 512, 1536>}, {pipeline_mode = #tpu.pipeline_mode<synchronous>, transform_indices = @transform_5, window_bounds = array<i64: 1, 1536>}, {pipeline_mode = #tpu.pipeline_mode<synchronous>, transform_indices = @transform_6, window_bounds = array<i64: 1, 1536>}, {pipeline_mode = #tpu.pipeline_mode<synchronous>, transform_indices = @transform_7, window_bounds = array<i64: 512, 128>}, {pipeline_mode = #tpu.pipeline_mode<synchronous>, transform_indices = @transform_8, window_bounds = array<i64: 1, 128>}, {pipeline_mode = #tpu.pipeline_mode<synchronous>, transform_indices = @transform_9, window_bounds = array<i64: 8, 512>}, {pipeline_mode = #tpu.pipeline_mode<synchronous>, transform_indices = @transform_10, window_bounds = array<i64: 8, 512>}, {pipeline_mode = #tpu.pipeline_mode<synchronous>, transform_indices = @transform_11, window_bounds = array<i64: 8, 128>}]} {
    %c0_i32 = arith.constant 0 : i32
    %0 = arith.cmpi eq, %arg0, %c0_i32 : i32
    %1 = arith.extui %0 : i1 to i32
    %c0_i32_0 = arith.constant 0 : i32
    %2 = arith.cmpi ne, %1, %c0_i32_0 : i32
    scf.if %2 {
      %c0_21 = arith.constant 0 : index
      %c0_22 = arith.constant 0 : index
      %49 = vector.load %arg1[%c0_21, %c0_22] : memref<8x22xf32, #tpu.memory_space<vmem>>, vector<8x22xf32>
      %50 = arith.truncf %49 : vector<8x22xf32> to vector<8x22xbf16>
      %c0_23 = arith.constant 0 : index
      %c0_24 = arith.constant 0 : index
      %51 = vector.load %arg3[%c0_23, %c0_24] : memref<22x512xbf16, #tpu.memory_space<vmem>>, vector<22x512xbf16>
      %cst_25 = arith.constant dense<0.000000e+00> : vector<8x512xf32>
      %52 = tpu.matmul %50, %51, %cst_25 {dimension_numbers = #tpu.dot_dimension_numbers<[1], [0], [0], [1], [0, 0, 1, 1], [], []>} : vector<8x22xbf16>, vector<22x512xbf16>, vector<8x512xf32> -> vector<8x512xf32>
      %cst_26 = arith.constant 0.000000e+00 : f32
      %53 = vector.broadcast %cst_26 : f32 to vector<8x512xf32>
      %54 = arith.maximumf %52, %53 : vector<8x512xf32>
      %c0_27 = arith.constant 0 : index
      %c0_28 = arith.constant 0 : index
      %55 = vector.load %arg10[%c0_27, %c0_28] : memref<8x512xf32, #tpu.memory_space<vmem>>, vector<8x512xf32>
      tpu.vector_store %arg10[%c0_27, %c0_28], %54 {strides = array<i32>} : memref<8x512xf32, #tpu.memory_space<vmem>>, vector<8x512xf32>,
      %c0_29 = arith.constant 0 : index
      %c0_30 = arith.constant 0 : index
      %56 = vector.load %arg13[%c0_29, %c0_30] : memref<8x512xf32, #tpu.memory_space<vmem>>, vector<8x512xf32>
      tpu.vector_store %arg13[%c0_29, %c0_30], %54 {strides = array<i32>} : memref<8x512xf32, #tpu.memory_space<vmem>>, vector<8x512xf32>,
    } else {
    }
    %c0 = arith.constant 0 : index
    %c0_1 = arith.constant 0 : index
    %3 = vector.load %arg13[%c0, %c0_1] : memref<8x512xf32, #tpu.memory_space<vmem>>, vector<8x512xf32>
    %4 = arith.truncf %3 : vector<8x512xf32> to vector<8x512xbf16>
    %c0_2 = arith.constant 0 : index
    %c0_3 = arith.constant 0 : index
    %5 = vector.load %arg2[%c0_2, %c0_3] : memref<8x8xbf16, #tpu.memory_space<vmem>>, vector<8x8xbf16>
    %cst = arith.constant dense<0.000000e+00> : vector<8x512xf32>
    %6 = tpu.matmul %5, %4, %cst {dimension_numbers = #tpu.dot_dimension_numbers<[1], [0], [0], [1], [0, 0, 1, 1], [], []>} : vector<8x8xbf16>, vector<8x512xbf16>, vector<8x512xf32> -> vector<8x512xf32>
    %7 = arith.truncf %6 : vector<8x512xf32> to vector<8x512xbf16>
    %c0_4 = arith.constant 0 : index
    %c0_5 = arith.constant 0 : index
    %c0_6 = arith.constant 0 : index
    %8 = vector.load %arg4[%c0_4, %c0_5, %c0_6] : memref<1x512x1536xbf16, #tpu.memory_space<vmem>>, vector<1x512x1536xbf16>
    %9 = vector.shape_cast %8 : vector<1x512x1536xbf16> to vector<512x1536xbf16>
    %cst_7 = arith.constant dense<0.000000e+00> : vector<8x1536xf32>
    %10 = tpu.matmul %7, %9, %cst_7 {dimension_numbers = #tpu.dot_dimension_numbers<[1], [0], [0], [1], [0, 0, 1, 1], [], []>} : vector<8x512xbf16>, vector<512x1536xbf16>, vector<8x1536xf32> -> vector<8x1536xf32>
    %c0_8 = arith.constant 0 : index
    %c0_9 = arith.constant 0 : index
    %11 = vector.load %arg6[%c0_8, %c0_9] : memref<1x1536xf32, #tpu.memory_space<vmem>>, vector<1x1536xf32>
    %12 = vector.broadcast %11 : vector<1x1536xf32> to vector<8x1536xf32>
    %13 = arith.addf %10, %12 : vector<8x1536xf32>
    %c0_10 = arith.constant 0 : index
    %c0_11 = arith.constant 0 : index
    %14 = vector.load %arg5[%c0_10, %c0_11] : memref<512x1536xbf16, #tpu.memory_space<vmem>>, vector<512x1536xbf16>
    %cst_12 = arith.constant dense<0.000000e+00> : vector<8x1536xf32>
    %15 = tpu.matmul %4, %14, %cst_12 {dimension_numbers = #tpu.dot_dimension_numbers<[1], [0], [0], [1], [0, 0, 1, 1], [], []>} : vector<8x512xbf16>, vector<512x1536xbf16>, vector<8x1536xf32> -> vector<8x1536xf32>
    %c0_13 = arith.constant 0 : index
    %c0_14 = arith.constant 0 : index
    %16 = vector.load %arg7[%c0_13, %c0_14] : memref<1x1536xf32, #tpu.memory_space<vmem>>, vector<1x1536xf32>
    %17 = vector.broadcast %16 : vector<1x1536xf32> to vector<8x1536xf32>
    %18 = arith.addf %15, %17 : vector<8x1536xf32>
    %19 = vector.extract_strided_slice %13 {offsets = [0, 0], sizes = [8, 512], strides = [1, 1]} : vector<8x1536xf32> to vector<8x512xf32>
    %20 = vector.extract_strided_slice %18 {offsets = [0, 0], sizes = [8, 512], strides = [1, 1]} : vector<8x1536xf32> to vector<8x512xf32>
    %21 = arith.addf %19, %20 : vector<8x512xf32>
    %22 = arith.negf %21 : vector<8x512xf32>
    %23 = math.exp %22 : vector<8x512xf32>
    %cst_15 = arith.constant 1.000000e+00 : f32
    %24 = vector.broadcast %cst_15 : f32 to vector<8x512xf32>
    %25 = arith.addf %24, %23 : vector<8x512xf32>
    %26 = arith.divf %24, %25 : vector<8x512xf32>
    %27 = vector.extract_strided_slice %13 {offsets = [0, 512], sizes = [8, 512], strides = [1, 1]} : vector<8x1536xf32> to vector<8x512xf32>
    %28 = vector.extract_strided_slice %18 {offsets = [0, 512], sizes = [8, 512], strides = [1, 1]} : vector<8x1536xf32> to vector<8x512xf32>
    %29 = arith.addf %27, %28 : vector<8x512xf32>
    %30 = arith.negf %29 : vector<8x512xf32>
    %31 = math.exp %30 : vector<8x512xf32>
    %cst_16 = arith.constant 1.000000e+00 : f32
    %32 = vector.broadcast %cst_16 : f32 to vector<8x512xf32>
    %33 = arith.addf %32, %31 : vector<8x512xf32>
    %34 = arith.divf %32, %33 : vector<8x512xf32>
    %35 = vector.extract_strided_slice %13 {offsets = [0, 1024], sizes = [8, 512], strides = [1, 1]} : vector<8x1536xf32> to vector<8x512xf32>
    %36 = vector.extract_strided_slice %18 {offsets = [0, 1024], sizes = [8, 512], strides = [1, 1]} : vector<8x1536xf32> to vector<8x512xf32>
    %37 = arith.mulf %26, %36 : vector<8x512xf32>
    %38 = arith.addf %35, %37 : vector<8x512xf32>
    %39 = math.tanh %38 : vector<8x512xf32>
    %cst_17 = arith.constant 1.000000e+00 : f32
    %40 = vector.broadcast %cst_17 : f32 to vector<8x512xf32>
    %41 = arith.subf %40, %34 : vector<8x512xf32>
    %42 = arith.mulf %41, %39 : vector<8x512xf32>
    %43 = arith.mulf %34, %3 : vector<8x512xf32>
    %44 = arith.addf %42, %43 : vector<8x512xf32>
    %c0_18 = arith.constant 0 : index
    %c0_19 = arith.constant 0 : index
    %45 = vector.load %arg13[%c0_18, %c0_19] : memref<8x512xf32, #tpu.memory_space<vmem>>, vector<8x512xf32>
    tpu.vector_store %arg13[%c0_18, %c0_19], %44 {strides = array<i32>} : memref<8x512xf32, #tpu.memory_space<vmem>>, vector<8x512xf32>,
    %c2_i32 = arith.constant 2 : i32
    %46 = arith.cmpi eq, %arg0, %c2_i32 : i32
    %47 = arith.extui %46 : i1 to i32
    %c0_i32_20 = arith.constant 0 : i32
    %48 = arith.cmpi ne, %47, %c0_i32_20 : i32
    scf.if %48 {
      %49 = arith.negf %44 : vector<8x512xf32>
      %50 = math.exp %49 : vector<8x512xf32>
      %cst_21 = arith.constant 1.000000e+00 : f32
      %51 = vector.broadcast %cst_21 : f32 to vector<8x512xf32>
      %52 = arith.addf %51, %50 : vector<8x512xf32>
      %53 = arith.divf %51, %52 : vector<8x512xf32>
      %c0_22 = arith.constant 0 : index
      %c0_23 = arith.constant 0 : index
      %54 = vector.load %arg11[%c0_22, %c0_23] : memref<8x512xf32, #tpu.memory_space<vmem>>, vector<8x512xf32>
      tpu.vector_store %arg11[%c0_22, %c0_23], %53 {strides = array<i32>} : memref<8x512xf32, #tpu.memory_space<vmem>>, vector<8x512xf32>,
      %55 = arith.truncf %53 : vector<8x512xf32> to vector<8x512xbf16>
      %c0_24 = arith.constant 0 : index
      %c0_25 = arith.constant 0 : index
      %56 = vector.load %arg8[%c0_24, %c0_25] : memref<512x128xbf16, #tpu.memory_space<vmem>>, vector<512x128xbf16>
      %cst_26 = arith.constant dense<0.000000e+00> : vector<8x128xf32>
      %57 = tpu.matmul %55, %56, %cst_26 {dimension_numbers = #tpu.dot_dimension_numbers<[1], [0], [0], [1], [0, 0, 1, 1], [], []>} : vector<8x512xbf16>, vector<512x128xbf16>, vector<8x128xf32> -> vector<8x128xf32>
      %c0_27 = arith.constant 0 : index
      %c0_28 = arith.constant 0 : index
      %58 = vector.load %arg9[%c0_27, %c0_28] : memref<1x128xf32, #tpu.memory_space<vmem>>, vector<1x128xf32>
      %59 = vector.broadcast %58 : vector<1x128xf32> to vector<8x128xf32>
      %60 = arith.addf %57, %59 : vector<8x128xf32>
      %c0_29 = arith.constant 0 : index
      %c0_30 = arith.constant 0 : index
      %61 = vector.load %arg12[%c0_29, %c0_30] : memref<8x128xf32, #tpu.memory_space<vmem>>, vector<8x128xf32>
      tpu.vector_store %arg12[%c0_29, %c0_30], %60 {strides = array<i32>} : memref<8x128xf32, #tpu.memory_space<vmem>>, vector<8x128xf32>,
    } else {
    }
    return
  }
  func.func @transform_0(%arg0: i32) -> (i32, i32) {
    %c0_i32 = arith.constant 0 : i32
    %c0_i32_0 = arith.constant 0 : i32
    %c0_i32_1 = arith.constant 0 : i32
    return %c0_i32, %c0_i32_0 : i32, i32
  }
  func.func @transform_1(%arg0: i32) -> (i32, i32) {
    %c0_i32 = arith.constant 0 : i32
    %c0_i32_0 = arith.constant 0 : i32
    %c0_i32_1 = arith.constant 0 : i32
    return %c0_i32, %c0_i32_0 : i32, i32
  }
  func.func @transform_2(%arg0: i32) -> (i32, i32) {
    %c0_i32 = arith.constant 0 : i32
    %c0_i32_0 = arith.constant 0 : i32
    %c0_i32_1 = arith.constant 0 : i32
    return %c0_i32, %c0_i32_0 : i32, i32
  }
  func.func @transform_3(%arg0: i32) -> (i32, i32, i32) {
    %c0_i32 = arith.constant 0 : i32
    %c0_i32_0 = arith.constant 0 : i32
    %c0_i32_1 = arith.constant 0 : i32
    return %arg0, %c0_i32, %c0_i32_0 : i32, i32, i32
  }
  func.func @transform_4(%arg0: i32) -> (i32, i32) {
    %c0_i32 = arith.constant 0 : i32
    %c0_i32_0 = arith.constant 0 : i32
    %c0_i32_1 = arith.constant 0 : i32
    return %c0_i32, %c0_i32_0 : i32, i32
  }
  func.func @transform_5(%arg0: i32) -> (i32, i32) {
    %c0_i32 = arith.constant 0 : i32
    %c0_i32_0 = arith.constant 0 : i32
    %c0_i32_1 = arith.constant 0 : i32
    return %c0_i32, %c0_i32_0 : i32, i32
  }
  func.func @transform_6(%arg0: i32) -> (i32, i32) {
    %c0_i32 = arith.constant 0 : i32
    %c0_i32_0 = arith.constant 0 : i32
    %c0_i32_1 = arith.constant 0 : i32
    return %c0_i32, %c0_i32_0 : i32, i32
  }
  func.func @transform_7(%arg0: i32) -> (i32, i32) {
    %c0_i32 = arith.constant 0 : i32
    %c0_i32_0 = arith.constant 0 : i32
    %c0_i32_1 = arith.constant 0 : i32
    return %c0_i32, %c0_i32_0 : i32, i32
  }
  func.func @transform_8(%arg0: i32) -> (i32, i32) {
    %c0_i32 = arith.constant 0 : i32
    %c0_i32_0 = arith.constant 0 : i32
    %c0_i32_1 = arith.constant 0 : i32
    return %c0_i32, %c0_i32_0 : i32, i32
  }
  func.func @transform_9(%arg0: i32) -> (i32, i32) {
    %c0_i32 = arith.constant 0 : i32
    %c0_i32_0 = arith.constant 0 : i32
    %c0_i32_1 = arith.constant 0 : i32
    return %c0_i32, %c0_i32_0 : i32, i32
  }
  func.func @transform_10(%arg0: i32) -> (i32, i32) {
    %c0_i32 = arith.constant 0 : i32
    %c0_i32_0 = arith.constant 0 : i32
    %c0_i32_1 = arith.constant 0 : i32
    return %c0_i32, %c0_i32_0 : i32, i32
  }
  func.func @transform_11(%arg0: i32) -> (i32, i32) {
    %c0_i32 = arith.constant 0 : i32
    %c0_i32_0 = arith.constant 0 : i32
    %c0_i32_1 = arith.constant 0 : i32
    return %c0_i32, %c0_i32_0 : i32, i32
  }
}

</mosaic_0001>

<bundles_post_ra>
// kernel: tpu_custom_call.1
= control target key start
LH: loop header
LB: loop body
LE: loop exit
PB: predicated region body
PF: predicated region fallthrough
CT: control target
= control target key end

     0   :  { %s13519_s0 = inlined_call_operand.hbm [shape: f32[8,22], index: 0, kind: input, shape index: {}]   ;;  %s13520_s1 = inlined_call_operand.hbm [shape: bf16[8,8], index: 1, kind: input, shape index: {}]   ;;  %s13521_s2 = inlined_call_operand.hbm [shape: bf16[22,512], index: 2, kind: input, shape index: {}]   ;;  %s13522_s3 = inlined_call_operand.hbm [shape: bf16[3,512,1536], index: 3, kind: input, shape index: {}]   ;;  %s13523_s4 = inlined_call_operand.hbm [shape: bf16[512,1536], index: 4, kind: input, shape index: {}]   ;;  %s13524_s5 = inlined_call_operand.hbm [shape: f32[1,1536], index: 5, kind: input, shape index: {}]   ;;  %s13525_s6 = inlined_call_operand.hbm [shape: f32[1,1536], index: 6, kind: input, shape index: {}]   ;;  %s13526_s7 = inlined_call_operand.hbm [shape: bf16[512,128], index: 7, kind: input, shape index: {}]   ;;  %s13527_s8 = inlined_call_operand.hbm [shape: f32[1,128], index: 8, kind: input, shape index: {}]   ;;  %s13528_s9 = inlined_call_operand.hbm [shape: f32[8,512], index: 9, kind: output, shape index: {0}]   ;;  %s13529_s10 = inlined_call_operand.hbm [shape: f32[8,512], index: 10, kind: output, shape index: {1}]   ;;  %s13530_s11 = inlined_call_operand.hbm [shape: f32[8,128], index: 11, kind: output, shape index: {2}]  }
   0x1   :  { %13533 = sst [smem:[#allocation30_spill]] %s13519_s0 }
   0x2   :  { %13534 = sst [smem:[#allocation31_spill]] %s13520_s1 }
   0x3   :  { %13535 = sst [smem:[#allocation32_spill]] %s13523_s4 }
   0x4   :  { %17 = vsyncpa [#allocation4], 0 }
   0x5   :  { %18 = vsyncpa [#allocation7], 0 }
   0x6   :  { %19 = vsyncpa [#allocation10], 0 }
   0x7   :  { %21 = vsyncpa [#allocation10 + $0x1], 0 }
   0x8   :  { %22 = vsyncpa [#allocation13], 0 }
   0x9   :  { %23 = vsyncpa [#allocation16], 0 }
   0xa   :  { %24 = vsyncpa [#allocation5], 0 }
   0xb   :  { %25 = vsyncpa [#allocation20], 0  ;;  %s12187_s17 = smov 0   ;;  %s12189_s18 = smov 0  }
   0xc   :  { %s12191_s19 = smov 0   ;;  %s12193_s20 = smov 0  }
   0xd LB: > { %s13536_s1 = sld [smem:[#allocation31_spill]]  ;;  %s12211_s24 = sadd.s32 4294967295, %s12108_s20   ;;  %s12108_s20 = sphi %s12193_s20, %s13560_s20   ;;  %s12104_s19 = sphi %s12191_s19, %s13559_s19   ;;  %s12100_s18 = sphi %s12189_s18, %s13558_s18   ;;  %s12096_s17 = sphi %s12187_s17, %s13557_s17  }
   0xe   : > { %p7409_p0 = scmp.ge.s32.totalorder %s12108_s20, 1  ;;  %p115_p1 = scmp.eq.s32.totalorder %s12211_s24, 0 }
   0xf   : > { %p293_p2 = scmp.lt.s32.totalorder %s12108_s20, 4  ;;  %p7410_p3 = scmp.ne.s32.totalorder %s12211_s24, 0 }
  0x10   : > { %s12110_s26 = smov [#allocation6]   ;;  %s13538_s4 = sld [smem:[#allocation32_spill]] }
  0x11   : > { %p12217_p4 = pnand %p7409_p0, %p293_p2  ;;  %s319_s27 = sshll.u32 %s12110_s26, 4  ;;  %s320_s27 = int_to_ptr.vmem [resolvable:$true] %s319_s27 }
  0x12   : > { %s12111_s13 = smov [#allocation11]   ;;  %s13531_s15 = smov 768  }
  0x13   : > { %s317_s23 = sshll.u32 %s13536_s1, 4  ;;  %p11528_p5 = pneg %p12217_p4  ;;  %s318_s23 = int_to_ptr.hbm [resolvable:$true] %s317_s23 }
  0x14   : > { %s344_s14 = sshll.u32 %s12111_s13, 4  ;;  %s13532_s16 = smov 48   ;;  %s345_s14 = int_to_ptr.vmem [resolvable:$true] %s344_s14 }
  0x15   : > { %p12228_p6 = pnand %p11528_p5, %p115_p1  ;;  %s357_s26 = sshll.u32 %s13524_s5, 4  ;;  %s358_s26 = int_to_ptr.hbm [resolvable:$true] %s357_s26 }
  0x16   : > { %s342_s30 = sshll.u32 %s13538_s4, 4  ;;  %s12114_s28 = smov [#allocation12]   ;;  %s343_s30 = int_to_ptr.hbm [resolvable:$true] %s342_s30 }
  0x17   : > { %11534 = dma.hbm_to_vmem [thread:$0]  (!%p12228_p6), %s318_s23, 64, %s320_s27, [#allocation7]  }
  0x18   : > { %11540 = dma.hbm_to_vmem [thread:$0]  (!%p12228_p6), %s343_s30, 49152, %s345_s14, [#allocation10], %s13531_s15, %s13531_s15, %s13532_s16  }
  0x19   : > { %s359_s29 = sshll.u32 %s12114_s28, 4  ;;  %s380_s23 = sshll.u32 %s13526_s7, 4  ;;  %s360_s29 = int_to_ptr.vmem [resolvable:$true] %s359_s29  ;;  %s381_s23 = int_to_ptr.hbm [resolvable:$true] %s380_s23 }
  0x1a   : > { %11543 = dma.hbm_to_vmem [thread:$0]  (!%p12228_p6), %s358_s26, 192, %s360_s29, [#allocation13]  }
  0x1b   : > { %s12115_s27 = smov [#allocation15]   ;;  %s12116_s30 = smov 64  }
  0x1c   : > { %s382_s4 = sshll.u32 %s12115_s27, 4  ;;  %s12117_s14 = smov 4   ;;  %s383_s4 = int_to_ptr.vmem [resolvable:$true] %s382_s4 }
  0x1d   : > { %11549 = dma.hbm_to_vmem [thread:$0]  (!%p12228_p6), %s381_s23, 4096, %s383_s4, [#allocation16], %s12116_s30, %s12116_s30, %s12117_s14  }
  0x1e   : > { %s13540_s0 = sld [smem:[#allocation30_spill]]  ;;  %s12118_s15 = smov [#allocation3]  }
  0x1f   : > { %s307_s1 = sshll.u32 %s12118_s15, 4  ;;  %s328_s26 = sshll.u32 %s13521_s2, 4  ;;  %s308_s1 = int_to_ptr.vmem [resolvable:$true] %s307_s1  ;;  %s329_s26 = int_to_ptr.hbm [resolvable:$true] %s328_s26 }
  0x20   : > { %s12119_s29 = smov [#allocation8]   ;;  %s12120_s4 = smov 256  }
  0x21   : > { %s330_s27 = sshll.u32 %s12119_s29, 4  ;;  %s12121_s23 = smov 16   ;;  %s331_s27 = int_to_ptr.vmem [resolvable:$true] %s330_s27 }
  0x22   : > { %11537 = dma.hbm_to_vmem [thread:$0]  (!%p12228_p6), %s329_s26, 768, %s331_s27, [#allocation7], %s12120_s4, %s12120_s4, %s12121_s23  }
  0x23   : > { %s369_s16 = sshll.u32 %s13525_s6, 4  ;;  %s12122_s14 = smov [#allocation14]   ;;  %s370_s16 = int_to_ptr.hbm [resolvable:$true] %s369_s16 }
  0x24   : > { %s305_s28 = sshll.u32 %s13540_s0, 4  ;;  %s371_s21 = sshll.u32 %s12122_s14, 4  ;;  %s306_s28 = int_to_ptr.hbm [resolvable:$true] %s305_s28  ;;  %s372_s21 = int_to_ptr.vmem [resolvable:$true] %s371_s21 }
  0x25   : > { %11531 = dma.hbm_to_vmem [thread:$0]  (!%p12228_p6), %s306_s28, 128, %s308_s1, [#allocation4]  }
  0x26   : > { %s395_s1 = sshll.u32 %s13527_s8, 4  ;;  %s12123_s13 = smov [#allocation17]   ;;  %s396_s1 = int_to_ptr.hbm [resolvable:$true] %s395_s1 }
  0x27   : > { %11546 = dma.hbm_to_vmem [thread:$0]  (!%p12228_p6), %s370_s16, 192, %s372_s21, [#allocation13]  }
  0x28   : > { %s397_s26 = sshll.u32 %s12123_s13, 4  ;;  %s12270_s29 = sadd.s32 1, %s12108_s20   ;;  %s398_s26 = int_to_ptr.vmem [resolvable:$true] %s397_s26 }
  0x29   : > { %11552 = dma.hbm_to_vmem [thread:$0]  (!%p12228_p6), %s396_s1, 16, %s398_s26, [#allocation16]  }
  0x2a   : > { %s101_s27 = sadd.s32 1, %s12104_s19  ;;  %s98_s4 = ssub.s32 %s12108_s20, %s12270_s29 }
  0x2b   : > { %p108_p7 = scmp.ne.s32.totalorder %s12104_s19, %s12100_s18  ;;  %p99_p8 = scmp.eq.s32.totalorder %s98_s4, 0 }
  0x2c   : > { %p109_p9 = scmp.eq.s32.totalorder %s12108_s20, 0  ;;  %p114_p10 = scmp.ne.s32.totalorder %s12100_s18, %s12096_s17 }
  0x2d   : > { %p11565_p11 = scmp.lt.s32.totalorder %s12108_s20, 3  ;;  %s408_s12 = sand.u32 1, %s12108_s20  }
  0x2e   : > { %s12282_s23 = scalar_select %p99_p8, %s12104_s19, %s101_s27  }
  0x2f   : > { %p110_p12 = por %p109_p9, %p108_p7  ;;  %p12286_p13 = por %p115_p1, %p114_p10 }
  0x30   : > { %s410_s30 = sand.u32 1, %s12104_s19   ;;  %s11480_s14 = smul.u32 3072, %s12108_s20 }
  0x31   : > { %s11479_s16 = smul.u32 3072, %s410_s30  ;;  %p12293_p0 = pnand %p11565_p11, %p110_p12 }
  0x32   : > { %s417_s17 = scalar_lea.hbm %s13522_s3, %s11480_s14  ;;  %s409_s27 = scalar_lea.sflag [#allocation10], %s408_s12 }
  0x33   : > { %s412_s1 = scalar_lea.vmem [#allocation9], %s11479_s16  ;;  %s418_s26 = sshll.u32 %s417_s17, 4  ;;  %s419_s26 = int_to_ptr.hbm [resolvable:$true] %s418_s26 }
  0x34   : > { %s420_s13 = sshll.u32 %s412_s1, 4  ;;  %s11932_s4 = sshra.s32 %s419_s26, 4  ;;  %s421_s13 = int_to_ptr.vmem [resolvable:$true] %s420_s13  ;;  %s11933_s4 = int_to_ptr.hbm [resolvable:$true] %s11932_s4 }
  0x35   : > { %s11934_s0 = scalar_lea.hbm %s11933_s4, 3072  ;;  %p11936_p5 = pneg %p12293_p0 }
  0x36   : > { %p11935_p2 = scmp.ne.s32.totalorder %s11933_s4, %s11934_s0  ;;  %s11939_s22 = scalar_lea.hbm %s13522_s3, 9216 }
  0x37   : > { %p11940_p8 = scmp.lt.s32.totalorder %s11933_s4, %s13522_s3  ;;  %p11941_p9 = scmp.lt.s32.totalorder %s11939_s22, %s11934_s0 }
  0x38   : > { %p11937_p6 = pnand %p11936_p5, %p11935_p2 }
  0x39   : > { %p11942_p10 = por %p11941_p9, %p11940_p8 }
  0x3a   : > { %p11938_p7 = pneg %p11937_p6 }
  0x3c   : > { %p11943_p11 = pnand %p11942_p10, %p11938_p7 }
  0x3e   : > { %11946 = shalt.err (!%p11943_p11)
}
  0x3f   : > { %s13543_s12 = smov 48   ;;  %s13544_s16 = smov 768  }
  0x40   : > { %11556 = dma.hbm_to_vmem [thread:$0]  (!%p12293_p0), %s419_s26, 49152, %s421_s13, %s409_s27, %s13544_s16, %s13544_s16, %s13543_s12  }
  0x41   : > { %432 = sbr.rel (%p12217_p4) target bundleno = 1429 (0x595), region = 56 }
  0x46   : > { %12063 = dma.done.wait (%p115_p1), [#allocation4], 128  }
  0x47   : > { %12065 = vsyncadd (%p115_p1), [#allocation4], 4294967168 }
  0x48   : > { %12067 = dma.done.wait (%p115_p1), [#allocation7], 832  }
  0x49   : > { %12069 = vsyncadd (%p115_p1), [#allocation7], 4294966464  ;;  %s449_s0 = sand.u32 1, %s12211_s24   ;;  %s451_s21 = sand.u32 1, %s12100_s18  }
  0x4a   : > { %s11481_s17 = smul.u32 3072, %s451_s21  ;;  %s450_s25 = scalar_lea.sflag [#allocation10], %s449_s0 }
  0x4c   : > { %s12325_s1 = scalar_lea.vmem [#allocation9], %s11481_s17 }
  0x4d   : > { %12071 = dma.done.wait (%p12286_p13), %s450_s25, 49152  }
  0x4e   : > { %12073 = vsyncadd (%p12286_p13), %s450_s25, 4294918144 }
  0x4f   : > { %12075 = dma.done.wait (%p115_p1), [#allocation10], 49152  }
  0x50   : > { %12077 = vsyncadd (%p115_p1), [#allocation10], 4294918144 }
  0x51   : > { %12079 = dma.done.wait (%p115_p1), [#allocation13], 384  }
  0x52   : > { %12081 = vsyncadd (%p115_p1), [#allocation13], 4294966912 }
  0x53   : > { %12083 = dma.done.wait (%p115_p1), [#allocation16], 4112  }
  0x54   : > { %12085 = vsyncadd (%p115_p1), [#allocation16], 4294963184  ;;  %517 = sbr.rel (%p7410_p3) target bundleno = 243 (0xf3), region = 96 }
  0x59   : > { %v524_v0 = vld [vmem:[#allocation8 + $0x20] sm:$0x77]  ;;  %v525_v1 = vld [vmem:[#allocation8 + $0x28] sm:$0x77]  ;;  %vm560_vm0 = vcmask 1042432   ;;  %v518_v24 = vld [vmem:[#allocation3] sm:$0xff] }
  0x5a   : > { %v540_v2 = vunpack.c.l.b16 %v524_v0  ;;  %v541_v3 = vunpack.c.h.b16 %v524_v0  ;;  %v542_v4 = vunpack.c.l.b16 %v525_v1  ;;  %v543_v5 = vunpack.c.h.b16 %v525_v1  ;;  %v7432_v6 = vld [vmem:[#allocation8] sm:$0xf]  ;;  %v10677_v7 = vld [vmem:[#allocation8 + $0xc] sm:$0xf0]  ;;  %v10675_v12 = vld [vmem:[#allocation8 + $0x4] sm:$0xf] }
  0x5b   : > { %v7434_v13 = vld [vmem:[#allocation8 + $0x10] sm:$0xf0]  ;;  %v7440_v14 = vld [vmem:[#allocation8 + $0x8] sm:$0xf]  ;;  %v10678_v15 = vld [vmem:[#allocation8 + $0x14] sm:$0xf0]  ;;  %v7433_v22 = vor.u32 %v10677_v7, %v7432_v6  ;;  %v519_v27 = vpack.c.bf16 %v518_v24, %v518_v24 }
  0x5c   : > { %v548_v8 = vpack.c.b16 %v540_v2, %v540_v2  ;;  %v549_v9 = vpack.c.b16 %v541_v3, %v541_v3  ;;  %v550_v10 = vpack.c.b16 %v542_v4, %v542_v4  ;;  %v551_v11 = vpack.c.b16 %v543_v5, %v543_v5  ;;  %v10676_v16 = vld [vmem:[#allocation8 + $0xc] sm:$0xf]  ;;  %v7442_v17 = vld [vmem:[#allocation8 + $0x18] sm:$0xf0] }
  0x5d   : > { %v7437_v23 = vor.u32 %v10675_v12, %v7434_v13  ;;  %v7441_v25 = vor.u32 %v10678_v15, %v7440_v14  ;;  %v7445_v26 = vor.u32 %v10676_v16, %v7442_v17  ;;  %vm556_vm1 = vcmask 179200  }
  0x5e   : > { %v562_v18 = vsel %vm560_vm0, %v548_v8, 0  ;;  %v565_v19 = vsel %vm560_vm0, %v549_v9, 0  ;;  %v568_v20 = vsel %vm560_vm0, %v550_v10, 0  ;;  %v571_v21 = vsel %vm560_vm0, %v551_v11, 0 }
  0x5f   : > { %579 = vmatpush.bf16.msra.mxu0 %v562_v18  ;;  %592 = vmatpush.bf16.msra.mxu1 %v565_v19 }
  0x60   : > { %605 = vmatpush.bf16.msra.mxu2 %v568_v20  ;;  %618 = vmatpush.bf16.msra.mxu3 %v571_v21 }
  0x63   : > { %580 = vmatpush.bf16.msra.mxu0 %v7433_v22  ;;  %593 = vmatpush.bf16.msra.mxu1 %v7437_v23 }
  0x64   : > { %606 = vmatpush.bf16.msra.mxu2 %v7441_v25  ;;  %619 = vmatpush.bf16.msra.mxu3 %v7445_v26 }
  0x66   : > { %7446 = vmatmul.msk.bf16.vlgmr.msra.gmra.mxu0 %vm556_vm1, %v519_v27  ;;  %7447 = vmatmul.msk.bf16.vlgmr.msra.gmra.mxu1 %vm556_vm1, %v519_v27 }
  0x67   : > { %7448 = vmatmul.msk.bf16.vlgmr.msra.gmra.mxu2 %vm556_vm1, %v519_v27  ;;  %7449 = vmatmul.msk.bf16.vlgmr.msra.gmra.mxu3 %vm556_vm1, %v519_v27 }
  0xe3   : > { %v582_v28 = vpop.f32.mrf.mxu0  ;;  %v595_v29 = vpop.f32.mrf.mxu1 }
  0xe4   : > { %v625_v30 = vmax.f32 %v582_v28, 0.0  ;;  %v626_v31 = vmax.f32 %v595_v29, 0.0 }
  0xe6   : > { %629 = vst [vmem:[#allocation18] sm:$0xff] %v625_v30 }
  0xe7   : > { %633 = vst [vmem:[#allocation2 + $0x10] sm:$0xff] %v625_v30 }
  0xe8   : > { %630 = vst [vmem:[#allocation18 + $0x8] sm:$0xff] %v626_v31 }
  0xe9   : > { %634 = vst [vmem:[#allocation2] sm:$0xff] %v626_v31 }
  0xea   : > { %v608_v32 = vpop.f32.mrf.mxu2  ;;  %v621_v33 = vpop.f32.mrf.mxu3 }
  0xeb   : > { %v627_v34 = vmax.f32 %v608_v32, 0.0  ;;  %v628_v35 = vmax.f32 %v621_v33, 0.0  ;;  %v584_v36 = vpop.f32.mrf.mxu0  ;;  %v597_v37 = vpop.f32.mrf.mxu1 }
  0xed   : > { %631 = vst [vmem:[#allocation18 + $0x10] sm:$0xff] %v627_v34 }
  0xee   : > { %635 = vst [vmem:[#allocation2 + $0x18] sm:$0xff] %v627_v34 }
  0xef   : > { %632 = vst [vmem:[#allocation18 + $0x18] sm:$0xff] %v628_v35 }
  0xf0   : > { %636 = vst [vmem:[#allocation2 + $0x8] sm:$0xff] %v628_v35 }
  0xf2   : > { %v610_v38 = vpop.f32.mrf.mxu2  ;;  %v623_v39 = vpop.f32.mrf.mxu3 }
  0xf3 PF: > { %v637_v40 = vld [vmem:[#allocation2 + $0x10] sm:$0xff]  ;;  %vm650_vm2 = vcmask 1043456   ;;  %v638_v41 = vld [vmem:[#allocation2] sm:$0xff]  ;;  %v7792_v47 = vld [vmem:[%s12325_s1 + $0x2a0] sm:$0xf]  ;;  %vm646_vm3 = vcmask 64512  }
  0xf4   : > { %v12349_v43 = vpack.c.bf16 %v637_v40, %v637_v40  ;;  %v12351_v44 = vpack.c.bf16 %v638_v41, %v638_v41  ;;  %v645_v49 = vld [vmem:[#allocation6] sm:$0xf]  ;;  %v10769_v50 = vld [vmem:[%s12325_s1 + $0x2cc] sm:$0xf0]  ;;  %v8176_v51 = vld [vmem:[%s12325_s1 + $0x5a0] sm:$0xf] }
  0xf5   : > { %v639_v42 = vld [vmem:[#allocation2 + $0x18] sm:$0xff]  ;;  %v10865_v52 = vld [vmem:[%s12325_s1 + $0x5cc] sm:$0xf0]  ;;  %v7793_v56 = vor.u32 %v10769_v50, %v7792_v47  ;;  %p10534_p1 = scmp.ne.s32.totalorder %s12211_s24, 2 }
  0xf6   : > { %v12353_v45 = vpack.c.bf16 %v639_v42, %v639_v42  ;;  %v652_v53 = vsel %vm650_vm2, %v12349_v43, 0  ;;  %v655_v54 = vsel %vm650_vm2, %v12351_v44, 0  ;;  %v7744_v57 = vld [vmem:[%s12325_s1 + $0x240] sm:$0xf]  ;;  %v8177_v59 = vor.u32 %v10865_v52, %v8176_v51  ;;  %v10757_v60 = vld [vmem:[%s12325_s1 + $0x26c] sm:$0xf0] }
  0xf7   : > { %v640_v46 = vld [vmem:[#allocation2 + $0x8] sm:$0xff]  ;;  %670 = vmatpush.bf16.msra.mxu0 %v652_v53  ;;  %683 = vmatpush.bf16.msra.mxu1 %v655_v54  ;;  %v8128_v61 = vld [vmem:[%s12325_s1 + $0x540] sm:$0xf]  ;;  %v7745_v1 = vor.u32 %v10757_v60, %v7744_v57 }
  0xf8   : > { %v12356_v48 = vpack.c.bf16 %v640_v46, %v640_v46  ;;  %v658_v55 = vsel %vm650_vm2, %v12353_v45, 0  ;;  %v10853_v62 = vld [vmem:[%s12325_s1 + $0x56c] sm:$0xf0]  ;;  %v8560_v63 = vld [vmem:[%s12325_s1 + $0x8a0] sm:$0xf] }
  0xf9   : > { %696 = vmatpush.bf16.msra.mxu2 %v658_v55  ;;  %v10961_v0 = vld [vmem:[%s12325_s1 + $0x8cc] sm:$0xf0]  ;;  %v8129_v2 = vor.u32 %v10853_v62, %v8128_v61  ;;  %v8944_v4 = vld [vmem:[%s12325_s1 + $0xba0] sm:$0xf] }
  0xfa   : > { %v661_v58 = vsel %vm650_vm2, %v12356_v48, 0  ;;  %v8561_v3 = vor.u32 %v10961_v0, %v8560_v63  ;;  %v11057_v5 = vld [vmem:[%s12325_s1 + $0xbcc] sm:$0xf0]  ;;  %v7696_v6 = vld [vmem:[%s12325_s1 + $0x1e0] sm:$0xf]  ;;  %7450 = vmatmul.msk.bf16.vlgmr.msra.gmra.mxu0 %vm646_vm3, %v645_v49  ;;  %7451 = vmatmul.msk.bf16.vlgmr.msra.gmra.mxu1 %vm646_vm3, %v645_v49 }
  0xfb   : > { %709 = vmatpush.bf16.msra.mxu3 %v661_v58  ;;  %3051 = vmatpush.bf16.msrb.mxu0 %v7793_v56  ;;  %v8945_v7 = vor.u32 %v11057_v5, %v8944_v4  ;;  %v10745_v8 = vld [vmem:[%s12325_s1 + $0x20c] sm:$0xf0]  ;;  %v8080_v9 = vld [vmem:[%s12325_s1 + $0x4e0] sm:$0xf] }
  0xfc   : > { %3064 = vmatpush.bf16.msrb.mxu1 %v8177_v59  ;;  %v10841_v10 = vld [vmem:[%s12325_s1 + $0x50c] sm:$0xf0]  ;;  %7452 = vmatmul.msk.bf16.vlgmr.msra.gmra.mxu2 %vm646_vm3, %v645_v49  ;;  %v8512_v11 = vld [vmem:[%s12325_s1 + $0x840] sm:$0xf]  ;;  %v7697_v18 = vor.u32 %v10745_v8, %v7696_v6 }
  0xfd   : > { %v10949_v12 = vld [vmem:[%s12325_s1 + $0x86c] sm:$0xf0]  ;;  %v8896_v13 = vld [vmem:[%s12325_s1 + $0xb40] sm:$0xf]  ;;  %3077 = vmatpush.bf16.msrb.mxu2 %v8561_v3  ;;  %v8081_v19 = vor.u32 %v10841_v10, %v8080_v9 }
  0xfe   : > { %7453 = vmatmul.msk.bf16.vlgmr.msra.gmra.mxu3 %vm646_vm3, %v645_v49  ;;  %v8513_v14 = vor.u32 %v10949_v12, %v8512_v11  ;;  %v11045_v15 = vld [vmem:[%s12325_s1 + $0xb6c] sm:$0xf0]  ;;  %v7648_v16 = vld [vmem:[%s12325_s1 + $0x180] sm:$0xf] }
  0xff   : > { %3090 = vmatpush.bf16.msrb.mxu3 %v8945_v7  ;;  %v10733_v17 = vld [vmem:[%s12325_s1 + $0x1ac] sm:$0xf0]  ;;  %3052 = vmatpush.bf16.msrb.mxu0 %v7745_v1  ;;  %v8897_v20 = vor.u32 %v11045_v15, %v8896_v13  ;;  %v8032_v21 = vld [vmem:[%s12325_s1 + $0x480] sm:$0xf]  ;;  %v10763_v15 = vld [vmem:[%s12325_s1 + $0x2a4] sm:$0xf] }
 0x100   : > { %3065 = vmatpush.bf16.msrb.mxu1 %v8129_v2  ;;  %v10829_v22 = vld [vmem:[%s12325_s1 + $0x4ac] sm:$0xf0]  ;;  %v8464_v23 = vld [vmem:[%s12325_s1 + $0x7e0] sm:$0xf]  ;;  %v7649_v31 = vor.u32 %v10733_v17, %v7648_v16  ;;  %v7794_v16 = vld [vmem:[%s12325_s1 + $0x2d0] sm:$0xf0] }
 0x101   : > { %v10937_v24 = vld [vmem:[%s12325_s1 + $0x80c] sm:$0xf0]  ;;  %v8848_v25 = vld [vmem:[%s12325_s1 + $0xae0] sm:$0xf]  ;;  %3078 = vmatpush.bf16.msrb.mxu2 %v8513_v14  ;;  %v8033_v32 = vor.u32 %v10829_v22, %v8032_v21  ;;  %v10859_v17 = vld [vmem:[%s12325_s1 + $0x5a4] sm:$0xf] }
 0x102   : > { %v11033_v26 = vld [vmem:[%s12325_s1 + $0xb0c] sm:$0xf0]  ;;  %v8465_v27 = vor.u32 %v10937_v24, %v8464_v23  ;;  %v7600_v29 = vld [vmem:[%s12325_s1 + $0x120] sm:$0xf] }
 0x103   : > { %3091 = vmatpush.bf16.msrb.mxu3 %v8897_v20  ;;  %v8849_v28 = vor.u32 %v11033_v26, %v8848_v25  ;;  %v8416_v30 = vld [vmem:[%s12325_s1 + $0x780] sm:$0xf]  ;;  %3053 = vmatpush.bf16.msrb.mxu0 %v7697_v18  ;;  %v10925_v33 = vld [vmem:[%s12325_s1 + $0x7ac] sm:$0xf0]  ;;  %v8178_v18 = vld [vmem:[%s12325_s1 + $0x5d0] sm:$0xf0] }
 0x104   : > { %3066 = vmatpush.bf16.msrb.mxu1 %v8081_v19  ;;  %v8800_v34 = vld [vmem:[%s12325_s1 + $0xa80] sm:$0xf]  ;;  %v11021_v35 = vld [vmem:[%s12325_s1 + $0xaac] sm:$0xf0]  ;;  %v8417_v39 = vor.u32 %v10925_v33, %v8416_v30  ;;  %v10751_v25 = vld [vmem:[%s12325_s1 + $0x244] sm:$0xf]  ;;  %v8181_v30 = vor.u32 %v10859_v17, %v8178_v18 }
 0x105   : > { %v10721_v36 = vld [vmem:[%s12325_s1 + $0x14c] sm:$0xf0]  ;;  %v7984_v37 = vld [vmem:[%s12325_s1 + $0x420] sm:$0xf]  ;;  %3079 = vmatpush.bf16.msrb.mxu2 %v8465_v27  ;;  %v8801_v40 = vor.u32 %v11021_v35, %v8800_v34  ;;  %v8946_v33 = vld [vmem:[%s12325_s1 + $0xbd0] sm:$0xf0] }
 0x106   : > { %v10817_v38 = vld [vmem:[%s12325_s1 + $0x44c] sm:$0xf0]  ;;  %v7552_v41 = vld [vmem:[%s12325_s1 + $0xc0] sm:$0xf]  ;;  %v7601_v46 = vor.u32 %v10721_v36, %v7600_v29  ;;  %v7797_v29 = vor.u32 %v10763_v15, %v7794_v16  ;;  %v7746_v34 = vld [vmem:[%s12325_s1 + $0x270] sm:$0xf0] }
 0x107   : > { %3092 = vmatpush.bf16.msrb.mxu3 %v8849_v28  ;;  %v8368_v42 = vld [vmem:[%s12325_s1 + $0x720] sm:$0xf]  ;;  %3054 = vmatpush.bf16.msrb.mxu0 %v7649_v31  ;;  %v7985_v47 = vor.u32 %v10817_v38, %v7984_v37  ;;  %v10913_v49 = vld [vmem:[%s12325_s1 + $0x74c] sm:$0xf0]  ;;  %v10955_v28 = vld [vmem:[%s12325_s1 + $0x8a4] sm:$0xf] }
 0x108   : > { %3067 = vmatpush.bf16.msrb.mxu1 %v8033_v32  ;;  %v8752_v50 = vld [vmem:[%s12325_s1 + $0xa20] sm:$0xf]  ;;  %v11009_v51 = vld [vmem:[%s12325_s1 + $0xa4c] sm:$0xf0]  ;;  %v8369_v55 = vor.u32 %v10913_v49, %v8368_v42  ;;  %v8562_v31 = vld [vmem:[%s12325_s1 + $0x8d0] sm:$0xf0] }
 0x109   : > { %v10709_v52 = vld [vmem:[%s12325_s1 + $0xec] sm:$0xf0]  ;;  %v7936_v53 = vld [vmem:[%s12325_s1 + $0x3c0] sm:$0xf]  ;;  %3080 = vmatpush.bf16.msrb.mxu2 %v8417_v39  ;;  %v8753_v56 = vor.u32 %v11009_v51, %v8752_v50  ;;  %v11051_v32 = vld [vmem:[%s12325_s1 + $0xba4] sm:$0xf]  ;;  %v8565_v39 = vor.u32 %v10955_v28, %v8562_v31 }
 0x10a   : > { %v10805_v54 = vld [vmem:[%s12325_s1 + $0x3ec] sm:$0xf0]  ;;  %v7504_v57 = vld [vmem:[%s12325_s1 + $0x60] sm:$0xf]  ;;  %v7553_v59 = vor.u32 %v10709_v52, %v7552_v41  ;;  %v10847_v35 = vld [vmem:[%s12325_s1 + $0x544] sm:$0xf] }
 0x10b   : > { %3093 = vmatpush.bf16.msrb.mxu3 %v8801_v40  ;;  %v8320_v58 = vld [vmem:[%s12325_s1 + $0x6c0] sm:$0xf]  ;;  %3055 = vmatpush.bf16.msrb.mxu0 %v7601_v46  ;;  %v7937_v60 = vor.u32 %v10805_v54, %v7936_v53  ;;  %v10901_v61 = vld [vmem:[%s12325_s1 + $0x6ec] sm:$0xf0]  ;;  %v8130_v36 = vld [vmem:[%s12325_s1 + $0x570] sm:$0xf0]  ;;  %v8949_v40 = vor.u32 %v11051_v32, %v8946_v33  ;;  %v7749_v46 = vor.u32 %v10751_v25, %v7746_v34 }
 0x10c   : > { %3068 = vmatpush.bf16.msrb.mxu1 %v7985_v47  ;;  %v8704_v62 = vld [vmem:[%s12325_s1 + $0x9c0] sm:$0xf]  ;;  %v10997_v63 = vld [vmem:[%s12325_s1 + $0x9ec] sm:$0xf0]  ;;  %v8321_v3 = vor.u32 %v10901_v61, %v8320_v58  ;;  %v10739_v41 = vld [vmem:[%s12325_s1 + $0x1e4] sm:$0xf]  ;;  %v8133_v47 = vor.u32 %v10847_v35, %v8130_v36 }
 0x10d   : > { %v10697_v0 = vld [vmem:[%s12325_s1 + $0x8c] sm:$0xf0]  ;;  %v7888_v1 = vld [vmem:[%s12325_s1 + $0x360] sm:$0xf]  ;;  %3081 = vmatpush.bf16.msrb.mxu2 %v8369_v55  ;;  %v8705_v4 = vor.u32 %v10997_v63, %v8704_v62  ;;  %v10943_v42 = vld [vmem:[%s12325_s1 + $0x844] sm:$0xf] }
 0x10e   : > { %v10793_v2 = vld [vmem:[%s12325_s1 + $0x38c] sm:$0xf0]  ;;  %v7456_v5 = vld [vmem:[%s12325_s1] sm:$0xf]  ;;  %v7505_v8 = vor.u32 %v10697_v0, %v7504_v57  ;;  %v8514_v49 = vld [vmem:[%s12325_s1 + $0x870] sm:$0xf0] }
 0x10f   : > { %3094 = vmatpush.bf16.msrb.mxu3 %v8753_v56  ;;  %v10685_v6 = vld [vmem:[%s12325_s1 + $0x2c] sm:$0xf0]  ;;  %v8272_v7 = vld [vmem:[%s12325_s1 + $0x660] sm:$0xf]  ;;  %3056 = vmatpush.bf16.msrb.mxu0 %v7553_v59  ;;  %v7889_v9 = vor.u32 %v10793_v2, %v7888_v1  ;;  %v11039_v50 = vld [vmem:[%s12325_s1 + $0xb44] sm:$0xf]  ;;  %v8517_v55 = vor.u32 %v10943_v42, %v8514_v49 }
 0x110   : > { %3069 = vmatpush.bf16.msrb.mxu1 %v7937_v60  ;;  %v10889_v10 = vld [vmem:[%s12325_s1 + $0x68c] sm:$0xf0]  ;;  %v8656_v11 = vld [vmem:[%s12325_s1 + $0x960] sm:$0xf]  ;;  %v7457_v23 = vor.u32 %v10685_v6, %v7456_v5  ;;  %v8898_v51 = vld [vmem:[%s12325_s1 + $0xb70] sm:$0xf0] }
 0x111   : > { %v10985_v12 = vld [vmem:[%s12325_s1 + $0x98c] sm:$0xf0]  ;;  %v7840_v13 = vld [vmem:[%s12325_s1 + $0x300] sm:$0xf]  ;;  %3082 = vmatpush.bf16.msrb.mxu2 %v8321_v3  ;;  %v8273_v19 = vor.u32 %v10889_v10, %v8272_v7  ;;  %v7698_v52 = vld [vmem:[%s12325_s1 + $0x210] sm:$0xf0]  ;;  %v8901_v56 = vor.u32 %v11039_v50, %v8898_v51 }
 0x112   : > { %v10781_v14 = vld [vmem:[%s12325_s1 + $0x32c] sm:$0xf0]  ;;  %v8657_v20 = vor.u32 %v10985_v12, %v8656_v11  ;;  %v8224_v21 = vld [vmem:[%s12325_s1 + $0x600] sm:$0xf]  ;;  %v10835_v53 = vld [vmem:[%s12325_s1 + $0x4e4] sm:$0xf]  ;;  %v7701_v59 = vor.u32 %v10739_v41, %v7698_v52 }
 0x113   : > { %3095 = vmatpush.bf16.msrb.mxu3 %v8705_v4  ;;  %v10877_v22 = vld [vmem:[%s12325_s1 + $0x62c] sm:$0xf0]  ;;  %3057 = vmatpush.bf16.msrb.mxu0 %v7505_v8  ;;  %v7841_v24 = vor.u32 %v10781_v14, %v7840_v13  ;;  %v8608_v26 = vld [vmem:[%s12325_s1 + $0x900] sm:$0xf]  ;;  %v8082_v54 = vld [vmem:[%s12325_s1 + $0x510] sm:$0xf0] }
 0x114   : > { %3070 = vmatpush.bf16.msrb.mxu1 %v7889_v9  ;;  %v10973_v27 = vld [vmem:[%s12325_s1 + $0x92c] sm:$0xf0]  ;;  %v8225_v37 = vor.u32 %v10877_v22, %v8224_v21  ;;  %v10727_v57 = vld [vmem:[%s12325_s1 + $0x184] sm:$0xf]  ;;  %v8085_v60 = vor.u32 %v10835_v53, %v8082_v54  ;;  %v8466_v61 = vld [vmem:[%s12325_s1 + $0x810] sm:$0xf0] }
 0x115   : > { %3083 = vmatpush.bf16.msrb.mxu2 %v8273_v19  ;;  %v8609_v38 = vor.u32 %v10973_v27, %v8608_v26  ;;  %v10931_v58 = vld [vmem:[%s12325_s1 + $0x7e4] sm:$0xf]  ;;  %v8850_v63 = vld [vmem:[%s12325_s1 + $0xb10] sm:$0xf0] }
 0x116   : > { %v11027_v62 = vld [vmem:[%s12325_s1 + $0xae4] sm:$0xf]  ;;  %v7650_v0 = vld [vmem:[%s12325_s1 + $0x1b0] sm:$0xf0]  ;;  %v8469_v3 = vor.u32 %v10931_v58, %v8466_v61 }
 0x117   : > { %3096 = vmatpush.bf16.msrb.mxu3 %v8657_v20  ;;  %3058 = vmatpush.bf16.msrb.mxu0 %v7457_v23  ;;  %v10823_v1 = vld [vmem:[%s12325_s1 + $0x484] sm:$0xf]  ;;  %v8034_v2 = vld [vmem:[%s12325_s1 + $0x4b0] sm:$0xf0]  ;;  %v8853_v4 = vor.u32 %v11027_v62, %v8850_v63  ;;  %v7653_v7 = vor.u32 %v10727_v57, %v7650_v0 }
 0x118   : > { %3071 = vmatpush.bf16.msrb.mxu1 %v7841_v24  ;;  %v10715_v5 = vld [vmem:[%s12325_s1 + $0x124] sm:$0xf]  ;;  %v8037_v8 = vor.u32 %v10823_v1, %v8034_v2  ;;  %v8418_v9 = vld [vmem:[%s12325_s1 + $0x7b0] sm:$0xf0]  ;;  %v7800_v1 = vld [vmem:[%s12325_s1 + $0x2a8] sm:$0xf] }
 0x119   : > { %3084 = vmatpush.bf16.msrb.mxu2 %v8225_v37  ;;  %v10919_v6 = vld [vmem:[%s12325_s1 + $0x784] sm:$0xf]  ;;  %v8802_v11 = vld [vmem:[%s12325_s1 + $0xab0] sm:$0xf0]  ;;  %v10770_v2 = vld [vmem:[%s12325_s1 + $0x2d4] sm:$0xf0] }
 0x11a   : > { %v11015_v10 = vld [vmem:[%s12325_s1 + $0xa84] sm:$0xf]  ;;  %v7602_v12 = vld [vmem:[%s12325_s1 + $0x150] sm:$0xf0]  ;;  %v8421_v15 = vor.u32 %v10919_v6, %v8418_v9  ;;  %v7752_v9 = vld [vmem:[%s12325_s1 + $0x248] sm:$0xf] }
 0x11b   : > { %3103 = vmatpush.bf16.msra.mxu0 %v7797_v29  ;;  %3097 = vmatpush.bf16.msrb.mxu3 %v8609_v38  ;;  %v10811_v13 = vld [vmem:[%s12325_s1 + $0x424] sm:$0xf]  ;;  %v7986_v14 = vld [vmem:[%s12325_s1 + $0x450] sm:$0xf0]  ;;  %v8805_v16 = vor.u32 %v11015_v10, %v8802_v11  ;;  %v7605_v19 = vor.u32 %v10715_v5, %v7602_v12  ;;  %v10758_v12 = vld [vmem:[%s12325_s1 + $0x274] sm:$0xf0] }
 0x11c   : > { %3116 = vmatpush.bf16.msra.mxu1 %v8181_v30  ;;  %v10703_v17 = vld [vmem:[%s12325_s1 + $0xc4] sm:$0xf]  ;;  %v7989_v20 = vor.u32 %v10811_v13, %v7986_v14  ;;  %v8370_v21 = vld [vmem:[%s12325_s1 + $0x750] sm:$0xf0]  ;;  %v8136_v13 = vld [vmem:[%s12325_s1 + $0x548] sm:$0xf] }
 0x11d   : > { %3129 = vmatpush.bf16.msra.mxu2 %v8565_v39  ;;  %v10907_v18 = vld [vmem:[%s12325_s1 + $0x724] sm:$0xf]  ;;  %v8754_v23 = vld [vmem:[%s12325_s1 + $0xa50] sm:$0xf0]  ;;  %v10854_v14 = vld [vmem:[%s12325_s1 + $0x574] sm:$0xf0] }
 0x11e   : > { %v11003_v22 = vld [vmem:[%s12325_s1 + $0xa24] sm:$0xf]  ;;  %v7554_v24 = vld [vmem:[%s12325_s1 + $0xf0] sm:$0xf0]  ;;  %v8373_v27 = vor.u32 %v10907_v18, %v8370_v21  ;;  %v7753_v18 = vor.u32 %v10758_v12, %v7752_v9  ;;  %v7704_v21 = vld [vmem:[%s12325_s1 + $0x1e8] sm:$0xf] }
 0x11f   : > { %3142 = vmatpush.bf16.msra.mxu3 %v8949_v40  ;;  %3104 = vmatpush.bf16.msra.mxu0 %v7749_v46  ;;  %v10799_v25 = vld [vmem:[%s12325_s1 + $0x3c4] sm:$0xf]  ;;  %v7938_v26 = vld [vmem:[%s12325_s1 + $0x3f0] sm:$0xf0]  ;;  %v8757_v28 = vor.u32 %v11003_v22, %v8754_v23  ;;  %v7557_v29 = vor.u32 %v10703_v17, %v7554_v24  ;;  %v8952_v17 = vld [vmem:[%s12325_s1 + $0xba8] sm:$0xf] }
 0x120   : > { %3117 = vmatpush.bf16.msra.mxu1 %v8133_v47  ;;  %v7941_v30 = vor.u32 %v10799_v25, %v7938_v26  ;;  %v10691_v31 = vld [vmem:[%s12325_s1 + $0x64] sm:$0xf]  ;;  %v7506_v32 = vld [vmem:[%s12325_s1 + $0x90] sm:$0xf0]  ;;  %v10746_v22 = vld [vmem:[%s12325_s1 + $0x214] sm:$0xf0] }
 0x121   : > { %3130 = vmatpush.bf16.msra.mxu2 %v8517_v55  ;;  %v10787_v33 = vld [vmem:[%s12325_s1 + $0x364] sm:$0xf]  ;;  %v7890_v34 = vld [vmem:[%s12325_s1 + $0x390] sm:$0xf0]  ;;  %v7509_v35 = vor.u32 %v10691_v31, %v7506_v32  ;;  %v8088_v23 = vld [vmem:[%s12325_s1 + $0x4e8] sm:$0xf] }
 0x122   : > { %v7893_v36 = vor.u32 %v10787_v33, %v7890_v34  ;;  %v10895_v37 = vld [vmem:[%s12325_s1 + $0x6c4] sm:$0xf]  ;;  %v8322_v38 = vld [vmem:[%s12325_s1 + $0x6f0] sm:$0xf0]  ;;  %v10842_v24 = vld [vmem:[%s12325_s1 + $0x514] sm:$0xf0] }
 0x123   : > { %3143 = vmatpush.bf16.msra.mxu3 %v8901_v56  ;;  %3105 = vmatpush.bf16.msra.mxu0 %v7701_v59  ;;  %v10991_v39 = vld [vmem:[%s12325_s1 + $0x9c4] sm:$0xf]  ;;  %v8325_v40 = vor.u32 %v10895_v37, %v8322_v38  ;;  %v8706_v41 = vld [vmem:[%s12325_s1 + $0x9f0] sm:$0xf0]  ;;  %v10950_v31 = vld [vmem:[%s12325_s1 + $0x874] sm:$0xf0] }
 0x124   : > { %3118 = vmatpush.bf16.msra.mxu1 %v8085_v60  ;;  %v8709_v42 = vor.u32 %v10991_v39, %v8706_v41  ;;  %v10679_v46 = vld [vmem:[%s12325_s1 + $0x4] sm:$0xf]  ;;  %v7458_v47 = vld [vmem:[%s12325_s1 + $0x30] sm:$0xf0]  ;;  %v8904_v37 = vld [vmem:[%s12325_s1 + $0xb48] sm:$0xf] }
 0x125   : > { %3131 = vmatpush.bf16.msra.mxu2 %v8469_v3  ;;  %v10775_v49 = vld [vmem:[%s12325_s1 + $0x304] sm:$0xf]  ;;  %v7461_v50 = vor.u32 %v10679_v46, %v7458_v47  ;;  %v7842_v51 = vld [vmem:[%s12325_s1 + $0x330] sm:$0xf0]  ;;  %v8184_v3 = vld [vmem:[%s12325_s1 + $0x5a8] sm:$0xf] }
 0x126   : > { %v7845_v52 = vor.u32 %v10775_v49, %v7842_v51  ;;  %v10883_v53 = vld [vmem:[%s12325_s1 + $0x664] sm:$0xf]  ;;  %v8274_v54 = vld [vmem:[%s12325_s1 + $0x690] sm:$0xf0]  ;;  %v11046_v38 = vld [vmem:[%s12325_s1 + $0xb74] sm:$0xf0] }
 0x127   : > { %3144 = vmatpush.bf16.msra.mxu3 %v8853_v4  ;;  %3106 = vmatpush.bf16.msra.mxu0 %v7653_v7  ;;  %v10979_v55 = vld [vmem:[%s12325_s1 + $0x964] sm:$0xf]  ;;  %v8658_v56 = vld [vmem:[%s12325_s1 + $0x990] sm:$0xf0]  ;;  %v8277_v57 = vor.u32 %v10883_v53, %v8274_v54  ;;  %v10866_v4 = vld [vmem:[%s12325_s1 + $0x5d4] sm:$0xf0]  ;;  %v7801_v7 = vor.u32 %v10770_v2, %v7800_v1  ;;  %v8905_v47 = vor.u32 %v11046_v38, %v8904_v37 }
 0x128   : > { %3119 = vmatpush.bf16.msra.mxu1 %v8037_v8  ;;  %v8661_v58 = vor.u32 %v10979_v55, %v8658_v56  ;;  %v10871_v59 = vld [vmem:[%s12325_s1 + $0x604] sm:$0xf]  ;;  %v8226_v60 = vld [vmem:[%s12325_s1 + $0x630] sm:$0xf0]  ;;  %v8185_v8 = vor.u32 %v10866_v4, %v8184_v3  ;;  %v7656_v39 = vld [vmem:[%s12325_s1 + $0x188] sm:$0xf] }
 0x129   : > { %3132 = vmatpush.bf16.msra.mxu2 %v8421_v15  ;;  %v8229_v61 = vor.u32 %v10871_v59, %v8226_v60  ;;  %v10967_v62 = vld [vmem:[%s12325_s1 + $0x904] sm:$0xf]  ;;  %v8610_v63 = vld [vmem:[%s12325_s1 + $0x930] sm:$0xf0]  ;;  %v8568_v15 = vld [vmem:[%s12325_s1 + $0x8a8] sm:$0xf] }
 0x12a   : > { %v8613_v0 = vor.u32 %v10967_v62, %v8610_v63  ;;  %v8040_v41 = vld [vmem:[%s12325_s1 + $0x488] sm:$0xf]  ;;  %v11034_v54 = vld [vmem:[%s12325_s1 + $0xb14] sm:$0xf0]  ;;  %v10764_v37 = vld [vmem:[%s12325_s1 + $0x2ac] sm:$0xf] }
 0x12b   : > { %3145 = vmatpush.bf16.msra.mxu3 %v8805_v16  ;;  %3107 = vmatpush.bf16.msra.mxu0 %v7605_v19  ;;  %v10962_v16 = vld [vmem:[%s12325_s1 + $0x8d4] sm:$0xf0]  ;;  %v8137_v19 = vor.u32 %v10854_v14, %v8136_v13  ;;  %v8472_v49 = vld [vmem:[%s12325_s1 + $0x7e8] sm:$0xf]  ;;  %v7802_v38 = vld [vmem:[%s12325_s1 + $0x2d8] sm:$0xf0] }
 0x12c   : > { %3120 = vmatpush.bf16.msra.mxu1 %v7989_v20  ;;  %v11058_v20 = vld [vmem:[%s12325_s1 + $0xbd4] sm:$0xf0]  ;;  %v8856_v53 = vld [vmem:[%s12325_s1 + $0xae8] sm:$0xf] }
 0x12d   : > { %3133 = vmatpush.bf16.msra.mxu2 %v8373_v27  ;;  %v8569_v27 = vor.u32 %v10962_v16, %v8568_v15  ;;  %v7608_v55 = vld [vmem:[%s12325_s1 + $0x128] sm:$0xf]  ;;  %v10722_v56 = vld [vmem:[%s12325_s1 + $0x154] sm:$0xf0]  ;;  %v8857_v62 = vor.u32 %v11034_v54, %v8856_v53  ;;  %v7805_v53 = vor.u32 %v10764_v37, %v7802_v38  ;;  %v10716_v37 = vld [vmem:[%s12325_s1 + $0x12c] sm:$0xf] }
 0x12e   : > { %v8424_v63 = vld [vmem:[%s12325_s1 + $0x788] sm:$0xf]  ;;  %v11022_v2 = vld [vmem:[%s12325_s1 + $0xab4] sm:$0xf0]  ;;  %v7609_v3 = vor.u32 %v10722_v56, %v7608_v55  ;;  %v10752_v55 = vld [vmem:[%s12325_s1 + $0x24c] sm:$0xf] }
 0x12f   : > { %3146 = vmatpush.bf16.msra.mxu3 %v8757_v28  ;;  %3108 = vmatpush.bf16.msra.mxu0 %v7557_v29  ;;  %v8953_v28 = vor.u32 %v11058_v20, %v8952_v17  ;;  %v7705_v29 = vor.u32 %v10746_v22, %v7704_v21  ;;  %v8808_v1 = vld [vmem:[%s12325_s1 + $0xa88] sm:$0xf]  ;;  %v10914_v14 = vld [vmem:[%s12325_s1 + $0x754] sm:$0xf0]  ;;  %v7754_v56 = vld [vmem:[%s12325_s1 + $0x278] sm:$0xf0] }
 0x130   : > { %3121 = vmatpush.bf16.msra.mxu1 %v7941_v30  ;;  %v8520_v30 = vld [vmem:[%s12325_s1 + $0x848] sm:$0xf]  ;;  %v8809_v12 = vor.u32 %v11022_v2, %v8808_v1  ;;  %v11010_v16 = vld [vmem:[%s12325_s1 + $0xa54] sm:$0xf0]  ;;  %v10956_v1 = vld [vmem:[%s12325_s1 + $0x8ac] sm:$0xf] }
 0x131   : > { %3134 = vmatpush.bf16.msra.mxu2 %v8325_v40  ;;  %v10734_v40 = vld [vmem:[%s12325_s1 + $0x1b4] sm:$0xf0]  ;;  %v8521_v46 = vor.u32 %v10950_v31, %v8520_v30  ;;  %v8376_v13 = vld [vmem:[%s12325_s1 + $0x728] sm:$0xf]  ;;  %v8570_v2 = vld [vmem:[%s12325_s1 + $0x8d8] sm:$0xf0] }
 0x132   : > { %v8760_v15 = vld [vmem:[%s12325_s1 + $0xa28] sm:$0xf]  ;;  %v10698_v20 = vld [vmem:[%s12325_s1 + $0x94] sm:$0xf0]  ;;  %v7610_v38 = vld [vmem:[%s12325_s1 + $0x158] sm:$0xf0] }
 0x133   : > { %3109 = vmatpush.bf16.msra.mxu0 %v7509_v35  ;;  %3147 = vmatpush.bf16.msra.mxu3 %v8709_v42  ;;  %v10830_v42 = vld [vmem:[%s12325_s1 + $0x4b4] sm:$0xf0]  ;;  %v7896_v21 = vld [vmem:[%s12325_s1 + $0x368] sm:$0xf] }
 0x134   : > { %3122 = vmatpush.bf16.msra.mxu1 %v7893_v36  ;;  %v8089_v36 = vor.u32 %v10842_v24, %v8088_v23  ;;  %v8041_v51 = vor.u32 %v10830_v42, %v8040_v41  ;;  %v10794_v22 = vld [vmem:[%s12325_s1 + $0x394] sm:$0xf0]  ;;  %v8377_v23 = vor.u32 %v10914_v14, %v8376_v13  ;;  %v8761_v24 = vor.u32 %v11010_v16, %v8760_v15  ;;  %v7464_v31 = vld [vmem:[%s12325_s1 + $0x8] sm:$0xf]  ;;  %v10860_v41 = vld [vmem:[%s12325_s1 + $0x5ac] sm:$0xf] }
 0x135   : > { %3135 = vmatpush.bf16.msra.mxu2 %v8277_v57  ;;  %v7992_v57 = vld [vmem:[%s12325_s1 + $0x428] sm:$0xf]  ;;  %v7897_v30 = vor.u32 %v10794_v22, %v7896_v21  ;;  %v8186_v42 = vld [vmem:[%s12325_s1 + $0x5d8] sm:$0xf0]  ;;  %v10836_v13 = vld [vmem:[%s12325_s1 + $0x4ec] sm:$0xf]  ;;  %v8573_v15 = vor.u32 %v10956_v1, %v8570_v2 }
 0x136   : > { %v8189_v54 = vor.u32 %v10860_v41, %v8186_v42  ;;  %v8090_v14 = vld [vmem:[%s12325_s1 + $0x518] sm:$0xf0]  ;;  %v10692_v1 = vld [vmem:[%s12325_s1 + $0x6c] sm:$0xf] }
 0x137   : > { %3110 = vmatpush.bf16.msra.mxu0 %v7461_v50  ;;  %3148 = vmatpush.bf16.msra.mxu3 %v8661_v58  ;;  %v7657_v50 = vor.u32 %v10734_v40, %v7656_v39  ;;  %v10818_v58 = vld [vmem:[%s12325_s1 + $0x454] sm:$0xf0]  ;;  %v8093_v22 = vor.u32 %v10836_v13, %v8090_v14  ;;  %v7514_v2 = vld [vmem:[%s12325_s1 + $0x98] sm:$0xf0] }
 0x138   : > { %3123 = vmatpush.bf16.msra.mxu1 %v7845_v52  ;;  %v10938_v52 = vld [vmem:[%s12325_s1 + $0x814] sm:$0xf0]  ;;  %v7993_v4 = vor.u32 %v10818_v58, %v7992_v57  ;;  %v10848_v57 = vld [vmem:[%s12325_s1 + $0x54c] sm:$0xf]  ;;  %v7517_v13 = vor.u32 %v10692_v1, %v7514_v2  ;;  %v8912_v1 = vld [vmem:[%s12325_s1 + $0xb50] sm:$0xf] }
 0x139   : > { %3136 = vmatpush.bf16.msra.mxu2 %v8229_v61  ;;  %v8473_v61 = vor.u32 %v10938_v52, %v8472_v49  ;;  %v8664_v49 = vld [vmem:[%s12325_s1 + $0x968] sm:$0xf]  ;;  %v11047_v2 = vld [vmem:[%s12325_s1 + $0xb7c] sm:$0xf0] }
 0x13b   : > { %3149 = vmatpush.bf16.msra.mxu3 %v8613_v0  ;;  %v10926_v0 = vld [vmem:[%s12325_s1 + $0x7b4] sm:$0xf0] }
 0x13c   : > { %v8425_v9 = vor.u32 %v10926_v0, %v8424_v63  ;;  %v8616_v63 = vld [vmem:[%s12325_s1 + $0x908] sm:$0xf]  ;;  %v10974_v0 = vld [vmem:[%s12325_s1 + $0x934] sm:$0xf0] }
 0x177   : > { %v672_v5 = vpop.f32.mrf.mxu0  ;;  %v685_v6 = vpop.f32.mrf.mxu1 }
 0x178   : > { %v12502_v10 = vpack.c.bf16 %v672_v5, %v672_v5  ;;  %v12504_v11 = vpack.c.bf16 %v685_v6, %v685_v6  ;;  %v7560_v5 = vld [vmem:[%s12325_s1 + $0xc8] sm:$0xf]  ;;  %v10710_v6 = vld [vmem:[%s12325_s1 + $0xf4] sm:$0xf0] }
 0x179   : > { %v7561_v17 = vor.u32 %v10710_v6, %v7560_v5  ;;  %v7757_v5 = vor.u32 %v10752_v55, %v7754_v56  ;;  %v10800_v55 = vld [vmem:[%s12325_s1 + $0x3cc] sm:$0xf]  ;;  %v7946_v56 = vld [vmem:[%s12325_s1 + $0x3f8] sm:$0xf0] }
 0x17a   : > { %3059 = vmatmul.bf16.vlgmr.msrb.gmra.mxu0 %v12502_v10  ;;  %3072 = vmatmul.bf16.vlgmr.msrb.gmra.mxu1 %v12504_v11 }
 0x17b   : > { %3155 = vmatpush.bf16.msrb.mxu0 %v7801_v7  ;;  %3168 = vmatpush.bf16.msrb.mxu1 %v8185_v8  ;;  %v7944_v7 = vld [vmem:[%s12325_s1 + $0x3c8] sm:$0xf]  ;;  %v10806_v8 = vld [vmem:[%s12325_s1 + $0x3f4] sm:$0xf0] }
 0x17f   : > { %v698_v25 = vpop.f32.mrf.mxu2  ;;  %3156 = vmatpush.bf16.msrb.mxu0 %v7753_v18  ;;  %3169 = vmatpush.bf16.msrb.mxu1 %v8137_v19  ;;  %v674_v34 = vpop.f32.mrf.mxu0  ;;  %v7945_v18 = vor.u32 %v10806_v8, %v7944_v7  ;;  %v7512_v19 = vld [vmem:[%s12325_s1 + $0x68] sm:$0xf]  ;;  %v10740_v7 = vld [vmem:[%s12325_s1 + $0x1ec] sm:$0xf] }
 0x180   : > { %v12521_v32 = vpack.c.bf16 %v698_v25, %v698_v25  ;;  %v687_v35 = vpop.f32.mrf.mxu1  ;;  %v8328_v25 = vld [vmem:[%s12325_s1 + $0x6c8] sm:$0xf]  ;;  %v10686_v34 = vld [vmem:[%s12325_s1 + $0x34] sm:$0xf0] }
 0x181   : > { %v711_v26 = vpop.f32.mrf.mxu3  ;;  %v7848_v35 = vld [vmem:[%s12325_s1 + $0x308] sm:$0xf] }
 0x182   : > { %v12523_v33 = vpack.c.bf16 %v711_v26, %v711_v26  ;;  %3085 = vmatmul.bf16.vlgmr.msrb.gmra.mxu2 %v12521_v32  ;;  %v10902_v26 = vld [vmem:[%s12325_s1 + $0x6f4] sm:$0xf0] }
 0x183   : > { %3181 = vmatpush.bf16.msrb.mxu2 %v8569_v27  ;;  %3157 = vmatpush.bf16.msrb.mxu0 %v7705_v29  ;;  %v8712_v27 = vld [vmem:[%s12325_s1 + $0x9c8] sm:$0xf]  ;;  %v7513_v29 = vor.u32 %v10698_v20, %v7512_v19  ;;  %v8329_v39 = vor.u32 %v10902_v26, %v8328_v25  ;;  %v11040_v19 = vld [vmem:[%s12325_s1 + $0xb4c] sm:$0xf]  ;;  %v8906_v20 = vld [vmem:[%s12325_s1 + $0xb78] sm:$0xf0] }
 0x184   : > { %3098 = vmatmul.bf16.vlgmr.msrb.gmra.mxu3 %v12523_v33  ;;  %3170 = vmatpush.bf16.msrb.mxu1 %v8089_v36  ;;  %v10782_v36 = vld [vmem:[%s12325_s1 + $0x334] sm:$0xf0]  ;;  %v10824_v25 = vld [vmem:[%s12325_s1 + $0x48c] sm:$0xf]  ;;  %v8042_v26 = vld [vmem:[%s12325_s1 + $0x4b8] sm:$0xf0] }
 0x185   : > { %3194 = vmatpush.bf16.msrb.mxu3 %v8953_v28  ;;  %v10998_v28 = vld [vmem:[%s12325_s1 + $0x9f4] sm:$0xf0]  ;;  %v7849_v52 = vor.u32 %v10782_v36, %v7848_v35  ;;  %v8045_v36 = vor.u32 %v10824_v25, %v8042_v26  ;;  %v10884_v25 = vld [vmem:[%s12325_s1 + $0x66c] sm:$0xf]  ;;  %v8282_v26 = vld [vmem:[%s12325_s1 + $0x698] sm:$0xf0] }
 0x186   : > { %v8713_v40 = vor.u32 %v10998_v28, %v8712_v27  ;;  %v8909_v28 = vor.u32 %v11040_v19, %v8906_v20  ;;  %v7808_v19 = vld [vmem:[%s12325_s1 + $0x2b0] sm:$0xf]  ;;  %v10771_v20 = vld [vmem:[%s12325_s1 + $0x2dc] sm:$0xf0] }
 0x187   : > { %3182 = vmatpush.bf16.msrb.mxu2 %v8521_v46  ;;  %v700_v59 = vpop.f32.mrf.mxu2  ;;  %3158 = vmatpush.bf16.msrb.mxu0 %v7657_v50  ;;  %v8280_v46 = vld [vmem:[%s12325_s1 + $0x668] sm:$0xf]  ;;  %v10986_v50 = vld [vmem:[%s12325_s1 + $0x994] sm:$0xf0] }
 0x188   : > { %3171 = vmatpush.bf16.msrb.mxu1 %v8041_v51  ;;  %v7465_v51 = vor.u32 %v10686_v34, %v7464_v31  ;;  %v8665_v59 = vor.u32 %v10986_v50, %v8664_v49  ;;  %v11028_v31 = vld [vmem:[%s12325_s1 + $0xaec] sm:$0xf]  ;;  %v8858_v34 = vld [vmem:[%s12325_s1 + $0xb18] sm:$0xf0] }
 0x189   : > { %3195 = vmatpush.bf16.msrb.mxu3 %v8905_v47  ;;  %v713_v60 = vpop.f32.mrf.mxu3  ;;  %v10890_v47 = vld [vmem:[%s12325_s1 + $0x694] sm:$0xf0]  ;;  %v8861_v42 = vor.u32 %v11028_v31, %v8858_v34  ;;  %v11016_v49 = vld [vmem:[%s12325_s1 + $0xa8c] sm:$0xf]  ;;  %v8810_v50 = vld [vmem:[%s12325_s1 + $0xab8] sm:$0xf0]  ;;  %v7809_v31 = vor.u32 %v10771_v20, %v7808_v19 }
 0x18a   : > { %3111 = vmatmul.bf16.vlgmr.msra.gmra.mxu0 %v12502_v10  ;;  %3124 = vmatmul.bf16.vlgmr.msra.gmra.mxu1 %v12504_v11  ;;  %v8281_v58 = vor.u32 %v10890_v47, %v8280_v46  ;;  %v8138_v60 = vld [vmem:[%s12325_s1 + $0x578] sm:$0xf0]  ;;  %v10920_v46 = vld [vmem:[%s12325_s1 + $0x78c] sm:$0xf]  ;;  %v7616_v19 = vld [vmem:[%s12325_s1 + $0x130] sm:$0xf] }
 0x18b   : > { %3183 = vmatpush.bf16.msrb.mxu2 %v8473_v61  ;;  %3159 = vmatpush.bf16.msrb.mxu0 %v7609_v3  ;;  %v8232_v61 = vld [vmem:[%s12325_s1 + $0x608] sm:$0xf]  ;;  %v11052_v3 = vld [vmem:[%s12325_s1 + $0xbac] sm:$0xf]  ;;  %v8141_v6 = vor.u32 %v10848_v57, %v8138_v60  ;;  %v8426_v47 = vld [vmem:[%s12325_s1 + $0x7b8] sm:$0xf0] }
 0x18c   : > { %3172 = vmatpush.bf16.msrb.mxu1 %v7993_v4  ;;  %v8954_v4 = vld [vmem:[%s12325_s1 + $0xbd8] sm:$0xf0]  ;;  %v8429_v57 = vor.u32 %v10920_v46, %v8426_v47  ;;  %v10968_v46 = vld [vmem:[%s12325_s1 + $0x90c] sm:$0xf]  ;;  %v10723_v20 = vld [vmem:[%s12325_s1 + $0x15c] sm:$0xf0] }
 0x18d   : > { %3196 = vmatpush.bf16.msrb.mxu3 %v8857_v62  ;;  %v10878_v62 = vld [vmem:[%s12325_s1 + $0x634] sm:$0xf0]  ;;  %v8957_v16 = vor.u32 %v11052_v3, %v8954_v4  ;;  %v8378_v60 = vld [vmem:[%s12325_s1 + $0x758] sm:$0xf0]  ;;  %v10788_v3 = vld [vmem:[%s12325_s1 + $0x36c] sm:$0xf] }
 0x18e   : > { %v8233_v8 = vor.u32 %v10878_v62, %v8232_v61  ;;  %v11004_v61 = vld [vmem:[%s12325_s1 + $0xa2c] sm:$0xf]  ;;  %v8762_v62 = vld [vmem:[%s12325_s1 + $0xa58] sm:$0xf0] }
 0x18f   : > { %3184 = vmatpush.bf16.msrb.mxu2 %v8425_v9  ;;  %3160 = vmatpush.bf16.msrb.mxu0 %v7561_v17  ;;  %v8617_v9 = vor.u32 %v10974_v0, %v8616_v63  ;;  %v10944_v17 = vld [vmem:[%s12325_s1 + $0x84c] sm:$0xf]  ;;  %v7949_v0 = vor.u32 %v10800_v55, %v7946_v56  ;;  %v7898_v4 = vld [vmem:[%s12325_s1 + $0x398] sm:$0xf0] }
 0x190   : > { %3173 = vmatpush.bf16.msrb.mxu1 %v7945_v18  ;;  %v8522_v18 = vld [vmem:[%s12325_s1 + $0x878] sm:$0xf0]  ;;  %v7901_v14 = vor.u32 %v10788_v3, %v7898_v4 }
 0x191   : > { %3197 = vmatpush.bf16.msrb.mxu3 %v8809_v12  ;;  %v7706_v12 = vld [vmem:[%s12325_s1 + $0x218] sm:$0xf0]  ;;  %v8525_v27 = vor.u32 %v10944_v17, %v8522_v18  ;;  %v10776_v17 = vld [vmem:[%s12325_s1 + $0x30c] sm:$0xf] }
 0x192   : > { %3137 = vmatmul.bf16.vlgmr.msra.gmra.mxu2 %v12521_v32  ;;  %v7709_v21 = vor.u32 %v10740_v7, %v7706_v12  ;;  %v10896_v7 = vld [vmem:[%s12325_s1 + $0x6cc] sm:$0xf]  ;;  %v8714_v12 = vld [vmem:[%s12325_s1 + $0x9f8] sm:$0xf0] }
 0x193   : > { %3185 = vmatpush.bf16.msrb.mxu2 %v8377_v23  ;;  %3161 = vmatpush.bf16.msrb.mxu0 %v7513_v29  ;;  %v10728_v23 = vld [vmem:[%s12325_s1 + $0x18c] sm:$0xf]  ;;  %v7850_v18 = vld [vmem:[%s12325_s1 + $0x338] sm:$0xf0] }
 0x194   : > { %3150 = vmatmul.bf16.vlgmr.msra.gmra.mxu3 %v12523_v33  ;;  %3174 = vmatpush.bf16.msrb.mxu1 %v7897_v30  ;;  %v10932_v29 = vld [vmem:[%s12325_s1 + $0x7ec] sm:$0xf]  ;;  %v8474_v30 = vld [vmem:[%s12325_s1 + $0x818] sm:$0xf0] }
 0x195   : > { %3198 = vmatpush.bf16.msrb.mxu3 %v8761_v24  ;;  %v7658_v24 = vld [vmem:[%s12325_s1 + $0x1b8] sm:$0xf0]  ;;  %v8477_v41 = vor.u32 %v10932_v29, %v8474_v30  ;;  %v7853_v30 = vor.u32 %v10776_v17, %v7850_v18 }
 0x196   : > { %v7661_v35 = vor.u32 %v10728_v23, %v7658_v24  ;;  %v8192_v23 = vld [vmem:[%s12325_s1 + $0x5b0] sm:$0xf]  ;;  %v10867_v24 = vld [vmem:[%s12325_s1 + $0x5dc] sm:$0xf0]  ;;  %v8618_v47 = vld [vmem:[%s12325_s1 + $0x938] sm:$0xf0] }
 0x197   : > { %3186 = vmatpush.bf16.msrb.mxu2 %v8329_v39  ;;  %3162 = vmatpush.bf16.msrb.mxu0 %v7465_v51  ;;  %v10812_v39 = vld [vmem:[%s12325_s1 + $0x42c] sm:$0xf]  ;;  %v7613_v51 = vor.u32 %v10716_v37, %v7610_v38  ;;  %v8193_v34 = vor.u32 %v10867_v24, %v8192_v23  ;;  %v8144_v37 = vld [vmem:[%s12325_s1 + $0x550] sm:$0xf]  ;;  %v8285_v38 = vor.u32 %v10884_v25, %v8282_v26  ;;  %v10819_v24 = vld [vmem:[%s12325_s1 + $0x45c] sm:$0xf0] }
 0x198   : > { %3175 = vmatpush.bf16.msrb.mxu1 %v7849_v52  ;;  %v8621_v56 = vor.u32 %v10968_v46, %v8618_v47  ;;  %v8000_v23 = vld [vmem:[%s12325_s1 + $0x430] sm:$0xf]  ;;  %v10927_v26 = vld [vmem:[%s12325_s1 + $0x7bc] sm:$0xf0] }
 0x199   : > { %3199 = vmatpush.bf16.msrb.mxu3 %v8713_v40  ;;  %v7994_v40 = vld [vmem:[%s12325_s1 + $0x458] sm:$0xf0]  ;;  %v8432_v25 = vld [vmem:[%s12325_s1 + $0x790] sm:$0xf] }
 0x19a   : > { %3163 = vmatmul.bf16.vlgmr.msrb.gmra.mxu0 %v12502_v10  ;;  %v7997_v52 = vor.u32 %v10812_v39, %v7994_v40  ;;  %v10855_v40 = vld [vmem:[%s12325_s1 + $0x57c] sm:$0xf0] }
 0x19b   : > { %3207 = vmatpush.bf16.msra.mxu0 %v7805_v53  ;;  %3187 = vmatpush.bf16.msrb.mxu2 %v8281_v58  ;;  %v10704_v53 = vld [vmem:[%s12325_s1 + $0xcc] sm:$0xf]  ;;  %v8813_v58 = vor.u32 %v11016_v49, %v8810_v50  ;;  %v8576_v49 = vld [vmem:[%s12325_s1 + $0x8b0] sm:$0xf]  ;;  %v10963_v50 = vld [vmem:[%s12325_s1 + $0x8dc] sm:$0xf0] }
 0x19c   : > { %3220 = vmatpush.bf16.msra.mxu1 %v8189_v54  ;;  %v7562_v54 = vld [vmem:[%s12325_s1 + $0xf8] sm:$0xf0] }
 0x19d   : > { %3200 = vmatpush.bf16.msrb.mxu3 %v8665_v59  ;;  %3176 = vmatmul.bf16.vlgmr.msrb.gmra.mxu1 %v12504_v11  ;;  %v10908_v59 = vld [vmem:[%s12325_s1 + $0x72c] sm:$0xf]  ;;  %v7565_v63 = vor.u32 %v10704_v53, %v7562_v54  ;;  %v8145_v54 = vor.u32 %v10855_v40, %v8144_v37  ;;  %v7952_v37 = vld [vmem:[%s12325_s1 + $0x3d0] sm:$0xf]  ;;  %v10915_v40 = vld [vmem:[%s12325_s1 + $0x75c] sm:$0xf0] }
 0x19f   : > { %3208 = vmatpush.bf16.msra.mxu0 %v7757_v5  ;;  %3188 = vmatpush.bf16.msrb.mxu2 %v8233_v8  ;;  %v8381_v5 = vor.u32 %v10908_v59, %v8378_v60  ;;  %v8330_v8 = vld [vmem:[%s12325_s1 + $0x6f8] sm:$0xf0]  ;;  %v8577_v59 = vor.u32 %v10963_v50, %v8576_v49  ;;  %v7520_v49 = vld [vmem:[%s12325_s1 + $0x70] sm:$0xf]  ;;  %v10699_v50 = vld [vmem:[%s12325_s1 + $0x9c] sm:$0xf0] }
 0x1a0   : > { %3221 = vmatpush.bf16.msra.mxu1 %v8141_v6  ;;  %v8765_v6 = vor.u32 %v11004_v61, %v8762_v62  ;;  %v8096_v61 = vld [vmem:[%s12325_s1 + $0x4f0] sm:$0xf]  ;;  %v10843_v62 = vld [vmem:[%s12325_s1 + $0x51c] sm:$0xf0] }
 0x1a1   : > { %3201 = vmatpush.bf16.msrb.mxu3 %v8617_v9  ;;  %v10992_v9 = vld [vmem:[%s12325_s1 + $0x9cc] sm:$0xf]  ;;  %v8097_v4 = vor.u32 %v10843_v62, %v8096_v61  ;;  %v7472_v61 = vld [vmem:[%s12325_s1 + $0x10] sm:$0xf]  ;;  %v10687_v62 = vld [vmem:[%s12325_s1 + $0x3c] sm:$0xf0] }
 0x1a2   : > { %3189 = vmatmul.bf16.vlgmr.msrb.gmra.mxu2 %v12521_v32 }
 0x1a3   : > { %3233 = vmatpush.bf16.msra.mxu2 %v8573_v15  ;;  %3209 = vmatpush.bf16.msra.mxu0 %v7709_v21  ;;  %v10680_v15 = vld [vmem:[%s12325_s1 + $0xc] sm:$0xf]  ;;  %v8333_v21 = vor.u32 %v10896_v7, %v8330_v8  ;;  %v8913_v8 = vor.u32 %v11047_v2, %v8912_v1  ;;  %v10783_v2 = vld [vmem:[%s12325_s1 + $0x33c] sm:$0xf0] }
 0x1a4   : > { %3222 = vmatpush.bf16.msra.mxu1 %v8093_v22  ;;  %3202 = vmatmul.bf16.vlgmr.msrb.gmra.mxu3 %v12523_v33  ;;  %v8717_v22 = vor.u32 %v10992_v9, %v8714_v12  ;;  %v8048_v9 = vld [vmem:[%s12325_s1 + $0x490] sm:$0xf]  ;;  %v10831_v12 = vld [vmem:[%s12325_s1 + $0x4bc] sm:$0xf0] }
 0x1a5   : > { %3246 = vmatpush.bf16.msra.mxu3 %v8957_v16  ;;  %v7466_v16 = vld [vmem:[%s12325_s1 + $0x38] sm:$0xf0]  ;;  %v8049_v18 = vor.u32 %v10831_v12, %v8048_v9  ;;  %v8672_v9 = vld [vmem:[%s12325_s1 + $0x970] sm:$0xf]  ;;  %v10987_v12 = vld [vmem:[%s12325_s1 + $0x99c] sm:$0xf0] }
 0x1a6   : > { %v7469_v29 = vor.u32 %v10680_v15, %v7466_v16  ;;  %v8864_v15 = vld [vmem:[%s12325_s1 + $0xaf0] sm:$0xf]  ;;  %v11035_v16 = vld [vmem:[%s12325_s1 + $0xb1c] sm:$0xf0] }
 0x1a7   : > { %3234 = vmatpush.bf16.msra.mxu2 %v8525_v27  ;;  %3210 = vmatpush.bf16.msra.mxu0 %v7661_v35  ;;  %v10980_v27 = vld [vmem:[%s12325_s1 + $0x96c] sm:$0xf]  ;;  %v7760_v35 = vld [vmem:[%s12325_s1 + $0x250] sm:$0xf] }
 0x1a8   : > { %3223 = vmatpush.bf16.msra.mxu1 %v8045_v36  ;;  %v10759_v36 = vld [vmem:[%s12325_s1 + $0x27c] sm:$0xf0] }
 0x1a9   : > { %3247 = vmatpush.bf16.msra.mxu3 %v8909_v28  ;;  %v8666_v28 = vld [vmem:[%s12325_s1 + $0x998] sm:$0xf0]  ;;  %v7761_v53 = vor.u32 %v10759_v36, %v7760_v35  ;;  %v8433_v35 = vor.u32 %v10927_v26, %v8432_v25  ;;  %v8624_v25 = vld [vmem:[%s12325_s1 + $0x910] sm:$0xf]  ;;  %v10975_v26 = vld [vmem:[%s12325_s1 + $0x93c] sm:$0xf0] }
 0x1aa   : > { %v8669_v39 = vor.u32 %v10980_v27, %v8666_v28  ;;  %v8816_v27 = vld [vmem:[%s12325_s1 + $0xa90] sm:$0xf]  ;;  %v11023_v28 = vld [vmem:[%s12325_s1 + $0xabc] sm:$0xf0] }
 0x1ab   : > { %3235 = vmatpush.bf16.msra.mxu2 %v8477_v41  ;;  %3211 = vmatpush.bf16.msra.mxu0 %v7613_v51  ;;  %v10872_v41 = vld [vmem:[%s12325_s1 + $0x60c] sm:$0xf]  ;;  %v8960_v51 = vld [vmem:[%s12325_s1 + $0xbb0] sm:$0xf]  ;;  %v8817_v36 = vor.u32 %v11023_v28, %v8816_v27  ;;  %v10957_v27 = vld [vmem:[%s12325_s1 + $0x8b4] sm:$0xf] }
 0x1ac   : > { %3224 = vmatpush.bf16.msra.mxu1 %v7997_v52  ;;  %v11059_v52 = vld [vmem:[%s12325_s1 + $0xbdc] sm:$0xf0]  ;;  %v8578_v28 = vld [vmem:[%s12325_s1 + $0x8e0] sm:$0xf0] }
 0x1ad   : > { %3248 = vmatpush.bf16.msra.mxu3 %v8861_v42  ;;  %v8234_v42 = vld [vmem:[%s12325_s1 + $0x638] sm:$0xf0]  ;;  %v8961_v60 = vor.u32 %v11059_v52, %v8960_v51 }
 0x1ae   : > { %v8237_v55 = vor.u32 %v10872_v41, %v8234_v42  ;;  %v8768_v41 = vld [vmem:[%s12325_s1 + $0xa30] sm:$0xf]  ;;  %v11011_v42 = vld [vmem:[%s12325_s1 + $0xa5c] sm:$0xf0] }
 0x1af   : > { %3236 = vmatpush.bf16.msra.mxu2 %v8429_v57  ;;  %3212 = vmatpush.bf16.msra.mxu0 %v7565_v63  ;;  %v7712_v57 = vld [vmem:[%s12325_s1 + $0x1f0] sm:$0xf]  ;;  %v8769_v52 = vor.u32 %v11011_v42, %v8768_v41  ;;  %v10837_v41 = vld [vmem:[%s12325_s1 + $0x4f4] sm:$0xf]  ;;  %v8098_v42 = vld [vmem:[%s12325_s1 + $0x520] sm:$0xf0] }
 0x1b0   : > { %3225 = vmatpush.bf16.msra.mxu1 %v7949_v0  ;;  %v8528_v63 = vld [vmem:[%s12325_s1 + $0x850] sm:$0xf]  ;;  %v10951_v0 = vld [vmem:[%s12325_s1 + $0x87c] sm:$0xf0] }
 0x1b1   : > { %3249 = vmatpush.bf16.msra.mxu3 %v8813_v58  ;;  %v10747_v58 = vld [vmem:[%s12325_s1 + $0x21c] sm:$0xf0]  ;;  %v8529_v7 = vor.u32 %v10951_v0, %v8528_v63  ;;  %v7856_v63 = vld [vmem:[%s12325_s1 + $0x310] sm:$0xf] }
 0x1b2   : > { %v7713_v3 = vor.u32 %v10747_v58, %v7712_v57  ;;  %v8720_v57 = vld [vmem:[%s12325_s1 + $0x9d0] sm:$0xf]  ;;  %v10999_v58 = vld [vmem:[%s12325_s1 + $0x9fc] sm:$0xf0] }
 0x1b3   : > { %3237 = vmatpush.bf16.msra.mxu2 %v8381_v5  ;;  %3213 = vmatpush.bf16.msra.mxu0 %v7517_v13  ;;  %v7664_v5 = vld [vmem:[%s12325_s1 + $0x190] sm:$0xf]  ;;  %v8721_v1 = vor.u32 %v10999_v58, %v8720_v57  ;;  %v10825_v57 = vld [vmem:[%s12325_s1 + $0x494] sm:$0xf]  ;;  %v8050_v58 = vld [vmem:[%s12325_s1 + $0x4c0] sm:$0xf0] }
 0x1b4   : > { %3226 = vmatpush.bf16.msra.mxu1 %v7901_v14  ;;  %v8480_v13 = vld [vmem:[%s12325_s1 + $0x7f0] sm:$0xf]  ;;  %v10939_v14 = vld [vmem:[%s12325_s1 + $0x81c] sm:$0xf0] }
 0x1b5   : > { %3250 = vmatpush.bf16.msra.mxu3 %v8765_v6  ;;  %v10735_v6 = vld [vmem:[%s12325_s1 + $0x1bc] sm:$0xf0] }
 0x1b6   : > { %v7665_v17 = vor.u32 %v10735_v6, %v7664_v5  ;;  %v10861_v5 = vld [vmem:[%s12325_s1 + $0x5b4] sm:$0xf]  ;;  %v8194_v6 = vld [vmem:[%s12325_s1 + $0x5e0] sm:$0xf0] }
 0x1b7   : > { %3238 = vmatpush.bf16.msra.mxu2 %v8333_v21  ;;  %3214 = vmatpush.bf16.msra.mxu0 %v7469_v29  ;;  %v8481_v21 = vor.u32 %v10939_v14, %v8480_v13  ;;  %v7617_v29 = vor.u32 %v10723_v20, %v7616_v19  ;;  %v7473_v13 = vor.u32 %v10687_v62, %v7472_v61  ;;  %v10849_v19 = vld [vmem:[%s12325_s1 + $0x554] sm:$0xf]  ;;  %v8866_v62 = vld [vmem:[%s12325_s1 + $0xb20] sm:$0xf0] }
 0x1b8   : > { %3227 = vmatpush.bf16.msra.mxu1 %v7853_v30  ;;  %v8001_v30 = vor.u32 %v10819_v24, %v8000_v23  ;;  %v7857_v14 = vor.u32 %v10783_v2, %v7856_v63  ;;  %v8240_v23 = vld [vmem:[%s12325_s1 + $0x610] sm:$0xf]  ;;  %v10879_v24 = vld [vmem:[%s12325_s1 + $0x63c] sm:$0xf0]  ;;  %v11029_v61 = vld [vmem:[%s12325_s1 + $0xaf4] sm:$0xf] }
 0x1b9   : > { %3251 = vmatpush.bf16.msra.mxu3 %v8717_v22  ;;  %v8865_v22 = vor.u32 %v11035_v16, %v8864_v15  ;;  %v8197_v16 = vor.u32 %v10861_v5, %v8194_v6  ;;  %v7618_v2 = vld [vmem:[%s12325_s1 + $0x160] sm:$0xf0]  ;;  %v10813_v5 = vld [vmem:[%s12325_s1 + $0x434] sm:$0xf] }
 0x1ba   : > { %3215 = vmatmul.bf16.vlgmr.msra.gmra.mxu0 %v12502_v10  ;;  %v8002_v6 = vld [vmem:[%s12325_s1 + $0x460] sm:$0xf0] }
 0x1bb   : > { %3259 = vmatpush.bf16.msrb.mxu0 %v7809_v31  ;;  %3239 = vmatpush.bf16.msra.mxu2 %v8285_v38  ;;  %v7568_v31 = vld [vmem:[%s12325_s1 + $0xd0] sm:$0xf]  ;;  %v10807_v38 = vld [vmem:[%s12325_s1 + $0x3fc] sm:$0xf0] }
 0x1bc   : > { %3272 = vmatpush.bf16.msrb.mxu1 %v8193_v34  ;;  %v10711_v34 = vld [vmem:[%s12325_s1 + $0xfc] sm:$0xf0]  ;;  %v7953_v47 = vor.u32 %v10807_v38, %v7952_v37  ;;  %v10741_v37 = vld [vmem:[%s12325_s1 + $0x1f4] sm:$0xf]  ;;  %v7714_v38 = vld [vmem:[%s12325_s1 + $0x220] sm:$0xf0] }
 0x1bd   : > { %3252 = vmatpush.bf16.msra.mxu3 %v8669_v39  ;;  %3228 = vmatmul.bf16.vlgmr.msra.gmra.mxu1 %v12504_v11  ;;  %v8384_v39 = vld [vmem:[%s12325_s1 + $0x730] sm:$0xf]  ;;  %v7569_v46 = vor.u32 %v10711_v34, %v7568_v31 }
 0x1be   : > { %v8385_v51 = vor.u32 %v10915_v40, %v8384_v39  ;;  %v8581_v39 = vor.u32 %v10957_v27, %v8578_v28  ;;  %v10693_v27 = vld [vmem:[%s12325_s1 + $0x74] sm:$0xf]  ;;  %v7522_v28 = vld [vmem:[%s12325_s1 + $0xa0] sm:$0xf0] }
 0x1bf   : > { %3260 = vmatpush.bf16.msrb.mxu0 %v7761_v53  ;;  %3240 = vmatpush.bf16.msra.mxu2 %v8237_v55  ;;  %v7904_v53 = vld [vmem:[%s12325_s1 + $0x370] sm:$0xf] }
 0x1c0   : > { %3273 = vmatpush.bf16.msrb.mxu1 %v8145_v54  ;;  %v10795_v54 = vld [vmem:[%s12325_s1 + $0x39c] sm:$0xf0]  ;;  %v8336_v55 = vld [vmem:[%s12325_s1 + $0x6d0] sm:$0xf] }
 0x1c1   : > { %3253 = vmatpush.bf16.msra.mxu3 %v8621_v56  ;;  %v10903_v56 = vld [vmem:[%s12325_s1 + $0x6fc] sm:$0xf0] }
 0x1c2   : > { %3241 = vmatmul.bf16.vlgmr.msra.gmra.mxu2 %v12521_v32  ;;  %v8337_v0 = vor.u32 %v10903_v56, %v8336_v55 }
 0x1c3   : > { %3285 = vmatpush.bf16.msrb.mxu2 %v8577_v59  ;;  %3261 = vmatpush.bf16.msrb.mxu0 %v7713_v3  ;;  %v7521_v59 = vor.u32 %v10699_v50, %v7520_v49  ;;  %v10765_v3 = vld [vmem:[%s12325_s1 + $0x2b4] sm:$0xf]  ;;  %v8914_v50 = vld [vmem:[%s12325_s1 + $0xb80] sm:$0xf0] }
 0x1c4   : > { %3254 = vmatmul.bf16.vlgmr.msra.gmra.mxu3 %v12523_v33  ;;  %3274 = vmatpush.bf16.msrb.mxu1 %v8097_v4  ;;  %v7810_v4 = vld [vmem:[%s12325_s1 + $0x2e0] sm:$0xf0]  ;;  %v11041_v49 = vld [vmem:[%s12325_s1 + $0xb54] sm:$0xf] }
 0x1c5   : > { %3298 = vmatpush.bf16.msrb.mxu3 %v8961_v60  ;;  %v7905_v60 = vor.u32 %v10795_v54, %v7904_v53  ;;  %v7813_v15 = vor.u32 %v10765_v3, %v7810_v4  ;;  %v10729_v53 = vld [vmem:[%s12325_s1 + $0x194] sm:$0xf]  ;;  %v7666_v54 = vld [vmem:[%s12325_s1 + $0x1c0] sm:$0xf0]  ;;  %v8917_v56 = vor.u32 %v11041_v49, %v8914_v50  ;;  %v8869_v4 = vor.u32 %v11029_v61, %v8866_v62  ;;  %v7768_v61 = vld [vmem:[%s12325_s1 + $0x258] sm:$0xf] }
 0x1c6   : > { %v7669_v63 = vor.u32 %v10729_v53, %v7666_v54  ;;  %v7858_v50 = vld [vmem:[%s12325_s1 + $0x340] sm:$0xf0]  ;;  %v8200_v53 = vld [vmem:[%s12325_s1 + $0x5b8] sm:$0xf]  ;;  %v10868_v54 = vld [vmem:[%s12325_s1 + $0x5e4] sm:$0xf0] }
 0x1c7   : > { %3286 = vmatpush.bf16.msrb.mxu2 %v8529_v7  ;;  %3262 = vmatpush.bf16.msrb.mxu0 %v7665_v17  ;;  %v8288_v7 = vld [vmem:[%s12325_s1 + $0x670] sm:$0xf]  ;;  %v10753_v17 = vld [vmem:[%s12325_s1 + $0x254] sm:$0xf] }
 0x1c8   : > { %3275 = vmatpush.bf16.msrb.mxu1 %v8049_v18  ;;  %v7762_v18 = vld [vmem:[%s12325_s1 + $0x280] sm:$0xf0] }
 0x1c9   : > { %3299 = vmatpush.bf16.msrb.mxu3 %v8913_v8  ;;  %v10891_v8 = vld [vmem:[%s12325_s1 + $0x69c] sm:$0xf0]  ;;  %v7765_v31 = vor.u32 %v10753_v17, %v7762_v18 }
 0x1ca   : > { %v8289_v20 = vor.u32 %v10891_v8, %v8288_v7  ;;  %v10921_v7 = vld [vmem:[%s12325_s1 + $0x794] sm:$0xf]  ;;  %v8434_v8 = vld [vmem:[%s12325_s1 + $0x7c0] sm:$0xf0] }
 0x1cb   : > { %3287 = vmatpush.bf16.msrb.mxu2 %v8481_v21  ;;  %3263 = vmatpush.bf16.msrb.mxu0 %v7617_v29  ;;  %v8673_v21 = vor.u32 %v10987_v12, %v8672_v9  ;;  %v11053_v29 = vld [vmem:[%s12325_s1 + $0xbb4] sm:$0xf]  ;;  %v8818_v12 = vld [vmem:[%s12325_s1 + $0xac0] sm:$0xf0]  ;;  %v8437_v17 = vor.u32 %v10921_v7, %v8434_v8 }
 0x1cc   : > { %3276 = vmatpush.bf16.msrb.mxu1 %v8001_v30  ;;  %v8962_v30 = vld [vmem:[%s12325_s1 + $0xbe0] sm:$0xf0]  ;;  %v11017_v9 = vld [vmem:[%s12325_s1 + $0xa94] sm:$0xf] }
 0x1cd   : > { %3300 = vmatpush.bf16.msrb.mxu3 %v8865_v22  ;;  %v8146_v22 = vld [vmem:[%s12325_s1 + $0x580] sm:$0xf0]  ;;  %v8965_v40 = vor.u32 %v11053_v29, %v8962_v30  ;;  %v8821_v18 = vor.u32 %v11017_v9, %v8818_v12  ;;  %v10969_v7 = vld [vmem:[%s12325_s1 + $0x914] sm:$0xf]  ;;  %v8584_v9 = vld [vmem:[%s12325_s1 + $0x8b8] sm:$0xf] }
 0x1ce   : > { %v8149_v34 = vor.u32 %v10849_v19, %v8146_v22  ;;  %v10801_v19 = vld [vmem:[%s12325_s1 + $0x3d4] sm:$0xf]  ;;  %v8386_v22 = vld [vmem:[%s12325_s1 + $0x760] sm:$0xf0]  ;;  %v10964_v12 = vld [vmem:[%s12325_s1 + $0x8e4] sm:$0xf0] }
 0x1cf   : > { %3288 = vmatpush.bf16.msrb.mxu2 %v8433_v35  ;;  %3264 = vmatpush.bf16.msrb.mxu0 %v7569_v46  ;;  %v8241_v35 = vor.u32 %v10879_v24, %v8240_v23  ;;  %v10945_v46 = vld [vmem:[%s12325_s1 + $0x854] sm:$0xf]  ;;  %v8770_v24 = vld [vmem:[%s12325_s1 + $0xa60] sm:$0xf0] }
 0x1d0   : > { %3277 = vmatpush.bf16.msrb.mxu1 %v7953_v47  ;;  %v8530_v47 = vld [vmem:[%s12325_s1 + $0x880] sm:$0xf0]  ;;  %v11005_v23 = vld [vmem:[%s12325_s1 + $0xa34] sm:$0xf] }
 0x1d1   : > { %3301 = vmatpush.bf16.msrb.mxu3 %v8817_v36  ;;  %v8625_v36 = vor.u32 %v10975_v26, %v8624_v25  ;;  %v8533_v55 = vor.u32 %v10945_v46, %v8530_v47  ;;  %v8773_v30 = vor.u32 %v11005_v23, %v8770_v24  ;;  %v10777_v46 = vld [vmem:[%s12325_s1 + $0x314] sm:$0xf]  ;;  %v8626_v8 = vld [vmem:[%s12325_s1 + $0x940] sm:$0xf0]  ;;  %v8585_v23 = vor.u32 %v10964_v12, %v8584_v9  ;;  %v7960_v9 = vld [vmem:[%s12325_s1 + $0x3d8] sm:$0xf] }
 0x1d2   : > { %v10808_v12 = vld [vmem:[%s12325_s1 + $0x404] sm:$0xf0] }
 0x1d3   : > { %3289 = vmatpush.bf16.msrb.mxu2 %v8385_v51  ;;  %3265 = vmatpush.bf16.msrb.mxu0 %v7521_v59  ;;  %v7717_v51 = vor.u32 %v10741_v37, %v7714_v38  ;;  %v10933_v59 = vld [vmem:[%s12325_s1 + $0x7f4] sm:$0xf]  ;;  %v8722_v38 = vld [vmem:[%s12325_s1 + $0xa00] sm:$0xf0] }
 0x1d4   : > { %3278 = vmatpush.bf16.msrb.mxu1 %v7905_v60  ;;  %v8482_v60 = vld [vmem:[%s12325_s1 + $0x820] sm:$0xf0]  ;;  %v10993_v37 = vld [vmem:[%s12325_s1 + $0x9d4] sm:$0xf] }
 0x1d5   : > { %3302 = vmatpush.bf16.msrb.mxu3 %v8769_v52  ;;  %v8101_v52 = vor.u32 %v10837_v41, %v8098_v42  ;;  %v8485_v3 = vor.u32 %v10933_v59, %v8482_v60  ;;  %v10681_v41 = vld [vmem:[%s12325_s1 + $0x14] sm:$0xf]  ;;  %v7474_v42 = vld [vmem:[%s12325_s1 + $0x40] sm:$0xf0]  ;;  %v8725_v49 = vor.u32 %v10993_v37, %v8722_v38  ;;  %v7861_v60 = vor.u32 %v10777_v46, %v7858_v50  ;;  %v7672_v37 = vld [vmem:[%s12325_s1 + $0x198] sm:$0xf] }
 0x1d6   : > { %v7477_v59 = vor.u32 %v10681_v41, %v7474_v42  ;;  %v10736_v38 = vld [vmem:[%s12325_s1 + $0x1c4] sm:$0xf0]  ;;  %v8056_v42 = vld [vmem:[%s12325_s1 + $0x498] sm:$0xf] }
 0x1d7   : > { %3290 = vmatpush.bf16.msrb.mxu2 %v8337_v0  ;;  %3266 = vmatpush.bf16.msrb.mxu0 %v7473_v13  ;;  %v8053_v0 = vor.u32 %v10825_v57, %v8050_v58  ;;  %v10981_v57 = vld [vmem:[%s12325_s1 + $0x974] sm:$0xf]  ;;  %v8674_v58 = vld [vmem:[%s12325_s1 + $0x9a0] sm:$0xf0]  ;;  %v10832_v46 = vld [vmem:[%s12325_s1 + $0x4c4] sm:$0xf0] }
 0x1d8   : > { %3279 = vmatpush.bf16.msrb.mxu1 %v7857_v14  ;;  %v8005_v14 = vor.u32 %v10813_v5, %v8002_v6  ;;  %v10873_v5 = vld [vmem:[%s12325_s1 + $0x614] sm:$0xf]  ;;  %v8242_v6 = vld [vmem:[%s12325_s1 + $0x640] sm:$0xf0]  ;;  %v8872_v50 = vld [vmem:[%s12325_s1 + $0xaf8] sm:$0xf] }
 0x1d9   : > { %3303 = vmatpush.bf16.msrb.mxu3 %v8721_v1  ;;  %v10717_v1 = vld [vmem:[%s12325_s1 + $0x134] sm:$0xf] }
 0x1da   : > { %3267 = vmatmul.bf16.vlgmr.msrb.gmra.mxu0 %v12502_v10  ;;  %v7621_v13 = vor.u32 %v10717_v1, %v7618_v2  ;;  %v8152_v1 = vld [vmem:[%s12325_s1 + $0x558] sm:$0xf]  ;;  %v10856_v2 = vld [vmem:[%s12325_s1 + $0x584] sm:$0xf0] }
 0x1db   : > { %3311 = vmatpush.bf16.msra.mxu0 %v7813_v15  ;;  %3291 = vmatpush.bf16.msrb.mxu2 %v8289_v20  ;;  %v10705_v15 = vld [vmem:[%s12325_s1 + $0xd4] sm:$0xf]  ;;  %v7954_v20 = vld [vmem:[%s12325_s1 + $0x400] sm:$0xf0] }
 0x1dc   : > { %3324 = vmatpush.bf16.msra.mxu1 %v8197_v16  ;;  %v7570_v16 = vld [vmem:[%s12325_s1 + $0x100] sm:$0xf0]  ;;  %v7957_v26 = vor.u32 %v10801_v19, %v7954_v20  ;;  %v8629_v19 = vor.u32 %v10969_v7, %v8626_v8  ;;  %v7720_v20 = vld [vmem:[%s12325_s1 + $0x1f8] sm:$0xf] }
 0x1dd   : > { %3304 = vmatpush.bf16.msrb.mxu3 %v8673_v21  ;;  %3280 = vmatmul.bf16.vlgmr.msrb.gmra.mxu1 %v12504_v11  ;;  %v10909_v21 = vld [vmem:[%s12325_s1 + $0x734] sm:$0xf]  ;;  %v7573_v25 = vor.u32 %v10705_v15, %v7570_v16  ;;  %v12793_v15 = vld [vmem:[#allocation12] sm:$0xff] }
 0x1de   : > { %v8389_v29 = vor.u32 %v10909_v21, %v8386_v22  ;;  %v10748_v21 = vld [vmem:[%s12325_s1 + $0x224] sm:$0xf0]  ;;  %v8104_v22 = vld [vmem:[%s12325_s1 + $0x4f8] sm:$0xf] }
 0x1df   : > { %3312 = vmatpush.bf16.msra.mxu0 %v7765_v31  ;;  %3292 = vmatpush.bf16.msrb.mxu2 %v8241_v35  ;;  %v10789_v31 = vld [vmem:[%s12325_s1 + $0x374] sm:$0xf] }
 0x1e0   : > { %3325 = vmatpush.bf16.msra.mxu1 %v8149_v34  ;;  %v7906_v34 = vld [vmem:[%s12325_s1 + $0x3a0] sm:$0xf0]  ;;  %v10897_v35 = vld [vmem:[%s12325_s1 + $0x6d4] sm:$0xf] }
 0x1e1   : > { %3305 = vmatpush.bf16.msrb.mxu3 %v8625_v36  ;;  %v8338_v36 = vld [vmem:[%s12325_s1 + $0x700] sm:$0xf0] }
 0x1e2   : > { %3293 = vmatmul.bf16.vlgmr.msrb.gmra.mxu2 %v12521_v32  ;;  %v8341_v47 = vor.u32 %v10897_v35, %v8338_v36 }
 0x1e3   : > { %3337 = vmatpush.bf16.msra.mxu2 %v8581_v39  ;;  %3313 = vmatpush.bf16.msra.mxu0 %v7717_v51  ;;  %v7525_v39 = vor.u32 %v10693_v27, %v7522_v28  ;;  %v7816_v51 = vld [vmem:[%s12325_s1 + $0x2b8] sm:$0xf]  ;;  %v10952_v28 = vld [vmem:[%s12325_s1 + $0x884] sm:$0xf0] }
 0x1e4   : > { %3306 = vmatmul.bf16.vlgmr.msrb.gmra.mxu3 %v12523_v33  ;;  %3326 = vmatpush.bf16.msra.mxu1 %v8101_v52  ;;  %v10772_v52 = vld [vmem:[%s12325_s1 + $0x2e4] sm:$0xf0]  ;;  %v8536_v27 = vld [vmem:[%s12325_s1 + $0x858] sm:$0xf] }
 0x1e5   : > { %3350 = vmatpush.bf16.msra.mxu3 %v8965_v40  ;;  %v7909_v40 = vor.u32 %v10789_v31, %v7906_v34  ;;  %v7817_v62 = vor.u32 %v10772_v52, %v7816_v51  ;;  %v7721_v31 = vor.u32 %v10748_v21, %v7720_v20  ;;  %v11036_v51 = vld [vmem:[%s12325_s1 + $0xb24] sm:$0xf0]  ;;  %v7528_v20 = vld [vmem:[%s12325_s1 + $0x78] sm:$0xf] }
 0x1e6   : > { %v10700_v21 = vld [vmem:[%s12325_s1 + $0xa4] sm:$0xf0] }
 0x1e7   : > { %3338 = vmatpush.bf16.msra.mxu2 %v8533_v55  ;;  %3314 = vmatpush.bf16.msra.mxu0 %v7669_v63  ;;  %v10885_v55 = vld [vmem:[%s12325_s1 + $0x674] sm:$0xf]  ;;  %v8201_v63 = vor.u32 %v10868_v54, %v8200_v53  ;;  %v7673_v53 = vor.u32 %v10736_v38, %v7672_v37  ;;  %v8057_v54 = vor.u32 %v10832_v46, %v8056_v42 }
 0x1e8   : > { %3327 = vmatpush.bf16.msra.mxu1 %v8053_v0  ;;  %v10760_v0 = vld [vmem:[%s12325_s1 + $0x284] sm:$0xf0]  ;;  %v7529_v37 = vor.u32 %v10700_v21, %v7528_v20 }
 0x1e9   : > { %3351 = vmatpush.bf16.msra.mxu3 %v8917_v56  ;;  %v8290_v56 = vld [vmem:[%s12325_s1 + $0x6a0] sm:$0xf0]  ;;  %v7769_v16 = vor.u32 %v10760_v0, %v7768_v61  ;;  %v8440_v61 = vld [vmem:[%s12325_s1 + $0x798] sm:$0xf]  ;;  %v11024_v0 = vld [vmem:[%s12325_s1 + $0xac4] sm:$0xf0] }
 0x1eb   : > { %3339 = vmatpush.bf16.msra.mxu2 %v8485_v3  ;;  %3315 = vmatpush.bf16.msra.mxu0 %v7621_v13  ;;  %v8293_v3 = vor.u32 %v10885_v55, %v8290_v56  ;;  %v8968_v13 = vld [vmem:[%s12325_s1 + $0xbb8] sm:$0xf]  ;;  %v10724_v56 = vld [vmem:[%s12325_s1 + $0x164] sm:$0xf0] }
 0x1ec   : > { %3328 = vmatpush.bf16.msra.mxu1 %v8005_v14  ;;  %v11060_v14 = vld [vmem:[%s12325_s1 + $0xbe4] sm:$0xf0]  ;;  %v7624_v55 = vld [vmem:[%s12325_s1 + $0x138] sm:$0xf] }
 0x1ed   : > { %3352 = vmatpush.bf16.msra.mxu3 %v8869_v4  ;;  %v8677_v4 = vor.u32 %v10981_v57, %v8674_v58  ;;  %v8969_v24 = vor.u32 %v11060_v14, %v8968_v13  ;;  %v8873_v58 = vor.u32 %v11036_v51, %v8872_v50  ;;  %v8392_v13 = vld [vmem:[%s12325_s1 + $0x738] sm:$0xf]  ;;  %v10916_v14 = vld [vmem:[%s12325_s1 + $0x764] sm:$0xf0]  ;;  %v10766_v51 = vld [vmem:[%s12325_s1 + $0x2bc] sm:$0xf] }
 0x1ee   : > { %v10784_v50 = vld [vmem:[%s12325_s1 + $0x344] sm:$0xf0] }
 0x1ef   : > { %3340 = vmatpush.bf16.msra.mxu2 %v8437_v17  ;;  %3316 = vmatpush.bf16.msra.mxu0 %v7573_v25  ;;  %v8153_v17 = vor.u32 %v10856_v2, %v8152_v1  ;;  %v10844_v25 = vld [vmem:[%s12325_s1 + $0x524] sm:$0xf0]  ;;  %v7625_v1 = vor.u32 %v10724_v56, %v7624_v55  ;;  %v8202_v55 = vld [vmem:[%s12325_s1 + $0x5e8] sm:$0xf0]  ;;  %v8296_v56 = vld [vmem:[%s12325_s1 + $0x678] sm:$0xf] }
 0x1f0   : > { %3329 = vmatpush.bf16.msra.mxu1 %v7957_v26  ;;  %v1107_v26 = vperm.slane %v12793_v15, 0  ;;  %v8105_v34 = vor.u32 %v10844_v25, %v8104_v22  ;;  %v7912_v22 = vld [vmem:[%s12325_s1 + $0x378] sm:$0xf]  ;;  %v8393_v25 = vor.u32 %v10916_v14, %v8392_v13  ;;  %v10976_v14 = vld [vmem:[%s12325_s1 + $0x944] sm:$0xf0] }
 0x1f1   : > { %3353 = vmatpush.bf16.msra.mxu3 %v8821_v18  ;;  %v8245_v18 = vor.u32 %v10873_v5, %v8242_v6  ;;  %v7576_v5 = vld [vmem:[%s12325_s1 + $0xd8] sm:$0xf]  ;;  %v10712_v6 = vld [vmem:[%s12325_s1 + $0x104] sm:$0xf0] }
 0x1f2   : > { %v8632_v13 = vld [vmem:[%s12325_s1 + $0x918] sm:$0xf] }
 0x1f3   : > { %3341 = vmatpush.bf16.msra.mxu2 %v8389_v29  ;;  %3317 = vmatpush.bf16.msra.mxu0 %v7525_v39  ;;  %v8920_v29 = vld [vmem:[%s12325_s1 + $0xb58] sm:$0xf] }
 0x1f4   : > { %3330 = vmatpush.bf16.msra.mxu1 %v7909_v40  ;;  %v8537_v40 = vor.u32 %v10952_v28, %v8536_v27  ;;  %v10796_v27 = vld [vmem:[%s12325_s1 + $0x3a4] sm:$0xf0]  ;;  %v8344_v28 = vld [vmem:[%s12325_s1 + $0x6d8] sm:$0xf] }
 0x1f5   : > { %3354 = vmatpush.bf16.msra.mxu3 %v8773_v30  ;;  %v11048_v30 = vld [vmem:[%s12325_s1 + $0xb84] sm:$0xf0]  ;;  %v7913_v38 = vor.u32 %v10796_v27, %v7912_v22  ;;  %v7722_v27 = vld [vmem:[%s12325_s1 + $0x228] sm:$0xf0] }
 0x1f6   : > { %v8921_v41 = vor.u32 %v11048_v30, %v8920_v29  ;;  %v10904_v29 = vld [vmem:[%s12325_s1 + $0x704] sm:$0xf0] }
 0x1f7   : > { %3342 = vmatpush.bf16.msra.mxu2 %v8341_v47  ;;  %3318 = vmatpush.bf16.msra.mxu0 %v7477_v59  ;;  %v3060_v35 = vpop.f32.mrf.mxu0  ;;  %v3073_v36 = vpop.f32.mrf.mxu1  ;;  %v8488_v47 = vld [vmem:[%s12325_s1 + $0x7f8] sm:$0xf] }
 0x1f8   : > { %3331 = vmatpush.bf16.msra.mxu1 %v7861_v60  ;;  %v3061_v39 = vadd.f32 %v3060_v35, %v1107_v26  ;;  %v8008_v59 = vld [vmem:[%s12325_s1 + $0x438] sm:$0xf]  ;;  %v10820_v60 = vld [vmem:[%s12325_s1 + $0x464] sm:$0xf0] }
 0x1f9   : > { %3355 = vmatpush.bf16.msra.mxu3 %v8725_v49  ;;  %v10940_v49 = vld [vmem:[%s12325_s1 + $0x824] sm:$0xf0]  ;;  %v8009_v2 = vor.u32 %v10820_v60, %v8008_v59 }
 0x1fa   : > { %3319 = vmatmul.bf16.vlgmr.msra.gmra.mxu0 %v12502_v10  ;;  %v3074_v52 = vadd.f32 %v3073_v36, %v3061_v39  ;;  %v8489_v57 = vor.u32 %v10940_v49, %v8488_v47  ;;  %v11000_v35 = vld [vmem:[%s12325_s1 + $0xa04] sm:$0xf0]  ;;  %v7480_v39 = vld [vmem:[%s12325_s1 + $0x18] sm:$0xf]  ;;  %v8345_v47 = vor.u32 %v10904_v29, %v8344_v28 }
 0x1fb   : > { %3363 = vmatpush.bf16.msrb.mxu0 %v7817_v62  ;;  %3343 = vmatpush.bf16.msra.mxu2 %v8293_v3  ;;  %v10928_v62 = vld [vmem:[%s12325_s1 + $0x7c4] sm:$0xf0] }
 0x1fc   : > { %3376 = vmatpush.bf16.msrb.mxu1 %v8201_v63  ;;  %v8824_v63 = vld [vmem:[%s12325_s1 + $0xa98] sm:$0xf]  ;;  %v8441_v7 = vor.u32 %v10928_v62, %v8440_v61  ;;  %v10988_v59 = vld [vmem:[%s12325_s1 + $0x9a4] sm:$0xf0] }
 0x1fd   : > { %3356 = vmatpush.bf16.msra.mxu3 %v8677_v4  ;;  %3332 = vmatmul.bf16.vlgmr.msra.gmra.mxu1 %v12504_v11  ;;  %v8825_v8 = vor.u32 %v11024_v0, %v8824_v63 }
 0x1ff   : > { %3364 = vmatpush.bf16.msrb.mxu0 %v7769_v16  ;;  %3344 = vmatpush.bf16.msra.mxu2 %v8245_v18  ;;  %v3062_v3 = vpop.f32.mrf.mxu0  ;;  %v3075_v4 = vpop.f32.mrf.mxu1  ;;  %v8776_v16 = vld [vmem:[%s12325_s1 + $0xa38] sm:$0xf]  ;;  %v7577_v18 = vor.u32 %v10712_v6, %v7576_v5  ;;  %v10850_v5 = vld [vmem:[%s12325_s1 + $0x55c] sm:$0xf] }
 0x200   : > { %3377 = vmatpush.bf16.msrb.mxu1 %v8153_v17  ;;  %v11012_v17 = vld [vmem:[%s12325_s1 + $0xa64] sm:$0xf0]  ;;  %v10754_v3 = vld [vmem:[%s12325_s1 + $0x25c] sm:$0xf]  ;;  %v7770_v4 = vld [vmem:[%s12325_s1 + $0x288] sm:$0xf0] }
 0x201   : > { %3357 = vmatpush.bf16.msra.mxu3 %v8629_v19  ;;  %v7961_v19 = vor.u32 %v10808_v12, %v7960_v9  ;;  %v8777_v26 = vor.u32 %v11012_v17, %v8776_v16  ;;  %v8248_v9 = vld [vmem:[%s12325_s1 + $0x618] sm:$0xf]  ;;  %v10880_v12 = vld [vmem:[%s12325_s1 + $0x644] sm:$0xf0]  ;;  %v10958_v16 = vld [vmem:[%s12325_s1 + $0x8bc] sm:$0xf]  ;;  %v7773_v22 = vor.u32 %v10754_v3, %v7770_v4 }
 0x202   : > { %3345 = vmatmul.bf16.vlgmr.msra.gmra.mxu2 %v12521_v32  ;;  %v8586_v17 = vld [vmem:[%s12325_s1 + $0x8e8] sm:$0xf0] }
 0x203   : > { %3389 = vmatpush.bf16.msrb.mxu2 %v8585_v23  ;;  %3365 = vmatpush.bf16.msrb.mxu0 %v7721_v31  ;;  %v1108_v31 = vperm.slane %v12793_v15, 1  ;;  %v8589_v28 = vor.u32 %v10958_v16, %v8586_v17 }
 0x204   : > { %3358 = vmatmul.bf16.vlgmr.msra.gmra.mxu3 %v12523_v33  ;;  %3378 = vmatpush.bf16.msrb.mxu1 %v8105_v34  ;;  %v8728_v34 = vld [vmem:[%s12325_s1 + $0x9d8] sm:$0xf] }
 0x205   : > { %3402 = vmatpush.bf16.msrb.mxu3 %v8969_v24  ;;  %v3086_v23 = vpop.f32.mrf.mxu2  ;;  %v8729_v49 = vor.u32 %v11000_v35, %v8728_v34  ;;  %v10946_v34 = vld [vmem:[%s12325_s1 + $0x85c] sm:$0xf]  ;;  %v8538_v35 = vld [vmem:[%s12325_s1 + $0x888] sm:$0xf0] }
 0x206   : > { %v3087_v30 = vadd.f32 %v3086_v23, %v3074_v52  ;;  %v7818_v52 = vld [vmem:[%s12325_s1 + $0x2e8] sm:$0xf0] }
 0x207   : > { %3390 = vmatpush.bf16.msrb.mxu2 %v8537_v40  ;;  %3366 = vmatpush.bf16.msrb.mxu0 %v7673_v53  ;;  %v3099_v24 = vpop.f32.mrf.mxu3  ;;  %v10688_v40 = vld [vmem:[%s12325_s1 + $0x44] sm:$0xf0]  ;;  %v3112_v42 = vpop.f32.mrf.mxu0 }
 0x208   : > { %3379 = vmatpush.bf16.msrb.mxu1 %v8057_v54  ;;  %v12841_v36 = vadd.f32 %v3099_v24, %v3087_v30  ;;  %v3125_v46 = vpop.f32.mrf.mxu1  ;;  %v3113_v53 = vadd.f32 %v3112_v42, %v1108_v31  ;;  %v10862_v54 = vld [vmem:[%s12325_s1 + $0x5bc] sm:$0xf]  ;;  %v7481_v61 = vor.u32 %v10688_v40, %v7480_v39  ;;  %v8249_v24 = vor.u32 %v10880_v12, %v8248_v9  ;;  %v8106_v31 = vld [vmem:[%s12325_s1 + $0x528] sm:$0xf0] }
 0x209   : > { %3403 = vmatpush.bf16.msrb.mxu3 %v8921_v41  ;;  %v7864_v41 = vld [vmem:[%s12325_s1 + $0x318] sm:$0xf]  ;;  %v10838_v30 = vld [vmem:[%s12325_s1 + $0x4fc] sm:$0xf]  ;;  %v8442_v9 = vld [vmem:[%s12325_s1 + $0x7c8] sm:$0xf0] }
 0x20a   : > { %v3126_v60 = vadd.f32 %v3125_v46, %v3113_v53  ;;  %v7865_v62 = vor.u32 %v10784_v50, %v7864_v41  ;;  %v8109_v46 = vor.u32 %v10838_v30, %v8106_v31  ;;  %v7674_v50 = vld [vmem:[%s12325_s1 + $0x1c8] sm:$0xf0]  ;;  %v10826_v53 = vld [vmem:[%s12325_s1 + $0x49c] sm:$0xf] }
 0x20b   : > { %3391 = vmatpush.bf16.msrb.mxu2 %v8489_v57  ;;  %3367 = vmatpush.bf16.msrb.mxu0 %v7625_v1  ;;  %v10892_v57 = vld [vmem:[%s12325_s1 + $0x6a4] sm:$0xf0]  ;;  %v7821_v1 = vor.u32 %v10766_v51, %v7818_v52  ;;  %v8541_v51 = vor.u32 %v10946_v34, %v8538_v35  ;;  %v11018_v12 = vld [vmem:[%s12325_s1 + $0xa9c] sm:$0xf] }
 0x20c   : > { %3380 = vmatpush.bf16.msrb.mxu1 %v8009_v2  ;;  %v8205_v2 = vor.u32 %v10862_v54, %v8202_v55  ;;  %v8297_v6 = vor.u32 %v10892_v57, %v8296_v56  ;;  %v8058_v54 = vld [vmem:[%s12325_s1 + $0x4c8] sm:$0xf0]  ;;  %v10934_v55 = vld [vmem:[%s12325_s1 + $0x7fc] sm:$0xf] }
 0x20d   : > { %3404 = vmatpush.bf16.msrb.mxu3 %v8873_v58  ;;  %v8680_v58 = vld [vmem:[%s12325_s1 + $0x978] sm:$0xf]  ;;  %v3088_v63 = vpop.f32.mrf.mxu2  ;;  %v8490_v57 = vld [vmem:[%s12325_s1 + $0x828] sm:$0xf0]  ;;  %v10694_v35 = vld [vmem:[%s12325_s1 + $0x7c] sm:$0xf] }
 0x20e   : > { %v8493_v3 = vor.u32 %v10934_v55, %v8490_v57  ;;  %v7482_v55 = vld [vmem:[%s12325_s1 + $0x48] sm:$0xf0]  ;;  %v10778_v57 = vld [vmem:[%s12325_s1 + $0x31c] sm:$0xf] }
 0x20f   : > { %3392 = vmatpush.bf16.msrb.mxu2 %v8441_v7  ;;  %3368 = vmatpush.bf16.msrb.mxu0 %v7577_v18  ;;  %v3101_v0 = vpop.f32.mrf.mxu3  ;;  %v8681_v7 = vor.u32 %v10988_v59, %v8680_v58  ;;  %v11054_v18 = vld [vmem:[%s12325_s1 + $0xbbc] sm:$0xf]  ;;  %v3114_v20 = vpop.f32.mrf.mxu0  ;;  %v8874_v59 = vld [vmem:[%s12325_s1 + $0xb28] sm:$0xf0] }
 0x210   : > { %3381 = vmatpush.bf16.msrb.mxu1 %v7961_v19  ;;  %v8970_v19 = vld [vmem:[%s12325_s1 + $0xbe8] sm:$0xf0]  ;;  %v3127_v21 = vpop.f32.mrf.mxu1  ;;  %v11030_v58 = vld [vmem:[%s12325_s1 + $0xafc] sm:$0xf]  ;;  %v8061_v0 = vor.u32 %v10826_v53, %v8058_v54 }
 0x211   : > { %3405 = vmatpush.bf16.msrb.mxu3 %v8825_v8  ;;  %v8154_v8 = vld [vmem:[%s12325_s1 + $0x588] sm:$0xf0]  ;;  %v8973_v29 = vor.u32 %v11054_v18, %v8970_v19  ;;  %v8877_v4 = vor.u32 %v11030_v58, %v8874_v59  ;;  %v10706_v19 = vld [vmem:[%s12325_s1 + $0xdc] sm:$0xf] }
 0x212   : > { %v8157_v23 = vor.u32 %v10850_v5, %v8154_v8  ;;  %v10814_v5 = vld [vmem:[%s12325_s1 + $0x43c] sm:$0xf]  ;;  %v7578_v20 = vld [vmem:[%s12325_s1 + $0x108] sm:$0xf0] }
 0x213   : > { %3393 = vmatpush.bf16.msrb.mxu2 %v8393_v25  ;;  %3369 = vmatpush.bf16.msrb.mxu0 %v7529_v37  ;;  %v8633_v25 = vor.u32 %v10976_v14, %v8632_v13  ;;  %v11042_v37 = vld [vmem:[%s12325_s1 + $0xb5c] sm:$0xf]  ;;  %v8826_v13 = vld [vmem:[%s12325_s1 + $0xac8] sm:$0xf0]  ;;  %v7581_v31 = vor.u32 %v10706_v19, %v7578_v20  ;;  %v10857_v19 = vld [vmem:[%s12325_s1 + $0x58c] sm:$0xf0] }
 0x214   : > { %3382 = vmatpush.bf16.msrb.mxu1 %v7913_v38  ;;  %v8922_v38 = vld [vmem:[%s12325_s1 + $0xb88] sm:$0xf0]  ;;  %v10682_v54 = vld [vmem:[%s12325_s1 + $0x1c] sm:$0xf] }
 0x215   : > { %3406 = vmatpush.bf16.msrb.mxu3 %v8777_v26  ;;  %v10742_v26 = vld [vmem:[%s12325_s1 + $0x1fc] sm:$0xf]  ;;  %v3138_v39 = vpop.f32.mrf.mxu2  ;;  %v8925_v52 = vor.u32 %v11042_v37, %v8922_v38  ;;  %v7530_v37 = vld [vmem:[%s12325_s1 + $0xa8] sm:$0xf0] }
 0x216   : > { %v3139_v41 = vadd.f32 %v3138_v39, %v3126_v60  ;;  %v7725_v42 = vor.u32 %v10742_v26, %v7722_v27  ;;  %v8394_v26 = vld [vmem:[%s12325_s1 + $0x768] sm:$0xf0]  ;;  %v11006_v27 = vld [vmem:[%s12325_s1 + $0xa3c] sm:$0xf] }
 0x217   : > { %3394 = vmatpush.bf16.msrb.mxu2 %v8345_v47  ;;  %3370 = vmatpush.bf16.msrb.mxu0 %v7481_v61  ;;  %v3151_v40 = vpop.f32.mrf.mxu3  ;;  %v1109_v47 = vperm.slane %v12793_v15, 2  ;;  %v3164_v60 = vpop.f32.mrf.mxu0  ;;  %v10874_v20 = vld [vmem:[%s12325_s1 + $0x61c] sm:$0xf] }
 0x218   : > { %3383 = vmatpush.bf16.msrb.mxu1 %v7865_v62  ;;  %v12883_v56 = vadd.f32 %v3151_v40, %v3139_v41  ;;  %v10790_v40 = vld [vmem:[%s12325_s1 + $0x37c] sm:$0xf]  ;;  %v7914_v41 = vld [vmem:[%s12325_s1 + $0x3a8] sm:$0xf0] }
 0x219   : > { %3407 = vmatpush.bf16.msrb.mxu3 %v8729_v49  ;;  %v10730_v49 = vld [vmem:[%s12325_s1 + $0x19c] sm:$0xf]  ;;  %v3165_v62 = vadd.f32 %v3164_v60, %v1109_v47  ;;  %v7917_v53 = vor.u32 %v10790_v40, %v7914_v41  ;;  %v8112_v41 = vld [vmem:[%s12325_s1 + $0x500] sm:$0xf] }
 0x21a   : > { %3371 = vmatmul.bf16.vlgmr.msrb.gmra.mxu0 %v12502_v10  ;;  %v3177_v61 = vpop.f32.mrf.mxu1  ;;  %v7677_v63 = vor.u32 %v10730_v49, %v7674_v50  ;;  %v10994_v47 = vld [vmem:[%s12325_s1 + $0x9dc] sm:$0xf]  ;;  %v8730_v49 = vld [vmem:[%s12325_s1 + $0xa08] sm:$0xf0] }
 0x21b   : > { %3415 = vmatpush.bf16.msra.mxu0 %v7821_v1  ;;  %3395 = vmatpush.bf16.msrb.mxu2 %v8297_v6  ;;  %v10718_v1 = vld [vmem:[%s12325_s1 + $0x13c] sm:$0xf]  ;;  %v8010_v6 = vld [vmem:[%s12325_s1 + $0x468] sm:$0xf0]  ;;  %v3178_v8 = vadd.f32 %v3177_v61, %v3165_v62  ;;  %v8733_v60 = vor.u32 %v10994_v47, %v8730_v49  ;;  %v7824_v62 = vld [vmem:[%s12325_s1 + $0x2c0] sm:$0xf] }
 0x21c   : > { %3428 = vmatpush.bf16.msra.mxu1 %v8205_v2  ;;  %v7626_v2 = vld [vmem:[%s12325_s1 + $0x168] sm:$0xf0]  ;;  %v8013_v18 = vor.u32 %v10814_v5, %v8010_v6  ;;  %v10982_v5 = vld [vmem:[%s12325_s1 + $0x97c] sm:$0xf]  ;;  %v10953_v47 = vld [vmem:[%s12325_s1 + $0x88c] sm:$0xf0] }
 0x21d   : > { %3408 = vmatpush.bf16.msrb.mxu3 %v8681_v7  ;;  %3384 = vmatmul.bf16.vlgmr.msrb.gmra.mxu1 %v12504_v11  ;;  %v10922_v7 = vld [vmem:[%s12325_s1 + $0x79c] sm:$0xf]  ;;  %v3140_v14 = vpop.f32.mrf.mxu2  ;;  %v7629_v17 = vor.u32 %v10718_v1, %v7626_v2  ;;  %v7866_v61 = vld [vmem:[%s12325_s1 + $0x348] sm:$0xf0]  ;;  %v10869_v1 = vld [vmem:[%s12325_s1 + $0x5ec] sm:$0xf0] }
 0x21e   : > { %v8445_v21 = vor.u32 %v10922_v7, %v8442_v9  ;;  %v10886_v2 = vld [vmem:[%s12325_s1 + $0x67c] sm:$0xf]  ;;  %v8682_v6 = vld [vmem:[%s12325_s1 + $0x9a8] sm:$0xf0]  ;;  %v7485_v7 = vor.u32 %v10682_v54, %v7482_v55  ;;  %v10761_v14 = vld [vmem:[%s12325_s1 + $0x28c] sm:$0xf0] }
 0x21f   : > { %3416 = vmatpush.bf16.msra.mxu0 %v7773_v22  ;;  %3396 = vmatpush.bf16.msrb.mxu2 %v8249_v24  ;;  %v3153_v16 = vpop.f32.mrf.mxu3  ;;  %v8829_v22 = vor.u32 %v11018_v12, %v8826_v13  ;;  %v7962_v24 = vld [vmem:[%s12325_s1 + $0x408] sm:$0xf0]  ;;  %v7776_v13 = vld [vmem:[%s12325_s1 + $0x260] sm:$0xf]  ;;  %v10737_v55 = vld [vmem:[%s12325_s1 + $0x1cc] sm:$0xf0] }
 0x220   : > { %3429 = vmatpush.bf16.msra.mxu1 %v8157_v23  ;;  %v10802_v23 = vld [vmem:[%s12325_s1 + $0x3dc] sm:$0xf]  ;;  %v8160_v16 = vld [vmem:[%s12325_s1 + $0x560] sm:$0xf] }
 0x221   : > { %3409 = vmatpush.bf16.msrb.mxu3 %v8633_v25  ;;  %v10910_v25 = vld [vmem:[%s12325_s1 + $0x73c] sm:$0xf]  ;;  %v7965_v34 = vor.u32 %v10802_v23, %v7962_v24  ;;  %v8634_v23 = vld [vmem:[%s12325_s1 + $0x948] sm:$0xf0]  ;;  %v8592_v24 = vld [vmem:[%s12325_s1 + $0x8c0] sm:$0xf] }
 0x222   : > { %3397 = vmatmul.bf16.vlgmr.msrb.gmra.mxu2 %v12521_v32  ;;  %v3179_v30 = vpop.f32.mrf.mxu1  ;;  %v8397_v38 = vor.u32 %v10910_v25, %v8394_v26  ;;  %v8928_v49 = vld [vmem:[%s12325_s1 + $0xb60] sm:$0xf] }
 0x223   : > { %3441 = vmatpush.bf16.msra.mxu2 %v8589_v28  ;;  %3417 = vmatpush.bf16.msra.mxu0 %v7725_v42  ;;  %v8778_v28 = vld [vmem:[%s12325_s1 + $0xa68] sm:$0xf0]  ;;  %v10898_v42 = vld [vmem:[%s12325_s1 + $0x6dc] sm:$0xf]  ;;  %v7777_v30 = vor.u32 %v10761_v14, %v7776_v13  ;;  %v7680_v54 = vld [vmem:[%s12325_s1 + $0x1a0] sm:$0xf] }
 0x224   : > { %3410 = vmatmul.bf16.vlgmr.msrb.gmra.mxu3 %v12523_v33  ;;  %3430 = vmatpush.bf16.msra.mxu1 %v8109_v46  ;;  %v8781_v39 = vor.u32 %v11006_v27, %v8778_v28  ;;  %v8346_v46 = vld [vmem:[%s12325_s1 + $0x708] sm:$0xf0]  ;;  %v10965_v27 = vld [vmem:[%s12325_s1 + $0x8ec] sm:$0xf0]  ;;  %v8976_v28 = vld [vmem:[%s12325_s1 + $0xbc0] sm:$0xf] }
 0x225   : > { %3454 = vmatpush.bf16.msra.mxu3 %v8973_v29  ;;  %v3166_v29 = vpop.f32.mrf.mxu0  ;;  %v3190_v50 = vpop.f32.mrf.mxu2  ;;  %v8349_v59 = vor.u32 %v10898_v42, %v8346_v46  ;;  %v10845_v42 = vld [vmem:[%s12325_s1 + $0x52c] sm:$0xf0]  ;;  %v8544_v46 = vld [vmem:[%s12325_s1 + $0x860] sm:$0xf] }
 0x226   : > { %v3191_v58 = vadd.f32 %v3190_v50, %v3178_v8  ;;  %v7869_v8 = vor.u32 %v10778_v57, %v7866_v61  ;;  %v11061_v29 = vld [vmem:[%s12325_s1 + $0xbec] sm:$0xf0]  ;;  %v8545_v57 = vor.u32 %v10953_v47, %v8544_v46  ;;  %v8496_v61 = vld [vmem:[%s12325_s1 + $0x800] sm:$0xf] }
 0x227   : > { %3442 = vmatpush.bf16.msra.mxu2 %v8541_v51  ;;  %3418 = vmatpush.bf16.msra.mxu0 %v7677_v63  ;;  %v3203_v51 = vpop.f32.mrf.mxu3  ;;  %v10773_v63 = vld [vmem:[%s12325_s1 + $0x2ec] sm:$0xf0]  ;;  %v8977_v40 = vor.u32 %v11061_v29, %v8976_v28  ;;  %v8016_v14 = vld [vmem:[%s12325_s1 + $0x440] sm:$0xf] }
 0x228   : > { %3431 = vmatpush.bf16.msra.mxu1 %v8061_v0  ;;  %v8208_v0 = vld [vmem:[%s12325_s1 + $0x5c0] sm:$0xf]  ;;  %v7825_v9 = vor.u32 %v10773_v63, %v7824_v62  ;;  %v11049_v50 = vld [vmem:[%s12325_s1 + $0xb8c] sm:$0xf0] }
 0x229   : > { %3455 = vmatpush.bf16.msra.mxu3 %v8925_v52  ;;  %v7533_v52 = vor.u32 %v10694_v35, %v7530_v37  ;;  %v8209_v12 = vor.u32 %v10869_v1, %v8208_v0  ;;  %v7728_v37 = vld [vmem:[%s12325_s1 + $0x200] sm:$0xf]  ;;  %v10941_v0 = vld [vmem:[%s12325_s1 + $0x82c] sm:$0xf0] }
 0x22a   : > { %v8880_v1 = vld [vmem:[%s12325_s1 + $0xb00] sm:$0xf]  ;;  %v10809_v28 = vld [vmem:[%s12325_s1 + $0x40c] sm:$0xf0] }
 0x22b   : > { %3443 = vmatpush.bf16.msra.mxu2 %v8493_v3  ;;  %3419 = vmatpush.bf16.msra.mxu0 %v7629_v17  ;;  %v12923_v3 = vadd.f32 %v3203_v51, %v3191_v58  ;;  %v1110_v51 = vperm.slane %v12793_v15, 3  ;;  %v8929_v58 = vor.u32 %v11049_v50, %v8928_v49  ;;  %v8400_v29 = vld [vmem:[%s12325_s1 + $0x740] sm:$0xf]  ;;  %v10797_v49 = vld [vmem:[%s12325_s1 + $0x3ac] sm:$0xf0] }
 0x22c   : > { %3432 = vmatpush.bf16.msra.mxu1 %v8013_v18  ;;  %v8685_v18 = vor.u32 %v10982_v5, %v8682_v6  ;;  %v7681_v5 = vor.u32 %v10737_v55, %v7680_v54  ;;  %v7920_v47 = vld [vmem:[%s12325_s1 + $0x380] sm:$0xf]  ;;  %v11001_v55 = vld [vmem:[%s12325_s1 + $0xa0c] sm:$0xf0] }
 0x22d   : > { %3456 = vmatpush.bf16.msra.mxu3 %v8877_v4  ;;  %v8298_v4 = vld [vmem:[%s12325_s1 + $0x6a8] sm:$0xf0]  ;;  %v3192_v25 = vpop.f32.mrf.mxu2  ;;  %v8352_v50 = vld [vmem:[%s12325_s1 + $0x6e0] sm:$0xf] }
 0x22e   : > { %v8301_v17 = vor.u32 %v10886_v2, %v8298_v4  ;;  %v11037_v2 = vld [vmem:[%s12325_s1 + $0xb2c] sm:$0xf0]  ;;  %v8736_v54 = vld [vmem:[%s12325_s1 + $0x9e0] sm:$0xf] }
 0x22f   : > { %3444 = vmatpush.bf16.msra.mxu2 %v8445_v21  ;;  %3420 = vmatpush.bf16.msra.mxu0 %v7581_v31  ;;  %v8250_v21 = vld [vmem:[%s12325_s1 + $0x648] sm:$0xf0]  ;;  %v3205_v26 = vpop.f32.mrf.mxu3  ;;  %v8161_v31 = vor.u32 %v10857_v19, %v8160_v16  ;;  %v8881_v13 = vor.u32 %v11037_v2, %v8880_v1  ;;  %v10821_v16 = vld [vmem:[%s12325_s1 + $0x46c] sm:$0xf0]  ;;  %v8832_v19 = vld [vmem:[%s12325_s1 + $0xaa0] sm:$0xf]  ;;  %v8737_v1 = vor.u32 %v11001_v55, %v8736_v54 }
 0x230   : > { %3433 = vmatpush.bf16.msra.mxu1 %v7965_v34  ;;  %v8253_v34 = vor.u32 %v10874_v20, %v8250_v21  ;;  %v11025_v20 = vld [vmem:[%s12325_s1 + $0xacc] sm:$0xf0]  ;;  %v11043_v54 = vld [vmem:[%s12325_s1 + $0xb64] sm:$0xf]  ;;  %v8930_v55 = vld [vmem:[%s12325_s1 + $0xb90] sm:$0xf0] }
 0x231   : > { %3457 = vmatpush.bf16.msra.mxu3 %v8829_v22  ;;  %v10970_v22 = vld [vmem:[%s12325_s1 + $0x91c] sm:$0xf]  ;;  %v8833_v26 = vor.u32 %v11025_v20, %v8832_v19  ;;  %v10785_v2 = vld [vmem:[%s12325_s1 + $0x34c] sm:$0xf0]  ;;  %v10755_v19 = vld [vmem:[%s12325_s1 + $0x264] sm:$0xf] }
 0x232   : > { %v8637_v35 = vor.u32 %v10970_v22, %v8634_v23  ;;  %v8017_v22 = vor.u32 %v10821_v16, %v8016_v14  ;;  %v7584_v23 = vld [vmem:[%s12325_s1 + $0xe0] sm:$0xf]  ;;  %v7778_v20 = vld [vmem:[%s12325_s1 + $0x290] sm:$0xf0] }
 0x233   : > { %3445 = vmatpush.bf16.msra.mxu2 %v8397_v38  ;;  %3421 = vmatpush.bf16.msra.mxu0 %v7533_v52  ;;  %v10749_v38 = vld [vmem:[%s12325_s1 + $0x22c] sm:$0xf0] }
 0x234   : > { %3434 = vmatpush.bf16.msra.mxu1 %v7917_v53  ;;  %v7729_v52 = vor.u32 %v10749_v38, %v7728_v37  ;;  %v8113_v53 = vor.u32 %v10845_v42, %v8112_v41  ;;  %v11013_v37 = vld [vmem:[%s12325_s1 + $0xa6c] sm:$0xf0] }
 0x235   : > { %3458 = vmatpush.bf16.msra.mxu3 %v8781_v39  ;;  %v8593_v39 = vor.u32 %v10965_v27, %v8592_v24  ;;  %v10713_v24 = vld [vmem:[%s12325_s1 + $0x10c] sm:$0xf0]  ;;  %v7968_v27 = vld [vmem:[%s12325_s1 + $0x3e0] sm:$0xf] }
 0x236   : > { %v7585_v38 = vor.u32 %v10713_v24, %v7584_v23  ;;  %v10701_v41 = vld [vmem:[%s12325_s1 + $0xac] sm:$0xf0] }
 0x237   : > { %3446 = vmatpush.bf16.msra.mxu2 %v8349_v59  ;;  %3422 = vmatpush.bf16.msra.mxu0 %v7485_v7  ;;  %v8064_v59 = vld [vmem:[%s12325_s1 + $0x4a0] sm:$0xf]  ;;  %v3216_v62 = vpop.f32.mrf.mxu0 }
 0x238   : > { %3435 = vmatpush.bf16.msra.mxu1 %v7869_v8  ;;  %v3217_v4 = vadd.f32 %v3216_v62, %v1110_v51  ;;  %v7632_v7 = vld [vmem:[%s12325_s1 + $0x140] sm:$0xf]  ;;  %v10725_v8 = vld [vmem:[%s12325_s1 + $0x16c] sm:$0xf0] }
 0x239   : > { %3459 = vmatpush.bf16.msra.mxu3 %v8733_v60  ;;  %v10833_v60 = vld [vmem:[%s12325_s1 + $0x4cc] sm:$0xf0]  ;;  %v7633_v21 = vor.u32 %v10725_v8, %v7632_v7  ;;  %v7872_v62 = vld [vmem:[%s12325_s1 + $0x320] sm:$0xf]  ;;  %v8210_v7 = vld [vmem:[%s12325_s1 + $0x5f0] sm:$0xf0] }
 0x23a   : > { %3423 = vmatmul.bf16.vlgmr.msra.gmra.mxu0 %v12502_v10  ;;  %v3229_v63 = vpop.f32.mrf.mxu1  ;;  %v8065_v6 = vor.u32 %v10833_v60, %v8064_v59  ;;  %v7921_v59 = vor.u32 %v10797_v49, %v7920_v47  ;;  %v7488_v60 = vld [vmem:[%s12325_s1 + $0x20] sm:$0xf]  ;;  %v7873_v16 = vor.u32 %v10785_v2, %v7872_v62  ;;  %v8066_v2 = vld [vmem:[%s12325_s1 + $0x4d0] sm:$0xf0] }
 0x23b   : > { %3467 = vmatpush.bf16.msrb.mxu0 %v7825_v9  ;;  %3447 = vmatpush.bf16.msra.mxu2 %v8301_v17  ;;  %v3230_v9 = vadd.f32 %v3229_v63, %v3217_v4  ;;  %v8448_v17 = vld [vmem:[%s12325_s1 + $0x7a0] sm:$0xf]  ;;  %v10767_v4 = vld [vmem:[%s12325_s1 + $0x2c4] sm:$0xf] }
 0x23c   : > { %3480 = vmatpush.bf16.msrb.mxu1 %v8209_v12  ;;  %v8497_v12 = vor.u32 %v10941_v0, %v8496_v61  ;;  %v10689_v61 = vld [vmem:[%s12325_s1 + $0x4c] sm:$0xf0]  ;;  %v8304_v8 = vld [vmem:[%s12325_s1 + $0x680] sm:$0xf] }
 0x23d   : > { %3460 = vmatpush.bf16.msra.mxu3 %v8685_v18  ;;  %3436 = vmatmul.bf16.vlgmr.msra.gmra.mxu1 %v12504_v11  ;;  %v10929_v18 = vld [vmem:[%s12325_s1 + $0x7cc] sm:$0xf0]  ;;  %v7489_v14 = vor.u32 %v10689_v61, %v7488_v60  ;;  %v10731_v60 = vld [vmem:[%s12325_s1 + $0x1a4] sm:$0xf]  ;;  %v7682_v61 = vld [vmem:[%s12325_s1 + $0x1d0] sm:$0xf0] }
 0x23e   : > { %v8449_v25 = vor.u32 %v10929_v18, %v8448_v17 }
 0x23f   : > { %3468 = vmatpush.bf16.msrb.mxu0 %v7777_v30  ;;  %3448 = vmatpush.bf16.msra.mxu2 %v8253_v34  ;;  %v3218_v30 = vpop.f32.mrf.mxu0  ;;  %v10917_v34 = vld [vmem:[%s12325_s1 + $0x76c] sm:$0xf0] }
 0x240   : > { %3481 = vmatpush.bf16.msrb.mxu1 %v8161_v31  ;;  %v8401_v42 = vor.u32 %v10917_v34, %v8400_v29  ;;  %v8640_v29 = vld [vmem:[%s12325_s1 + $0x920] sm:$0xf]  ;;  %v10977_v30 = vld [vmem:[%s12325_s1 + $0x94c] sm:$0xf0]  ;;  %v8594_v34 = vld [vmem:[%s12325_s1 + $0x8f0] sm:$0xf0] }
 0x241   : > { %3461 = vmatpush.bf16.msra.mxu3 %v8637_v35  ;;  %v8784_v35 = vld [vmem:[%s12325_s1 + $0xa40] sm:$0xf] }
 0x242   : > { %3449 = vmatmul.bf16.vlgmr.msra.gmra.mxu2 %v12521_v32  ;;  %v3231_v31 = vpop.f32.mrf.mxu1  ;;  %v8785_v46 = vor.u32 %v11013_v37, %v8784_v35  ;;  %v11055_v35 = vld [vmem:[%s12325_s1 + $0xbc4] sm:$0xf]  ;;  %v8978_v37 = vld [vmem:[%s12325_s1 + $0xbf0] sm:$0xf0] }
 0x243   : > { %3493 = vmatpush.bf16.msrb.mxu2 %v8593_v39  ;;  %3469 = vmatpush.bf16.msrb.mxu0 %v7729_v52  ;;  %v7969_v39 = vor.u32 %v10809_v28, %v7968_v27  ;;  %v8256_v27 = vld [vmem:[%s12325_s1 + $0x620] sm:$0xf]  ;;  %v10881_v28 = vld [vmem:[%s12325_s1 + $0x64c] sm:$0xf0]  ;;  %v10959_v31 = vld [vmem:[%s12325_s1 + $0x8c4] sm:$0xf]  ;;  %v8981_v49 = vor.u32 %v11055_v35, %v8978_v37 }
 0x244   : > { %3462 = vmatmul.bf16.vlgmr.msra.gmra.mxu3 %v12523_v33  ;;  %3482 = vmatpush.bf16.msrb.mxu1 %v8113_v53  ;;  %v10905_v53 = vld [vmem:[%s12325_s1 + $0x70c] sm:$0xf0]  ;;  %v8597_v47 = vor.u32 %v10959_v31, %v8594_v34  ;;  %v10803_v34 = vld [vmem:[%s12325_s1 + $0x3e4] sm:$0xf]  ;;  %v7970_v35 = vld [vmem:[%s12325_s1 + $0x410] sm:$0xf0] }
 0x245   : > { %3506 = vmatpush.bf16.msrb.mxu3 %v8977_v40  ;;  %v7536_v40 = vld [vmem:[%s12325_s1 + $0x80] sm:$0xf]  ;;  %v3242_v51 = vpop.f32.mrf.mxu2  ;;  %v8353_v0 = vor.u32 %v10905_v53, %v8352_v50  ;;  %v10839_v50 = vld [vmem:[%s12325_s1 + $0x504] sm:$0xf]  ;;  %v8546_v53 = vld [vmem:[%s12325_s1 + $0x890] sm:$0xf0] }
 0x246   : > { %v10911_v37 = vld [vmem:[%s12325_s1 + $0x744] sm:$0xf] }
 0x247   : > { %3494 = vmatpush.bf16.msrb.mxu2 %v8545_v57  ;;  %3470 = vmatpush.bf16.msrb.mxu0 %v7681_v5  ;;  %v3255_v52 = vpop.f32.mrf.mxu3  ;;  %v3243_v57 = vadd.f32 %v3242_v51, %v3230_v9  ;;  %v7826_v5 = vld [vmem:[%s12325_s1 + $0x2f0] sm:$0xf0]  ;;  %v10893_v9 = vld [vmem:[%s12325_s1 + $0x6ac] sm:$0xf0] }
 0x248   : > { %3483 = vmatpush.bf16.msrb.mxu1 %v8065_v6  ;;  %v10863_v6 = vld [vmem:[%s12325_s1 + $0x5c4] sm:$0xf]  ;;  %v7829_v17 = vor.u32 %v10767_v4, %v7826_v5  ;;  %v8114_v51 = vld [vmem:[%s12325_s1 + $0x530] sm:$0xf0] }
 0x249   : > { %3507 = vmatpush.bf16.msrb.mxu3 %v8929_v58  ;;  %v7537_v58 = vor.u32 %v10701_v41, %v7536_v40  ;;  %v12988_v63 = vadd.f32 %v3255_v52, %v3243_v57  ;;  %v8213_v18 = vor.u32 %v10863_v6, %v8210_v7  ;;  %v8257_v40 = vor.u32 %v10881_v28, %v8256_v27  ;;  %v10947_v52 = vld [vmem:[%s12325_s1 + $0x864] sm:$0xf]  ;;  %v8498_v6 = vld [vmem:[%s12325_s1 + $0x830] sm:$0xf0] }
 0x24a   : > { %v8641_v41 = vor.u32 %v10977_v30, %v8640_v29  ;;  %v1111_v57 = vperm.slane %v12793_v15, 4  ;;  %v8549_v62 = vor.u32 %v10947_v52, %v8546_v53  ;;  %v10935_v4 = vld [vmem:[%s12325_s1 + $0x804] sm:$0xf]  ;;  %v7586_v29 = vld [vmem:[%s12325_s1 + $0x110] sm:$0xf0] }
 0x24b   : > { %3495 = vmatpush.bf16.msrb.mxu2 %v8497_v12  ;;  %3471 = vmatpush.bf16.msrb.mxu0 %v7633_v21  ;;  %v8688_v12 = vld [vmem:[%s12325_s1 + $0x980] sm:$0xf]  ;;  %v10851_v21 = vld [vmem:[%s12325_s1 + $0x564] sm:$0xf] }
 0x24c   : > { %3484 = vmatpush.bf16.msrb.mxu1 %v8017_v22  ;;  %v8305_v22 = vor.u32 %v10893_v9, %v8304_v8  ;;  %v11031_v7 = vld [vmem:[%s12325_s1 + $0xb04] sm:$0xf]  ;;  %v8882_v8 = vld [vmem:[%s12325_s1 + $0xb30] sm:$0xf0] }
 0x24d   : > { %3508 = vmatpush.bf16.msrb.mxu3 %v8881_v13  ;;  %v10989_v13 = vld [vmem:[%s12325_s1 + $0x9ac] sm:$0xf0]  ;;  %v3244_v24 = vpop.f32.mrf.mxu2  ;;  %v10707_v28 = vld [vmem:[%s12325_s1 + $0xe4] sm:$0xf] }
 0x24e   : > { %v8689_v23 = vor.u32 %v10989_v13, %v8688_v12  ;;  %v7685_v12 = vor.u32 %v10731_v60, %v7682_v61  ;;  %v11019_v24 = vld [vmem:[%s12325_s1 + $0xaa4] sm:$0xf]  ;;  %v8738_v61 = vld [vmem:[%s12325_s1 + $0xa10] sm:$0xf0] }
 0x24f   : > { %3496 = vmatpush.bf16.msrb.mxu2 %v8449_v25  ;;  %3472 = vmatpush.bf16.msrb.mxu0 %v7585_v38  ;;  %v3257_v25 = vpop.f32.mrf.mxu3  ;;  %v7781_v38 = vor.u32 %v10755_v19, %v7778_v20  ;;  %v8885_v19 = vor.u32 %v11031_v7, %v8882_v8  ;;  %v10815_v20 = vld [vmem:[%s12325_s1 + $0x444] sm:$0xf]  ;;  %v7874_v8 = vld [vmem:[%s12325_s1 + $0x350] sm:$0xf0] }
 0x250   : > { %3485 = vmatpush.bf16.msrb.mxu1 %v7969_v39  ;;  %v8834_v25 = vld [vmem:[%s12325_s1 + $0xad0] sm:$0xf0]  ;;  %v10791_v53 = vld [vmem:[%s12325_s1 + $0x384] sm:$0xf] }
 0x251   : > { %3509 = vmatpush.bf16.msrb.mxu3 %v8833_v26  ;;  %v8162_v26 = vld [vmem:[%s12325_s1 + $0x590] sm:$0xf0]  ;;  %v8837_v31 = vor.u32 %v11019_v24, %v8834_v25  ;;  %v10995_v60 = vld [vmem:[%s12325_s1 + $0x9e4] sm:$0xf]  ;;  %v7784_v24 = vld [vmem:[%s12325_s1 + $0x268] sm:$0xf] }
 0x252   : > { %v8165_v39 = vor.u32 %v10851_v21, %v8162_v26  ;;  %v8018_v21 = vld [vmem:[%s12325_s1 + $0x470] sm:$0xf0]  ;;  %v8741_v7 = vor.u32 %v10995_v60, %v8738_v61  ;;  %v10762_v25 = vld [vmem:[%s12325_s1 + $0x294] sm:$0xf0]  ;;  %v8936_v60 = vld [vmem:[%s12325_s1 + $0xb68] sm:$0xf] }
 0x253   : > { %3497 = vmatpush.bf16.msrb.mxu2 %v8401_v42  ;;  %3473 = vmatpush.bf16.msrb.mxu0 %v7537_v58  ;;  %v10743_v42 = vld [vmem:[%s12325_s1 + $0x204] sm:$0xf]  ;;  %v8021_v27 = vor.u32 %v10815_v20, %v8018_v21  ;;  %v11050_v61 = vld [vmem:[%s12325_s1 + $0xb94] sm:$0xf0] }
 0x254   : > { %3486 = vmatpush.bf16.msrb.mxu1 %v7921_v59  ;;  %v8117_v59 = vor.u32 %v10839_v50, %v8114_v51  ;;  %v7538_v50 = vld [vmem:[%s12325_s1 + $0xb0] sm:$0xf0] }
 0x255   : > { %3510 = vmatpush.bf16.msrb.mxu3 %v8785_v46  ;;  %v7730_v46 = vld [vmem:[%s12325_s1 + $0x230] sm:$0xf0] }
 0x256   : > { %v7733_v58 = vor.u32 %v10743_v42, %v7730_v46  ;;  %v8786_v42 = vld [vmem:[%s12325_s1 + $0xa70] sm:$0xf0]  ;;  %v7589_v46 = vor.u32 %v10707_v28, %v7586_v29 }
 0x257   : > { %3498 = vmatpush.bf16.msrb.mxu2 %v8353_v0  ;;  %3474 = vmatpush.bf16.msrb.mxu0 %v7489_v14  ;;  %v8933_v0 = vor.u32 %v11043_v54, %v8930_v55  ;;  %v3268_v5 = vpop.f32.mrf.mxu0  ;;  %v10719_v14 = vld [vmem:[%s12325_s1 + $0x144] sm:$0xf]  ;;  %v7922_v54 = vld [vmem:[%s12325_s1 + $0x3b0] sm:$0xf0] }
 0x258   : > { %3487 = vmatpush.bf16.msrb.mxu1 %v7873_v16  ;;  %v3269_v9 = vadd.f32 %v3268_v5, %v1111_v57  ;;  %v7634_v16 = vld [vmem:[%s12325_s1 + $0x170] sm:$0xf0]  ;;  %v10899_v55 = vld [vmem:[%s12325_s1 + $0x6e4] sm:$0xf] }
 0x259   : > { %3511 = vmatpush.bf16.msrb.mxu3 %v8737_v1  ;;  %v10827_v1 = vld [vmem:[%s12325_s1 + $0x4a4] sm:$0xf]  ;;  %v7637_v26 = vor.u32 %v10719_v14, %v7634_v16  ;;  %v10870_v14 = vld [vmem:[%s12325_s1 + $0x5f4] sm:$0xf0] }
 0x25a   : > { %3475 = vmatmul.bf16.vlgmr.msrb.gmra.mxu0 %v12502_v10  ;;  %v3281_v15 = vpop.f32.mrf.mxu1  ;;  %v8069_v13 = vor.u32 %v10827_v1, %v8066_v2  ;;  %v7925_v1 = vor.u32 %v10791_v53, %v7922_v54  ;;  %v10683_v2 = vld [vmem:[%s12325_s1 + $0x24] sm:$0xf] }
 0x25b   : > { %3519 = vmatpush.bf16.msra.mxu0 %v7829_v17  ;;  %3499 = vmatpush.bf16.msrb.mxu2 %v8305_v22  ;;  %v3282_v17 = vadd.f32 %v3281_v15, %v3269_v9  ;;  %v10923_v22 = vld [vmem:[%s12325_s1 + $0x7a4] sm:$0xf]  ;;  %v7832_v9 = vld [vmem:[%s12325_s1 + $0x2c8] sm:$0xf] }
 0x25c   : > { %3532 = vmatpush.bf16.msra.mxu1 %v8213_v18  ;;  %v8501_v18 = vor.u32 %v10935_v4, %v8498_v6  ;;  %v7490_v4 = vld [vmem:[%s12325_s1 + $0x50] sm:$0xf0]  ;;  %v10779_v5 = vld [vmem:[%s12325_s1 + $0x324] sm:$0xf] }
 0x25d   : > { %3512 = vmatpush.bf16.msrb.mxu3 %v8689_v23  ;;  %3488 = vmatmul.bf16.vlgmr.msrb.gmra.mxu1 %v12504_v11  ;;  %v8450_v23 = vld [vmem:[%s12325_s1 + $0x7d0] sm:$0xf0]  ;;  %v10887_v16 = vld [vmem:[%s12325_s1 + $0x684] sm:$0xf]  ;;  %v7493_v20 = vor.u32 %v10683_v2, %v7490_v4  ;;  %v7877_v21 = vor.u32 %v10779_v5, %v7874_v8  ;;  %v7688_v4 = vld [vmem:[%s12325_s1 + $0x1a8] sm:$0xf] }
 0x25e   : > { %v8453_v30 = vor.u32 %v10923_v22, %v8450_v23  ;;  %v10738_v5 = vld [vmem:[%s12325_s1 + $0x1d4] sm:$0xf0]  ;;  %v8072_v8 = vld [vmem:[%s12325_s1 + $0x4a8] sm:$0xf] }
 0x25f   : > { %3520 = vmatpush.bf16.msra.mxu0 %v7781_v38  ;;  %3500 = vmatpush.bf16.msrb.mxu2 %v8257_v40  ;;  %v3270_v38 = vpop.f32.mrf.mxu0  ;;  %v8402_v40 = vld [vmem:[%s12325_s1 + $0x770] sm:$0xf0] }
 0x260   : > { %3533 = vmatpush.bf16.msra.mxu1 %v8165_v39  ;;  %v8405_v51 = vor.u32 %v10911_v37, %v8402_v40  ;;  %v10971_v37 = vld [vmem:[%s12325_s1 + $0x924] sm:$0xf]  ;;  %v8642_v38 = vld [vmem:[%s12325_s1 + $0x950] sm:$0xf0]  ;;  %v10966_v40 = vld [vmem:[%s12325_s1 + $0x8f4] sm:$0xf0] }
 0x261   : > { %3513 = vmatpush.bf16.msrb.mxu3 %v8641_v41  ;;  %v11007_v41 = vld [vmem:[%s12325_s1 + $0xa44] sm:$0xf] }
 0x262   : > { %3501 = vmatmul.bf16.vlgmr.msrb.gmra.mxu2 %v12521_v32  ;;  %v3283_v39 = vpop.f32.mrf.mxu1  ;;  %v8789_v52 = vor.u32 %v11007_v41, %v8786_v42  ;;  %v8984_v41 = vld [vmem:[%s12325_s1 + $0xbc8] sm:$0xf]  ;;  %v11062_v42 = vld [vmem:[%s12325_s1 + $0xbf4] sm:$0xf0] }
 0x263   : > { %3545 = vmatpush.bf16.msra.mxu2 %v8597_v47  ;;  %3521 = vmatpush.bf16.msra.mxu0 %v7733_v58  ;;  %v7973_v47 = vor.u32 %v10803_v34, %v7970_v35  ;;  %v10875_v34 = vld [vmem:[%s12325_s1 + $0x624] sm:$0xf]  ;;  %v8258_v35 = vld [vmem:[%s12325_s1 + $0x650] sm:$0xf0]  ;;  %v8600_v39 = vld [vmem:[%s12325_s1 + $0x8c8] sm:$0xf]  ;;  %v8985_v54 = vor.u32 %v11062_v42, %v8984_v41 }
 0x264   : > { %3514 = vmatmul.bf16.vlgmr.msrb.gmra.mxu3 %v12523_v33  ;;  %3534 = vmatpush.bf16.msra.mxu1 %v8117_v59  ;;  %v8354_v59 = vld [vmem:[%s12325_s1 + $0x710] sm:$0xf0]  ;;  %v8601_v53 = vor.u32 %v10966_v40, %v8600_v39  ;;  %v10714_v39 = vld [vmem:[%s12325_s1 + $0x114] sm:$0xf0]  ;;  %v7976_v42 = vld [vmem:[%s12325_s1 + $0x3e8] sm:$0xf] }
 0x265   : > { %3558 = vmatpush.bf16.msra.mxu3 %v8981_v49  ;;  %v10695_v49 = vld [vmem:[%s12325_s1 + $0x84] sm:$0xf]  ;;  %v3294_v57 = vpop.f32.mrf.mxu2  ;;  %v8357_v6 = vor.u32 %v10899_v55, %v8354_v59  ;;  %v8120_v55 = vld [vmem:[%s12325_s1 + $0x508] sm:$0xf]  ;;  %v10954_v59 = vld [vmem:[%s12325_s1 + $0x894] sm:$0xf0] }
 0x267   : > { %3546 = vmatpush.bf16.msra.mxu2 %v8549_v62  ;;  %3522 = vmatpush.bf16.msra.mxu0 %v7685_v12  ;;  %v3307_v58 = vpop.f32.mrf.mxu3  ;;  %v3295_v62 = vadd.f32 %v3294_v57, %v3282_v17  ;;  %v10774_v12 = vld [vmem:[%s12325_s1 + $0x2f4] sm:$0xf0]  ;;  %v8306_v17 = vld [vmem:[%s12325_s1 + $0x6b0] sm:$0xf0] }
 0x268   : > { %3535 = vmatpush.bf16.msra.mxu1 %v8069_v13  ;;  %v8216_v13 = vld [vmem:[%s12325_s1 + $0x5c8] sm:$0xf]  ;;  %v7833_v22 = vor.u32 %v10774_v12, %v7832_v9  ;;  %v10846_v57 = vld [vmem:[%s12325_s1 + $0x534] sm:$0xf0] }
 0x269   : > { %3559 = vmatpush.bf16.msra.mxu3 %v8933_v0  ;;  %v7541_v0 = vor.u32 %v10695_v49, %v7538_v50  ;;  %v13059_v15 = vadd.f32 %v3307_v58, %v3295_v62  ;;  %v8217_v23 = vor.u32 %v10870_v14, %v8216_v13  ;;  %v8261_v49 = vor.u32 %v10875_v34, %v8258_v35  ;;  %v8552_v58 = vld [vmem:[%s12325_s1 + $0x868] sm:$0xf]  ;;  %v13092_v62 = vld [vmem:[#allocation12] sm:$0xff]  ;;  %v10834_v9 = vld [vmem:[%s12325_s1 + $0x4d4] sm:$0xf0] }
 0x26a   : > { %v8645_v50 = vor.u32 %v10971_v37, %v8642_v38  ;;  %v8121_v2 = vor.u32 %v10846_v57, %v8120_v55  ;;  %v8504_v12 = vld [vmem:[%s12325_s1 + $0x808] sm:$0xf]  ;;  %v11026_v34 = vld [vmem:[%s12325_s1 + $0xad4] sm:$0xf0] }
 0x26b   : > { %3547 = vmatpush.bf16.msra.mxu2 %v8501_v18  ;;  %3523 = vmatpush.bf16.msra.mxu0 %v7637_v26  ;;  %v10983_v18 = vld [vmem:[%s12325_s1 + $0x984] sm:$0xf]  ;;  %v8168_v26 = vld [vmem:[%s12325_s1 + $0x568] sm:$0xf] }
 0x26c   : > { %3536 = vmatpush.bf16.msra.mxu1 %v8021_v27  ;;  %v8309_v27 = vor.u32 %v10887_v16, %v8306_v17  ;;  %v10942_v16 = vld [vmem:[%s12325_s1 + $0x834] sm:$0xf0]  ;;  %v8888_v17 = vld [vmem:[%s12325_s1 + $0xb08] sm:$0xf] }
 0x26d   : > { %3560 = vmatpush.bf16.msra.mxu3 %v8885_v19  ;;  %v8690_v19 = vld [vmem:[%s12325_s1 + $0x9b0] sm:$0xf0]  ;;  %v3296_v29 = vpop.f32.mrf.mxu2  ;;  %v7592_v38 = vld [vmem:[%s12325_s1 + $0xe8] sm:$0xf] }
 0x26e   : > { %v8693_v28 = vor.u32 %v10983_v18, %v8690_v19  ;;  %v11038_v18 = vld [vmem:[%s12325_s1 + $0xb34] sm:$0xf0]  ;;  %v8456_v29 = vld [vmem:[%s12325_s1 + $0x7a8] sm:$0xf] }
 0x26f   : > { %3548 = vmatpush.bf16.msra.mxu2 %v8453_v30  ;;  %3524 = vmatpush.bf16.msra.mxu0 %v7589_v46  ;;  %v3309_v30 = vpop.f32.mrf.mxu3  ;;  %v7785_v46 = vor.u32 %v10762_v25, %v7784_v24  ;;  %v8505_v25 = vor.u32 %v10942_v16, %v8504_v12  ;;  %v7544_v57 = vld [vmem:[%s12325_s1 + $0x88] sm:$0xf] }
 0x270   : > { %3537 = vmatpush.bf16.msra.mxu1 %v7973_v47  ;;  %v10930_v30 = vld [vmem:[%s12325_s1 + $0x7d4] sm:$0xf0]  ;;  %v7880_v16 = vld [vmem:[%s12325_s1 + $0x328] sm:$0xf] }
 0x271   : > { %3561 = vmatpush.bf16.msra.mxu3 %v8837_v31  ;;  %v10858_v31 = vld [vmem:[%s12325_s1 + $0x594] sm:$0xf0]  ;;  %v8457_v40 = vor.u32 %v10930_v30, %v8456_v29 }
 0x272   : > { %v8169_v47 = vor.u32 %v10858_v31, %v8168_v26  ;;  %v8889_v26 = vor.u32 %v11038_v18, %v8888_v17  ;;  %v8840_v31 = vld [vmem:[%s12325_s1 + $0xaa8] sm:$0xf] }
 0x273   : > { %3549 = vmatpush.bf16.msra.mxu2 %v8405_v51  ;;  %3525 = vmatpush.bf16.msra.mxu0 %v7541_v0  ;;  %v7736_v51 = vld [vmem:[%s12325_s1 + $0x208] sm:$0xf]  ;;  %v1112_v0 = vperm.slane %v13092_v62, 5  ;;  %v8841_v41 = vor.u32 %v11026_v34, %v8840_v31 }
 0x274   : > { %3538 = vmatpush.bf16.msra.mxu1 %v7925_v1 }
 0x275   : > { %3562 = vmatpush.bf16.msra.mxu3 %v8789_v52  ;;  %v10750_v52 = vld [vmem:[%s12325_s1 + $0x234] sm:$0xf0] }
 0x276   : > { %v7737_v1 = vor.u32 %v10750_v52, %v7736_v51  ;;  %v10918_v51 = vld [vmem:[%s12325_s1 + $0x774] sm:$0xf0]  ;;  %v8792_v52 = vld [vmem:[%s12325_s1 + $0xa48] sm:$0xf] }
 0x277   : > { %3550 = vmatpush.bf16.msra.mxu2 %v8357_v6  ;;  %3526 = vmatpush.bf16.msra.mxu0 %v7493_v20  ;;  %v8553_v6 = vor.u32 %v10954_v59, %v8552_v58  ;;  %v3320_v13 = vpop.f32.mrf.mxu0  ;;  %v7689_v20 = vor.u32 %v10738_v5, %v7688_v4  ;;  %v10702_v58 = vld [vmem:[%s12325_s1 + $0xb4] sm:$0xf0] }
 0x278   : > { %3539 = vmatpush.bf16.msra.mxu1 %v7877_v21  ;;  %v3321_v19 = vadd.f32 %v3320_v13, %v1112_v0  ;;  %v8073_v21 = vor.u32 %v10834_v9, %v8072_v8  ;;  %v10798_v0 = vld [vmem:[%s12325_s1 + $0x3b4] sm:$0xf0]  ;;  %v7545_v9 = vor.u32 %v10702_v58, %v7544_v57  ;;  %v7496_v13 = vld [vmem:[%s12325_s1 + $0x28] sm:$0xf] }
 0x279   : > { %3563 = vmatpush.bf16.msra.mxu3 %v8741_v7  ;;  %v8937_v7 = vor.u32 %v11050_v61, %v8936_v60  ;;  %v7928_v61 = vld [vmem:[%s12325_s1 + $0x388] sm:$0xf]  ;;  %v10906_v5 = vld [vmem:[%s12325_s1 + $0x714] sm:$0xf0] }
 0x27a   : > { %3527 = vmatmul.bf16.vlgmr.msra.gmra.mxu0 %v12502_v10  ;;  %v3333_v14 = vpop.f32.mrf.mxu1  ;;  %v7929_v12 = vor.u32 %v10798_v0, %v7928_v61  ;;  %v10744_v61 = vld [vmem:[%s12325_s1 + $0x20c] sm:$0xf]  ;;  %v7738_v0 = vld [vmem:[%s12325_s1 + $0x238] sm:$0xf0] }
 0x27b   : > { %3571 = vmatpush.bf16.msrb.mxu0 %v7833_v22  ;;  %3551 = vmatpush.bf16.msra.mxu2 %v8309_v27  ;;  %v7640_v22 = vld [vmem:[%s12325_s1 + $0x148] sm:$0xf]  ;;  %v3334_v24 = vadd.f32 %v3333_v14, %v3321_v19  ;;  %v10690_v14 = vld [vmem:[%s12325_s1 + $0x54] sm:$0xf0] }
 0x27c   : > { %3584 = vmatpush.bf16.msrb.mxu1 %v8217_v23  ;;  %v10726_v23 = vld [vmem:[%s12325_s1 + $0x174] sm:$0xf0]  ;;  %v8024_v27 = vld [vmem:[%s12325_s1 + $0x448] sm:$0xf]  ;;  %v7497_v29 = vor.u32 %v10690_v14, %v7496_v13  ;;  %v7741_v13 = vor.u32 %v10744_v61, %v7738_v0  ;;  %v8410_v0 = vld [vmem:[%s12325_s1 + $0x778] sm:$0xf0] }
 0x27d   : > { %3564 = vmatpush.bf16.msra.mxu3 %v8693_v28  ;;  %3540 = vmatmul.bf16.vlgmr.msra.gmra.mxu1 %v12504_v11  ;;  %v10822_v28 = vld [vmem:[%s12325_s1 + $0x474] sm:$0xf0]  ;;  %v7641_v35 = vor.u32 %v10726_v23, %v7640_v22  ;;  %v7834_v22 = vld [vmem:[%s12325_s1 + $0x2f8] sm:$0xf0]  ;;  %v10864_v23 = vld [vmem:[%s12325_s1 + $0x5cc] sm:$0xf] }
 0x27e   : > { %v8025_v37 = vor.u32 %v10822_v28, %v8024_v27  ;;  %v8696_v27 = vld [vmem:[%s12325_s1 + $0x988] sm:$0xf]  ;;  %v10990_v28 = vld [vmem:[%s12325_s1 + $0x9b4] sm:$0xf0] }
 0x27f   : > { %3572 = vmatpush.bf16.msrb.mxu0 %v7785_v46  ;;  %3552 = vmatpush.bf16.msra.mxu2 %v8261_v49  ;;  %v10810_v46 = vld [vmem:[%s12325_s1 + $0x414] sm:$0xf0]  ;;  %v3322_v49 = vpop.f32.mrf.mxu0 }
 0x280   : > { %3585 = vmatpush.bf16.msrb.mxu1 %v8169_v47  ;;  %v8408_v47 = vld [vmem:[%s12325_s1 + $0x748] sm:$0xf]  ;;  %v7977_v55 = vor.u32 %v10810_v46, %v7976_v42  ;;  %v8170_v46 = vld [vmem:[%s12325_s1 + $0x598] sm:$0xf0]  ;;  %v10882_v49 = vld [vmem:[%s12325_s1 + $0x654] sm:$0xf0] }
 0x281   : > { %3565 = vmatpush.bf16.msra.mxu3 %v8645_v50  ;;  %v8409_v59 = vor.u32 %v10918_v51, %v8408_v47  ;;  %v8264_v47 = vld [vmem:[%s12325_s1 + $0x628] sm:$0xf]  ;;  %v10978_v51 = vld [vmem:[%s12325_s1 + $0x954] sm:$0xf0] }
 0x282   : > { %3553 = vmatmul.bf16.vlgmr.msra.gmra.mxu2 %v12521_v32  ;;  %v3335_v50 = vpop.f32.mrf.mxu1 }
 0x283   : > { %3597 = vmatpush.bf16.msrb.mxu2 %v8601_v53  ;;  %3573 = vmatpush.bf16.msrb.mxu0 %v7737_v1  ;;  %v11014_v53 = vld [vmem:[%s12325_s1 + $0xa74] sm:$0xf0]  ;;  %v8360_v1 = vld [vmem:[%s12325_s1 + $0x6e8] sm:$0xf] }
 0x284   : > { %3566 = vmatmul.bf16.vlgmr.msra.gmra.mxu3 %v12523_v33  ;;  %3586 = vmatpush.bf16.msrb.mxu1 %v8121_v2  ;;  %v8793_v60 = vor.u32 %v11014_v53, %v8792_v52  ;;  %v8361_v18 = vor.u32 %v10906_v5, %v8360_v1  ;;  %v8648_v50 = vld [vmem:[%s12325_s1 + $0x928] sm:$0xf]  ;;  %v10960_v52 = vld [vmem:[%s12325_s1 + $0x8cc] sm:$0xf]  ;;  %v8602_v53 = vld [vmem:[%s12325_s1 + $0x8f8] sm:$0xf0] }
 0x285   : > { %3610 = vmatpush.bf16.msrb.mxu3 %v8985_v54  ;;  %v7593_v54 = vor.u32 %v10714_v39, %v7592_v38  ;;  %v3346_v2 = vpop.f32.mrf.mxu2  ;;  %v10852_v38 = vld [vmem:[%s12325_s1 + $0x56c] sm:$0xf]  ;;  %v8605_v1 = vor.u32 %v10960_v52, %v8602_v53  ;;  %v8122_v5 = vld [vmem:[%s12325_s1 + $0x538] sm:$0xf0] }
 0x286   : > { %v3347_v8 = vadd.f32 %v3346_v2, %v3334_v24  ;;  %v8218_v24 = vld [vmem:[%s12325_s1 + $0x5f8] sm:$0xf0]  ;;  %v8173_v58 = vor.u32 %v10852_v38, %v8170_v46  ;;  %v10708_v52 = vld [vmem:[%s12325_s1 + $0xec] sm:$0xf] }
 0x287   : > { %3598 = vmatpush.bf16.msrb.mxu2 %v8553_v6  ;;  %3574 = vmatpush.bf16.msrb.mxu0 %v7689_v20  ;;  %v3359_v4 = vpop.f32.mrf.mxu3  ;;  %v8744_v6 = vld [vmem:[%s12325_s1 + $0x9e8] sm:$0xf]  ;;  %v10786_v20 = vld [vmem:[%s12325_s1 + $0x354] sm:$0xf0]  ;;  %v8221_v34 = vor.u32 %v10864_v23, %v8218_v24  ;;  %v10936_v23 = vld [vmem:[%s12325_s1 + $0x80c] sm:$0xf] }
 0x288   : > { %3587 = vmatpush.bf16.msrb.mxu1 %v8073_v21  ;;  %v13132_v17 = vadd.f32 %v3359_v4, %v3347_v8  ;;  %v10768_v21 = vld [vmem:[%s12325_s1 + $0x2cc] sm:$0xf]  ;;  %v7881_v30 = vor.u32 %v10786_v20, %v7880_v16  ;;  %v8458_v46 = vld [vmem:[%s12325_s1 + $0x7d8] sm:$0xf0] }
 0x289   : > { %3611 = vmatpush.bf16.msrb.mxu3 %v8937_v7  ;;  %v11002_v7 = vld [vmem:[%s12325_s1 + $0xa14] sm:$0xf0]  ;;  %v7837_v31 = vor.u32 %v10768_v21, %v7834_v22  ;;  %v10840_v4 = vld [vmem:[%s12325_s1 + $0x50c] sm:$0xf]  ;;  %v8074_v22 = vld [vmem:[%s12325_s1 + $0x4d8] sm:$0xf0] }
 0x28a   : > { %v8745_v19 = vor.u32 %v11002_v7, %v8744_v6  ;;  %v10948_v6 = vld [vmem:[%s12325_s1 + $0x86c] sm:$0xf]  ;;  %v8554_v7 = vld [vmem:[%s12325_s1 + $0x898] sm:$0xf0]  ;;  %v8125_v14 = vor.u32 %v10840_v4, %v8122_v5 }
 0x28b   : > { %3599 = vmatpush.bf16.msrb.mxu2 %v8505_v25  ;;  %3575 = vmatpush.bf16.msrb.mxu0 %v7641_v35  ;;  %v8312_v25 = vld [vmem:[%s12325_s1 + $0x688] sm:$0xf]  ;;  %v10756_v35 = vld [vmem:[%s12325_s1 + $0x26c] sm:$0xf]  ;;  %v7594_v53 = vld [vmem:[%s12325_s1 + $0x118] sm:$0xf0] }
 0x28c   : > { %3588 = vmatpush.bf16.msrb.mxu1 %v8025_v37  ;;  %v7786_v37 = vld [vmem:[%s12325_s1 + $0x298] sm:$0xf0]  ;;  %v11044_v8 = vld [vmem:[%s12325_s1 + $0xb6c] sm:$0xf]  ;;  %v7597_v4 = vor.u32 %v10708_v52, %v7594_v53  ;;  %v11141_v52 = vld [vmem:[#allocation11 + $0x26c] sm:$0xf0] }
 0x28d   : > { %3612 = vmatpush.bf16.msrb.mxu3 %v8889_v26  ;;  %v10894_v26 = vld [vmem:[%s12325_s1 + $0x6b4] sm:$0xf0]  ;;  %v7789_v57 = vor.u32 %v10756_v35, %v7786_v37  ;;  %v10732_v16 = vld [vmem:[%s12325_s1 + $0x1ac] sm:$0xf]  ;;  %v7642_v35 = vld [vmem:[%s12325_s1 + $0x178] sm:$0xf0] }
 0x28e   : > { %v8313_v39 = vor.u32 %v10894_v26, %v8312_v25  ;;  %v10828_v21 = vld [vmem:[%s12325_s1 + $0x4ac] sm:$0xf]  ;;  %v8506_v26 = vld [vmem:[%s12325_s1 + $0x838] sm:$0xf0] }
 0x28f   : > { %3600 = vmatpush.bf16.msrb.mxu2 %v8457_v40  ;;  %3576 = vmatpush.bf16.msrb.mxu0 %v7593_v54  ;;  %v8697_v40 = vor.u32 %v10990_v28, %v8696_v27  ;;  %v3361_v42 = vpop.f32.mrf.mxu3  ;;  %v11056_v54 = vld [vmem:[%s12325_s1 + $0xbcc] sm:$0xf]  ;;  %v8890_v28 = vld [vmem:[%s12325_s1 + $0xb38] sm:$0xf0]  ;;  %v8509_v38 = vor.u32 %v10936_v23, %v8506_v26 }
 0x290   : > { %3589 = vmatpush.bf16.msrb.mxu1 %v7977_v55  ;;  %v8986_v55 = vld [vmem:[%s12325_s1 + $0xbf8] sm:$0xf0]  ;;  %v11032_v27 = vld [vmem:[%s12325_s1 + $0xb0c] sm:$0xf] }
 0x291   : > { %3613 = vmatpush.bf16.msrb.mxu3 %v8841_v41  ;;  %v3348_v41 = vpop.f32.mrf.mxu2  ;;  %v8989_v2 = vor.u32 %v11056_v54, %v8986_v55  ;;  %v10924_v42 = vld [vmem:[%s12325_s1 + $0x7ac] sm:$0xf]  ;;  %v7498_v26 = vld [vmem:[%s12325_s1 + $0x58] sm:$0xf0] }
 0x292   : > { %v8026_v41 = vld [vmem:[%s12325_s1 + $0x478] sm:$0xf0]  ;;  %v8461_v54 = vor.u32 %v10924_v42, %v8458_v46  ;;  %v11249_v42 = vld [vmem:[#allocation11 + $0x5cc] sm:$0xf0]  ;;  %v10876_v53 = vld [vmem:[%s12325_s1 + $0x62c] sm:$0xf] }
 0x293   : > { %3601 = vmatpush.bf16.msrb.mxu2 %v8409_v59  ;;  %3577 = vmatpush.bf16.msrb.mxu0 %v7545_v9  ;;  %v8265_v59 = vor.u32 %v10882_v49, %v8264_v47  ;;  %v8938_v9 = vld [vmem:[%s12325_s1 + $0xb98] sm:$0xf0]  ;;  %v11020_v47 = vld [vmem:[%s12325_s1 + $0xaac] sm:$0xf] }
 0x294   : > { %3590 = vmatpush.bf16.msrb.mxu1 %v7929_v12  ;;  %v1113_v12 = vperm.slane %v13092_v62, 6  ;;  %v8941_v20 = vor.u32 %v11044_v8, %v8938_v9  ;;  %v8842_v49 = vld [vmem:[%s12325_s1 + $0xad8] sm:$0xf0] }
 0x295   : > { %3614 = vmatpush.bf16.msrb.mxu3 %v8793_v60  ;;  %v8649_v60 = vor.u32 %v10978_v51, %v8648_v50  ;;  %v8845_v55 = vor.u32 %v11020_v47, %v8842_v49 }
 0x297   : > { %3602 = vmatpush.bf16.msrb.mxu2 %v8361_v18  ;;  %3578 = vmatpush.bf16.msrb.mxu0 %v7497_v29  ;;  %v7690_v18 = vld [vmem:[%s12325_s1 + $0x1d8] sm:$0xf0]  ;;  %v3372_v24 = vpop.f32.mrf.mxu0 }
 0x298   : > { %3591 = vmatpush.bf16.msrb.mxu1 %v7881_v30  ;;  %v3373_v29 = vadd.f32 %v3372_v24, %v1113_v12  ;;  %v7693_v30 = vor.u32 %v10732_v16, %v7690_v18  ;;  %v10792_v12 = vld [vmem:[%s12325_s1 + $0x38c] sm:$0xf] }
 0x299   : > { %3615 = vmatpush.bf16.msrb.mxu3 %v8745_v19  ;;  %v8557_v19 = vor.u32 %v10948_v6, %v8554_v7  ;;  %v10696_v6 = vld [vmem:[%s12325_s1 + $0x8c] sm:$0xf]  ;;  %v7546_v7 = vld [vmem:[%s12325_s1 + $0xb8] sm:$0xf0] }
 0x29a   : > { %3579 = vmatmul.bf16.vlgmr.msrb.gmra.mxu0 %v12502_v10  ;;  %v3385_v25 = vpop.f32.mrf.mxu1  ;;  %v7549_v23 = vor.u32 %v10696_v6, %v7546_v7  ;;  %v11441_v6 = vld [vmem:[#allocation11 + $0xbcc] sm:$0xf0] }
 0x29b   : > { %3623 = vmatpush.bf16.msra.mxu0 %v7837_v31  ;;  %3603 = vmatpush.bf16.msrb.mxu2 %v8313_v39  ;;  %v8077_v31 = vor.u32 %v10828_v21, %v8074_v22  ;;  %v3386_v37 = vadd.f32 %v3385_v25, %v3373_v29  ;;  %v8893_v39 = vor.u32 %v11032_v27, %v8890_v28  ;;  %v8746_v21 = vld [vmem:[%s12325_s1 + $0xa18] sm:$0xf0]  ;;  %v10684_v25 = vld [vmem:[%s12325_s1 + $0x2c] sm:$0xf] }
 0x29c   : > { %3636 = vmatpush.bf16.msra.mxu1 %v8221_v34  ;;  %v10720_v34 = vld [vmem:[%s12325_s1 + $0x14c] sm:$0xf]  ;;  %v7501_v46 = vor.u32 %v10684_v25, %v7498_v26  ;;  %v1114_v26 = vperm.slane %v13092_v62, 7 }
 0x29d   : > { %3616 = vmatpush.bf16.msrb.mxu3 %v8697_v40  ;;  %3592 = vmatmul.bf16.vlgmr.msrb.gmra.mxu1 %v12504_v11  ;;  %v10816_v40 = vld [vmem:[%s12325_s1 + $0x44c] sm:$0xf]  ;;  %v7645_v50 = vor.u32 %v10720_v34, %v7642_v35  ;;  %v9328_v34 = vld [vmem:[#allocation11 + $0x2a0] sm:$0xf]  ;;  %v11153_v35 = vld [vmem:[#allocation11 + $0x2cc] sm:$0xf0] }
 0x29e   : > { %v8029_v51 = vor.u32 %v10816_v40, %v8026_v41  ;;  %v10780_v27 = vld [vmem:[%s12325_s1 + $0x32c] sm:$0xf]  ;;  %v8698_v40 = vld [vmem:[%s12325_s1 + $0x9b8] sm:$0xf0]  ;;  %v9712_v41 = vld [vmem:[#allocation11 + $0x5a0] sm:$0xf]  ;;  %v9329_v49 = vor.u32 %v11153_v35, %v9328_v34 }
 0x29f   : > { %3624 = vmatpush.bf16.msra.mxu0 %v7789_v57  ;;  %3604 = vmatpush.bf16.msrb.mxu2 %v8265_v59  ;;  %v10804_v57 = vld [vmem:[%s12325_s1 + $0x3ec] sm:$0xf]  ;;  %v11213_v34 = vld [vmem:[#allocation11 + $0x4ac] sm:$0xf0]  ;;  %v10000_v35 = vld [vmem:[#allocation11 + $0x7e0] sm:$0xf] }
 0x2a0   : > { %3637 = vmatpush.bf16.msra.mxu1 %v8173_v58  ;;  %v7978_v58 = vld [vmem:[%s12325_s1 + $0x418] sm:$0xf0]  ;;  %v10912_v59 = vld [vmem:[%s12325_s1 + $0x74c] sm:$0xf] }
 0x2a1   : > { %3617 = vmatpush.bf16.msrb.mxu3 %v8649_v60  ;;  %v3374_v60 = vpop.f32.mrf.mxu0  ;;  %v7981_v5 = vor.u32 %v10804_v57, %v7978_v58  ;;  %v8413_v8 = vor.u32 %v10912_v59, %v8410_v0  ;;  %v9713_v58 = vor.u32 %v11249_v42, %v9712_v41  ;;  %v8266_v59 = vld [vmem:[%s12325_s1 + $0x658] sm:$0xf0]  ;;  %v9664_v0 = vld [vmem:[#allocation11 + $0x540] sm:$0xf]  ;;  %v11417_v41 = vld [vmem:[#allocation11 + $0xb0c] sm:$0xf0] }
 0x2a2   : > { %3605 = vmatmul.bf16.vlgmr.msrb.gmra.mxu2 %v12521_v32  ;;  %v3387_v61 = vpop.f32.mrf.mxu1  ;;  %v10972_v60 = vld [vmem:[%s12325_s1 + $0x92c] sm:$0xf] }
 0x2a3   : > { %3649 = vmatpush.bf16.msra.mxu2 %v8605_v1  ;;  %3625 = vmatpush.bf16.msra.mxu0 %v7741_v13  ;;  %v11008_v1 = vld [vmem:[%s12325_s1 + $0xa4c] sm:$0xf]  ;;  %v7930_v13 = vld [vmem:[%s12325_s1 + $0x3b8] sm:$0xf0] }
 0x2a4   : > { %3618 = vmatmul.bf16.vlgmr.msrb.gmra.mxu3 %v12523_v33  ;;  %3638 = vmatpush.bf16.msra.mxu1 %v8125_v14  ;;  %v10900_v14 = vld [vmem:[%s12325_s1 + $0x6ec] sm:$0xf]  ;;  %v7933_v24 = vor.u32 %v10792_v12, %v7930_v13  ;;  %v8650_v61 = vld [vmem:[%s12325_s1 + $0x958] sm:$0xf0]  ;;  %v9232_v13 = vld [vmem:[#allocation11 + $0x1e0] sm:$0xf] }
 0x2a5   : > { %3662 = vmatpush.bf16.msra.mxu3 %v8989_v2  ;;  %v8794_v2 = vld [vmem:[%s12325_s1 + $0xa78] sm:$0xf0]  ;;  %v3398_v16 = vpop.f32.mrf.mxu2 }
 0x2a6   : > { %v8797_v9 = vor.u32 %v11008_v1, %v8794_v2  ;;  %v3399_v22 = vadd.f32 %v3398_v16, %v3386_v37  ;;  %v10888_v37 = vld [vmem:[%s12325_s1 + $0x68c] sm:$0xf]  ;;  %v11237_v1 = vld [vmem:[#allocation11 + $0x56c] sm:$0xf0]  ;;  %v10096_v2 = vld [vmem:[#allocation11 + $0x8a0] sm:$0xf] }
 0x2a7   : > { %3650 = vmatpush.bf16.msra.mxu2 %v8557_v19  ;;  %3626 = vmatpush.bf16.msra.mxu0 %v7693_v30  ;;  %v3411_v18 = vpop.f32.mrf.mxu3  ;;  %v8362_v19 = vld [vmem:[%s12325_s1 + $0x718] sm:$0xf0]  ;;  %v9665_v12 = vor.u32 %v11237_v1, %v9664_v0 }
 0x2a8   : > { %3639 = vmatpush.bf16.msra.mxu1 %v8077_v31  ;;  %v13203_v28 = vadd.f32 %v3411_v18, %v3399_v22  ;;  %v8365_v29 = vor.u32 %v10900_v14, %v8362_v19  ;;  %v7882_v31 = vld [vmem:[%s12325_s1 + $0x358] sm:$0xf0]  ;;  %v11129_v14 = vld [vmem:[#allocation11 + $0x20c] sm:$0xf0]  ;;  %v9616_v19 = vld [vmem:[#allocation11 + $0x4e0] sm:$0xf] }
 0x2a9   : > { %3663 = vmatpush.bf16.msra.mxu3 %v8941_v20  ;;  %v10996_v20 = vld [vmem:[%s12325_s1 + $0x9ec] sm:$0xf]  ;;  %v7885_v47 = vor.u32 %v10780_v27, %v7882_v31  ;;  %v11333_v22 = vld [vmem:[#allocation11 + $0x86c] sm:$0xf0]  ;;  %v9233_v25 = vor.u32 %v11129_v14, %v9232_v13  ;;  %v9568_v31 = vld [vmem:[#allocation11 + $0x480] sm:$0xf] }
 0x2aa   : > { %v8749_v30 = vor.u32 %v10996_v20, %v8746_v21  ;;  %v11225_v20 = vld [vmem:[#allocation11 + $0x50c] sm:$0xf0]  ;;  %v10048_v21 = vld [vmem:[#allocation11 + $0x840] sm:$0xf] }
 0x2ab   : > { %3651 = vmatpush.bf16.msra.mxu2 %v8509_v38  ;;  %3627 = vmatpush.bf16.msra.mxu0 %v7645_v50  ;;  %v8314_v38 = vld [vmem:[%s12325_s1 + $0x6b8] sm:$0xf0]  ;;  %v9617_v27 = vor.u32 %v11225_v20, %v9616_v19 }
 0x2ac   : > { %3640 = vmatpush.bf16.msra.mxu1 %v8029_v51  ;;  %v8317_v50 = vor.u32 %v10888_v37, %v8314_v38  ;;  %v9280_v51 = vld [vmem:[#allocation11 + $0x240] sm:$0xf] }
 0x2ad   : > { %3664 = vmatpush.bf16.msra.mxu3 %v8893_v39  ;;  %v10984_v39 = vld [vmem:[%s12325_s1 + $0x98c] sm:$0xf]  ;;  %v9281_v7 = vor.u32 %v11141_v52, %v9280_v51 }
 0x2af   : > { %3652 = vmatpush.bf16.msra.mxu2 %v8461_v54  ;;  %3628 = vmatpush.bf16.msra.mxu0 %v7597_v4  ;;  %v8701_v54 = vor.u32 %v10984_v39, %v8698_v40  ;;  %v3413_v57 = vpop.f32.mrf.mxu3  ;;  %v11345_v4 = vld [vmem:[#allocation11 + $0x8cc] sm:$0xf0]  ;;  %v10384_v40 = vld [vmem:[#allocation11 + $0xae0] sm:$0xf] }
 0x2b0   : > { %3641 = vmatpush.bf16.msra.mxu1 %v7981_v5  ;;  %v10480_v5 = vld [vmem:[#allocation11 + $0xba0] sm:$0xf]  ;;  %v10097_v16 = vor.u32 %v11345_v4, %v10096_v2  ;;  %v11321_v39 = vld [vmem:[#allocation11 + $0x80c] sm:$0xf0]  ;;  %v10385_v52 = vor.u32 %v11417_v41, %v10384_v40 }
 0x2b1   : > { %3665 = vmatpush.bf16.msra.mxu3 %v8845_v55  ;;  %v3400_v55 = vpop.f32.mrf.mxu2  ;;  %v10481_v18 = vor.u32 %v11441_v6, %v10480_v5  ;;  %v10001_v51 = vor.u32 %v11321_v39, %v10000_v35  ;;  %v10336_v57 = vld [vmem:[#allocation11 + $0xa80] sm:$0xf]  ;;  %v11189_v4 = vld [vmem:[#allocation11 + $0x3ec] sm:$0xf0]  ;;  %v11147_v35 = vld [vmem:[#allocation11 + $0x2a4] sm:$0xf] }
 0x2b2   : > { %v11309_v55 = vld [vmem:[#allocation11 + $0x7ac] sm:$0xf0]  ;;  %v9472_v2 = vld [vmem:[#allocation11 + $0x3c0] sm:$0xf] }
 0x2b3   : > { %3653 = vmatpush.bf16.msra.mxu2 %v8413_v8  ;;  %3629 = vmatpush.bf16.msra.mxu0 %v7549_v23  ;;  %v8269_v8 = vor.u32 %v10876_v53, %v8266_v59  ;;  %v10432_v23 = vld [vmem:[#allocation11 + $0xb40] sm:$0xf]  ;;  %v11201_v53 = vld [vmem:[#allocation11 + $0x44c] sm:$0xf0]  ;;  %v9473_v14 = vor.u32 %v11189_v4, %v9472_v2  ;;  %v11231_v4 = vld [vmem:[#allocation11 + $0x544] sm:$0xf] }
 0x2b4   : > { %3642 = vmatpush.bf16.msra.mxu1 %v7933_v24  ;;  %v11429_v24 = vld [vmem:[#allocation11 + $0xb6c] sm:$0xf0]  ;;  %v9904_v5 = vld [vmem:[#allocation11 + $0x720] sm:$0xf] }
 0x2b5   : > { %3666 = vmatpush.bf16.msra.mxu3 %v8797_v9  ;;  %v8653_v9 = vor.u32 %v10972_v60, %v8650_v61  ;;  %v9088_v60 = vld [vmem:[#allocation11 + $0xc0] sm:$0xf]  ;;  %v11093_v61 = vld [vmem:[#allocation11 + $0xec] sm:$0xf0] }
 0x2b6   : > { %v9089_v13 = vor.u32 %v11093_v61, %v9088_v60  ;;  %v9376_v41 = vld [vmem:[#allocation11 + $0x300] sm:$0xf]  ;;  %v11357_v2 = vld [vmem:[#allocation11 + $0x92c] sm:$0xf0] }
 0x2b7   : > { %3654 = vmatpush.bf16.msra.mxu2 %v8365_v29  ;;  %3630 = vmatpush.bf16.msra.mxu0 %v7501_v46  ;;  %v9184_v29 = vld [vmem:[#allocation11 + $0x180] sm:$0xf]  ;;  %v3424_v37 = vpop.f32.mrf.mxu0  ;;  %v9569_v46 = vor.u32 %v11213_v34, %v9568_v31  ;;  %v11069_v34 = vld [vmem:[#allocation11 + $0x2c] sm:$0xf0] }
 0x2b8   : > { %3643 = vmatpush.bf16.msra.mxu1 %v7885_v47  ;;  %v3425_v62 = vadd.f32 %v3424_v37, %v1114_v26  ;;  %v9136_v47 = vld [vmem:[#allocation11 + $0x120] sm:$0xf]  ;;  %v11285_v26 = vld [vmem:[#allocation11 + $0x6ec] sm:$0xf0]  ;;  %v9330_v37 = vld [vmem:[#allocation11 + $0x2d0] sm:$0xf0] }
 0x2b9   : > { %3667 = vmatpush.bf16.msra.mxu3 %v8749_v30  ;;  %v10433_v30 = vor.u32 %v11429_v24, %v10432_v23  ;;  %v9856_v23 = vld [vmem:[#allocation11 + $0x6c0] sm:$0xf] }
 0x2ba   : > { %3631 = vmatmul.bf16.vlgmr.msra.gmra.mxu0 %v12502_v10  ;;  %v11117_v10 = vld [vmem:[#allocation11 + $0x1ac] sm:$0xf0]  ;;  %v3437_v38 = vpop.f32.mrf.mxu1  ;;  %v9857_v39 = vor.u32 %v11285_v26, %v9856_v23  ;;  %v10050_v26 = vld [vmem:[#allocation11 + $0x870] sm:$0xf0] }
 0x2bb   : > { %6007 = vmatpush.bf16.msrb.mxu0 %v9329_v49  ;;  %3655 = vmatpush.bf16.msra.mxu2 %v8317_v50  ;;  %v9185_v42 = vor.u32 %v11117_v10, %v9184_v29  ;;  %v11105_v49 = vld [vmem:[#allocation11 + $0x14c] sm:$0xf0]  ;;  %v3438_v50 = vadd.f32 %v3437_v38, %v3425_v62 }
 0x2bc   : > { %6020 = vmatpush.bf16.msrb.mxu1 %v9713_v58  ;;  %v11405_v58 = vld [vmem:[#allocation11 + $0xaac] sm:$0xf0] }
 0x2bd   : > { %3668 = vmatpush.bf16.msra.mxu3 %v8701_v54  ;;  %3644 = vmatmul.bf16.vlgmr.msra.gmra.mxu1 %v12504_v11  ;;  %v10049_v11 = vor.u32 %v11333_v22, %v10048_v21  ;;  %v9952_v54 = vld [vmem:[#allocation11 + $0x780] sm:$0xf]  ;;  %v10337_v1 = vor.u32 %v11405_v58, %v10336_v57  ;;  %v11177_v22 = vld [vmem:[#allocation11 + $0x38c] sm:$0xf0]  ;;  %v9282_v58 = vld [vmem:[#allocation11 + $0x270] sm:$0xf0] }
 0x2be   : > { %v9953_v0 = vor.u32 %v11309_v55, %v9952_v54  ;;  %v9424_v21 = vld [vmem:[#allocation11 + $0x360] sm:$0xf]  ;;  %v11381_v29 = vld [vmem:[#allocation11 + $0x9ec] sm:$0xf0]  ;;  %v11135_v54 = vld [vmem:[#allocation11 + $0x244] sm:$0xf] }
 0x2bf   : > { %6008 = vmatpush.bf16.msrb.mxu0 %v9281_v7  ;;  %3656 = vmatpush.bf16.msra.mxu2 %v8269_v8  ;;  %v3426_v6 = vpop.f32.mrf.mxu0  ;;  %v11297_v8 = vld [vmem:[#allocation11 + $0x74c] sm:$0xf0]  ;;  %v9425_v31 = vor.u32 %v11177_v22, %v9424_v21  ;;  %v11219_v21 = vld [vmem:[#allocation11 + $0x4e4] sm:$0xf]  ;;  %v13222_v22 = vld [vmem:[#allocation12 + $0x8] sm:$0xf] }
 0x2c0   : > { %6021 = vmatpush.bf16.msrb.mxu1 %v9665_v12  ;;  %v11393_v12 = vld [vmem:[#allocation11 + $0xa4c] sm:$0xf0]  ;;  %v9905_v19 = vor.u32 %v11297_v8, %v9904_v5  ;;  %v9666_v5 = vld [vmem:[#allocation11 + $0x570] sm:$0xf0]  ;;  %v11339_v6 = vld [vmem:[#allocation11 + $0x8a4] sm:$0xf]  ;;  %v9285_v8 = vor.u32 %v11135_v54, %v9282_v58 }
 0x2c1   : > { %3669 = vmatpush.bf16.msra.mxu3 %v8653_v9  ;;  %v10288_v9 = vld [vmem:[#allocation11 + $0xa20] sm:$0xf]  ;;  %v11165_v62 = vld [vmem:[#allocation11 + $0x32c] sm:$0xf0] }
 0x2c2   : > { %3657 = vmatmul.bf16.vlgmr.msra.gmra.mxu2 %v12521_v32  ;;  %v9520_v32 = vld [vmem:[#allocation11 + $0x420] sm:$0xf]  ;;  %v3439_v7 = vpop.f32.mrf.mxu1  ;;  %v10289_v20 = vor.u32 %v11393_v12, %v10288_v9  ;;  %v11435_v9 = vld [vmem:[#allocation11 + $0xba4] sm:$0xf]  ;;  %v10482_v12 = vld [vmem:[#allocation11 + $0xbd0] sm:$0xf0] }
 0x2c3   : > { %6033 = vmatpush.bf16.msrb.mxu2 %v10097_v16  ;;  %6009 = vmatpush.bf16.msrb.mxu0 %v9233_v25  ;;  %v9521_v59 = vor.u32 %v11201_v53, %v9520_v32  ;;  %v9040_v16 = vld [vmem:[#allocation11 + $0x60] sm:$0xf]  ;;  %v9333_v32 = vor.u32 %v11147_v35, %v9330_v37  ;;  %v9377_v53 = vor.u32 %v11165_v62, %v9376_v41  ;;  %v10098_v7 = vld [vmem:[#allocation11 + $0x8d0] sm:$0xf0]  ;;  %v11207_v37 = vld [vmem:[#allocation11 + $0x484] sm:$0xf] }
 0x2c4   : > { %3670 = vmatmul.bf16.vlgmr.msra.gmra.mxu3 %v12523_v33  ;;  %6022 = vmatpush.bf16.msrb.mxu1 %v9617_v27  ;;  %v9137_v33 = vor.u32 %v11105_v49, %v9136_v47  ;;  %v10240_v27 = vld [vmem:[#allocation11 + $0x9c0] sm:$0xf]  ;;  %v11369_v49 = vld [vmem:[#allocation11 + $0x98c] sm:$0xf0]  ;;  %v10485_v23 = vor.u32 %v11435_v9, %v10482_v12  ;;  %v11315_v41 = vld [vmem:[#allocation11 + $0x7e4] sm:$0xf] }
 0x2c5   : > { %6046 = vmatpush.bf16.msrb.mxu3 %v10481_v18  ;;  %v11081_v18 = vld [vmem:[#allocation11 + $0x8c] sm:$0xf0]  ;;  %v3450_v24 = vpop.f32.mrf.mxu2  ;;  %v10241_v40 = vor.u32 %v11381_v29, %v10240_v27  ;;  %v10192_v47 = vld [vmem:[#allocation11 + $0x960] sm:$0xf]  ;;  %v11423_v29 = vld [vmem:[#allocation11 + $0xb44] sm:$0xf] }
 0x2c6   : > { %v3451_v10 = vadd.f32 %v3450_v24, %v3438_v50  ;;  %v10193_v57 = vor.u32 %v11369_v49, %v10192_v47  ;;  %v9618_v24 = vld [vmem:[#allocation11 + $0x510] sm:$0xf0]  ;;  %v11411_v49 = vld [vmem:[#allocation11 + $0xae4] sm:$0xf] }
 0x2c7   : > { %6034 = vmatpush.bf16.msrb.mxu2 %v10049_v11  ;;  %6010 = vmatpush.bf16.msrb.mxu0 %v9185_v42  ;;  %v3463_v25 = vpop.f32.mrf.mxu3  ;;  %v9041_v11 = vor.u32 %v11081_v18, %v9040_v16  ;;  %v9808_v42 = vld [vmem:[#allocation11 + $0x660] sm:$0xf]  ;;  %v11123_v16 = vld [vmem:[#allocation11 + $0x1e4] sm:$0xf]  ;;  %v9234_v18 = vld [vmem:[#allocation11 + $0x210] sm:$0xf0] }
 0x2c8   : > { %6023 = vmatpush.bf16.msrb.mxu1 %v9569_v46  ;;  %v13219_v38 = vadd.f32 %v3463_v25, %v3451_v10  ;;  %v11273_v46 = vld [vmem:[#allocation11 + $0x68c] sm:$0xf0]  ;;  %v11327_v25 = vld [vmem:[#allocation11 + $0x844] sm:$0xf]  ;;  %v9237_v27 = vor.u32 %v11123_v16, %v9234_v18  ;;  %v10434_v10 = vld [vmem:[#allocation11 + $0xb70] sm:$0xf0] }
 0x2c9   : > { %6047 = vmatpush.bf16.msrb.mxu3 %v10433_v30  ;;  %v8992_v30 = vld [vmem:[#allocation11] sm:$0xf]  ;;  %v9809_v55 = vor.u32 %v11273_v46, %v9808_v42  ;;  %v10053_v35 = vor.u32 %v11327_v25, %v10050_v26  ;;  %v10002_v62 = vld [vmem:[#allocation11 + $0x810] sm:$0xf0]  ;;  %v11291_v12 = vld [vmem:[#allocation11 + $0x724] sm:$0xf] }
 0x2ca   : > { %v8993_v50 = vor.u32 %v11069_v34, %v8992_v30  ;;  %v11111_v30 = vld [vmem:[#allocation11 + $0x184] sm:$0xf]  ;;  %v9621_v34 = vor.u32 %v11219_v21, %v9618_v24  ;;  %v10005_v54 = vor.u32 %v11315_v41, %v10002_v62  ;;  %v9474_v9 = vld [vmem:[#allocation11 + $0x3f0] sm:$0xf0]  ;;  %v9336_v62 = vld [vmem:[#allocation11 + $0x2a8] sm:$0xf] }
 0x2cb   : > { %6035 = vmatpush.bf16.msrb.mxu2 %v10001_v51  ;;  %6011 = vmatpush.bf16.msrb.mxu0 %v9137_v33  ;;  %v11243_v51 = vld [vmem:[#allocation11 + $0x5a4] sm:$0xf]  ;;  %v9760_v33 = vld [vmem:[#allocation11 + $0x600] sm:$0xf]  ;;  %v8994_v41 = vld [vmem:[#allocation11 + $0x30] sm:$0xf0] }
 0x2cc   : > { %6024 = vmatpush.bf16.msrb.mxu1 %v9521_v59  ;;  %v11261_v59 = vld [vmem:[#allocation11 + $0x62c] sm:$0xf0]  ;;  %v11075_v21 = vld [vmem:[#allocation11 + $0x64] sm:$0xf] }
 0x2cd   : > { %6048 = vmatpush.bf16.msrb.mxu3 %v10385_v52  ;;  %v9714_v52 = vld [vmem:[#allocation11 + $0x5d0] sm:$0xf0]  ;;  %v3452_v60 = vpop.f32.mrf.mxu2  ;;  %v11171_v26 = vld [vmem:[#allocation11 + $0x364] sm:$0xf] }
 0x2ce   : > { %v9954_v60 = vld [vmem:[#allocation11 + $0x7b0] sm:$0xf0] }
 0x2cf   : > { %6036 = vmatpush.bf16.msrb.mxu2 %v9953_v0  ;;  %6012 = vmatpush.bf16.msrb.mxu0 %v9089_v13  ;;  %v3465_v61 = vpop.f32.mrf.mxu3  ;;  %v9717_v0 = vor.u32 %v11243_v51, %v9714_v52  ;;  %v9761_v13 = vor.u32 %v11261_v59, %v9760_v33  ;;  %v11099_v52 = vld [vmem:[#allocation11 + $0x124] sm:$0xf]  ;;  %v9522_v33 = vld [vmem:[#allocation11 + $0x450] sm:$0xf0] }
 0x2d0   : > { %6025 = vmatpush.bf16.msrb.mxu1 %v9473_v14  ;;  %v11303_v59 = vld [vmem:[#allocation11 + $0x784] sm:$0xf] }
 0x2d1   : > { %6049 = vmatpush.bf16.msrb.mxu3 %v10337_v1  ;;  %v10144_v1 = vld [vmem:[#allocation11 + $0x900] sm:$0xf] }
 0x2d2   : > { %v10145_v14 = vor.u32 %v11357_v2, %v10144_v1  ;;  %v10338_v1 = vld [vmem:[#allocation11 + $0xab0] sm:$0xf0]  ;;  %v11087_v2 = vld [vmem:[#allocation11 + $0xc4] sm:$0xf] }
 0x2d3   : > { %6037 = vmatpush.bf16.msrb.mxu2 %v9905_v19  ;;  %6013 = vmatpush.bf16.msrb.mxu0 %v9041_v11  ;;  %v9669_v19 = vor.u32 %v11231_v4, %v9666_v5  ;;  %v1115_v11 = vperm.slane %v13222_v22, 0  ;;  %v9090_v4 = vld [vmem:[#allocation11 + $0xf0] sm:$0xf0] }
 0x2d4   : > { %6026 = vmatpush.bf16.msrb.mxu1 %v9425_v31  ;;  %v9186_v31 = vld [vmem:[#allocation11 + $0x1b0] sm:$0xf0]  ;;  %v9093_v18 = vor.u32 %v11087_v2, %v9090_v4  ;;  %v11255_v2 = vld [vmem:[#allocation11 + $0x604] sm:$0xf] }
 0x2d5   : > { %6050 = vmatpush.bf16.msrb.mxu3 %v10289_v20  ;;  %v10101_v20 = vor.u32 %v11339_v6, %v10098_v7  ;;  %v9189_v47 = vor.u32 %v11111_v30, %v9186_v31  ;;  %v9957_v6 = vor.u32 %v11303_v59, %v9954_v60  ;;  %v11183_v7 = vld [vmem:[#allocation11 + $0x3c4] sm:$0xf] }
 0x2d6   : > { %v9477_v24 = vor.u32 %v11183_v7, %v9474_v9  ;;  %v11351_v7 = vld [vmem:[#allocation11 + $0x904] sm:$0xf] }
 0x2d7   : > { %6038 = vmatpush.bf16.msrb.mxu2 %v9857_v39  ;;  %6014 = vmatpush.bf16.msrb.mxu0 %v8993_v50  ;;  %v10437_v39 = vor.u32 %v11423_v29, %v10434_v10  ;;  %v3476_v42 = vpop.f32.mrf.mxu0  ;;  %v10386_v50 = vld [vmem:[#allocation11 + $0xb10] sm:$0xf0]  ;;  %v11279_v10 = vld [vmem:[#allocation11 + $0x6c4] sm:$0xf] }
 0x2d8   : > { %6027 = vmatpush.bf16.msrb.mxu1 %v9377_v53  ;;  %v3477_v51 = vadd.f32 %v3476_v42, %v1115_v11  ;;  %v10389_v58 = vor.u32 %v11411_v49, %v10386_v50  ;;  %v9426_v29 = vld [vmem:[#allocation11 + $0x390] sm:$0xf0]  ;;  %v11159_v49 = vld [vmem:[#allocation11 + $0x304] sm:$0xf] }
 0x2d9   : > { %6051 = vmatpush.bf16.msrb.mxu3 %v10241_v40  ;;  %v9570_v40 = vld [vmem:[#allocation11 + $0x4b0] sm:$0xf0]  ;;  %v9429_v42 = vor.u32 %v11171_v26, %v9426_v29 }
 0x2da   : > { %6015 = vmatmul.bf16.vlgmr.msrb.gmra.mxu0 %v12349_v43  ;;  %v3489_v46 = vpop.f32.mrf.mxu1  ;;  %v9573_v53 = vor.u32 %v11207_v37, %v9570_v40  ;;  %v9858_v11 = vld [vmem:[#allocation11 + $0x6f0] sm:$0xf0]  ;;  %v11063_v40 = vld [vmem:[#allocation11 + $0x4] sm:$0xf] }
 0x2db   : > { %6059 = vmatpush.bf16.msra.mxu0 %v9333_v32  ;;  %6039 = vmatpush.bf16.msrb.mxu2 %v9809_v55  ;;  %v9138_v32 = vld [vmem:[#allocation11 + $0x150] sm:$0xf0]  ;;  %v11195_v55 = vld [vmem:[#allocation11 + $0x424] sm:$0xf] }
 0x2dc   : > { %6072 = vmatpush.bf16.msra.mxu1 %v9717_v0  ;;  %v9141_v61 = vor.u32 %v11099_v52, %v9138_v32  ;;  %v11399_v0 = vld [vmem:[#allocation11 + $0xa84] sm:$0xf]  ;;  %v9525_v5 = vor.u32 %v11195_v55, %v9522_v33  ;;  %v10242_v37 = vld [vmem:[#allocation11 + $0x9f0] sm:$0xf0]  ;;  %v8997_v55 = vor.u32 %v11063_v40, %v8994_v41  ;;  %v11250_v33 = vld [vmem:[#allocation11 + $0x5d4] sm:$0xf0] }
 0x2dd   : > { %6052 = vmatpush.bf16.msrb.mxu3 %v10193_v57  ;;  %6028 = vmatmul.bf16.vlgmr.msrb.gmra.mxu1 %v12351_v44  ;;  %v3490_v57 = vadd.f32 %v3489_v46, %v3477_v51  ;;  %v9861_v46 = vor.u32 %v11279_v10, %v9858_v11  ;;  %v9378_v50 = vld [vmem:[#allocation11 + $0x330] sm:$0xf0]  ;;  %v11267_v32 = vld [vmem:[#allocation11 + $0x664] sm:$0xf]  ;;  %v9624_v11 = vld [vmem:[#allocation11 + $0x4e8] sm:$0xf] }
 0x2de   : > { %v9381_v60 = vor.u32 %v11159_v49, %v9378_v50  ;;  %v9192_v40 = vld [vmem:[#allocation11 + $0x188] sm:$0xf]  ;;  %v11118_v41 = vld [vmem:[#allocation11 + $0x1b4] sm:$0xf0] }
 0x2df   : > { %6060 = vmatpush.bf16.msra.mxu0 %v9285_v8  ;;  %6040 = vmatpush.bf16.msrb.mxu2 %v9761_v13  ;;  %v10341_v8 = vor.u32 %v11399_v0, %v10338_v1  ;;  %v9906_v13 = vld [vmem:[#allocation11 + $0x750] sm:$0xf0]  ;;  %v9288_v0 = vld [vmem:[#allocation11 + $0x248] sm:$0xf]  ;;  %v11142_v1 = vld [vmem:[#allocation11 + $0x274] sm:$0xf0] }
 0x2e0   : > { %6073 = vmatpush.bf16.msra.mxu1 %v9669_v19  ;;  %v11387_v19 = vld [vmem:[#allocation11 + $0xa24] sm:$0xf]  ;;  %v9909_v25 = vor.u32 %v11291_v12, %v9906_v13  ;;  %v9672_v13 = vld [vmem:[#allocation11 + $0x548] sm:$0xf]  ;;  %v11214_v50 = vld [vmem:[#allocation11 + $0x4b4] sm:$0xf0] }
 0x2e1   : > { %6053 = vmatpush.bf16.msrb.mxu3 %v10145_v14  ;;  %v3478_v14 = vpop.f32.mrf.mxu0  ;;  %v9576_v49 = vld [vmem:[#allocation11 + $0x488] sm:$0xf] }
 0x2e2   : > { %6041 = vmatmul.bf16.vlgmr.msrb.gmra.mxu2 %v12353_v45  ;;  %v3491_v16 = vpop.f32.mrf.mxu1  ;;  %v11238_v14 = vld [vmem:[#allocation11 + $0x574] sm:$0xf0] }
 0x2e3   : > { %6085 = vmatpush.bf16.msra.mxu2 %v10101_v20  ;;  %6061 = vmatpush.bf16.msra.mxu0 %v9237_v27  ;;  %v10290_v20 = vld [vmem:[#allocation11 + $0xa50] sm:$0xf0]  ;;  %v10104_v16 = vld [vmem:[#allocation11 + $0x8a8] sm:$0xf] }
 0x2e4   : > { %6054 = vmatmul.bf16.vlgmr.msrb.gmra.mxu3 %v12356_v48  ;;  %6074 = vmatpush.bf16.msra.mxu1 %v9621_v34  ;;  %v10293_v27 = vor.u32 %v11387_v19, %v10290_v20  ;;  %v11346_v19 = vld [vmem:[#allocation11 + $0x8d4] sm:$0xf0]  ;;  %v10488_v20 = vld [vmem:[#allocation11 + $0xba8] sm:$0xf] }
 0x2e5   : > { %6098 = vmatpush.bf16.msra.mxu3 %v10485_v23  ;;  %v9042_v23 = vld [vmem:[#allocation11 + $0x90] sm:$0xf0]  ;;  %v3502_v30 = vpop.f32.mrf.mxu2  ;;  %v10105_v29 = vor.u32 %v11346_v19, %v10104_v16 }
 0x2e6   : > { %v9045_v34 = vor.u32 %v11075_v21, %v9042_v23  ;;  %v11442_v21 = vld [vmem:[#allocation11 + $0xbd4] sm:$0xf0] }
 0x2e7   : > { %6086 = vmatpush.bf16.msra.mxu2 %v10053_v35  ;;  %6062 = vmatpush.bf16.msra.mxu0 %v9189_v47  ;;  %v3515_v31 = vpop.f32.mrf.mxu3  ;;  %v11375_v35 = vld [vmem:[#allocation11 + $0x9c4] sm:$0xf]  ;;  %v11154_v47 = vld [vmem:[#allocation11 + $0x2d4] sm:$0xf0]  ;;  %v10489_v10 = vor.u32 %v11442_v21, %v10488_v20  ;;  %v9480_v20 = vld [vmem:[#allocation11 + $0x3c8] sm:$0xf] }
 0x2e8   : > { %6075 = vmatpush.bf16.msra.mxu1 %v9573_v53  ;;  %v10245_v52 = vor.u32 %v11375_v35, %v10242_v37  ;;  %v9810_v53 = vld [vmem:[#allocation11 + $0x690] sm:$0xf0]  ;;  %v9337_v59 = vor.u32 %v11154_v47, %v9336_v62  ;;  %v11334_v35 = vld [vmem:[#allocation11 + $0x874] sm:$0xf0]  ;;  %v10440_v37 = vld [vmem:[#allocation11 + $0xb48] sm:$0xf] }
 0x2e9   : > { %6099 = vmatpush.bf16.msra.mxu3 %v10437_v39  ;;  %v3503_v39 = vadd.f32 %v3502_v30, %v3490_v57  ;;  %v10194_v57 = vld [vmem:[#allocation11 + $0x990] sm:$0xf0]  ;;  %v11226_v30 = vld [vmem:[#allocation11 + $0x514] sm:$0xf0] }
 0x2ea   : > { %v9625_v62 = vor.u32 %v11226_v30, %v9624_v11  ;;  %v11190_v21 = vld [vmem:[#allocation11 + $0x3f4] sm:$0xf0]  ;;  %v9048_v11 = vld [vmem:[#allocation11 + $0x68] sm:$0xf] }
 0x2eb   : > { %6087 = vmatpush.bf16.msra.mxu2 %v10005_v54  ;;  %6063 = vmatpush.bf16.msra.mxu0 %v9141_v61  ;;  %v13228_v51 = vadd.f32 %v3515_v31, %v3503_v39  ;;  %v11363_v54 = vld [vmem:[#allocation11 + $0x964] sm:$0xf]  ;;  %v9813_v61 = vor.u32 %v11267_v32, %v9810_v53  ;;  %v10056_v31 = vld [vmem:[#allocation11 + $0x848] sm:$0xf]  ;;  %v11430_v39 = vld [vmem:[#allocation11 + $0xb74] sm:$0xf0]  ;;  %v9193_v32 = vor.u32 %v11118_v41, %v9192_v40 }
 0x2ec   : > { %6076 = vmatpush.bf16.msra.mxu1 %v9525_v5  ;;  %v10197_v4 = vor.u32 %v11363_v54, %v10194_v57  ;;  %v10441_v47 = vor.u32 %v11430_v39, %v10440_v37  ;;  %v11322_v53 = vld [vmem:[#allocation11 + $0x814] sm:$0xf0]  ;;  %v10392_v54 = vld [vmem:[#allocation11 + $0xae8] sm:$0xf] }
 0x2ed   : > { %6100 = vmatpush.bf16.msra.mxu3 %v10389_v58  ;;  %v9720_v58 = vld [vmem:[#allocation11 + $0x5a8] sm:$0xf]  ;;  %v3504_v9 = vpop.f32.mrf.mxu2  ;;  %v11082_v30 = vld [vmem:[#allocation11 + $0x94] sm:$0xf0] }
 0x2ee   : > { %v9721_v5 = vor.u32 %v11250_v33, %v9720_v58  ;;  %v9144_v33 = vld [vmem:[#allocation11 + $0x128] sm:$0xf]  ;;  %v11178_v39 = vld [vmem:[#allocation11 + $0x394] sm:$0xf0]  ;;  %v9049_v41 = vor.u32 %v11082_v30, %v9048_v11  ;;  %v11436_v11 = vld [vmem:[#allocation11 + $0xbac] sm:$0xf] }
 0x2ef   : > { %6088 = vmatpush.bf16.msra.mxu2 %v9957_v6  ;;  %6064 = vmatpush.bf16.msra.mxu0 %v9093_v18  ;;  %v9762_v6 = vld [vmem:[#allocation11 + $0x630] sm:$0xf0]  ;;  %v3517_v12 = vpop.f32.mrf.mxu3  ;;  %v9289_v18 = vor.u32 %v11142_v1, %v9288_v0  ;;  %v10344_v9 = vld [vmem:[#allocation11 + $0xa88] sm:$0xf]  ;;  %v10490_v30 = vld [vmem:[#allocation11 + $0xbd8] sm:$0xf0] }
 0x2f0   : > { %6077 = vmatpush.bf16.msra.mxu1 %v9477_v24  ;;  %v9765_v23 = vor.u32 %v11255_v2, %v9762_v6  ;;  %v9240_v24 = vld [vmem:[#allocation11 + $0x1e8] sm:$0xf]  ;;  %v11406_v12 = vld [vmem:[#allocation11 + $0xab4] sm:$0xf0] }
 0x2f1   : > { %6101 = vmatpush.bf16.msra.mxu3 %v10341_v8  ;;  %v10146_v8 = vld [vmem:[#allocation11 + $0x930] sm:$0xf0]  ;;  %v9528_v2 = vld [vmem:[#allocation11 + $0x428] sm:$0xf]  ;;  %v10345_v19 = vor.u32 %v11406_v12, %v10344_v9  ;;  %v11136_v9 = vld [vmem:[#allocation11 + $0x24c] sm:$0xf] }
 0x2f2   : > { %v10149_v26 = vor.u32 %v11351_v7, %v10146_v8  ;;  %v11310_v8 = vld [vmem:[#allocation11 + $0x7b4] sm:$0xf0]  ;;  %v9432_v37 = vld [vmem:[#allocation11 + $0x368] sm:$0xf]  ;;  %v9290_v12 = vld [vmem:[#allocation11 + $0x278] sm:$0xf0] }
 0x2f3   : > { %6089 = vmatpush.bf16.msra.mxu2 %v9909_v25  ;;  %6065 = vmatpush.bf16.msra.mxu0 %v9045_v34  ;;  %v11130_v25 = vld [vmem:[#allocation11 + $0x214] sm:$0xf0]  ;;  %v9864_v40 = vld [vmem:[#allocation11 + $0x6c8] sm:$0xf] }
 0x2f4   : > { %6078 = vmatpush.bf16.msra.mxu1 %v9429_v42  ;;  %v9241_v34 = vor.u32 %v11130_v25, %v9240_v24  ;;  %v1116_v42 = vperm.slane %v13222_v22, 1  ;;  %v11298_v25 = vld [vmem:[#allocation11 + $0x754] sm:$0xf0] }
 0x2f5   : > { %6102 = vmatpush.bf16.msra.mxu3 %v10293_v27  ;;  %v9673_v27 = vor.u32 %v11238_v14, %v9672_v13  ;;  %v9096_v13 = vld [vmem:[#allocation11 + $0xc8] sm:$0xf]  ;;  %v11094_v14 = vld [vmem:[#allocation11 + $0xf4] sm:$0xf0] }
 0x2f6   : > { %v9097_v24 = vor.u32 %v11094_v14, %v9096_v13 }
 0x2f7   : > { %6090 = vmatpush.bf16.msra.mxu2 %v9861_v46  ;;  %6066 = vmatpush.bf16.msra.mxu0 %v8997_v55  ;;  %v10057_v46 = vor.u32 %v11334_v35, %v10056_v31  ;;  %v11418_v55 = vld [vmem:[#allocation11 + $0xb14] sm:$0xf0]  ;;  %v3528_v57 = vpop.f32.mrf.mxu0  ;;  %v9481_v31 = vor.u32 %v11190_v21, %v9480_v20 }
 0x2f8   : > { %6079 = vmatpush.bf16.msra.mxu1 %v9381_v60  ;;  %v3529_v60 = vadd.f32 %v3528_v57, %v1116_v42  ;;  %v10393_v1 = vor.u32 %v11418_v55, %v10392_v54  ;;  %v10248_v42 = vld [vmem:[#allocation11 + $0x9c8] sm:$0xf]  ;;  %v11148_v54 = vld [vmem:[#allocation11 + $0x2ac] sm:$0xf]  ;;  %v9338_v55 = vld [vmem:[#allocation11 + $0x2d8] sm:$0xf0] }
 0x2f9   : > { %6103 = vmatpush.bf16.msra.mxu3 %v10245_v52  ;;  %v10008_v52 = vld [vmem:[#allocation11 + $0x7e8] sm:$0xf]  ;;  %v11358_v21 = vld [vmem:[#allocation11 + $0x934] sm:$0xf0] }
 0x2fa   : > { %6067 = vmatmul.bf16.vlgmr.msra.gmra.mxu0 %v12349_v43  ;;  %v3541_v58 = vpop.f32.mrf.mxu1  ;;  %v10009_v0 = vor.u32 %v11322_v53, %v10008_v52  ;;  %v11070_v52 = vld [vmem:[#allocation11 + $0x34] sm:$0xf0]  ;;  %v9433_v53 = vor.u32 %v11178_v39, %v9432_v37 }
 0x2fb   : > { %6111 = vmatpush.bf16.msrb.mxu0 %v9337_v59  ;;  %6091 = vmatpush.bf16.msra.mxu2 %v9813_v61  ;;  %v11106_v59 = vld [vmem:[#allocation11 + $0x154] sm:$0xf0]  ;;  %v9577_v61 = vor.u32 %v11214_v50, %v9576_v49  ;;  %v3542_v6 = vadd.f32 %v3541_v58, %v3529_v60  ;;  %v9000_v50 = vld [vmem:[#allocation11 + $0x8] sm:$0xf] }
 0x2fc   : > { %6124 = vmatpush.bf16.msrb.mxu1 %v9721_v5  ;;  %v9960_v5 = vld [vmem:[#allocation11 + $0x788] sm:$0xf]  ;;  %v9145_v7 = vor.u32 %v11106_v59, %v9144_v33  ;;  %v11166_v59 = vld [vmem:[#allocation11 + $0x334] sm:$0xf0] }
 0x2fd   : > { %6104 = vmatpush.bf16.msra.mxu3 %v10197_v4  ;;  %6080 = vmatmul.bf16.vlgmr.msra.gmra.mxu1 %v12351_v44  ;;  %v11202_v4 = vld [vmem:[#allocation11 + $0x454] sm:$0xf0]  ;;  %v9384_v33 = vld [vmem:[#allocation11 + $0x308] sm:$0xf] }
 0x2fe   : > { %v9529_v16 = vor.u32 %v11202_v4, %v9528_v2  ;;  %v9816_v60 = vld [vmem:[#allocation11 + $0x668] sm:$0xf]  ;;  %v11370_v4 = vld [vmem:[#allocation11 + $0x994] sm:$0xf0] }
 0x2ff   : > { %6112 = vmatpush.bf16.msrb.mxu0 %v9289_v18  ;;  %6092 = vmatpush.bf16.msra.mxu2 %v9765_v23  ;;  %v9961_v18 = vor.u32 %v11310_v8, %v9960_v5  ;;  %v9912_v23 = vld [vmem:[#allocation11 + $0x728] sm:$0xf]  ;;  %v9341_v5 = vor.u32 %v11148_v54, %v9338_v55  ;;  %v9385_v8 = vor.u32 %v11166_v59, %v9384_v33  ;;  %v9578_v33 = vld [vmem:[#allocation11 + $0x4b8] sm:$0xf0] }
 0x300   : > { %6125 = vmatpush.bf16.msrb.mxu1 %v9673_v27  ;;  %v11394_v27 = vld [vmem:[#allocation11 + $0xa54] sm:$0xf0]  ;;  %v10200_v2 = vld [vmem:[#allocation11 + $0x968] sm:$0xf] }
 0x301   : > { %6105 = vmatpush.bf16.msra.mxu3 %v10149_v26  ;;  %v10296_v26 = vld [vmem:[#allocation11 + $0xa28] sm:$0xf]  ;;  %v10201_v14 = vor.u32 %v11370_v4, %v10200_v2  ;;  %v11412_v2 = vld [vmem:[#allocation11 + $0xaec] sm:$0xf]  ;;  %v10394_v4 = vld [vmem:[#allocation11 + $0xb18] sm:$0xf0] }
 0x302   : > { %6093 = vmatmul.bf16.vlgmr.msra.gmra.mxu2 %v12353_v45  ;;  %v10297_v35 = vor.u32 %v11394_v27, %v10296_v26  ;;  %v9293_v27 = vor.u32 %v11136_v9, %v9290_v12 }
 0x303   : > { %6137 = vmatpush.bf16.msrb.mxu2 %v10105_v29  ;;  %6113 = vmatpush.bf16.msrb.mxu0 %v9241_v34  ;;  %v3530_v29 = vpop.f32.mrf.mxu0  ;;  %v9913_v34 = vor.u32 %v11298_v25, %v9912_v23  ;;  %v11232_v23 = vld [vmem:[#allocation11 + $0x54c] sm:$0xf] }
 0x304   : > { %6106 = vmatmul.bf16.vlgmr.msra.gmra.mxu3 %v12356_v48  ;;  %6126 = vmatpush.bf16.msrb.mxu1 %v9625_v62  ;;  %v11286_v62 = vld [vmem:[#allocation11 + $0x6f4] sm:$0xf0]  ;;  %v11340_v29 = vld [vmem:[#allocation11 + $0x8ac] sm:$0xf] }
 0x305   : > { %6150 = vmatpush.bf16.msrb.mxu3 %v10489_v10  ;;  %v3543_v10 = vpop.f32.mrf.mxu1  ;;  %v9865_v57 = vor.u32 %v11286_v62, %v9864_v40  ;;  %v9626_v62 = vld [vmem:[#allocation11 + $0x518] sm:$0xf0] }
 0x306   : > { %v10106_v10 = vld [vmem:[#allocation11 + $0x8d8] sm:$0xf0] }
 0x307   : > { %6138 = vmatpush.bf16.msrb.mxu2 %v10057_v46  ;;  %6114 = vmatpush.bf16.msrb.mxu0 %v9193_v32  ;;  %v11382_v46 = vld [vmem:[#allocation11 + $0x9f4] sm:$0xf0]  ;;  %v3567_v49 = vpop.f32.mrf.mxu3  ;;  %v10109_v40 = vor.u32 %v11340_v29, %v10106_v10 }
 0x308   : > { %6127 = vmatpush.bf16.msrb.mxu1 %v9577_v61  ;;  %v10249_v58 = vor.u32 %v11382_v46, %v10248_v42  ;;  %v10493_v42 = vor.u32 %v11436_v11, %v10490_v30  ;;  %v11184_v11 = vld [vmem:[#allocation11 + $0x3cc] sm:$0xf]  ;;  %v9482_v30 = vld [vmem:[#allocation11 + $0x3f8] sm:$0xf0] }
 0x309   : > { %6151 = vmatpush.bf16.msrb.mxu3 %v10441_v47  ;;  %v3554_v47 = vpop.f32.mrf.mxu2 }
 0x30a   : > { %v3555_v32 = vadd.f32 %v3554_v47, %v3542_v6  ;;  %v9722_v6 = vld [vmem:[#allocation11 + $0x5d8] sm:$0xf0]  ;;  %v11328_v47 = vld [vmem:[#allocation11 + $0x84c] sm:$0xf] }
 0x30b   : > { %6139 = vmatpush.bf16.msrb.mxu2 %v10009_v0  ;;  %6115 = vmatpush.bf16.msrb.mxu0 %v9145_v7  ;;  %v9001_v0 = vor.u32 %v11070_v52, %v9000_v50  ;;  %v11244_v7 = vld [vmem:[#allocation11 + $0x5ac] sm:$0xf]  ;;  %v10442_v52 = vld [vmem:[#allocation11 + $0xb78] sm:$0xf0] }
 0x30c   : > { %6128 = vmatpush.bf16.msrb.mxu1 %v9529_v16  ;;  %v13235_v61 = vadd.f32 %v3567_v49, %v3555_v32  ;;  %v9768_v16 = vld [vmem:[#allocation11 + $0x608] sm:$0xf]  ;;  %v9725_v20 = vor.u32 %v11244_v7, %v9722_v6  ;;  %v10058_v49 = vld [vmem:[#allocation11 + $0x878] sm:$0xf0]  ;;  %v11424_v50 = vld [vmem:[#allocation11 + $0xb4c] sm:$0xf] }
 0x30d   : > { %6152 = vmatpush.bf16.msrb.mxu3 %v10393_v1  ;;  %v11274_v1 = vld [vmem:[#allocation11 + $0x694] sm:$0xf0]  ;;  %v11112_v32 = vld [vmem:[#allocation11 + $0x18c] sm:$0xf]  ;;  %v10061_v55 = vor.u32 %v11328_v47, %v10058_v49  ;;  %v10445_v59 = vor.u32 %v11424_v50, %v10442_v52  ;;  %v9146_v7 = vld [vmem:[#allocation11 + $0x158] sm:$0xf0]  ;;  %v9485_v47 = vor.u32 %v11184_v11, %v9482_v30 }
 0x30e   : > { %v9817_v13 = vor.u32 %v11274_v1, %v9816_v60  ;;  %v10010_v1 = vld [vmem:[#allocation11 + $0x818] sm:$0xf0]  ;;  %v11172_v50 = vld [vmem:[#allocation11 + $0x36c] sm:$0xf] }
 0x30f   : > { %6140 = vmatpush.bf16.msrb.mxu2 %v9961_v18  ;;  %6116 = vmatpush.bf16.msrb.mxu0 %v9097_v24  ;;  %v11262_v18 = vld [vmem:[#allocation11 + $0x634] sm:$0xf0]  ;;  %v9674_v24 = vld [vmem:[#allocation11 + $0x578] sm:$0xf0]  ;;  %v3569_v26 = vpop.f32.mrf.mxu3 }
 0x310   : > { %6129 = vmatpush.bf16.msrb.mxu1 %v9481_v31  ;;  %v11124_v31 = vld [vmem:[#allocation11 + $0x1ec] sm:$0xf]  ;;  %v9677_v39 = vor.u32 %v11232_v23, %v9674_v24  ;;  %v9434_v52 = vld [vmem:[#allocation11 + $0x398] sm:$0xf0] }
 0x311   : > { %6153 = vmatpush.bf16.msrb.mxu3 %v10345_v19  ;;  %v10152_v19 = vld [vmem:[#allocation11 + $0x908] sm:$0xf]  ;;  %v3556_v25 = vpop.f32.mrf.mxu2  ;;  %v11400_v23 = vld [vmem:[#allocation11 + $0xa8c] sm:$0xf]  ;;  %v9770_v30 = vld [vmem:[#allocation11 + $0x638] sm:$0xf0] }
 0x312   : > { %v10153_v37 = vor.u32 %v11358_v21, %v10152_v19  ;;  %v9962_v21 = vld [vmem:[#allocation11 + $0x7b8] sm:$0xf0]  ;;  %v11088_v26 = vld [vmem:[#allocation11 + $0xcc] sm:$0xf] }
 0x313   : > { %6141 = vmatpush.bf16.msrb.mxu2 %v9913_v34  ;;  %6117 = vmatpush.bf16.msrb.mxu0 %v9049_v41  ;;  %v9242_v34 = vld [vmem:[#allocation11 + $0x218] sm:$0xf0]  ;;  %v11220_v41 = vld [vmem:[#allocation11 + $0x4ec] sm:$0xf] }
 0x314   : > { %6130 = vmatpush.bf16.msrb.mxu1 %v9433_v53  ;;  %v9245_v46 = vor.u32 %v11124_v31, %v9242_v34  ;;  %v9194_v53 = vld [vmem:[#allocation11 + $0x1b8] sm:$0xf0]  ;;  %v9629_v54 = vor.u32 %v11220_v41, %v9626_v62  ;;  %v11076_v41 = vld [vmem:[#allocation11 + $0x6c] sm:$0xf] }
 0x315   : > { %6154 = vmatpush.bf16.msrb.mxu3 %v10297_v35  ;;  %v9769_v35 = vor.u32 %v11262_v18, %v9768_v16  ;;  %v9197_v60 = vor.u32 %v11112_v32, %v9194_v53  ;;  %v9530_v16 = vld [vmem:[#allocation11 + $0x458] sm:$0xf0]  ;;  %v10397_v18 = vor.u32 %v11412_v2, %v10394_v4  ;;  %v11155_v2 = vld [vmem:[#allocation11 + $0x2dc] sm:$0xf0] }
 0x316   : > { %v10346_v25 = vld [vmem:[#allocation11 + $0xab8] sm:$0xf0] }
 0x317   : > { %6142 = vmatpush.bf16.msrb.mxu2 %v9865_v57  ;;  %6118 = vmatpush.bf16.msrb.mxu0 %v9001_v0  ;;  %v1117_v57 = vperm.slane %v13222_v22, 2  ;;  %v11316_v0 = vld [vmem:[#allocation11 + $0x7ec] sm:$0xf]  ;;  %v3580_v6 = vpop.f32.mrf.mxu0  ;;  %v10349_v31 = vor.u32 %v11400_v23, %v10346_v25  ;;  %v9050_v62 = vld [vmem:[#allocation11 + $0x98] sm:$0xf0] }
 0x318   : > { %6131 = vmatpush.bf16.msrb.mxu1 %v9385_v8  ;;  %v9053_v53 = vor.u32 %v11076_v41, %v9050_v62  ;;  %v11251_v23 = vld [vmem:[#allocation11 + $0x5dc] sm:$0xf0]  ;;  %v9296_v25 = vld [vmem:[#allocation11 + $0x250] sm:$0xf] }
 0x319   : > { %6155 = vmatpush.bf16.msrb.mxu3 %v10249_v58  ;;  %v11208_v58 = vld [vmem:[#allocation11 + $0x48c] sm:$0xf]  ;;  %v3581_v9 = vadd.f32 %v3580_v6, %v1117_v57 }
 0x31a   : > { %6119 = vmatmul.bf16.vlgmr.msrb.gmra.mxu0 %v12349_v43  ;;  %v3593_v8 = vpop.f32.mrf.mxu1  ;;  %v9581_v12 = vor.u32 %v11208_v58, %v9578_v33  ;;  %v11376_v57 = vld [vmem:[#allocation11 + $0x9cc] sm:$0xf]  ;;  %v10250_v58 = vld [vmem:[#allocation11 + $0x9f8] sm:$0xf0] }
 0x31b   : > { %6163 = vmatpush.bf16.msra.mxu0 %v9341_v5  ;;  %6143 = vmatpush.bf16.msrb.mxu2 %v9817_v13  ;;  %v11100_v5 = vld [vmem:[#allocation11 + $0x12c] sm:$0xf]  ;;  %v10013_v13 = vor.u32 %v11316_v0, %v10010_v1  ;;  %v3594_v24 = vadd.f32 %v3593_v8, %v3581_v9  ;;  %v9344_v1 = vld [vmem:[#allocation11 + $0x2b0] sm:$0xf]  ;;  %v9386_v8 = vld [vmem:[#allocation11 + $0x338] sm:$0xf0]  ;;  %v10253_v9 = vor.u32 %v11376_v57, %v10250_v58 }
 0x31c   : > { %6176 = vmatpush.bf16.msra.mxu1 %v9725_v20  ;;  %v9149_v19 = vor.u32 %v11100_v5, %v9146_v7  ;;  %v11304_v20 = vld [vmem:[#allocation11 + $0x78c] sm:$0xf]  ;;  %v9437_v5 = vor.u32 %v11172_v50, %v9434_v52  ;;  %v9248_v50 = vld [vmem:[#allocation11 + $0x1f0] sm:$0xf]  ;;  %v11131_v52 = vld [vmem:[#allocation11 + $0x21c] sm:$0xf0] }
 0x31d   : > { %6156 = vmatpush.bf16.msrb.mxu3 %v10201_v14  ;;  %6132 = vmatmul.bf16.vlgmr.msrb.gmra.mxu1 %v12351_v44  ;;  %v11196_v14 = vld [vmem:[#allocation11 + $0x42c] sm:$0xf]  ;;  %v9965_v10 = vor.u32 %v11304_v20, %v9962_v21  ;;  %v10202_v20 = vld [vmem:[#allocation11 + $0x998] sm:$0xf0]  ;;  %v9728_v21 = vld [vmem:[#allocation11 + $0x5b0] sm:$0xf] }
 0x31e   : > { %v9533_v29 = vor.u32 %v11196_v14, %v9530_v16  ;;  %v11064_v33 = vld [vmem:[#allocation11 + $0xc] sm:$0xf]  ;;  %v9818_v14 = vld [vmem:[#allocation11 + $0x698] sm:$0xf0]  ;;  %v9729_v11 = vor.u32 %v11251_v23, %v9728_v21  ;;  %v9632_v57 = vld [vmem:[#allocation11 + $0x4f0] sm:$0xf] }
 0x31f   : > { %6164 = vmatpush.bf16.msra.mxu0 %v9293_v27  ;;  %6144 = vmatpush.bf16.msrb.mxu2 %v9769_v35  ;;  %v9098_v27 = vld [vmem:[#allocation11 + $0xf8] sm:$0xf0]  ;;  %v11292_v35 = vld [vmem:[#allocation11 + $0x72c] sm:$0xf]  ;;  %v11227_v58 = vld [vmem:[#allocation11 + $0x51c] sm:$0xf0] }
 0x320   : > { %6177 = vmatpush.bf16.msra.mxu1 %v9677_v39  ;;  %v9101_v34 = vor.u32 %v11088_v26, %v9098_v27  ;;  %v11388_v39 = vld [vmem:[#allocation11 + $0xa2c] sm:$0xf]  ;;  %v11143_v26 = vld [vmem:[#allocation11 + $0x27c] sm:$0xf0]  ;;  %v9152_v21 = vld [vmem:[#allocation11 + $0x130] sm:$0xf] }
 0x321   : > { %6157 = vmatpush.bf16.msrb.mxu3 %v10153_v37  ;;  %v9914_v37 = vld [vmem:[#allocation11 + $0x758] sm:$0xf0]  ;;  %v11160_v6 = vld [vmem:[#allocation11 + $0x30c] sm:$0xf]  ;;  %v11107_v23 = vld [vmem:[#allocation11 + $0x15c] sm:$0xf0] }
 0x322   : > { %6145 = vmatmul.bf16.vlgmr.msrb.gmra.mxu2 %v12353_v45  ;;  %v9917_v49 = vor.u32 %v11292_v35, %v9914_v37  ;;  %v11364_v16 = vld [vmem:[#allocation11 + $0x96c] sm:$0xf]  ;;  %v9297_v35 = vor.u32 %v11143_v26, %v9296_v25  ;;  %v9680_v37 = vld [vmem:[#allocation11 + $0x550] sm:$0xf] }
 0x323   : > { %6189 = vmatpush.bf16.msra.mxu2 %v10109_v40  ;;  %6165 = vmatpush.bf16.msra.mxu0 %v9245_v46  ;;  %v10298_v40 = vld [vmem:[#allocation11 + $0xa58] sm:$0xf0]  ;;  %v3595_v46 = vpop.f32.mrf.mxu1 }
 0x324   : > { %6158 = vmatmul.bf16.vlgmr.msrb.gmra.mxu3 %v12356_v48  ;;  %6178 = vmatpush.bf16.msra.mxu1 %v9629_v54  ;;  %v10301_v32 = vor.u32 %v11388_v39, %v10298_v40  ;;  %v11280_v54 = vld [vmem:[#allocation11 + $0x6cc] sm:$0xf]  ;;  %v11239_v39 = vld [vmem:[#allocation11 + $0x57c] sm:$0xf0]  ;;  %v10112_v40 = vld [vmem:[#allocation11 + $0x8b0] sm:$0xf] }
 0x325   : > { %6202 = vmatpush.bf16.msra.mxu3 %v10493_v42  ;;  %v3582_v42 = vpop.f32.mrf.mxu0  ;;  %v10496_v46 = vld [vmem:[#allocation11 + $0xbb0] sm:$0xf] }
 0x326   : > { %v11347_v42 = vld [vmem:[#allocation11 + $0x8dc] sm:$0xf0] }
 0x327   : > { %6190 = vmatpush.bf16.msra.mxu2 %v10061_v55  ;;  %6166 = vmatpush.bf16.msra.mxu0 %v9197_v60  ;;  %v9866_v55 = vld [vmem:[#allocation11 + $0x6f8] sm:$0xf0]  ;;  %v3606_v60 = vpop.f32.mrf.mxu2  ;;  %v3619_v0 = vpop.f32.mrf.mxu3 }
 0x328   : > { %6179 = vmatpush.bf16.msra.mxu1 %v9581_v12  ;;  %v3607_v4 = vadd.f32 %v3606_v60, %v3594_v24  ;;  %v9869_v7 = vor.u32 %v11280_v54, %v9866_v55  ;;  %v9389_v24 = vor.u32 %v11160_v6, %v9386_v8  ;;  %v10113_v54 = vor.u32 %v11347_v42, %v10112_v40  ;;  %v11335_v60 = vld [vmem:[#allocation11 + $0x87c] sm:$0xf0]  ;;  %v9104_v40 = vld [vmem:[#allocation11 + $0xd0] sm:$0xf] }
 0x329   : > { %6203 = vmatpush.bf16.msra.mxu3 %v10445_v59  ;;  %v9002_v59 = vld [vmem:[#allocation11 + $0x38] sm:$0xf0] }
 0x32a   : > { %v9005_v12 = vor.u32 %v11064_v33, %v9002_v59  ;;  %v10064_v33 = vld [vmem:[#allocation11 + $0x850] sm:$0xf]  ;;  %v9249_v59 = vor.u32 %v11131_v52, %v9248_v50 }
 0x32b   : > { %6191 = vmatpush.bf16.msra.mxu2 %v10013_v13  ;;  %6167 = vmatpush.bf16.msra.mxu0 %v9149_v19  ;;  %v11268_v13 = vld [vmem:[#allocation11 + $0x66c] sm:$0xf]  ;;  %v9345_v19 = vor.u32 %v11155_v2, %v9344_v1  ;;  %v11431_v1 = vld [vmem:[#allocation11 + $0xb7c] sm:$0xf0]  ;;  %v9200_v2 = vld [vmem:[#allocation11 + $0x190] sm:$0xf]  ;;  %v10065_v6 = vor.u32 %v11335_v60, %v10064_v33 }
 0x32c   : > { %6180 = vmatpush.bf16.msra.mxu1 %v9533_v29  ;;  %v9821_v27 = vor.u32 %v11268_v13, %v9818_v14  ;;  %v11256_v29 = vld [vmem:[#allocation11 + $0x60c] sm:$0xf]  ;;  %v10016_v13 = vld [vmem:[#allocation11 + $0x7f0] sm:$0xf] }
 0x32d   : > { %6204 = vmatpush.bf16.msra.mxu3 %v10397_v18  ;;  %v13242_v18 = vadd.f32 %v3619_v0, %v3607_v4  ;;  %v10448_v0 = vld [vmem:[#allocation11 + $0xb50] sm:$0xf]  ;;  %v11119_v4 = vld [vmem:[#allocation11 + $0x1bc] sm:$0xf0] }
 0x32e   : > { %v10449_v8 = vor.u32 %v11431_v1, %v10448_v0  ;;  %v9201_v14 = vor.u32 %v11119_v4, %v9200_v2  ;;  %v9920_v50 = vld [vmem:[#allocation11 + $0x730] sm:$0xf]  ;;  %v11179_v2 = vld [vmem:[#allocation11 + $0x39c] sm:$0xf0] }
 0x32f   : > { %6192 = vmatpush.bf16.msra.mxu2 %v9965_v10  ;;  %6168 = vmatpush.bf16.msra.mxu0 %v9101_v34  ;;  %v10205_v10 = vor.u32 %v11364_v16, %v10202_v20  ;;  %v10154_v34 = vld [vmem:[#allocation11 + $0x938] sm:$0xf0]  ;;  %v3608_v41 = vpop.f32.mrf.mxu2  ;;  %v3621_v62 = vpop.f32.mrf.mxu3  ;;  %v11323_v16 = vld [vmem:[#allocation11 + $0x81c] sm:$0xf0]  ;;  %v9440_v1 = vld [vmem:[#allocation11 + $0x370] sm:$0xf] }
 0x330   : > { %6181 = vmatpush.bf16.msra.mxu1 %v9485_v47  ;;  %v11443_v47 = vld [vmem:[#allocation11 + $0xbdc] sm:$0xf0]  ;;  %v9872_v4 = vld [vmem:[#allocation11 + $0x6d0] sm:$0xf] }
 0x331   : > { %6205 = vmatpush.bf16.msra.mxu3 %v10349_v31  ;;  %v11352_v31 = vld [vmem:[#allocation11 + $0x90c] sm:$0xf]  ;;  %v10497_v55 = vor.u32 %v11443_v47, %v10496_v46  ;;  %v11419_v20 = vld [vmem:[#allocation11 + $0xb1c] sm:$0xf0]  ;;  %v9488_v47 = vld [vmem:[#allocation11 + $0x3d0] sm:$0xf] }
 0x332   : > { %v11095_v41 = vld [vmem:[#allocation11 + $0xfc] sm:$0xf0] }
 0x333   : > { %6193 = vmatpush.bf16.msra.mxu2 %v9917_v49  ;;  %6169 = vmatpush.bf16.msra.mxu0 %v9053_v53  ;;  %v9773_v49 = vor.u32 %v11256_v29, %v9770_v30  ;;  %v9681_v53 = vor.u32 %v11239_v39, %v9680_v37  ;;  %v9968_v30 = vld [vmem:[#allocation11 + $0x790] sm:$0xf]  ;;  %v11407_v37 = vld [vmem:[#allocation11 + $0xabc] sm:$0xf0]  ;;  %v9105_v52 = vor.u32 %v11095_v41, %v9104_v40  ;;  %v9298_v40 = vld [vmem:[#allocation11 + $0x280] sm:$0xf0] }
 0x334   : > { %6182 = vmatpush.bf16.msra.mxu1 %v9437_v5  ;;  %v9633_v5 = vor.u32 %v11227_v58, %v9632_v57  ;;  %v11083_v57 = vld [vmem:[#allocation11 + $0x9c] sm:$0xf0] }
 0x335   : > { %6206 = vmatpush.bf16.msra.mxu3 %v10301_v32  ;;  %v10157_v32 = vor.u32 %v11352_v31, %v10154_v34  ;;  %v9153_v31 = vor.u32 %v11107_v23, %v9152_v21  ;;  %v11311_v34 = vld [vmem:[#allocation11 + $0x7bc] sm:$0xf0]  ;;  %v9346_v21 = vld [vmem:[#allocation11 + $0x2e0] sm:$0xf0] }
 0x336   : > { %v9969_v42 = vor.u32 %v11311_v34, %v9968_v30  ;;  %v11371_v30 = vld [vmem:[#allocation11 + $0x99c] sm:$0xf0]  ;;  %v11245_v34 = vld [vmem:[#allocation11 + $0x5b4] sm:$0xf] }
 0x337   : > { %6194 = vmatpush.bf16.msra.mxu2 %v9869_v7  ;;  %6170 = vmatpush.bf16.msra.mxu0 %v9005_v12  ;;  %v1118_v7 = vperm.slane %v13222_v22, 3  ;;  %v11215_v12 = vld [vmem:[#allocation11 + $0x4bc] sm:$0xf0]  ;;  %v3632_v22 = vpop.f32.mrf.mxu0 }
 0x338   : > { %6183 = vmatpush.bf16.msra.mxu1 %v9389_v24 }
 0x339   : > { %6207 = vmatpush.bf16.msra.mxu3 %v10253_v9  ;;  %v9584_v9 = vld [vmem:[#allocation11 + $0x490] sm:$0xf]  ;;  %v3633_v24 = vadd.f32 %v3632_v22, %v1118_v7  ;;  %v11287_v7 = vld [vmem:[#allocation11 + $0x6fc] sm:$0xf0] }
 0x33a   : > { %6171 = vmatmul.bf16.vlgmr.msra.gmra.mxu0 %v12349_v43  ;;  %v3645_v25 = vpop.f32.mrf.mxu1  ;;  %v9585_v26 = vor.u32 %v11215_v12, %v9584_v9  ;;  %v9008_v12 = vld [vmem:[#allocation11 + $0x10] sm:$0xf]  ;;  %v9873_v23 = vor.u32 %v11287_v7, %v9872_v4  ;;  %v11221_v7 = vld [vmem:[#allocation11 + $0x4f4] sm:$0xf] }
 0x33b   : > { %6215 = vmatpush.bf16.msrb.mxu0 %v9345_v19  ;;  %6195 = vmatpush.bf16.msra.mxu2 %v9821_v27  ;;  %v10400_v19 = vld [vmem:[#allocation11 + $0xaf0] sm:$0xf]  ;;  %v10017_v27 = vor.u32 %v11323_v16, %v10016_v13  ;;  %v3646_v39 = vadd.f32 %v3645_v25, %v3633_v24  ;;  %v11071_v13 = vld [vmem:[#allocation11 + $0x3c] sm:$0xf0] }
 0x33c   : > { %6228 = vmatpush.bf16.msrb.mxu1 %v9729_v11  ;;  %v10401_v29 = vor.u32 %v11419_v20, %v10400_v19  ;;  %v11203_v11 = vld [vmem:[#allocation11 + $0x45c] sm:$0xf0]  ;;  %v9441_v19 = vor.u32 %v11179_v2, %v9440_v1  ;;  %v11149_v20 = vld [vmem:[#allocation11 + $0x2b4] sm:$0xf]  ;;  %v9392_v25 = vld [vmem:[#allocation11 + $0x310] sm:$0xf] }
 0x33d   : > { %6208 = vmatpush.bf16.msra.mxu3 %v10205_v10  ;;  %6184 = vmatmul.bf16.vlgmr.msra.gmra.mxu1 %v12351_v44  ;;  %v9536_v10 = vld [vmem:[#allocation11 + $0x430] sm:$0xf] }
 0x33e   : > { %v9537_v62 = vor.u32 %v11203_v11, %v9536_v10  ;;  %v9824_v24 = vld [vmem:[#allocation11 + $0x670] sm:$0xf]  ;;  %v11275_v10 = vld [vmem:[#allocation11 + $0x69c] sm:$0xf0] }
 0x33f   : > { %6216 = vmatpush.bf16.msrb.mxu0 %v9297_v35  ;;  %6196 = vmatpush.bf16.msra.mxu2 %v9773_v49  ;;  %v10352_v35 = vld [vmem:[#allocation11 + $0xa90] sm:$0xf]  ;;  %v11191_v49 = vld [vmem:[#allocation11 + $0x3fc] sm:$0xf0]  ;;  %v3634_v58 = vpop.f32.mrf.mxu0  ;;  %v9825_v41 = vor.u32 %v11275_v10, %v9824_v24 }
 0x340   : > { %6229 = vmatpush.bf16.msrb.mxu1 %v9681_v53  ;;  %v10353_v46 = vor.u32 %v11407_v37, %v10352_v35  ;;  %v10304_v53 = vld [vmem:[#allocation11 + $0xa30] sm:$0xf]  ;;  %v9730_v35 = vld [vmem:[#allocation11 + $0x5e0] sm:$0xf0]  ;;  %v11437_v58 = vld [vmem:[#allocation11 + $0xbb4] sm:$0xf] }
 0x341   : > { %6209 = vmatpush.bf16.msra.mxu3 %v10157_v32  ;;  %v11299_v32 = vld [vmem:[#allocation11 + $0x75c] sm:$0xf0]  ;;  %v10208_v11 = vld [vmem:[#allocation11 + $0x970] sm:$0xf] }
 0x342   : > { %6197 = vmatmul.bf16.vlgmr.msra.gmra.mxu2 %v12353_v45  ;;  %v3647_v33 = vpop.f32.mrf.mxu1  ;;  %v9921_v60 = vor.u32 %v11299_v32, %v9920_v50  ;;  %v11359_v50 = vld [vmem:[#allocation11 + $0x93c] sm:$0xf0]  ;;  %v9682_v32 = vld [vmem:[#allocation11 + $0x580] sm:$0xf0] }
 0x343   : > { %6241 = vmatpush.bf16.msrb.mxu2 %v10113_v54  ;;  %6217 = vmatpush.bf16.msrb.mxu0 %v9249_v59  ;;  %v11395_v54 = vld [vmem:[#allocation11 + $0xa5c] sm:$0xf0]  ;;  %v9489_v59 = vor.u32 %v11191_v49, %v9488_v47  ;;  %v10160_v47 = vld [vmem:[#allocation11 + $0x910] sm:$0xf]  ;;  %v9733_v49 = vor.u32 %v11245_v34, %v9730_v35  ;;  %v10402_v34 = vld [vmem:[#allocation11 + $0xb20] sm:$0xf0] }
 0x344   : > { %6210 = vmatmul.bf16.vlgmr.msra.gmra.mxu3 %v12356_v48  ;;  %6230 = vmatpush.bf16.msrb.mxu1 %v9633_v5  ;;  %v10305_v0 = vor.u32 %v11395_v54, %v10304_v53  ;;  %v10161_v2 = vor.u32 %v11359_v50, %v10160_v47  ;;  %v11101_v35 = vld [vmem:[#allocation11 + $0x134] sm:$0xf] }
 0x345   : > { %6254 = vmatpush.bf16.msrb.mxu3 %v10497_v55  ;;  %v9056_v55 = vld [vmem:[#allocation11 + $0x70] sm:$0xf]  ;;  %v3658_v9 = vpop.f32.mrf.mxu2 }
 0x346   : > { %v9057_v5 = vor.u32 %v11083_v57, %v9056_v55  ;;  %v11341_v55 = vld [vmem:[#allocation11 + $0x8b4] sm:$0xf]  ;;  %v10114_v57 = vld [vmem:[#allocation11 + $0x8e0] sm:$0xf0] }
 0x347   : > { %6242 = vmatpush.bf16.msrb.mxu2 %v10065_v6  ;;  %6218 = vmatpush.bf16.msrb.mxu0 %v9201_v14  ;;  %v10256_v6 = vld [vmem:[#allocation11 + $0x9d0] sm:$0xf]  ;;  %v3659_v14 = vadd.f32 %v3658_v9, %v3646_v39  ;;  %v3671_v16 = vpop.f32.mrf.mxu3  ;;  %v11137_v39 = vld [vmem:[#allocation11 + $0x254] sm:$0xf] }
 0x348   : > { %6231 = vmatpush.bf16.msrb.mxu1 %v9585_v26  ;;  %v11167_v26 = vld [vmem:[#allocation11 + $0x33c] sm:$0xf0]  ;;  %v9301_v54 = vor.u32 %v11137_v39, %v9298_v40 }
 0x349   : > { %6255 = vmatpush.bf16.msrb.mxu3 %v10449_v8  ;;  %v11383_v8 = vld [vmem:[#allocation11 + $0x9fc] sm:$0xf0]  ;;  %v9393_v37 = vor.u32 %v11167_v26, %v9392_v25  ;;  %v11209_v25 = vld [vmem:[#allocation11 + $0x494] sm:$0xf]  ;;  %v9586_v26 = vld [vmem:[#allocation11 + $0x4c0] sm:$0xf0] }
 0x34a   : > { %v10257_v22 = vor.u32 %v11383_v8, %v10256_v6  ;;  %v9634_v6 = vld [vmem:[#allocation11 + $0x520] sm:$0xf0]  ;;  %v11329_v8 = vld [vmem:[#allocation11 + $0x854] sm:$0xf]  ;;  %v9589_v40 = vor.u32 %v11209_v25, %v9586_v26 }
 0x34b   : > { %6243 = vmatpush.bf16.msrb.mxu2 %v10017_v27  ;;  %6219 = vmatpush.bf16.msrb.mxu0 %v9153_v31  ;;  %v13249_v27 = vadd.f32 %v3671_v16, %v3659_v14  ;;  %v9349_v31 = vor.u32 %v11149_v20, %v9346_v21  ;;  %v11425_v14 = vld [vmem:[#allocation11 + $0xb54] sm:$0xf]  ;;  %v13253_v16 = vld [vmem:[#allocation14] sm:$0xff]  ;;  %v9202_v21 = vld [vmem:[#allocation11 + $0x1c0] sm:$0xf0] }
 0x34c   : > { %6232 = vmatpush.bf16.msrb.mxu1 %v9537_v62  ;;  %v10209_v62 = vor.u32 %v11371_v30, %v10208_v11  ;;  %v11113_v20 = vld [vmem:[#allocation11 + $0x194] sm:$0xf]  ;;  %v4063_v24 = vperm.slane %v13253_v16, 0  ;;  %v10018_v30 = vld [vmem:[#allocation11 + $0x820] sm:$0xf0] }
 0x34d   : > { %6256 = vmatpush.bf16.msrb.mxu3 %v10401_v29  ;;  %v9009_v29 = vor.u32 %v11071_v13, %v9008_v12  ;;  %v3660_v53 = vpop.f32.mrf.mxu2  ;;  %v10066_v13 = vld [vmem:[#allocation11 + $0x880] sm:$0xf0]  ;;  %v9205_v10 = vor.u32 %v11113_v20, %v9202_v21  ;;  %v11317_v11 = vld [vmem:[#allocation11 + $0x7f4] sm:$0xf] }
 0x34e   : > { %v11401_v53 = vld [vmem:[#allocation11 + $0xa94] sm:$0xf]  ;;  %v9442_v20 = vld [vmem:[#allocation11 + $0x3a0] sm:$0xf0] }
 0x34f   : > { %6244 = vmatpush.bf16.msrb.mxu2 %v9969_v42  ;;  %6220 = vmatpush.bf16.msrb.mxu0 %v9105_v52  ;;  %v9776_v42 = vld [vmem:[#allocation11 + $0x610] sm:$0xf]  ;;  %v11233_v52 = vld [vmem:[#allocation11 + $0x554] sm:$0xf]  ;;  %v3673_v33 = vpop.f32.mrf.mxu3  ;;  %v9874_v26 = vld [vmem:[#allocation11 + $0x700] sm:$0xf0] }
 0x350   : > { %6233 = vmatpush.bf16.msrb.mxu1 %v9489_v59  ;;  %v10498_v59 = vld [vmem:[#allocation11 + $0xbe0] sm:$0xf0]  ;;  %v9685_v4 = vor.u32 %v11233_v52, %v9682_v32  ;;  %v11305_v52 = vld [vmem:[#allocation11 + $0x794] sm:$0xf] }
 0x351   : > { %6257 = vmatpush.bf16.msrb.mxu3 %v10353_v46  ;;  %v11263_v46 = vld [vmem:[#allocation11 + $0x63c] sm:$0xf0]  ;;  %v10501_v9 = vor.u32 %v11437_v58, %v10498_v59  ;;  %v9970_v32 = vld [vmem:[#allocation11 + $0x7c0] sm:$0xf0]  ;;  %v11281_v25 = vld [vmem:[#allocation11 + $0x6d4] sm:$0xf] }
 0x352   : > { %v9777_v1 = vor.u32 %v11263_v46, %v9776_v42  ;;  %v9538_v42 = vld [vmem:[#allocation11 + $0x460] sm:$0xf0]  ;;  %v9973_v59 = vor.u32 %v11305_v52, %v9970_v32 }
 0x353   : > { %6245 = vmatpush.bf16.msrb.mxu2 %v9921_v60  ;;  %6221 = vmatpush.bf16.msrb.mxu0 %v9057_v5  ;;  %v11125_v60 = vld [vmem:[#allocation11 + $0x1f4] sm:$0xf]  ;;  %v10117_v5 = vor.u32 %v11341_v55, %v10114_v57  ;;  %v9106_v57 = vld [vmem:[#allocation11 + $0x100] sm:$0xf0] }
 0x354   : > { %6234 = vmatpush.bf16.msrb.mxu1 %v9441_v19  ;;  %v10450_v19 = vld [vmem:[#allocation11 + $0xb80] sm:$0xf0]  ;;  %v11089_v55 = vld [vmem:[#allocation11 + $0xd4] sm:$0xf] }
 0x355   : > { %6258 = vmatpush.bf16.msrb.mxu3 %v10305_v0  ;;  %v9250_v0 = vld [vmem:[#allocation11 + $0x220] sm:$0xf0] }
 0x356   : > { %v9253_v12 = vor.u32 %v11125_v60, %v9250_v0  ;;  %v11185_v60 = vld [vmem:[#allocation11 + $0x3d4] sm:$0xf]  ;;  %v9490_v0 = vld [vmem:[#allocation11 + $0x400] sm:$0xf0] }
 0x357   : > { %6246 = vmatpush.bf16.msrb.mxu2 %v9873_v23  ;;  %6222 = vmatpush.bf16.msrb.mxu0 %v9009_v29  ;;  %v9637_v23 = vor.u32 %v11221_v7, %v9634_v6  ;;  %v10453_v29 = vor.u32 %v11425_v14, %v10450_v19  ;;  %v6016_v39 = vpop.f32.mrf.mxu0  ;;  %v11389_v7 = vld [vmem:[#allocation11 + $0xa34] sm:$0xf]  ;;  %v10306_v6 = vld [vmem:[#allocation11 + $0xa60] sm:$0xf0] }
 0x358   : > { %6235 = vmatpush.bf16.msrb.mxu1 %v9393_v37  ;;  %v9154_v37 = vld [vmem:[#allocation11 + $0x160] sm:$0xf0]  ;;  %v6017_v46 = vadd.f32 %v6016_v39, %v4063_v24  ;;  %v11173_v19 = vld [vmem:[#allocation11 + $0x374] sm:$0xf] }
 0x359   : > { %6259 = vmatpush.bf16.msrb.mxu3 %v10257_v22  ;;  %v10069_v22 = vor.u32 %v11329_v8, %v10066_v13  ;;  %v9157_v50 = vor.u32 %v11101_v35, %v9154_v37  ;;  %v11077_v8 = vld [vmem:[#allocation11 + $0x74] sm:$0xf]  ;;  %v9493_v13 = vor.u32 %v11185_v60, %v9490_v0  ;;  %v9445_v39 = vor.u32 %v11173_v19, %v9442_v20 }
 0x35a   : > { %6223 = vmatmul.bf16.vlgmr.msrb.gmra.mxu0 %v12349_v43  ;;  %v6029_v47 = vpop.f32.mrf.mxu1  ;;  %v11377_v24 = vld [vmem:[#allocation11 + $0x9d4] sm:$0xf] }
 0x35b   : > { %6267 = vmatpush.bf16.msra.mxu0 %v9349_v31  ;;  %6247 = vmatpush.bf16.msrb.mxu2 %v9825_v41  ;;  %v11413_v31 = vld [vmem:[#allocation11 + $0xaf4] sm:$0xf]  ;;  %v10021_v41 = vor.u32 %v11317_v11, %v10018_v30  ;;  %v6030_v58 = vadd.f32 %v6029_v47, %v6017_v46  ;;  %v9010_v11 = vld [vmem:[#allocation11 + $0x40] sm:$0xf0] }
 0x35c   : > { %6280 = vmatpush.bf16.msra.mxu1 %v9733_v49  ;;  %v10405_v49 = vor.u32 %v11413_v31, %v10402_v34  ;;  %v9352_v31 = vld [vmem:[#allocation11 + $0x2b8] sm:$0xf]  ;;  %v11156_v34 = vld [vmem:[#allocation11 + $0x2e4] sm:$0xf0]  ;;  %v11269_v47 = vld [vmem:[#allocation11 + $0x674] sm:$0xf] }
 0x35d   : > { %6260 = vmatpush.bf16.msrb.mxu3 %v10209_v62  ;;  %6236 = vmatmul.bf16.vlgmr.msrb.gmra.mxu1 %v12351_v44  ;;  %v11197_v62 = vld [vmem:[#allocation11 + $0x434] sm:$0xf]  ;;  %v9353_v32 = vor.u32 %v11156_v34, %v9352_v31  ;;  %v11336_v34 = vld [vmem:[#allocation11 + $0x884] sm:$0xf0] }
 0x35e   : > { %v9541_v33 = vor.u32 %v11197_v62, %v9538_v42  ;;  %v9394_v62 = vld [vmem:[#allocation11 + $0x340] sm:$0xf0]  ;;  %v11257_v0 = vld [vmem:[#allocation11 + $0x614] sm:$0xf] }
 0x35f   : > { %6268 = vmatpush.bf16.msra.mxu0 %v9301_v54  ;;  %6248 = vmatpush.bf16.msrb.mxu2 %v9777_v1  ;;  %v10354_v54 = vld [vmem:[#allocation11 + $0xac0] sm:$0xf0] }
 0x360   : > { %6281 = vmatpush.bf16.msra.mxu1 %v9685_v4  ;;  %v10357_v1 = vor.u32 %v11401_v53, %v10354_v54  ;;  %v11293_v4 = vld [vmem:[#allocation11 + $0x734] sm:$0xf]  ;;  %v10210_v53 = vld [vmem:[#allocation11 + $0x9a0] sm:$0xf0]  ;;  %v9736_v54 = vld [vmem:[#allocation11 + $0x5b8] sm:$0xf] }
 0x361   : > { %6261 = vmatpush.bf16.msrb.mxu3 %v10161_v2  ;;  %v9109_v2 = vor.u32 %v11089_v55, %v9106_v57  ;;  %v11252_v55 = vld [vmem:[#allocation11 + $0x5e4] sm:$0xf0]  ;;  %v9304_v57 = vld [vmem:[#allocation11 + $0x258] sm:$0xf] }
 0x362   : > { %6249 = vmatmul.bf16.vlgmr.msrb.gmra.mxu2 %v12353_v45  ;;  %v6031_v21 = vpop.f32.mrf.mxu1 }
 0x363   : > { %6293 = vmatpush.bf16.msra.mxu2 %v10117_v5  ;;  %6269 = vmatpush.bf16.msra.mxu0 %v9253_v12  ;;  %v9922_v5 = vld [vmem:[#allocation11 + $0x760] sm:$0xf0]  ;;  %v6018_v12 = vpop.f32.mrf.mxu0  ;;  %v9256_v21 = vld [vmem:[#allocation11 + $0x1f8] sm:$0xf] }
 0x364   : > { %6262 = vmatmul.bf16.vlgmr.msrb.gmra.mxu3 %v12356_v48  ;;  %6282 = vmatpush.bf16.msra.mxu1 %v9637_v23  ;;  %v9925_v14 = vor.u32 %v11293_v4, %v9922_v5  ;;  %v10309_v23 = vor.u32 %v11389_v7, %v10306_v6  ;;  %v9778_v4 = vld [vmem:[#allocation11 + $0x640] sm:$0xf0]  ;;  %v11353_v5 = vld [vmem:[#allocation11 + $0x914] sm:$0xf]  ;;  %v10120_v12 = vld [vmem:[#allocation11 + $0x8b8] sm:$0xf] }
 0x365   : > { %6306 = vmatpush.bf16.msra.mxu3 %v10501_v9  ;;  %v9058_v9 = vld [vmem:[#allocation11 + $0xa0] sm:$0xf0]  ;;  %v6042_v30 = vpop.f32.mrf.mxu2  ;;  %v9781_v20 = vor.u32 %v11257_v0, %v9778_v4  ;;  %v9976_v4 = vld [vmem:[#allocation11 + $0x798] sm:$0xf] }
 0x366   : > { %v6043_v35 = vadd.f32 %v6042_v30, %v6030_v58  ;;  %v10162_v7 = vld [vmem:[#allocation11 + $0x940] sm:$0xf0]  ;;  %v10072_v30 = vld [vmem:[#allocation11 + $0x858] sm:$0xf] }
 0x367   : > { %6294 = vmatpush.bf16.msra.mxu2 %v10069_v22  ;;  %6270 = vmatpush.bf16.msra.mxu0 %v9205_v10  ;;  %v9061_v22 = vor.u32 %v11077_v8, %v9058_v9  ;;  %v11065_v10 = vld [vmem:[#allocation11 + $0x14] sm:$0xf]  ;;  %v6055_v37 = vpop.f32.mrf.mxu3  ;;  %v9688_v8 = vld [vmem:[#allocation11 + $0x558] sm:$0xf]  ;;  %v11240_v9 = vld [vmem:[#allocation11 + $0x584] sm:$0xf0] }
 0x368   : > { %6283 = vmatpush.bf16.msra.mxu1 %v9589_v40  ;;  %v9877_v40 = vor.u32 %v11281_v25, %v9874_v26  ;;  %v9013_v46 = vor.u32 %v11065_v10, %v9010_v11  ;;  %v6056_v52 = vadd.f32 %v6055_v37, %v6043_v35  ;;  %v10165_v25 = vor.u32 %v11353_v5, %v10162_v7  ;;  %v9640_v10 = vld [vmem:[#allocation11 + $0x4f8] sm:$0xf]  ;;  %v11228_v11 = vld [vmem:[#allocation11 + $0x524] sm:$0xf0] }
 0x369   : > { %6307 = vmatpush.bf16.msra.mxu3 %v10453_v29  ;;  %v10258_v29 = vld [vmem:[#allocation11 + $0xa00] sm:$0xf0]  ;;  %v9689_v26 = vor.u32 %v11240_v9, %v9688_v8  ;;  %v10456_v35 = vld [vmem:[#allocation11 + $0xb58] sm:$0xf]  ;;  %v11432_v37 = vld [vmem:[#allocation11 + $0xb84] sm:$0xf0] }
 0x36a   : > { %v10261_v42 = vor.u32 %v11377_v24, %v10258_v29  ;;  %v13259_v58 = vadd.f32 %v6056_v52, %v12841_v36  ;;  %v10504_v36 = vld [vmem:[#allocation11 + $0xbb8] sm:$0xf]  ;;  %v11312_v8 = vld [vmem:[#allocation11 + $0x7c4] sm:$0xf0] }
 0x36b   : > { %6295 = vmatpush.bf16.msra.mxu2 %v10021_v41  ;;  %6271 = vmatpush.bf16.msra.mxu0 %v9157_v50  ;;  %v11161_v41 = vld [vmem:[#allocation11 + $0x314] sm:$0xf]  ;;  %v10360_v9 = vld [vmem:[#allocation11 + $0xa98] sm:$0xf] }
 0x36c   : > { %6284 = vmatpush.bf16.msra.mxu1 %v9541_v33  ;;  %v11365_v50 = vld [vmem:[#allocation11 + $0x974] sm:$0xf]  ;;  %v11144_v33 = vld [vmem:[#allocation11 + $0x284] sm:$0xf0] }
 0x36d   : > { %6308 = vmatpush.bf16.msra.mxu3 %v10405_v49  ;;  %v9826_v49 = vld [vmem:[#allocation11 + $0x6a0] sm:$0xf0]  ;;  %v9305_v6 = vor.u32 %v11144_v33, %v9304_v57  ;;  %v6044_v19 = vpop.f32.mrf.mxu2  ;;  %v11108_v57 = vld [vmem:[#allocation11 + $0x164] sm:$0xf0] }
 0x36e   : > { %v9829_v60 = vor.u32 %v11269_v47, %v9826_v49  ;;  %v11216_v47 = vld [vmem:[#allocation11 + $0x4c4] sm:$0xf0]  ;;  %v10024_v49 = vld [vmem:[#allocation11 + $0x7f8] sm:$0xf] }
 0x36f   : > { %6296 = vmatpush.bf16.msra.mxu2 %v9973_v59  ;;  %6272 = vmatpush.bf16.msra.mxu0 %v9109_v2  ;;  %v9397_v59 = vor.u32 %v11161_v41, %v9394_v62  ;;  %v9737_v2 = vor.u32 %v11252_v55, %v9736_v54  ;;  %v9641_v41 = vor.u32 %v11228_v11, %v9640_v10  ;;  %v9592_v62 = vld [vmem:[#allocation11 + $0x498] sm:$0xf]  ;;  %v11420_v54 = vld [vmem:[#allocation11 + $0xb24] sm:$0xf0] }
 0x370   : > { %6285 = vmatpush.bf16.msra.mxu1 %v9493_v13  ;;  %v11348_v13 = vld [vmem:[#allocation11 + $0x8e4] sm:$0xf0]  ;;  %v9160_v55 = vld [vmem:[#allocation11 + $0x138] sm:$0xf]  ;;  %v9593_v33 = vor.u32 %v11216_v47, %v9592_v62 }
 0x371   : > { %6309 = vmatpush.bf16.msra.mxu3 %v10357_v1  ;;  %v10213_v1 = vor.u32 %v11365_v50, %v10210_v53  ;;  %v10121_v24 = vor.u32 %v11348_v13, %v10120_v12  ;;  %v4064_v50 = vperm.slane %v13253_v16, 1  ;;  %v10408_v53 = vld [vmem:[#allocation11 + $0xaf8] sm:$0xf]  ;;  %v11408_v12 = vld [vmem:[#allocation11 + $0xac4] sm:$0xf0] }
 0x372   : > { %v10409_v0 = vor.u32 %v11420_v54, %v10408_v53  ;;  %v9112_v13 = vld [vmem:[#allocation11 + $0xd8] sm:$0xf]  ;;  %v11396_v10 = vld [vmem:[#allocation11 + $0xa64] sm:$0xf0] }
 0x373   : > { %6297 = vmatpush.bf16.msra.mxu2 %v9925_v14  ;;  %6273 = vmatpush.bf16.msra.mxu0 %v9061_v22  ;;  %v11444_v14 = vld [vmem:[#allocation11 + $0xbe4] sm:$0xf0]  ;;  %v6057_v22 = vpop.f32.mrf.mxu3  ;;  %v9064_v11 = vld [vmem:[#allocation11 + $0x78] sm:$0xf] }
 0x374   : > { %6286 = vmatpush.bf16.msra.mxu1 %v9445_v39  ;;  %v10505_v29 = vor.u32 %v11444_v14, %v10504_v36  ;;  %v9208_v39 = vld [vmem:[#allocation11 + $0x198] sm:$0xf]  ;;  %v11096_v36 = vld [vmem:[#allocation11 + $0x104] sm:$0xf0] }
 0x375   : > { %6310 = vmatpush.bf16.msra.mxu3 %v10309_v23  ;;  %v11132_v23 = vld [vmem:[#allocation11 + $0x224] sm:$0xf0]  ;;  %v10264_v47 = vld [vmem:[#allocation11 + $0x9d8] sm:$0xf] }
 0x376   : > { %v9257_v31 = vor.u32 %v11132_v23, %v9256_v21  ;;  %v10361_v21 = vor.u32 %v11408_v12, %v10360_v9  ;;  %v9496_v23 = vld [vmem:[#allocation11 + $0x3d8] sm:$0xf]  ;;  %v11192_v22 = vld [vmem:[#allocation11 + $0x404] sm:$0xf0]  ;;  %v11246_v12 = vld [vmem:[#allocation11 + $0x5bc] sm:$0xf] }
 0x377   : > { %6298 = vmatpush.bf16.msra.mxu2 %v9877_v40  ;;  %6274 = vmatpush.bf16.msra.mxu0 %v9013_v46  ;;  %v11120_v40 = vld [vmem:[#allocation11 + $0x1c4] sm:$0xf0]  ;;  %v10457_v46 = vor.u32 %v11432_v37, %v10456_v35 }
 0x378   : > { %6287 = vmatpush.bf16.msra.mxu1 %v9397_v59  ;;  %v9209_v52 = vor.u32 %v11120_v40, %v9208_v39  ;;  %v6068_v59 = vpop.f32.mrf.mxu0  ;;  %v9448_v39 = vld [vmem:[#allocation11 + $0x378] sm:$0xf]  ;;  %v11180_v40 = vld [vmem:[#allocation11 + $0x3a4] sm:$0xf0] }
 0x379   : > { %6311 = vmatpush.bf16.msra.mxu3 %v10261_v42  ;;  %v10073_v42 = vor.u32 %v11336_v34, %v10072_v30  ;;  %v6069_v5 = vadd.f32 %v6068_v59, %v4064_v50  ;;  %v11084_v30 = vld [vmem:[#allocation11 + $0xa4] sm:$0xf0] }
 0x37a   : > { %6275 = vmatmul.bf16.vlgmr.msra.gmra.mxu0 %v12349_v43  ;;  %v6081_v7 = vpop.f32.mrf.mxu1 }
 0x37b   : > { %6319 = vmatpush.bf16.msrb.mxu0 %v9353_v32  ;;  %6299 = vmatpush.bf16.msra.mxu2 %v9829_v60  ;;  %v11324_v32 = vld [vmem:[#allocation11 + $0x824] sm:$0xf0]  ;;  %v6082_v14 = vadd.f32 %v6081_v7, %v6069_v5 }
 0x37c   : > { %6332 = vmatpush.bf16.msrb.mxu1 %v9737_v2  ;;  %v10025_v60 = vor.u32 %v11324_v32, %v10024_v49  ;;  %v11204_v2 = vld [vmem:[#allocation11 + $0x464] sm:$0xf0] }
 0x37d   : > { %6312 = vmatpush.bf16.msra.mxu3 %v10213_v1  ;;  %6288 = vmatmul.bf16.vlgmr.msra.gmra.mxu1 %v12351_v44  ;;  %v9544_v1 = vld [vmem:[#allocation11 + $0x438] sm:$0xf]  ;;  %v11384_v49 = vld [vmem:[#allocation11 + $0xa04] sm:$0xf0] }
 0x37e   : > { %v9545_v19 = vor.u32 %v11204_v2, %v9544_v1  ;;  %v11072_v32 = vld [vmem:[#allocation11 + $0x44] sm:$0xf0]  ;;  %v9832_v2 = vld [vmem:[#allocation11 + $0x678] sm:$0xf] }
 0x37f   : > { %6320 = vmatpush.bf16.msrb.mxu0 %v9305_v6  ;;  %6300 = vmatpush.bf16.msra.mxu2 %v9781_v20  ;;  %v9161_v6 = vor.u32 %v11108_v57, %v9160_v55  ;;  %v9977_v20 = vor.u32 %v11312_v8, %v9976_v4  ;;  %v9449_v55 = vor.u32 %v11180_v40, %v9448_v39  ;;  %v11150_v57 = vld [vmem:[#allocation11 + $0x2bc] sm:$0xf]  ;;  %v11168_v1 = vld [vmem:[#allocation11 + $0x344] sm:$0xf0]  ;;  %v9258_v40 = vld [vmem:[#allocation11 + $0x228] sm:$0xf0] }
 0x380   : > { %6333 = vmatpush.bf16.msrb.mxu1 %v9689_v26  ;;  %v9113_v26 = vor.u32 %v11096_v36, %v9112_v13  ;;  %v6070_v34 = vpop.f32.mrf.mxu0  ;;  %v11276_v7 = vld [vmem:[#allocation11 + $0x6a4] sm:$0xf0]  ;;  %v9738_v13 = vld [vmem:[#allocation11 + $0x5e8] sm:$0xf0]  ;;  %v11126_v39 = vld [vmem:[#allocation11 + $0x1fc] sm:$0xf] }
 0x381   : > { %6313 = vmatpush.bf16.msra.mxu3 %v10165_v25  ;;  %v9928_v25 = vld [vmem:[#allocation11 + $0x738] sm:$0xf]  ;;  %v11372_v8 = vld [vmem:[#allocation11 + $0x9a4] sm:$0xf0]  ;;  %v11438_v34 = vld [vmem:[#allocation11 + $0xbbc] sm:$0xf] }
 0x382   : > { %6301 = vmatmul.bf16.vlgmr.msra.gmra.mxu2 %v12353_v45  ;;  %v6083_v62 = vpop.f32.mrf.mxu1 }
 0x383   : > { %6345 = vmatpush.bf16.msrb.mxu2 %v10121_v24  ;;  %6321 = vmatpush.bf16.msrb.mxu0 %v9257_v31  ;;  %v11300_v24 = vld [vmem:[#allocation11 + $0x764] sm:$0xf0]  ;;  %v9497_v31 = vor.u32 %v11192_v22, %v9496_v23  ;;  %v9784_v22 = vld [vmem:[#allocation11 + $0x618] sm:$0xf] }
 0x384   : > { %6314 = vmatmul.bf16.vlgmr.msra.gmra.mxu3 %v12356_v48  ;;  %6334 = vmatpush.bf16.msrb.mxu1 %v9641_v41  ;;  %v9929_v35 = vor.u32 %v11300_v24, %v9928_v25  ;;  %v9880_v41 = vld [vmem:[#allocation11 + $0x6d8] sm:$0xf]  ;;  %v11264_v25 = vld [vmem:[#allocation11 + $0x644] sm:$0xf0]  ;;  %v9741_v24 = vor.u32 %v11246_v12, %v9738_v13  ;;  %v10410_v12 = vld [vmem:[#allocation11 + $0xb28] sm:$0xf0] }
 0x385   : > { %6358 = vmatpush.bf16.msrb.mxu3 %v10505_v29  ;;  %v10312_v29 = vld [vmem:[#allocation11 + $0xa38] sm:$0xf]  ;;  %v6094_v50 = vpop.f32.mrf.mxu2  ;;  %v9785_v62 = vor.u32 %v11264_v25, %v9784_v22  ;;  %v11102_v13 = vld [vmem:[#allocation11 + $0x13c] sm:$0xf]  ;;  %v9546_v22 = vld [vmem:[#allocation11 + $0x468] sm:$0xf0] }
 0x386   : > { %v10313_v37 = vor.u32 %v11396_v10, %v10312_v29  ;;  %v6095_v53 = vadd.f32 %v6094_v50, %v6082_v14  ;;  %v11360_v29 = vld [vmem:[#allocation11 + $0x944] sm:$0xf0]  ;;  %v11234_v10 = vld [vmem:[#allocation11 + $0x55c] sm:$0xf]  ;;  %v9642_v50 = vld [vmem:[#allocation11 + $0x528] sm:$0xf0] }
 0x387   : > { %6346 = vmatpush.bf16.msrb.mxu2 %v10073_v42  ;;  %6322 = vmatpush.bf16.msrb.mxu0 %v9209_v52  ;;  %v9065_v42 = vor.u32 %v11084_v30, %v9064_v11  ;;  %v9016_v52 = vld [vmem:[#allocation11 + $0x18] sm:$0xf]  ;;  %v6107_v54 = vpop.f32.mrf.mxu3  ;;  %v9690_v11 = vld [vmem:[#allocation11 + $0x588] sm:$0xf0] }
 0x388   : > { %6335 = vmatpush.bf16.msrb.mxu1 %v9593_v33  ;;  %v9354_v33 = vld [vmem:[#allocation11 + $0x2e8] sm:$0xf0]  ;;  %v6108_v4 = vadd.f32 %v6107_v54, %v6095_v53  ;;  %v9017_v5 = vor.u32 %v11072_v32, %v9016_v52  ;;  %v9261_v32 = vor.u32 %v11126_v39, %v9258_v40  ;;  %v11330_v53 = vld [vmem:[#allocation11 + $0x85c] sm:$0xf] }
 0x389   : > { %6359 = vmatpush.bf16.msrb.mxu3 %v10457_v46  ;;  %v11288_v46 = vld [vmem:[#allocation11 + $0x704] sm:$0xf0]  ;;  %v9357_v9 = vor.u32 %v11150_v57, %v9354_v33  ;;  %v10074_v54 = vld [vmem:[#allocation11 + $0x888] sm:$0xf0]  ;;  %v11114_v33 = vld [vmem:[#allocation11 + $0x19c] sm:$0xf] }
 0x38a   : > { %v9881_v59 = vor.u32 %v11288_v46, %v9880_v41  ;;  %v13267_v36 = vadd.f32 %v6108_v4, %v12883_v56  ;;  %v11342_v56 = vld [vmem:[#allocation11 + $0x8bc] sm:$0xf]  ;;  %v9693_v46 = vor.u32 %v11234_v10, %v9690_v11  ;;  %v10458_v57 = vld [vmem:[#allocation11 + $0xb88] sm:$0xf0]  ;;  %v4065_v4 = vperm.slane %v13253_v16, 2 }
 0x38b   : > { %6347 = vmatpush.bf16.msrb.mxu2 %v10025_v60  ;;  %6323 = vmatpush.bf16.msrb.mxu0 %v9161_v6  ;;  %v10265_v60 = vor.u32 %v11384_v49, %v10264_v47  ;;  %v10216_v6 = vld [vmem:[#allocation11 + $0x978] sm:$0xf]  ;;  %v11222_v49 = vld [vmem:[#allocation11 + $0x4fc] sm:$0xf]  ;;  %v9978_v11 = vld [vmem:[#allocation11 + $0x7c8] sm:$0xf0] }
 0x38c   : > { %6336 = vmatpush.bf16.msrb.mxu1 %v9545_v19  ;;  %v11138_v19 = vld [vmem:[#allocation11 + $0x25c] sm:$0xf]  ;;  %v10217_v23 = vor.u32 %v11372_v8, %v10216_v6  ;;  %v10026_v8 = vld [vmem:[#allocation11 + $0x828] sm:$0xf0] }
 0x38d   : > { %6360 = vmatpush.bf16.msrb.mxu3 %v10409_v0  ;;  %v9400_v0 = vld [vmem:[#allocation11 + $0x318] sm:$0xf]  ;;  %v11318_v6 = vld [vmem:[#allocation11 + $0x7fc] sm:$0xf] }
 0x38e   : > { %v9401_v14 = vor.u32 %v11168_v1, %v9400_v0  ;;  %v10077_v0 = vor.u32 %v11330_v53, %v10074_v54  ;;  %v11210_v1 = vld [vmem:[#allocation11 + $0x49c] sm:$0xf] }
 0x38f   : > { %6348 = vmatpush.bf16.msrb.mxu2 %v9977_v20  ;;  %6324 = vmatpush.bf16.msrb.mxu0 %v9113_v26  ;;  %v9306_v20 = vld [vmem:[#allocation11 + $0x288] sm:$0xf0]  ;;  %v10168_v26 = vld [vmem:[#allocation11 + $0x918] sm:$0xf]  ;;  %v6109_v41 = vpop.f32.mrf.mxu3  ;;  %v11306_v10 = vld [vmem:[#allocation11 + $0x79c] sm:$0xf] }
 0x390   : > { %6337 = vmatpush.bf16.msrb.mxu1 %v9497_v31  ;;  %v9309_v30 = vor.u32 %v11138_v19, %v9306_v20  ;;  %v10122_v31 = vld [vmem:[#allocation11 + $0x8e8] sm:$0xf0]  ;;  %v9981_v39 = vor.u32 %v11306_v10, %v9978_v11  ;;  %v11186_v40 = vld [vmem:[#allocation11 + $0x3dc] sm:$0xf] }
 0x391   : > { %6361 = vmatpush.bf16.msrb.mxu3 %v10361_v21  ;;  %v9833_v21 = vor.u32 %v11276_v7, %v9832_v2  ;;  %v10125_v47 = vor.u32 %v11342_v56, %v10122_v31  ;;  %v9594_v2 = vld [vmem:[#allocation11 + $0x4c8] sm:$0xf0]  ;;  %v11090_v31 = vld [vmem:[#allocation11 + $0xdc] sm:$0xf] }
 0x392   : > { %v9597_v20 = vor.u32 %v11210_v1, %v9594_v2  ;;  %v10362_v56 = vld [vmem:[#allocation11 + $0xac8] sm:$0xf0]  ;;  %v11282_v1 = vld [vmem:[#allocation11 + $0x6dc] sm:$0xf] }
 0x393   : > { %6349 = vmatpush.bf16.msrb.mxu2 %v9929_v35  ;;  %6325 = vmatpush.bf16.msrb.mxu0 %v9065_v42  ;;  %v6096_v35 = vpop.f32.mrf.mxu2  ;;  %v10169_v42 = vor.u32 %v11360_v29, %v10168_v26  ;;  %v9498_v41 = vld [vmem:[#allocation11 + $0x408] sm:$0xf0] }
 0x394   : > { %6338 = vmatpush.bf16.msrb.mxu1 %v9449_v55  ;;  %v11426_v55 = vld [vmem:[#allocation11 + $0xb5c] sm:$0xf]  ;;  %v9501_v54 = vor.u32 %v11186_v40, %v9498_v41  ;;  %v9882_v2 = vld [vmem:[#allocation11 + $0x708] sm:$0xf0] }
 0x395   : > { %6362 = vmatpush.bf16.msrb.mxu3 %v10313_v37  ;;  %v10506_v37 = vld [vmem:[#allocation11 + $0xbe8] sm:$0xf0]  ;;  %v11258_v41 = vld [vmem:[#allocation11 + $0x61c] sm:$0xf] }
 0x396   : > { %v10509_v52 = vor.u32 %v11438_v34, %v10506_v37  ;;  %v9114_v34 = vld [vmem:[#allocation11 + $0x108] sm:$0xf0] }
 0x397   : > { %6350 = vmatpush.bf16.msrb.mxu2 %v9881_v59  ;;  %6326 = vmatpush.bf16.msrb.mxu0 %v9017_v5  ;;  %v9210_v59 = vld [vmem:[#allocation11 + $0x1c8] sm:$0xf0]  ;;  %v10461_v5 = vor.u32 %v11426_v55, %v10458_v57  ;;  %v6120_v19 = vpop.f32.mrf.mxu0  ;;  %v11174_v57 = vld [vmem:[#allocation11 + $0x37c] sm:$0xf] }
 0x398   : > { %6339 = vmatpush.bf16.msrb.mxu1 %v9401_v14  ;;  %v9213_v7 = vor.u32 %v11114_v33, %v9210_v59  ;;  %v9162_v14 = vld [vmem:[#allocation11 + $0x168] sm:$0xf0]  ;;  %v6121_v25 = vadd.f32 %v6120_v19, %v4065_v4  ;;  %v11378_v4 = vld [vmem:[#allocation11 + $0x9dc] sm:$0xf] }
 0x399   : > { %6363 = vmatpush.bf16.msrb.mxu3 %v10265_v60  ;;  %v9645_v60 = vor.u32 %v11222_v49, %v9642_v50  ;;  %v9165_v29 = vor.u32 %v11102_v13, %v9162_v14  ;;  %v11390_v49 = vld [vmem:[#allocation11 + $0xa3c] sm:$0xf]  ;;  %v10314_v50 = vld [vmem:[#allocation11 + $0xa68] sm:$0xf0]  ;;  %v11157_v13 = vld [vmem:[#allocation11 + $0x2ec] sm:$0xf0] }
 0x39a   : > { %6327 = vmatmul.bf16.vlgmr.msrb.gmra.mxu0 %v12349_v43  ;;  %v6133_v26 = vpop.f32.mrf.mxu1  ;;  %v9450_v33 = vld [vmem:[#allocation11 + $0x3a8] sm:$0xf0] }
 0x39b   : > { %6371 = vmatpush.bf16.msra.mxu0 %v9357_v9  ;;  %6351 = vmatpush.bf16.msrb.mxu2 %v9833_v21  ;;  %v11414_v9 = vld [vmem:[#allocation11 + $0xafc] sm:$0xf]  ;;  %v10029_v21 = vor.u32 %v11318_v6, %v10026_v8  ;;  %v6134_v35 = vadd.f32 %v6133_v26, %v6121_v25  ;;  %v9018_v6 = vld [vmem:[#allocation11 + $0x48] sm:$0xf0]  ;;  %v9453_v19 = vor.u32 %v11174_v57, %v9450_v33 }
 0x39c   : > { %6384 = vmatpush.bf16.msra.mxu1 %v9741_v24  ;;  %v10413_v24 = vor.u32 %v11414_v9, %v10410_v12  ;;  %v9360_v12 = vld [vmem:[#allocation11 + $0x2c0] sm:$0xf]  ;;  %v11270_v26 = vld [vmem:[#allocation11 + $0x67c] sm:$0xf] }
 0x39d   : > { %6364 = vmatpush.bf16.msrb.mxu3 %v10217_v23  ;;  %6340 = vmatmul.bf16.vlgmr.msrb.gmra.mxu1 %v12351_v44  ;;  %v11198_v23 = vld [vmem:[#allocation11 + $0x43c] sm:$0xf]  ;;  %v9361_v11 = vor.u32 %v11157_v13, %v9360_v12  ;;  %v11337_v12 = vld [vmem:[#allocation11 + $0x88c] sm:$0xf0]  ;;  %v10464_v13 = vld [vmem:[#allocation11 + $0xb60] sm:$0xf] }
 0x39e   : > { %v9549_v37 = vor.u32 %v11198_v23, %v9546_v22  ;;  %v9402_v23 = vld [vmem:[#allocation11 + $0x348] sm:$0xf0] }
 0x39f   : > { %6372 = vmatpush.bf16.msra.mxu0 %v9309_v30  ;;  %6352 = vmatpush.bf16.msrb.mxu2 %v9785_v62  ;;  %v11402_v30 = vld [vmem:[#allocation11 + $0xa9c] sm:$0xf]  ;;  %v6122_v53 = vpop.f32.mrf.mxu0 }
 0x3a0   : > { %6385 = vmatpush.bf16.msra.mxu1 %v9693_v46  ;;  %v10365_v62 = vor.u32 %v11402_v30, %v10362_v56  ;;  %v11294_v46 = vld [vmem:[#allocation11 + $0x73c] sm:$0xf]  ;;  %v10218_v30 = vld [vmem:[#allocation11 + $0x9a8] sm:$0xf0]  ;;  %v9744_v56 = vld [vmem:[#allocation11 + $0x5c0] sm:$0xf] }
 0x3a1   : > { %6365 = vmatpush.bf16.msrb.mxu3 %v10169_v42  ;;  %v9117_v42 = vor.u32 %v11090_v31, %v9114_v34  ;;  %v11253_v31 = vld [vmem:[#allocation11 + $0x5ec] sm:$0xf0]  ;;  %v9312_v34 = vld [vmem:[#allocation11 + $0x260] sm:$0xf] }
 0x3a2   : > { %6353 = vmatmul.bf16.vlgmr.msrb.gmra.mxu2 %v12353_v45  ;;  %v6135_v59 = vpop.f32.mrf.mxu1  ;;  %v10128_v53 = vld [vmem:[#allocation11 + $0x8c0] sm:$0xf] }
 0x3a3   : > { %6397 = vmatpush.bf16.msra.mxu2 %v10125_v47  ;;  %6373 = vmatpush.bf16.msra.mxu0 %v9261_v32  ;;  %v9930_v47 = vld [vmem:[#allocation11 + $0x768] sm:$0xf0] }
 0x3a4   : > { %6366 = vmatmul.bf16.vlgmr.msrb.gmra.mxu3 %v12356_v48  ;;  %6386 = vmatpush.bf16.msra.mxu1 %v9645_v60  ;;  %v9066_v32 = vld [vmem:[#allocation11 + $0xa8] sm:$0xf0]  ;;  %v9933_v55 = vor.u32 %v11294_v46, %v9930_v47  ;;  %v10317_v60 = vor.u32 %v11390_v49, %v10314_v50  ;;  %v11354_v47 = vld [vmem:[#allocation11 + $0x91c] sm:$0xf] }
 0x3a5   : > { %6410 = vmatpush.bf16.msra.mxu3 %v10509_v52  ;;  %v11078_v52 = vld [vmem:[#allocation11 + $0x7c] sm:$0xf]  ;;  %v6146_v8 = vpop.f32.mrf.mxu2  ;;  %v9786_v46 = vld [vmem:[#allocation11 + $0x648] sm:$0xf0] }
 0x3a6   : > { %v6147_v14 = vadd.f32 %v6146_v8, %v6134_v35  ;;  %v10170_v49 = vld [vmem:[#allocation11 + $0x948] sm:$0xf0]  ;;  %v9789_v59 = vor.u32 %v11258_v41, %v9786_v46  ;;  %v10080_v8 = vld [vmem:[#allocation11 + $0x860] sm:$0xf] }
 0x3a7   : > { %6398 = vmatpush.bf16.msra.mxu2 %v10077_v0  ;;  %6374 = vmatpush.bf16.msra.mxu0 %v9213_v7  ;;  %v9069_v0 = vor.u32 %v11078_v52, %v9066_v32  ;;  %v11066_v7 = vld [vmem:[#allocation11 + $0x1c] sm:$0xf]  ;;  %v6159_v9 = vpop.f32.mrf.mxu3  ;;  %v9696_v52 = vld [vmem:[#allocation11 + $0x560] sm:$0xf]  ;;  %v11241_v32 = vld [vmem:[#allocation11 + $0x58c] sm:$0xf0] }
 0x3a8   : > { %6387 = vmatpush.bf16.msra.mxu1 %v9597_v20  ;;  %v9885_v20 = vor.u32 %v11282_v1, %v9882_v2  ;;  %v9021_v25 = vor.u32 %v11066_v7, %v9018_v6  ;;  %v6160_v10 = vadd.f32 %v6159_v9, %v6147_v14  ;;  %v10173_v1 = vor.u32 %v11354_v47, %v10170_v49  ;;  %v9648_v7 = vld [vmem:[#allocation11 + $0x500] sm:$0xf]  ;;  %v11229_v6 = vld [vmem:[#allocation11 + $0x52c] sm:$0xf0] }
 0x3a9   : > { %6411 = vmatpush.bf16.msra.mxu3 %v10461_v5  ;;  %v10266_v5 = vld [vmem:[#allocation11 + $0xa08] sm:$0xf0]  ;;  %v9697_v2 = vor.u32 %v11241_v32, %v9696_v52  ;;  %v11433_v14 = vld [vmem:[#allocation11 + $0xb8c] sm:$0xf0]  ;;  %v9552_v41 = vld [vmem:[#allocation11 + $0x440] sm:$0xf] }
 0x3aa   : > { %v10269_v22 = vor.u32 %v11378_v4, %v10266_v5  ;;  %v13275_v35 = vadd.f32 %v6160_v10, %v12923_v3  ;;  %v10512_v3 = vld [vmem:[#allocation11 + $0xbc0] sm:$0xf] }
 0x3ab   : > { %6399 = vmatpush.bf16.msra.mxu2 %v10029_v21  ;;  %6375 = vmatpush.bf16.msra.mxu0 %v9165_v29  ;;  %v11162_v21 = vld [vmem:[#allocation11 + $0x31c] sm:$0xf]  ;;  %v10368_v52 = vld [vmem:[#allocation11 + $0xaa0] sm:$0xf] }
 0x3ac   : > { %6388 = vmatpush.bf16.msra.mxu1 %v9549_v37  ;;  %v11366_v29 = vld [vmem:[#allocation11 + $0x97c] sm:$0xf]  ;;  %v11145_v37 = vld [vmem:[#allocation11 + $0x28c] sm:$0xf0] }
 0x3ad   : > { %6412 = vmatpush.bf16.msra.mxu3 %v10413_v24  ;;  %v9834_v24 = vld [vmem:[#allocation11 + $0x6a8] sm:$0xf0]  ;;  %v9313_v50 = vor.u32 %v11145_v37, %v9312_v34  ;;  %v6148_v57 = vpop.f32.mrf.mxu2  ;;  %v11109_v34 = vld [vmem:[#allocation11 + $0x16c] sm:$0xf0] }
 0x3ae   : > { %v9837_v40 = vor.u32 %v11270_v26, %v9834_v24  ;;  %v11217_v26 = vld [vmem:[#allocation11 + $0x4cc] sm:$0xf0]  ;;  %v10032_v24 = vld [vmem:[#allocation11 + $0x800] sm:$0xf] }
 0x3af   : > { %6400 = vmatpush.bf16.msra.mxu2 %v9981_v39  ;;  %6376 = vmatpush.bf16.msra.mxu0 %v9117_v42  ;;  %v9405_v39 = vor.u32 %v11162_v21, %v9402_v23  ;;  %v9745_v42 = vor.u32 %v11253_v31, %v9744_v56  ;;  %v6161_v33 = vpop.f32.mrf.mxu3  ;;  %v9649_v21 = vor.u32 %v11229_v6, %v9648_v7  ;;  %v9600_v23 = vld [vmem:[#allocation11 + $0x4a0] sm:$0xf]  ;;  %v4066_v56 = vperm.slane %v13253_v16, 3  ;;  %v11409_v16 = vld [vmem:[#allocation11 + $0xacc] sm:$0xf0] }
 0x3b0   : > { %6389 = vmatpush.bf16.msra.mxu1 %v9501_v54  ;;  %v11349_v54 = vld [vmem:[#allocation11 + $0x8ec] sm:$0xf0]  ;;  %v9168_v31 = vld [vmem:[#allocation11 + $0x140] sm:$0xf]  ;;  %v9601_v37 = vor.u32 %v11217_v26, %v9600_v23  ;;  %v10369_v33 = vor.u32 %v11409_v16, %v10368_v52  ;;  %v11247_v16 = vld [vmem:[#allocation11 + $0x5c4] sm:$0xf] }
 0x3b1   : > { %6413 = vmatpush.bf16.msra.mxu3 %v10365_v62  ;;  %v10221_v62 = vor.u32 %v11366_v29, %v10218_v30  ;;  %v10129_v4 = vor.u32 %v11349_v54, %v10128_v53  ;;  %v11325_v29 = vld [vmem:[#allocation11 + $0x82c] sm:$0xf0]  ;;  %v9169_v49 = vor.u32 %v11109_v34, %v9168_v31  ;;  %v9120_v53 = vld [vmem:[#allocation11 + $0xe0] sm:$0xf]  ;;  %v11151_v31 = vld [vmem:[#allocation11 + $0x2c4] sm:$0xf] }
 0x3b2   : > { %v11421_v30 = vld [vmem:[#allocation11 + $0xb2c] sm:$0xf0]  ;;  %v9072_v7 = vld [vmem:[#allocation11 + $0x80] sm:$0xf]  ;;  %v9362_v34 = vld [vmem:[#allocation11 + $0x2f0] sm:$0xf0] }
 0x3b3   : > { %6401 = vmatpush.bf16.msra.mxu2 %v9933_v55  ;;  %6377 = vmatpush.bf16.msra.mxu0 %v9069_v0  ;;  %v11445_v55 = vld [vmem:[#allocation11 + $0xbec] sm:$0xf0]  ;;  %v9365_v52 = vor.u32 %v11151_v31, %v9362_v34  ;;  %v11115_v31 = vld [vmem:[#allocation11 + $0x1a4] sm:$0xf]  ;;  %v9218_v34 = vld [vmem:[#allocation11 + $0x1d0] sm:$0xf0] }
 0x3b4   : > { %6390 = vmatpush.bf16.msra.mxu1 %v9453_v19  ;;  %v11133_v0 = vld [vmem:[#allocation11 + $0x22c] sm:$0xf0]  ;;  %v10513_v5 = vor.u32 %v11445_v55, %v10512_v3  ;;  %v9216_v19 = vld [vmem:[#allocation11 + $0x1a0] sm:$0xf] }
 0x3b5   : > { %6414 = vmatpush.bf16.msra.mxu3 %v10317_v60  ;;  %v9264_v60 = vld [vmem:[#allocation11 + $0x200] sm:$0xf]  ;;  %v11097_v54 = vld [vmem:[#allocation11 + $0x10c] sm:$0xf0] }
 0x3b6   : > { %v9265_v9 = vor.u32 %v11133_v0, %v9264_v60  ;;  %v11193_v60 = vld [vmem:[#allocation11 + $0x40c] sm:$0xf0]  ;;  %v9936_v0 = vld [vmem:[#allocation11 + $0x740] sm:$0xf] }
 0x3b7   : > { %6402 = vmatpush.bf16.msra.mxu2 %v9885_v20  ;;  %6378 = vmatpush.bf16.msra.mxu0 %v9021_v25  ;;  %v11121_v20 = vld [vmem:[#allocation11 + $0x1cc] sm:$0xf0]  ;;  %v10465_v25 = vor.u32 %v11433_v14, %v10464_v13  ;;  %v6172_v46 = vpop.f32.mrf.mxu0  ;;  %v9456_v13 = vld [vmem:[#allocation11 + $0x380] sm:$0xf] }
 0x3b8   : > { %6391 = vmatpush.bf16.msra.mxu1 %v9405_v39  ;;  %v9217_v10 = vor.u32 %v11121_v20, %v9216_v19  ;;  %v10033_v39 = vor.u32 %v11325_v29, %v10032_v24  ;;  %v6173_v32 = vadd.f32 %v6172_v46, %v4066_v56  ;;  %v11085_v6 = vld [vmem:[#allocation11 + $0xac] sm:$0xf0]  ;;  %v9888_v19 = vld [vmem:[#allocation11 + $0x6e0] sm:$0xf] }
 0x3b9   : > { %6415 = vmatpush.bf16.msra.mxu3 %v10269_v22  ;;  %v10081_v22 = vor.u32 %v11337_v12, %v10080_v8  ;;  %v11181_v14 = vld [vmem:[#allocation11 + $0x3ac] sm:$0xf0]  ;;  %v9073_v23 = vor.u32 %v11085_v6, %v9072_v7  ;;  %v9024_v29 = vld [vmem:[#allocation11 + $0x20] sm:$0xf]  ;;  %v10130_v6 = vld [vmem:[#allocation11 + $0x8f0] sm:$0xf0] }
 0x3ba   : > { %6379 = vmatmul.bf16.vlgmr.msra.gmra.mxu0 %v12349_v43  ;;  %v6185_v47 = vpop.f32.mrf.mxu1  ;;  %v11385_v26 = vld [vmem:[#allocation11 + $0xa0c] sm:$0xf0]  ;;  %v9457_v56 = vor.u32 %v11181_v14, %v9456_v13  ;;  %v11127_v13 = vld [vmem:[#allocation11 + $0x204] sm:$0xf]  ;;  %v9266_v14 = vld [vmem:[#allocation11 + $0x230] sm:$0xf0] }
 0x3bb   : > { %6423 = vmatpush.bf16.msrb.mxu0 %v9361_v11  ;;  %6403 = vmatpush.bf16.msra.mxu2 %v9837_v40  ;;  %v10416_v11 = vld [vmem:[#allocation11 + $0xb00] sm:$0xf]  ;;  %v6186_v55 = vadd.f32 %v6185_v47, %v6173_v32  ;;  %v11277_v47 = vld [vmem:[#allocation11 + $0x6ac] sm:$0xf0]  ;;  %v9746_v32 = vld [vmem:[#allocation11 + $0x5f0] sm:$0xf0] }
 0x3bc   : > { %6436 = vmatpush.bf16.msrb.mxu1 %v9745_v42  ;;  %v10417_v40 = vor.u32 %v11421_v30, %v10416_v11  ;;  %v9984_v42 = vld [vmem:[#allocation11 + $0x7a0] sm:$0xf] }
 0x3bd   : > { %6416 = vmatpush.bf16.msra.mxu3 %v10221_v62  ;;  %6392 = vmatmul.bf16.vlgmr.msra.gmra.mxu1 %v12351_v44  ;;  %v11205_v62 = vld [vmem:[#allocation11 + $0x46c] sm:$0xf0] }
 0x3be   : > { %v9553_v3 = vor.u32 %v11205_v62, %v9552_v41  ;;  %v11169_v41 = vld [vmem:[#allocation11 + $0x34c] sm:$0xf0]  ;;  %v9840_v62 = vld [vmem:[#allocation11 + $0x680] sm:$0xf] }
 0x3bf   : > { %6424 = vmatpush.bf16.msrb.mxu0 %v9313_v50  ;;  %6404 = vmatpush.bf16.msra.mxu2 %v9789_v59  ;;  %v11313_v50 = vld [vmem:[#allocation11 + $0x7cc] sm:$0xf0]  ;;  %v9504_v59 = vld [vmem:[#allocation11 + $0x3e0] sm:$0xf]  ;;  %v6174_v20 = vpop.f32.mrf.mxu0 }
 0x3c0   : > { %6437 = vmatpush.bf16.msrb.mxu1 %v9697_v2  ;;  %v9985_v57 = vor.u32 %v11313_v50, %v9984_v42  ;;  %v11301_v2 = vld [vmem:[#allocation11 + $0x76c] sm:$0xf0]  ;;  %v9505_v8 = vor.u32 %v11193_v60, %v9504_v59  ;;  %v9792_v59 = vld [vmem:[#allocation11 + $0x620] sm:$0xf] }
 0x3c1   : > { %6417 = vmatpush.bf16.msra.mxu3 %v10173_v1  ;;  %v9121_v1 = vor.u32 %v11097_v54, %v9120_v53  ;;  %v11373_v50 = vld [vmem:[#allocation11 + $0x9ac] sm:$0xf0] }
 0x3c2   : > { %6405 = vmatmul.bf16.vlgmr.msra.gmra.mxu2 %v12353_v45  ;;  %v11265_v60 = vld [vmem:[#allocation11 + $0x64c] sm:$0xf0] }
 0x3c3   : > { %6449 = vmatpush.bf16.msrb.mxu2 %v10129_v4  ;;  %6425 = vmatpush.bf16.msrb.mxu0 %v9265_v9  ;;  %v10320_v4 = vld [vmem:[#allocation11 + $0xa40] sm:$0xf]  ;;  %v9937_v9 = vor.u32 %v11301_v2, %v9936_v0  ;;  %v11361_v2 = vld [vmem:[#allocation11 + $0x94c] sm:$0xf0]  ;;  %v9793_v20 = vor.u32 %v11265_v60, %v9792_v59  ;;  %v9554_v59 = vld [vmem:[#allocation11 + $0x470] sm:$0xf0] }
 0x3c4   : > { %6418 = vmatmul.bf16.vlgmr.msra.gmra.mxu3 %v12356_v48  ;;  %6438 = vmatpush.bf16.msrb.mxu1 %v9649_v21  ;;  %v6187_v21 = vpop.f32.mrf.mxu1  ;;  %v10176_v0 = vld [vmem:[#allocation11 + $0x920] sm:$0xf] }
 0x3c5   : > { %6462 = vmatpush.bf16.msrb.mxu3 %v10513_v5  ;;  %v11397_v5 = vld [vmem:[#allocation11 + $0xa6c] sm:$0xf0]  ;;  %v6198_v24 = vpop.f32.mrf.mxu2  ;;  %v10177_v21 = vor.u32 %v11361_v2, %v10176_v0 }
 0x3c6   : > { %v10321_v12 = vor.u32 %v11397_v5, %v10320_v4  ;;  %v6199_v11 = vadd.f32 %v6198_v24, %v6186_v55  ;;  %v9314_v55 = vld [vmem:[#allocation11 + $0x290] sm:$0xf0]  ;;  %v11235_v4 = vld [vmem:[#allocation11 + $0x564] sm:$0xf] }
 0x3c7   : > { %6450 = vmatpush.bf16.msrb.mxu2 %v10081_v22  ;;  %6426 = vmatpush.bf16.msrb.mxu0 %v9217_v10  ;;  %v11289_v22 = vld [vmem:[#allocation11 + $0x70c] sm:$0xf0]  ;;  %v6211_v30 = vpop.f32.mrf.mxu3  ;;  %v9698_v5 = vld [vmem:[#allocation11 + $0x590] sm:$0xf0] }
 0x3c8   : > { %6439 = vmatpush.bf16.msrb.mxu1 %v9601_v37  ;;  %v11073_v10 = vld [vmem:[#allocation11 + $0x4c] sm:$0xf0]  ;;  %v9889_v37 = vor.u32 %v11289_v22, %v9888_v19  ;;  %v6212_v42 = vadd.f32 %v6211_v30, %v6199_v11  ;;  %v10082_v11 = vld [vmem:[#allocation11 + $0x890] sm:$0xf0]  ;;  %v11427_v30 = vld [vmem:[#allocation11 + $0xb64] sm:$0xf] }
 0x3c9   : > { %6463 = vmatpush.bf16.msrb.mxu3 %v10465_v25  ;;  %v10272_v25 = vld [vmem:[#allocation11 + $0x9e0] sm:$0xf]  ;;  %v9025_v46 = vor.u32 %v11073_v10, %v9024_v29  ;;  %v9269_v29 = vor.u32 %v11127_v13, %v9266_v14  ;;  %v11331_v10 = vld [vmem:[#allocation11 + $0x864] sm:$0xf] }
 0x3ca   : > { %v13283_v53 = vadd.f32 %v6212_v42, %v12988_v63  ;;  %v11343_v63 = vld [vmem:[#allocation11 + $0x8c4] sm:$0xf] }
 0x3cb   : > { %6451 = vmatpush.bf16.msrb.mxu2 %v10033_v39  ;;  %6427 = vmatpush.bf16.msrb.mxu0 %v9169_v49  ;;  %v10273_v39 = vor.u32 %v11385_v26, %v10272_v25  ;;  %v10224_v49 = vld [vmem:[#allocation11 + $0x980] sm:$0xf]  ;;  %v10133_v22 = vor.u32 %v11343_v63, %v10130_v6  ;;  %v11223_v25 = vld [vmem:[#allocation11 + $0x504] sm:$0xf]  ;;  %v9650_v26 = vld [vmem:[#allocation11 + $0x530] sm:$0xf0] }
 0x3cc   : > { %6440 = vmatpush.bf16.msrb.mxu1 %v9553_v3  ;;  %v11139_v3 = vld [vmem:[#allocation11 + $0x264] sm:$0xf]  ;;  %v10370_v63 = vld [vmem:[#allocation11 + $0xad0] sm:$0xf0] }
 0x3cd   : > { %6464 = vmatpush.bf16.msrb.mxu3 %v10417_v40  ;;  %v9408_v40 = vld [vmem:[#allocation11 + $0x320] sm:$0xf]  ;;  %v9317_v7 = vor.u32 %v11139_v3, %v9314_v55  ;;  %v11091_v6 = vld [vmem:[#allocation11 + $0xe4] sm:$0xf] }
 0x3ce   : > { %v9409_v54 = vor.u32 %v11169_v41, %v9408_v40  ;;  %v11211_v40 = vld [vmem:[#allocation11 + $0x4a4] sm:$0xf]  ;;  %v9602_v41 = vld [vmem:[#allocation11 + $0x4d0] sm:$0xf0] }
 0x3cf   : > { %6452 = vmatpush.bf16.msrb.mxu2 %v9985_v57  ;;  %6428 = vmatpush.bf16.msrb.mxu0 %v9121_v1  ;;  %v9841_v57 = vor.u32 %v11277_v47, %v9840_v62  ;;  %v9749_v1 = vor.u32 %v11247_v16, %v9746_v32  ;;  %v6213_v19 = vpop.f32.mrf.mxu3  ;;  %v13287_v62 = vld [vmem:[#allocation14] sm:$0xff]  ;;  %v9221_v47 = vor.u32 %v11115_v31, %v9218_v34  ;;  %v10418_v16 = vld [vmem:[#allocation11 + $0xb30] sm:$0xf0]  ;;  %v11103_v32 = vld [vmem:[#allocation11 + $0x144] sm:$0xf] }
 0x3d0   : > { %6441 = vmatpush.bf16.msrb.mxu1 %v9505_v8  ;;  %v11439_v8 = vld [vmem:[#allocation11 + $0xbc4] sm:$0xf]  ;;  %v4067_v42 = vperm.slane %v13287_v62, 4  ;;  %v9605_v55 = vor.u32 %v11211_v40, %v9602_v41  ;;  %v9506_v19 = vld [vmem:[#allocation11 + $0x410] sm:$0xf0] }
 0x3d1   : > { %6465 = vmatpush.bf16.msrb.mxu3 %v10369_v33  ;;  %v10225_v33 = vor.u32 %v11373_v50, %v10224_v49  ;;  %v11319_v49 = vld [vmem:[#allocation11 + $0x804] sm:$0xf]  ;;  %v10034_v50 = vld [vmem:[#allocation11 + $0x830] sm:$0xf0] }
 0x3d2   : > { %v11187_v14 = vld [vmem:[#allocation11 + $0x3e4] sm:$0xf]  ;;  %v9458_v31 = vld [vmem:[#allocation11 + $0x3b0] sm:$0xf0] }
 0x3d3   : > { %6453 = vmatpush.bf16.msrb.mxu2 %v9937_v9  ;;  %6429 = vmatpush.bf16.msrb.mxu0 %v9073_v23  ;;  %v6200_v9 = vpop.f32.mrf.mxu2  ;;  %v9701_v23 = vor.u32 %v11235_v4, %v9698_v5  ;;  %v11307_v4 = vld [vmem:[#allocation11 + $0x7a4] sm:$0xf]  ;;  %v9986_v5 = vld [vmem:[#allocation11 + $0x7d0] sm:$0xf0] }
 0x3d4   : > { %6442 = vmatpush.bf16.msrb.mxu1 %v9457_v56  ;;  %v10466_v56 = vld [vmem:[#allocation11 + $0xb90] sm:$0xf0]  ;;  %v9989_v13 = vor.u32 %v11307_v4, %v9986_v5  ;;  %v11283_v40 = vld [vmem:[#allocation11 + $0x6e4] sm:$0xf] }
 0x3d5   : > { %6466 = vmatpush.bf16.msrb.mxu3 %v10321_v12  ;;  %v10514_v12 = vld [vmem:[#allocation11 + $0xbf0] sm:$0xf0] }
 0x3d6   : > { %v10517_v24 = vor.u32 %v11439_v8, %v10514_v12  ;;  %v9122_v8 = vld [vmem:[#allocation11 + $0x110] sm:$0xf0] }
 0x3d7   : > { %6454 = vmatpush.bf16.msrb.mxu2 %v9889_v37  ;;  %6430 = vmatpush.bf16.msrb.mxu0 %v9025_v46  ;;  %v9653_v37 = vor.u32 %v11223_v25, %v9650_v26  ;;  %v10469_v46 = vor.u32 %v11427_v30, %v10466_v56  ;;  %v6224_v3 = vpop.f32.mrf.mxu0  ;;  %v11391_v25 = vld [vmem:[#allocation11 + $0xa44] sm:$0xf]  ;;  %v10322_v26 = vld [vmem:[#allocation11 + $0xa70] sm:$0xf0] }
 0x3d8   : > { %6443 = vmatpush.bf16.msrb.mxu1 %v9409_v54  ;;  %v9170_v54 = vld [vmem:[#allocation11 + $0x170] sm:$0xf0]  ;;  %v6225_v60 = vadd.f32 %v6224_v3, %v4067_v42  ;;  %v11175_v56 = vld [vmem:[#allocation11 + $0x384] sm:$0xf] }
 0x3d9   : > { %6467 = vmatpush.bf16.msrb.mxu3 %v10273_v39  ;;  %v10085_v39 = vor.u32 %v11331_v10, %v10082_v11  ;;  %v9173_v2 = vor.u32 %v11103_v32, %v9170_v54  ;;  %v9509_v11 = vor.u32 %v11187_v14, %v9506_v19  ;;  %v9890_v41 = vld [vmem:[#allocation11 + $0x710] sm:$0xf0]  ;;  %v11379_v42 = vld [vmem:[#allocation11 + $0x9e4] sm:$0xf]  ;;  %v11158_v32 = vld [vmem:[#allocation11 + $0x2f4] sm:$0xf0]  ;;  %v9461_v3 = vor.u32 %v11175_v56, %v9458_v31 }
 0x3da   : > { %6431 = vmatmul.bf16.vlgmr.msrb.gmra.mxu0 %v12349_v43  ;;  %v6237_v0 = vpop.f32.mrf.mxu1  ;;  %v11259_v19 = vld [vmem:[#allocation11 + $0x624] sm:$0xf] }
 0x3db   : > { %6475 = vmatpush.bf16.msra.mxu0 %v9365_v52  ;;  %6455 = vmatpush.bf16.msrb.mxu2 %v9841_v57  ;;  %v11415_v52 = vld [vmem:[#allocation11 + $0xb04] sm:$0xf]  ;;  %v10037_v57 = vor.u32 %v11319_v49, %v10034_v50  ;;  %v6238_v9 = vadd.f32 %v6237_v0, %v6225_v60  ;;  %v9026_v49 = vld [vmem:[#allocation11 + $0x50] sm:$0xf0] }
 0x3dc   : > { %6488 = vmatpush.bf16.msra.mxu1 %v9749_v1  ;;  %v10421_v1 = vor.u32 %v11415_v52, %v10418_v16  ;;  %v9368_v16 = vld [vmem:[#allocation11 + $0x2c8] sm:$0xf]  ;;  %v11271_v0 = vld [vmem:[#allocation11 + $0x684] sm:$0xf] }
 0x3dd   : > { %6468 = vmatpush.bf16.msrb.mxu3 %v10225_v33  ;;  %6444 = vmatmul.bf16.vlgmr.msrb.gmra.mxu1 %v12351_v44  ;;  %v11199_v33 = vld [vmem:[#allocation11 + $0x444] sm:$0xf]  ;;  %v9369_v5 = vor.u32 %v11158_v32, %v9368_v16  ;;  %v11338_v16 = vld [vmem:[#allocation11 + $0x894] sm:$0xf0]  ;;  %v10472_v32 = vld [vmem:[#allocation11 + $0xb68] sm:$0xf] }
 0x3de   : > { %v9557_v12 = vor.u32 %v11199_v33, %v9554_v59  ;;  %v9410_v33 = vld [vmem:[#allocation11 + $0x350] sm:$0xf0] }
 0x3df   : > { %6476 = vmatpush.bf16.msra.mxu0 %v9317_v7  ;;  %6456 = vmatpush.bf16.msrb.mxu2 %v9793_v20  ;;  %v11403_v7 = vld [vmem:[#allocation11 + $0xaa4] sm:$0xf]  ;;  %v6226_v10 = vpop.f32.mrf.mxu0 }
 0x3e0   : > { %6489 = vmatpush.bf16.msra.mxu1 %v9701_v23  ;;  %v10373_v20 = vor.u32 %v11403_v7, %v10370_v63  ;;  %v11295_v23 = vld [vmem:[#allocation11 + $0x744] sm:$0xf]  ;;  %v10226_v7 = vld [vmem:[#allocation11 + $0x9b0] sm:$0xf0]  ;;  %v9752_v63 = vld [vmem:[#allocation11 + $0x5c8] sm:$0xf] }
 0x3e1   : > { %6469 = vmatpush.bf16.msrb.mxu3 %v10177_v21  ;;  %v9125_v21 = vor.u32 %v11091_v6, %v9122_v8  ;;  %v11254_v6 = vld [vmem:[#allocation11 + $0x5f4] sm:$0xf0]  ;;  %v9320_v8 = vld [vmem:[#allocation11 + $0x268] sm:$0xf] }
 0x3e2   : > { %6457 = vmatmul.bf16.vlgmr.msrb.gmra.mxu2 %v12353_v45  ;;  %v6239_v34 = vpop.f32.mrf.mxu1  ;;  %v10136_v10 = vld [vmem:[#allocation11 + $0x8c8] sm:$0xf] }
 0x3e3   : > { %6501 = vmatpush.bf16.msra.mxu2 %v10133_v22  ;;  %6477 = vmatpush.bf16.msra.mxu0 %v9269_v29  ;;  %v9938_v22 = vld [vmem:[#allocation11 + $0x770] sm:$0xf0] }
 0x3e4   : > { %6470 = vmatmul.bf16.vlgmr.msrb.gmra.mxu3 %v12356_v48  ;;  %6490 = vmatpush.bf16.msra.mxu1 %v9653_v37  ;;  %v9074_v29 = vld [vmem:[#allocation11 + $0xb0] sm:$0xf0]  ;;  %v9941_v30 = vor.u32 %v11295_v23, %v9938_v22  ;;  %v10325_v37 = vor.u32 %v11391_v25, %v10322_v26  ;;  %v11355_v22 = vld [vmem:[#allocation11 + $0x924] sm:$0xf] }
 0x3e5   : > { %6514 = vmatpush.bf16.msra.mxu3 %v10517_v24  ;;  %v11079_v24 = vld [vmem:[#allocation11 + $0x84] sm:$0xf]  ;;  %v6250_v50 = vpop.f32.mrf.mxu2  ;;  %v9794_v23 = vld [vmem:[#allocation11 + $0x650] sm:$0xf0] }
 0x3e6   : > { %v6251_v54 = vadd.f32 %v6250_v50, %v6238_v9  ;;  %v10178_v25 = vld [vmem:[#allocation11 + $0x950] sm:$0xf0]  ;;  %v9797_v34 = vor.u32 %v11259_v19, %v9794_v23  ;;  %v10088_v50 = vld [vmem:[#allocation11 + $0x868] sm:$0xf] }
 0x3e7   : > { %6502 = vmatpush.bf16.msra.mxu2 %v10085_v39  ;;  %6478 = vmatpush.bf16.msra.mxu0 %v9221_v47  ;;  %v9077_v39 = vor.u32 %v11079_v24, %v9074_v29  ;;  %v11067_v47 = vld [vmem:[#allocation11 + $0x24] sm:$0xf]  ;;  %v6263_v52 = vpop.f32.mrf.mxu3  ;;  %v9704_v24 = vld [vmem:[#allocation11 + $0x568] sm:$0xf]  ;;  %v11242_v29 = vld [vmem:[#allocation11 + $0x594] sm:$0xf0] }
 0x3e8   : > { %6491 = vmatpush.bf16.msra.mxu1 %v9605_v55  ;;  %v9893_v55 = vor.u32 %v11283_v40, %v9890_v41  ;;  %v9029_v60 = vor.u32 %v11067_v47, %v9026_v49  ;;  %v6264_v4 = vadd.f32 %v6263_v52, %v6251_v54  ;;  %v10181_v40 = vor.u32 %v11355_v22, %v10178_v25  ;;  %v9656_v47 = vld [vmem:[#allocation11 + $0x508] sm:$0xf]  ;;  %v11230_v49 = vld [vmem:[#allocation11 + $0x534] sm:$0xf0] }
 0x3e9   : > { %6515 = vmatpush.bf16.msra.mxu3 %v10469_v46  ;;  %v10274_v46 = vld [vmem:[#allocation11 + $0xa10] sm:$0xf0]  ;;  %v9705_v41 = vor.u32 %v11242_v29, %v9704_v24  ;;  %v11434_v54 = vld [vmem:[#allocation11 + $0xb94] sm:$0xf0]  ;;  %v9560_v19 = vld [vmem:[#allocation11 + $0x448] sm:$0xf] }
 0x3ea   : > { %v10277_v59 = vor.u32 %v11379_v42, %v10274_v46  ;;  %v13293_v9 = vadd.f32 %v6264_v4, %v13059_v15  ;;  %v10520_v15 = vld [vmem:[#allocation11 + $0xbc8] sm:$0xf]  ;;  %v11410_v29 = vld [vmem:[#allocation11 + $0xad4] sm:$0xf0] }
 0x3eb   : > { %6503 = vmatpush.bf16.msra.mxu2 %v10037_v57  ;;  %6479 = vmatpush.bf16.msra.mxu0 %v9173_v2  ;;  %v11163_v57 = vld [vmem:[#allocation11 + $0x324] sm:$0xf]  ;;  %v10376_v24 = vld [vmem:[#allocation11 + $0xaa8] sm:$0xf] }
 0x3ec   : > { %6492 = vmatpush.bf16.msra.mxu1 %v9557_v12  ;;  %v11367_v2 = vld [vmem:[#allocation11 + $0x984] sm:$0xf]  ;;  %v11146_v12 = vld [vmem:[#allocation11 + $0x294] sm:$0xf0] }
 0x3ed   : > { %6516 = vmatpush.bf16.msra.mxu3 %v10421_v1  ;;  %v9842_v1 = vld [vmem:[#allocation11 + $0x6b0] sm:$0xf0]  ;;  %v9321_v26 = vor.u32 %v11146_v12, %v9320_v8  ;;  %v6252_v56 = vpop.f32.mrf.mxu2  ;;  %v11110_v8 = vld [vmem:[#allocation11 + $0x174] sm:$0xf0] }
 0x3ee   : > { %v9845_v14 = vor.u32 %v11271_v0, %v9842_v1  ;;  %v11218_v0 = vld [vmem:[#allocation11 + $0x4d4] sm:$0xf0]  ;;  %v10040_v1 = vld [vmem:[#allocation11 + $0x808] sm:$0xf] }
 0x3ef   : > { %6504 = vmatpush.bf16.msra.mxu2 %v9989_v13  ;;  %6480 = vmatpush.bf16.msra.mxu0 %v9125_v21  ;;  %v9413_v13 = vor.u32 %v11163_v57, %v9410_v33  ;;  %v9753_v21 = vor.u32 %v11254_v6, %v9752_v63  ;;  %v6265_v31 = vpop.f32.mrf.mxu3  ;;  %v9657_v57 = vor.u32 %v11230_v49, %v9656_v47  ;;  %v9608_v33 = vld [vmem:[#allocation11 + $0x4a8] sm:$0xf]  ;;  %v4068_v63 = vperm.slane %v13287_v62, 5  ;;  %v11398_v47 = vld [vmem:[#allocation11 + $0xa74] sm:$0xf0] }
 0x3f0   : > { %6493 = vmatpush.bf16.msra.mxu1 %v9509_v11  ;;  %v11350_v11 = vld [vmem:[#allocation11 + $0x8f4] sm:$0xf0]  ;;  %v9176_v6 = vld [vmem:[#allocation11 + $0x148] sm:$0xf]  ;;  %v9609_v12 = vor.u32 %v11218_v0, %v9608_v33 }
 0x3f1   : > { %6517 = vmatpush.bf16.msra.mxu3 %v10373_v20  ;;  %v10229_v20 = vor.u32 %v11367_v2, %v10226_v7  ;;  %v10137_v42 = vor.u32 %v11350_v11, %v10136_v10  ;;  %v11326_v2 = vld [vmem:[#allocation11 + $0x834] sm:$0xf0]  ;;  %v9177_v25 = vor.u32 %v11110_v8, %v9176_v6  ;;  %v9128_v11 = vld [vmem:[#allocation11 + $0xe8] sm:$0xf]  ;;  %v11152_v8 = vld [vmem:[#allocation11 + $0x2cc] sm:$0xf] }
 0x3f2   : > { %v11422_v7 = vld [vmem:[#allocation11 + $0xb34] sm:$0xf0]  ;;  %v9080_v49 = vld [vmem:[#allocation11 + $0x88] sm:$0xf] }
 0x3f3   : > { %6505 = vmatpush.bf16.msra.mxu2 %v9941_v30  ;;  %6481 = vmatpush.bf16.msra.mxu0 %v9077_v39  ;;  %v11446_v30 = vld [vmem:[#allocation11 + $0xbf4] sm:$0xf0]  ;;  %v10280_v0 = vld [vmem:[#allocation11 + $0x9e8] sm:$0xf] }
 0x3f4   : > { %6494 = vmatpush.bf16.msra.mxu1 %v9461_v3  ;;  %v11134_v39 = vld [vmem:[#allocation11 + $0x234] sm:$0xf0]  ;;  %v10521_v46 = vor.u32 %v11446_v30, %v10520_v15  ;;  %v9224_v3 = vld [vmem:[#allocation11 + $0x1a8] sm:$0xf] }
 0x3f5   : > { %6518 = vmatpush.bf16.msra.mxu3 %v10325_v37  ;;  %v9272_v37 = vld [vmem:[#allocation11 + $0x208] sm:$0xf]  ;;  %v11098_v15 = vld [vmem:[#allocation11 + $0x114] sm:$0xf0] }
 0x3f6   : > { %v9273_v52 = vor.u32 %v11134_v39, %v9272_v37  ;;  %v9512_v37 = vld [vmem:[#allocation11 + $0x3e8] sm:$0xf]  ;;  %v11194_v39 = vld [vmem:[#allocation11 + $0x414] sm:$0xf0] }
 0x3f7   : > { %6506 = vmatpush.bf16.msra.mxu2 %v9893_v55  ;;  %6482 = vmatpush.bf16.msra.mxu0 %v9029_v60  ;;  %v11122_v55 = vld [vmem:[#allocation11 + $0x1d4] sm:$0xf0]  ;;  %v10473_v60 = vor.u32 %v11434_v54, %v10472_v32  ;;  %v6276_v23 = vpop.f32.mrf.mxu0  ;;  %v9464_v54 = vld [vmem:[#allocation11 + $0x388] sm:$0xf] }
 0x3f8   : > { %6495 = vmatpush.bf16.msra.mxu1 %v9413_v13  ;;  %v9225_v4 = vor.u32 %v11122_v55, %v9224_v3  ;;  %v10041_v13 = vor.u32 %v11326_v2, %v10040_v1  ;;  %v6277_v10 = vadd.f32 %v6276_v23, %v4068_v63  ;;  %v11182_v3 = vld [vmem:[#allocation11 + $0x3b4] sm:$0xf0]  ;;  %v9896_v55 = vld [vmem:[#allocation11 + $0x6e8] sm:$0xf] }
 0x3f9   : > { %6519 = vmatpush.bf16.msra.mxu3 %v10277_v59  ;;  %v10089_v59 = vor.u32 %v11338_v16, %v10088_v50  ;;  %v11086_v50 = vld [vmem:[#allocation11 + $0xb4] sm:$0xf0]  ;;  %v9465_v6 = vor.u32 %v11182_v3, %v9464_v54  ;;  %v10522_v54 = vld [vmem:[#allocation11 + $0xbf8] sm:$0xf0]  ;;  %v11128_v3 = vld [vmem:[#allocation11 + $0x20c] sm:$0xf] }
 0x3fa   : > { %6483 = vmatmul.bf16.vlgmr.msra.gmra.mxu0 %v12349_v43  ;;  %v6289_v22 = vpop.f32.mrf.mxu1  ;;  %v11386_v1 = vld [vmem:[#allocation11 + $0xa14] sm:$0xf0] }
 0x3fb   : > { %6527 = vmatpush.bf16.msrb.mxu0 %v9369_v5  ;;  %6507 = vmatpush.bf16.msra.mxu2 %v9845_v14  ;;  %v10424_v5 = vld [vmem:[#allocation11 + $0xb08] sm:$0xf]  ;;  %v6290_v56 = vadd.f32 %v6289_v22, %v6277_v10  ;;  %v11248_v10 = vld [vmem:[#allocation11 + $0x5cc] sm:$0xf] }
 0x3fc   : > { %6540 = vmatpush.bf16.msrb.mxu1 %v9753_v21  ;;  %v10425_v14 = vor.u32 %v11422_v7, %v10424_v5  ;;  %v9992_v21 = vld [vmem:[#allocation11 + $0x7a8] sm:$0xf]  ;;  %v11074_v5 = vld [vmem:[#allocation11 + $0x54] sm:$0xf0] }
 0x3fd   : > { %6520 = vmatpush.bf16.msra.mxu3 %v10229_v20  ;;  %6496 = vmatmul.bf16.vlgmr.msra.gmra.mxu1 %v12351_v44  ;;  %v11206_v20 = vld [vmem:[#allocation11 + $0x474] sm:$0xf0] }
 0x3fe   : > { %v9561_v30 = vor.u32 %v11206_v20, %v9560_v19  ;;  %v9416_v19 = vld [vmem:[#allocation11 + $0x328] sm:$0xf]  ;;  %v11170_v20 = vld [vmem:[#allocation11 + $0x354] sm:$0xf0] }
 0x3ff   : > { %6528 = vmatpush.bf16.msrb.mxu0 %v9321_v26  ;;  %6508 = vmatpush.bf16.msra.mxu2 %v9797_v34  ;;  %v11314_v26 = vld [vmem:[#allocation11 + $0x7d4] sm:$0xf0]  ;;  %v10377_v34 = vor.u32 %v11410_v29, %v10376_v24 }
 0x400   : > { %6541 = vmatpush.bf16.msrb.mxu1 %v9705_v41  ;;  %v9993_v31 = vor.u32 %v11314_v26, %v9992_v21  ;;  %v9129_v41 = vor.u32 %v11098_v15, %v9128_v11  ;;  %v9848_v21 = vld [vmem:[#allocation11 + $0x688] sm:$0xf]  ;;  %v11374_v24 = vld [vmem:[#allocation11 + $0x9b4] sm:$0xf0]  ;;  %v9754_v11 = vld [vmem:[#allocation11 + $0x5f8] sm:$0xf0] }
 0x401   : > { %6521 = vmatpush.bf16.msra.mxu3 %v10181_v40  ;;  %v9944_v40 = vld [vmem:[#allocation11 + $0x748] sm:$0xf] }
 0x402   : > { %6509 = vmatmul.bf16.vlgmr.msra.gmra.mxu2 %v12353_v45  ;;  %v6291_v33 = vpop.f32.mrf.mxu1  ;;  %v10232_v26 = vld [vmem:[#allocation11 + $0x988] sm:$0xf] }
 0x403   : > { %6553 = vmatpush.bf16.msrb.mxu2 %v10137_v42  ;;  %6529 = vmatpush.bf16.msrb.mxu0 %v9273_v52  ;;  %v11302_v42 = vld [vmem:[#allocation11 + $0x774] sm:$0xf0]  ;;  %v9513_v52 = vor.u32 %v11194_v39, %v9512_v37  ;;  %v10233_v37 = vor.u32 %v11374_v24, %v10232_v26  ;;  %v9800_v39 = vld [vmem:[#allocation11 + $0x628] sm:$0xf]  ;;  %v11320_v26 = vld [vmem:[#allocation11 + $0x80c] sm:$0xf] }
 0x404   : > { %6522 = vmatmul.bf16.vlgmr.msra.gmra.mxu3 %v12356_v48  ;;  %6542 = vmatpush.bf16.msrb.mxu1 %v9657_v57  ;;  %v9945_v16 = vor.u32 %v11302_v42, %v9944_v40  ;;  %v6278_v57 = vpop.f32.mrf.mxu0  ;;  %v11266_v40 = vld [vmem:[#allocation11 + $0x654] sm:$0xf0]  ;;  %v9757_v42 = vor.u32 %v11248_v10, %v9754_v11  ;;  %v10042_v24 = vld [vmem:[#allocation11 + $0x838] sm:$0xf0]  ;;  %v11104_v11 = vld [vmem:[#allocation11 + $0x14c] sm:$0xf] }
 0x405   : > { %6566 = vmatpush.bf16.msrb.mxu3 %v10521_v46  ;;  %v10328_v46 = vld [vmem:[#allocation11 + $0xa48] sm:$0xf]  ;;  %v6302_v2 = vpop.f32.mrf.mxu2  ;;  %v9801_v33 = vor.u32 %v11266_v40, %v9800_v39  ;;  %v10426_v10 = vld [vmem:[#allocation11 + $0xb38] sm:$0xf0] }
 0x406   : > { %v10329_v32 = vor.u32 %v11398_v47, %v10328_v46  ;;  %v6303_v7 = vadd.f32 %v6302_v2, %v6290_v56  ;;  %v11140_v56 = vld [vmem:[#allocation11 + $0x26c] sm:$0xf]  ;;  %v11362_v46 = vld [vmem:[#allocation11 + $0x954] sm:$0xf0]  ;;  %v9658_v2 = vld [vmem:[#allocation11 + $0x538] sm:$0xf0] }
 0x407   : > { %6554 = vmatpush.bf16.msrb.mxu2 %v10089_v59  ;;  %6530 = vmatpush.bf16.msrb.mxu0 %v9225_v4  ;;  %v9081_v59 = vor.u32 %v11086_v50, %v9080_v49  ;;  %v9032_v4 = vld [vmem:[#allocation11 + $0x28] sm:$0xf]  ;;  %v6315_v63 = vpop.f32.mrf.mxu3  ;;  %v11236_v47 = vld [vmem:[#allocation11 + $0x56c] sm:$0xf]  ;;  %v9706_v49 = vld [vmem:[#allocation11 + $0x598] sm:$0xf0] }
 0x408   : > { %6543 = vmatpush.bf16.msrb.mxu1 %v9609_v12  ;;  %v9370_v12 = vld [vmem:[#allocation11 + $0x2f8] sm:$0xf0]  ;;  %v6316_v23 = vadd.f32 %v6315_v63, %v6303_v7  ;;  %v9033_v22 = vor.u32 %v11074_v5, %v9032_v4  ;;  %v11332_v7 = vld [vmem:[#allocation11 + $0x86c] sm:$0xf] }
 0x409   : > { %6567 = vmatpush.bf16.msrb.mxu3 %v10473_v60  ;;  %v11290_v60 = vld [vmem:[#allocation11 + $0x714] sm:$0xf0]  ;;  %v9373_v29 = vor.u32 %v11152_v8, %v9370_v12  ;;  %v10090_v63 = vld [vmem:[#allocation11 + $0x898] sm:$0xf0]  ;;  %v11116_v12 = vld [vmem:[#allocation11 + $0x1ac] sm:$0xf] }
 0x40a   : > { %v13301_v15 = vadd.f32 %v6316_v23, %v13132_v17  ;;  %v11344_v17 = vld [vmem:[#allocation11 + $0x8cc] sm:$0xf]  ;;  %v10474_v8 = vld [vmem:[#allocation11 + $0xb98] sm:$0xf0]  ;;  %v4069_v23 = vperm.slane %v13287_v62, 6 }
 0x40b   : > { %6555 = vmatpush.bf16.msrb.mxu2 %v10041_v13  ;;  %6531 = vmatpush.bf16.msrb.mxu0 %v9177_v25  ;;  %v9897_v13 = vor.u32 %v11290_v60, %v9896_v55  ;;  %v11278_v25 = vld [vmem:[#allocation11 + $0x6b4] sm:$0xf0]  ;;  %v9274_v55 = vld [vmem:[#allocation11 + $0x238] sm:$0xf0]  ;;  %v9709_v60 = vor.u32 %v11236_v47, %v9706_v49  ;;  %v11308_v47 = vld [vmem:[#allocation11 + $0x7ac] sm:$0xf] }
 0x40c   : > { %6544 = vmatpush.bf16.msrb.mxu1 %v9561_v30  ;;  %v9417_v30 = vor.u32 %v11170_v20, %v9416_v19  ;;  %v9277_v5 = vor.u32 %v11128_v3, %v9274_v55  ;;  %v10093_v19 = vor.u32 %v11332_v7, %v10090_v63  ;;  %v11212_v20 = vld [vmem:[#allocation11 + $0x4ac] sm:$0xf]  ;;  %v9562_v39 = vld [vmem:[#allocation11 + $0x478] sm:$0xf0] }
 0x40d   : > { %6568 = vmatpush.bf16.msrb.mxu3 %v10425_v14  ;;  %v10281_v14 = vor.u32 %v11386_v1, %v10280_v0  ;;  %v11224_v1 = vld [vmem:[#allocation11 + $0x50c] sm:$0xf]  ;;  %v9994_v49 = vld [vmem:[#allocation11 + $0x7d8] sm:$0xf0] }
 0x40e   : > { %v9997_v3 = vor.u32 %v11308_v47, %v9994_v49  ;;  %v11188_v55 = vld [vmem:[#allocation11 + $0x3ec] sm:$0xf] }
 0x40f   : > { %6556 = vmatpush.bf16.msrb.mxu2 %v9993_v31  ;;  %6532 = vmatpush.bf16.msrb.mxu0 %v9129_v41  ;;  %v9322_v31 = vld [vmem:[#allocation11 + $0x298] sm:$0xf0]  ;;  %v10184_v41 = vld [vmem:[#allocation11 + $0x928] sm:$0xf]  ;;  %v6317_v57 = vpop.f32.mrf.mxu3 }
 0x410   : > { %6545 = vmatpush.bf16.msrb.mxu1 %v9513_v52  ;;  %v9325_v50 = vor.u32 %v11140_v56, %v9322_v31  ;;  %v10138_v52 = vld [vmem:[#allocation11 + $0x8f8] sm:$0xf0] }
 0x411   : > { %6569 = vmatpush.bf16.msrb.mxu3 %v10377_v34  ;;  %v9849_v34 = vor.u32 %v11278_v25, %v9848_v21  ;;  %v10141_v0 = vor.u32 %v11344_v17, %v10138_v52  ;;  %v9610_v21 = vld [vmem:[#allocation11 + $0x4d8] sm:$0xf0]  ;;  %v11092_v52 = vld [vmem:[#allocation11 + $0xec] sm:$0xf] }
 0x412   : > { %v9613_v31 = vor.u32 %v11212_v20, %v9610_v21  ;;  %v10378_v17 = vld [vmem:[#allocation11 + $0xad8] sm:$0xf0]  ;;  %v11284_v20 = vld [vmem:[#allocation11 + $0x6ec] sm:$0xf] }
 0x413   : > { %6557 = vmatpush.bf16.msrb.mxu2 %v9945_v16  ;;  %6533 = vmatpush.bf16.msrb.mxu0 %v9081_v59  ;;  %v11440_v16 = vld [vmem:[#allocation11 + $0xbcc] sm:$0xf]  ;;  %v10185_v59 = vor.u32 %v11362_v46, %v10184_v41  ;;  %v9514_v57 = vld [vmem:[#allocation11 + $0x418] sm:$0xf0] }
 0x414   : > { %6546 = vmatpush.bf16.msrb.mxu1 %v9465_v6  ;;  %v10525_v4 = vor.u32 %v11440_v16, %v10522_v54  ;;  %v11428_v6 = vld [vmem:[#allocation11 + $0xb6c] sm:$0xf]  ;;  %v9130_v16 = vld [vmem:[#allocation11 + $0x118] sm:$0xf0]  ;;  %v9517_v63 = vor.u32 %v11188_v55, %v9514_v57 }
 0x415   : > { %6570 = vmatpush.bf16.msrb.mxu3 %v10329_v32  ;;  %v6304_v32 = vpop.f32.mrf.mxu2  ;;  %v9898_v21 = vld [vmem:[#allocation11 + $0x718] sm:$0xf0] }
 0x417   : > { %6558 = vmatpush.bf16.msrb.mxu2 %v9897_v13  ;;  %6534 = vmatpush.bf16.msrb.mxu0 %v9033_v22  ;;  %v9226_v13 = vld [vmem:[#allocation11 + $0x1d8] sm:$0xf0]  ;;  %v10477_v22 = vor.u32 %v11428_v6, %v10474_v8  ;;  %v6328_v56 = vpop.f32.mrf.mxu0  ;;  %v11176_v8 = vld [vmem:[#allocation11 + $0x38c] sm:$0xf] }
 0x418   : > { %6547 = vmatpush.bf16.msrb.mxu1 %v9417_v30  ;;  %v9229_v25 = vor.u32 %v11116_v12, %v9226_v13  ;;  %v9178_v30 = vld [vmem:[#allocation11 + $0x178] sm:$0xf0]  ;;  %v6329_v40 = vadd.f32 %v6328_v56, %v4069_v23  ;;  %v11380_v23 = vld [vmem:[#allocation11 + $0x9ec] sm:$0xf] }
 0x419   : > { %6571 = vmatpush.bf16.msrb.mxu3 %v10281_v14  ;;  %v9661_v14 = vor.u32 %v11224_v1, %v9658_v2  ;;  %v9181_v46 = vor.u32 %v11104_v11, %v9178_v30  ;;  %v11392_v1 = vld [vmem:[#allocation11 + $0xa4c] sm:$0xf]  ;;  %v10330_v2 = vld [vmem:[#allocation11 + $0xa78] sm:$0xf0]  ;;  %v9901_v30 = vor.u32 %v11284_v20, %v9898_v21  ;;  %v10527_v20 = vmul.f32 -1.442695, %v13267_v36 }
 0x41a   : > { %6535 = vmatmul.bf16.vlgmr.msrb.gmra.mxu0 %v12349_v43  ;;  %v6341_v41 = vpop.f32.mrf.mxu1  ;;  %v9466_v12 = vld [vmem:[#allocation11 + $0x3b8] sm:$0xf0]  ;;  %v11164_v56 = vld [vmem:[#allocation11 + $0x32c] sm:$0xf] }
 0x41b   : > { %6579 = vmatpush.bf16.msra.mxu0 %v9373_v29  ;;  %6559 = vmatpush.bf16.msrb.mxu2 %v9849_v34  ;;  %v11416_v29 = vld [vmem:[#allocation11 + $0xb0c] sm:$0xf]  ;;  %v10045_v34 = vor.u32 %v11320_v26, %v10042_v24  ;;  %v6342_v32 = vadd.f32 %v6341_v41, %v6329_v40  ;;  %v9034_v26 = vld [vmem:[#allocation11 + $0x58] sm:$0xf0]  ;;  %v9469_v11 = vor.u32 %v11176_v8, %v9466_v12 }
 0x41c   : > { %6592 = vmatpush.bf16.msra.mxu1 %v9757_v42  ;;  %v10429_v42 = vor.u32 %v11416_v29, %v10426_v10  ;;  %v9850_v40 = vld [vmem:[#allocation11 + $0x6b8] sm:$0xf0] }
 0x41d   : > { %6572 = vmatpush.bf16.msrb.mxu3 %v10233_v37  ;;  %6548 = vmatmul.bf16.vlgmr.msrb.gmra.mxu1 %v12351_v44  ;;  %v11200_v37 = vld [vmem:[#allocation11 + $0x44c] sm:$0xf] }
 0x41e   : > { %v9565_v54 = vor.u32 %v11200_v37, %v9562_v39  ;;  %v9418_v37 = vld [vmem:[#allocation11 + $0x358] sm:$0xf0]  ;;  %v11272_v39 = vld [vmem:[#allocation11 + $0x68c] sm:$0xf] }
 0x41f   : > { %6580 = vmatpush.bf16.msra.mxu0 %v9325_v50  ;;  %6560 = vmatpush.bf16.msrb.mxu2 %v9801_v33  ;;  %v11404_v50 = vld [vmem:[#allocation11 + $0xaac] sm:$0xf]  ;;  %v6330_v7 = vpop.f32.mrf.mxu0  ;;  %v9421_v49 = vor.u32 %v11164_v56, %v9418_v37 }
 0x420   : > { %6593 = vmatpush.bf16.msra.mxu1 %v9709_v60  ;;  %v10381_v33 = vor.u32 %v11404_v50, %v10378_v17  ;;  %v11296_v60 = vld [vmem:[#allocation11 + $0x74c] sm:$0xf]  ;;  %v9853_v50 = vor.u32 %v11272_v39, %v9850_v40 }
 0x421   : > { %6573 = vmatpush.bf16.msrb.mxu3 %v10185_v59  ;;  %v9133_v59 = vor.u32 %v11092_v52, %v9130_v16  ;;  %v11260_v52 = vld [vmem:[#allocation11 + $0x62c] sm:$0xf]  ;;  %v9802_v16 = vld [vmem:[#allocation11 + $0x658] sm:$0xf0] }
 0x422   : > { %6561 = vmatmul.bf16.vlgmr.msrb.gmra.mxu2 %v12353_v45  ;;  %v6343_v13 = vpop.f32.mrf.mxu1  ;;  %v9805_v57 = vor.u32 %v11260_v52, %v9802_v16 }
 0x423   : > { %6605 = vmatpush.bf16.msra.mxu2 %v10141_v0  ;;  %6581 = vmatpush.bf16.msra.mxu0 %v9277_v5  ;;  %v9946_v0 = vld [vmem:[#allocation11 + $0x778] sm:$0xf0] }
 0x424   : > { %6574 = vmatmul.bf16.vlgmr.msrb.gmra.mxu3 %v12356_v48  ;;  %6594 = vmatpush.bf16.msra.mxu1 %v9661_v14  ;;  %v9082_v5 = vld [vmem:[#allocation11 + $0xb8] sm:$0xf0]  ;;  %v9949_v6 = vor.u32 %v11296_v60, %v9946_v0  ;;  %v10333_v14 = vor.u32 %v11392_v1, %v10330_v2 }
 0x425   : > { %6618 = vmatpush.bf16.msra.mxu3 %v10525_v4  ;;  %v11080_v4 = vld [vmem:[#allocation11 + $0x8c] sm:$0xf]  ;;  %v6354_v24 = vpop.f32.mrf.mxu2 }
 0x426   : > { %v6355_v10 = vadd.f32 %v6354_v24, %v6342_v32  ;;  %v11356_v32 = vld [vmem:[#allocation11 + $0x92c] sm:$0xf] }
 0x427   : > { %6606 = vmatpush.bf16.msra.mxu2 %v10093_v19  ;;  %6582 = vmatpush.bf16.msra.mxu0 %v9229_v25  ;;  %v9085_v19 = vor.u32 %v11080_v4, %v9082_v5  ;;  %v11068_v25 = vld [vmem:[#allocation11 + $0x2c] sm:$0xf]  ;;  %v6367_v29 = vpop.f32.mrf.mxu3 }
 0x428   : > { %6595 = vmatpush.bf16.msra.mxu1 %v9613_v31  ;;  %v6368_v41 = vadd.f32 %v6367_v29, %v6355_v10  ;;  %v10531_v10 = vmul.f32 -1.442695, %v13301_v15 }
 0x429   : > { %6619 = vmatpush.bf16.msra.mxu3 %v10477_v22  ;;  %v10282_v22 = vld [vmem:[#allocation11 + $0xa18] sm:$0xf0] }
 0x42a   : > { %v10285_v31 = vor.u32 %v11380_v23, %v10282_v22  ;;  %v13309_v47 = vadd.f32 %v6368_v41, %v13203_v28 }
 0x42b   : > { %6607 = vmatpush.bf16.msra.mxu2 %v10045_v34  ;;  %6583 = vmatpush.bf16.msra.mxu0 %v9181_v46  ;;  %v9037_v34 = vor.u32 %v11068_v25, %v9034_v26  ;;  %v10234_v46 = vld [vmem:[#allocation11 + $0x9b8] sm:$0xf0] }
 0x42c   : > { %6596 = vmatpush.bf16.msra.mxu1 %v9565_v54  ;;  %v10186_v54 = vld [vmem:[#allocation11 + $0x958] sm:$0xf0] }
 0x42d   : > { %6620 = vmatpush.bf16.msra.mxu3 %v10429_v42  ;;  %v11368_v42 = vld [vmem:[#allocation11 + $0x98c] sm:$0xf]  ;;  %v10189_v28 = vor.u32 %v11356_v32, %v10186_v54 }
 0x42e   : > { %v10237_v17 = vor.u32 %v11368_v42, %v10234_v46 }
 0x42f   : > { %6608 = vmatpush.bf16.msra.mxu2 %v9997_v3  ;;  %6584 = vmatpush.bf16.msra.mxu0 %v9133_v59  ;;  %v6356_v3 = vpop.f32.mrf.mxu2  ;;  %v6369_v55 = vpop.f32.mrf.mxu3  ;;  %v10526_v59 = vmul.f32 -1.442695, %v13259_v58 }
 0x430   : > { %6597 = vmatpush.bf16.msra.mxu1 %v9517_v63 }
 0x431   : > { %6621 = vmatpush.bf16.msra.mxu3 %v10381_v33  ;;  %v4070_v33 = vperm.slane %v13287_v62, 7  ;;  %11629 = vpow2.f32 %v10526_v59 }
 0x433   : > { %6609 = vmatpush.bf16.msra.mxu2 %v9949_v6  ;;  %6585 = vmatpush.bf16.msra.mxu0 %v9085_v19  ;;  %v13321_v19 = vld [vmem:[#allocation14 + $0x8] sm:$0xf] }
 0x434   : > { %6598 = vmatpush.bf16.msra.mxu1 %v9469_v11  ;;  %v4071_v22 = vperm.slane %v13321_v19, 0 }
 0x435   : > { %6622 = vmatpush.bf16.msra.mxu3 %v10333_v14 }
 0x437   : > { %6610 = vmatpush.bf16.msra.mxu2 %v9901_v30  ;;  %6586 = vmatpush.bf16.msra.mxu0 %v9037_v34  ;;  %v6380_v60 = vpop.f32.mrf.mxu0 }
 0x438   : > { %6599 = vmatpush.bf16.msra.mxu1 %v9421_v49  ;;  %v6381_v1 = vadd.f32 %v6380_v60, %v4070_v33 }
 0x439   : > { %6623 = vmatpush.bf16.msra.mxu3 %v10285_v31 }
 0x43a   : > { %6587 = vmatmul.bf16.vlgmr.msra.gmra.mxu0 %v12349_v43  ;;  %v6393_v0 = vpop.f32.mrf.mxu1  ;;  %v10530_v43 = vmul.f32 -1.442695, %v13293_v9 }
 0x43b   : > { %6611 = vmatpush.bf16.msra.mxu2 %v9853_v50  ;;  %6600 = vmatmul.bf16.vlgmr.msra.gmra.mxu1 %v12351_v44  ;;  %v6394_v2 = vadd.f32 %v6393_v0, %v6381_v1  ;;  %v11630_v44 = vpop.eup %11629 }
 0x43c   : > { %11631 = vpow2.f32 %v10530_v43  ;;  %v6647_v6 = vadd.f32 1.0, %v11630_v44 }
 0x43d   : > { %6624 = vmatpush.bf16.msra.mxu3 %v10237_v17 }
 0x43e   : > { %11633 = vrcp.f32 %v6647_v6  ;;  %v6662_v36 = vand.u32 2147483648, %v6647_v6  ;;  %vm6656_vm5 = vweird.f32 %v6647_v6  ;;  %v6660_v39 = vand.u32 2147483647, %v6647_v6 }
 0x43f   : > { %6612 = vmatpush.bf16.msra.mxu2 %v9805_v57  ;;  %v6382_v4 = vpop.f32.mrf.mxu0 }
 0x440   : > { %v6663_v15 = vor.u32 1.1754944e-38, %v6662_v36  ;;  %vm6661_vm7 = vcmp.eq.f32.partialorder %v6660_v39, 8.507059e+37 }
 0x441   : > { %6625 = vmatpush.bf16.msra.mxu3 %v10189_v28 }
 0x442   : > { %6613 = vmatmul.bf16.vlgmr.msra.gmra.mxu2 %v12353_v45  ;;  %v6395_v5 = vpop.f32.mrf.mxu1  ;;  %v11632_v58 = vpop.eup %11631 }
 0x443   : > { %v6727_v12 = vadd.f32 1.0, %v11632_v58 }
 0x444   : > { %6626 = vmatmul.bf16.vlgmr.msra.gmra.mxu3 %v12356_v48  ;;  %v11634_v14 = vpop.eup %11633 }
 0x445   : > { %v6406_v7 = vpop.f32.mrf.mxu2  ;;  %11635 = vrcp.f32 %v6727_v12  ;;  %v6652_v9 = vmul.f32 %v11634_v14, %v6647_v6  ;;  %vm6657_vm4 = vweird.f32 %v11634_v14  ;;  %v6742_v54 = vand.u32 2147483648, %v6727_v12 }
 0x446   : > { %v6407_v63 = vadd.f32 %v6406_v7, %v6394_v2  ;;  %11637 = vpow2.f32 %v10527_v20  ;;  %vm6658_vm6 = vmor %vm6656_vm5, %vm6657_vm4  ;;  %vm6736_vm9 = vweird.f32 %v6727_v12  ;;  %v6740_v55 = vand.u32 2147483647, %v6727_v12  ;;  %v11671_v7 = vld [vmem:[#allocation2 + $0x10] sm:$0xff] }
 0x447   : > { %v6419_v45 = vpop.f32.mrf.mxu3  ;;  %v6653_v26 = vsub.f32 1.0, %v6652_v9  ;;  %11639 = vpow2.f32 %v10531_v10  ;;  %v6743_v0 = vor.u32 1.1754944e-38, %v6742_v54 }
 0x448   : > { %v6420_v62 = vadd.f32 %v6419_v45, %v6407_v63  ;;  %vm6741_vm11 = vcmp.eq.f32.partialorder %v6740_v55, 8.507059e+37  ;;  %v10528_v45 = vmul.f32 -1.442695, %v13275_v35 }
 0x449   : > { %v6654_v29 = vmul.f32 %v11634_v14, %v6653_v26 }
 0x44a   : > { %v13319_v48 = vadd.f32 %v6420_v62, %v13219_v38  ;;  %v4072_v62 = vperm.slane %v13321_v19, 1 }
 0x44b   : > { %v11636_v23 = vpop.eup %11635  ;;  %v6655_v31 = vadd.f32 %v11634_v14, %v6654_v29 }
 0x44c   : > { %v6732_v38 = vmul.f32 %v11636_v23, %v6727_v12  ;;  %v11638_v37 = vpop.eup %11637  ;;  %vm6737_vm8 = vweird.f32 %v11636_v23 }
 0x44d   : > { %v6408_v8 = vpop.f32.mrf.mxu2  ;;  %v13326_v46 = vadd.f32 1.0, %v11638_v37  ;;  %v6659_v50 = vsel %vm6658_vm6, %v11634_v14, %v6655_v31  ;;  %v11640_v32 = vpop.eup %11639  ;;  %vm6738_vm10 = vmor %vm6736_vm9, %vm6737_vm8 }
 0x44e   : > { %v6733_v11 = vsub.f32 1.0, %v6732_v38  ;;  %v6664_v52 = vsel %vm6661_vm7, %v6663_v15, %v6659_v50  ;;  %v13330_v28 = vadd.f32 1.0, %v11640_v32 }
 0x44f   : > { %v6421_v13 = vpop.f32.mrf.mxu3  ;;  %11641 = vrcp.f32 %v13326_v46  ;;  %v6677_v35 = vand.u32 2147483648, %v13326_v46  ;;  %vm6671_vm13 = vweird.f32 %v13326_v46 }
 0x450   : > { %v6734_v40 = vmul.f32 %v11636_v23, %v6733_v11  ;;  %v6757_v39 = vand.u32 2147483648, %v13330_v28  ;;  %vm6751_vm1 = vweird.f32 %v13330_v28 }
 0x451   : > { %v6678_v31 = vor.u32 1.1754944e-38, %v6677_v35 }
 0x452   : > { %v6735_v16 = vadd.f32 %v11636_v23, %v6734_v40  ;;  %v6758_v15 = vor.u32 1.1754944e-38, %v6757_v39 }
 0x454   : > { %v6739_v33 = vsel %vm6738_vm10, %v11636_v23, %v6735_v16 }
 0x455   : > { %v11642_v1 = vpop.eup %11641  ;;  %v6744_v2 = vsel %vm6741_vm11, %v6743_v0, %v6739_v33 }
 0x456   : > { %v6803_v43 = vsub.f32 1.0, %v6744_v2  ;;  %v6667_v4 = vmul.f32 %v11642_v1, %v13326_v46  ;;  %v6811_v63 = vmul.f32 %v11671_v7, %v6744_v2  ;;  %vm6672_vm12 = vweird.f32 %v11642_v1 }
 0x457   : > { %v6432_v21 = vpop.f32.mrf.mxu0  ;;  %vm6673_vm14 = vmor %vm6671_vm13, %vm6672_vm12  ;;  %v10533_v7 = vmul.f32 -1.442695, %v13319_v48 }
 0x458   : > { %v6433_v24 = vadd.f32 %v6432_v21, %v4071_v22  ;;  %v6668_v58 = vsub.f32 1.0, %v6667_v4  ;;  %v10532_v21 = vmul.f32 -1.442695, %v13309_v47 }
 0x45a   : > { %v6445_v25 = vpop.f32.mrf.mxu1  ;;  %v6669_v9 = vmul.f32 %v11642_v1, %v6668_v58 }
 0x45b   : > { %v6446_v56 = vadd.f32 %v6445_v25, %v6433_v24  ;;  %v6675_v24 = vand.u32 2147483647, %v13326_v46 }
 0x45c   : > { %v6670_v22 = vadd.f32 %v11642_v1, %v6669_v9 }
 0x45d   : > { %vm6676_vm15 = vcmp.eq.f32.partialorder %v6675_v24, 8.507059e+37 }
 0x45f   : > { %v6434_v30 = vpop.f32.mrf.mxu0 }
 0x462   : > { %v6447_v34 = vpop.f32.mrf.mxu1 }
 0x465   : > { %v6458_v41 = vpop.f32.mrf.mxu2 }
 0x466   : > { %v6459_v49 = vadd.f32 %v6458_v41, %v6446_v56  ;;  %v6674_v56 = vsel %vm6673_vm14, %v11642_v1, %v6670_v22  ;;  %v4073_v1 = vperm.slane %v13321_v19, 2 }
 0x467   : > { %v6471_v42 = vpop.f32.mrf.mxu3  ;;  %v6679_v37 = vsel %vm6676_vm15, %v6678_v31, %v6674_v56 }
 0x468   : > { %v6472_v17 = vadd.f32 %v6471_v42, %v6459_v49  ;;  %v6755_v42 = vand.u32 2147483647, %v13330_v28 }
 0x46a   : > { %v6791_v3 = vmul.f32 %v6664_v52, %v6472_v17  ;;  %vm6756_vm3 = vcmp.eq.f32.partialorder %v6755_v42, 8.507059e+37  ;;  %v11673_v42 = vld [vmem:[#allocation2 + $0x18] sm:$0xff] }
 0x46c   : > { %v6795_v57 = vadd.f32 %v6791_v3, %v13228_v51 }
 0x46d   : > { %v6460_v59 = vpop.f32.mrf.mxu2 }
 0x46e   : > { %11643 = vtanh.f32 %v6795_v57 }
 0x46f   : > { %v6473_v60 = vpop.f32.mrf.mxu3  ;;  %11645 = vrcp.f32 %v13330_v28 }
 0x470   : > { %11647 = vpow2.f32 %v10528_v45 }
 0x471   : > { %11649 = vpow2.f32 %v10532_v21 }
 0x474   : > { %v11644_v5 = vpop.eup %11643 }
 0x475   : > { %v6807_v44 = vmul.f32 %v11644_v5, %v6803_v43  ;;  %v11646_v51 = vpop.eup %11645 }
 0x476   : > { %v6747_v13 = vmul.f32 %v11646_v51, %v13330_v28  ;;  %v11648_v38 = vpop.eup %11647  ;;  %vm6752_vm0 = vweird.f32 %v11646_v51  ;;  %v11672_v28 = vld [vmem:[#allocation2] sm:$0xff] }
 0x477   : > { %v13335_v6 = vadd.f32 %v6811_v63, %v6807_v44  ;;  %v6484_v8 = vpop.f32.mrf.mxu0  ;;  %v13344_v47 = vadd.f32 1.0, %v11648_v38  ;;  %v11650_v41 = vpop.eup %11649  ;;  %vm6753_vm2 = vmor %vm6751_vm1, %vm6752_vm0 }
 0x478   : > { %v6485_v14 = vadd.f32 %v6484_v8, %v4072_v62  ;;  %v6748_v20 = vsub.f32 1.0, %v6747_v13  ;;  %v13351_v17 = vadd.f32 1.0, %v11650_v41 }
 0x479   : > { %6819 = vst [vmem:[#allocation2 + $0x10] sm:$0xff] %v13335_v6  ;;  %11651 = vrcp.f32 %v13344_v47  ;;  %v6692_v8 = vand.u32 2147483648, %v13344_v47  ;;  %vm6686_vm5 = vweird.f32 %v13344_v47 }
 0x47a   : > { %v6497_v12 = vpop.f32.mrf.mxu1  ;;  %v6749_v29 = vmul.f32 %v11646_v51, %v6748_v20  ;;  %v6772_v38 = vand.u32 2147483648, %v13351_v17  ;;  %vm6766_vm9 = vweird.f32 %v13351_v17 }
 0x47b   : > { %v6498_v23 = vadd.f32 %v6497_v12, %v6485_v14  ;;  %v6690_v12 = vand.u32 2147483647, %v13344_v47 }
 0x47c   : > { %v6750_v36 = vadd.f32 %v11646_v51, %v6749_v29  ;;  %v6770_v29 = vand.u32 2147483647, %v13351_v17  ;;  %v6773_v31 = vor.u32 1.1754944e-38, %v6772_v38 }
 0x47d   : > { %vm6691_vm7 = vcmp.eq.f32.partialorder %v6690_v12, 8.507059e+37 }
 0x47e   : > { %v6754_v49 = vsel %vm6753_vm2, %v11646_v51, %v6750_v36  ;;  %vm6771_vm11 = vcmp.eq.f32.partialorder %v6770_v29, 8.507059e+37 }
 0x47f   : > { %v6486_v25 = vpop.f32.mrf.mxu0  ;;  %v6759_v16 = vsel %vm6756_vm3, %v6758_v15, %v6754_v49  ;;  %v11652_v32 = vpop.eup %11651 }
 0x480   : > { %v6804_v54 = vsub.f32 1.0, %v6759_v16  ;;  %v6682_v55 = vmul.f32 %v11652_v32, %v13344_v47  ;;  %v6812_v33 = vmul.f32 %v11672_v28, %v6759_v16  ;;  %vm6687_vm4 = vweird.f32 %v11652_v32 }
 0x481   : > { %vm6688_vm6 = vmor %vm6686_vm5, %vm6687_vm4 }
 0x482   : > { %v6499_v26 = vpop.f32.mrf.mxu1  ;;  %v6683_v43 = vsub.f32 1.0, %v6682_v55 }
 0x484   : > { %v6684_v44 = vmul.f32 %v11652_v32, %v6683_v43 }
 0x485   : > { %v6510_v10 = vpop.f32.mrf.mxu2 }
 0x486   : > { %v6511_v11 = vadd.f32 %v6510_v10, %v6498_v23  ;;  %v6685_v45 = vadd.f32 %v11652_v32, %v6684_v44  ;;  %v6693_v23 = vor.u32 1.1754944e-38, %v6692_v8 }
 0x487   : > { %v6523_v30 = vpop.f32.mrf.mxu3 }
 0x488   : > { %v6524_v34 = vadd.f32 %v6523_v30, %v6511_v11  ;;  %v6689_v21 = vsel %vm6688_vm6, %v11652_v32, %v6685_v45 }
 0x489   : > { %v6694_v35 = vsel %vm6691_vm7, %v6693_v23, %v6689_v21 }
 0x48a   : > { %v6792_v40 = vmul.f32 %v6679_v37, %v6524_v34 }
 0x48c   : > { %v6796_v46 = vadd.f32 %v6792_v40, %v13235_v61  ;;  %v10529_v61 = vmul.f32 -1.442695, %v13283_v53 }
 0x48d   : > { %v6512_v50 = vpop.f32.mrf.mxu2 }
 0x48e   : > { %11653 = vtanh.f32 %v6796_v46 }
 0x48f   : > { %v6525_v52 = vpop.f32.mrf.mxu3  ;;  %11655 = vrcp.f32 %v13351_v17 }
 0x490   : > { %11657 = vpow2.f32 %v10529_v61 }
 0x491   : > { %11659 = vpow2.f32 %v10533_v7 }
 0x494   : > { %v11654_v3 = vpop.eup %11653 }
 0x495   : > { %v6808_v57 = vmul.f32 %v11654_v3, %v6804_v54  ;;  %v11656_v0 = vpop.eup %11655 }
 0x496   : > { %v6762_v4 = vmul.f32 %v11656_v0, %v13351_v17  ;;  %v11658_v58 = vpop.eup %11657  ;;  %vm6767_vm8 = vweird.f32 %v11656_v0 }
 0x497   : > { %v13356_v59 = vadd.f32 %v6812_v33, %v6808_v57  ;;  %v6536_v60 = vpop.f32.mrf.mxu0  ;;  %v6650_v20 = vadd.f32 1.0, %v11658_v58  ;;  %v11660_v26 = vpop.eup %11659  ;;  %vm6768_vm10 = vmor %vm6766_vm9, %vm6767_vm8 }
 0x498   : > { %v6537_v5 = vadd.f32 %v6536_v60, %v4073_v1  ;;  %v6763_v63 = vsub.f32 1.0, %v6762_v4  ;;  %v6730_v11 = vadd.f32 1.0, %v11660_v26 }
 0x499   : > { %6820 = vst [vmem:[#allocation2] sm:$0xff] %v13356_v59  ;;  %11661 = vrcp.f32 %v6650_v20  ;;  %v6707_v61 = vand.u32 2147483648, %v6650_v20  ;;  %vm6701_vm13 = vweird.f32 %v6650_v20  ;;  %v6705_v60 = vand.u32 2147483647, %v6650_v20 }
 0x49a   : > { %v6549_v2 = vpop.f32.mrf.mxu1  ;;  %v6764_v13 = vmul.f32 %v11656_v0, %v6763_v63  ;;  %v6787_v63 = vand.u32 2147483648, %v6730_v11  ;;  %vm6781_vm1 = vweird.f32 %v6730_v11 }
 0x49b   : > { %v6550_v53 = vadd.f32 %v6549_v2, %v6537_v5  ;;  %v6708_v4 = vor.u32 1.1754944e-38, %v6707_v61  ;;  %vm6706_vm15 = vcmp.eq.f32.partialorder %v6705_v60, 8.507059e+37 }
 0x49c   : > { %v6765_v25 = vadd.f32 %v11656_v0, %v6764_v13  ;;  %v6788_v8 = vor.u32 1.1754944e-38, %v6787_v63 }
 0x49e   : > { %v6769_v30 = vsel %vm6768_vm10, %v11656_v0, %v6765_v25 }
 0x49f   : > { %v6538_v51 = vpop.f32.mrf.mxu0  ;;  %v11662_v34 = vpop.eup %11661  ;;  %v6774_v37 = vsel %vm6771_vm11, %v6773_v31, %v6769_v30 }
 0x4a0   : > { %v6805_v36 = vsub.f32 1.0, %v6774_v37  ;;  %v6697_v39 = vmul.f32 %v11662_v34, %v6650_v20  ;;  %v6813_v46 = vmul.f32 %v11673_v42, %v6774_v37  ;;  %vm6702_vm12 = vweird.f32 %v11662_v34 }
 0x4a1   : > { %vm6703_vm14 = vmor %vm6701_vm13, %vm6702_vm12 }
 0x4a2   : > { %v6551_v62 = vpop.f32.mrf.mxu1  ;;  %v6698_v17 = vsub.f32 1.0, %v6697_v39 }
 0x4a4   : > { %v6699_v54 = vmul.f32 %v11662_v34, %v6698_v17 }
 0x4a5   : > { %v6562_v14 = vpop.f32.mrf.mxu2 }
 0x4a6   : > { %v6563_v48 = vadd.f32 %v6562_v14, %v6550_v53  ;;  %v6700_v28 = vadd.f32 %v11662_v34, %v6699_v54  ;;  %v6785_v53 = vand.u32 2147483647, %v6730_v11 }
 0x4a7   : > { %v6575_v9 = vpop.f32.mrf.mxu3 }
 0x4a8   : > { %v6576_v22 = vadd.f32 %v6575_v9, %v6563_v48  ;;  %v6704_v43 = vsel %vm6703_vm14, %v11662_v34, %v6700_v28  ;;  %vm6786_vm3 = vcmp.eq.f32.partialorder %v6785_v53, 8.507059e+37  ;;  %v11674_v48 = vld [vmem:[#allocation2 + $0x8] sm:$0xff] }
 0x4a9   : > { %v6709_v44 = vsel %vm6706_vm15, %v6708_v4, %v6704_v43 }
 0x4aa   : > { %v6793_v24 = vmul.f32 %v6694_v35, %v6576_v22 }
 0x4ac   : > { %v6797_v10 = vadd.f32 %v6793_v24, %v13242_v18  ;;  %v4074_v18 = vperm.slane %v13321_v19, 3 }
 0x4ad   : > { %v6564_v56 = vpop.f32.mrf.mxu2 }
 0x4ae   : > { %11663 = vtanh.f32 %v6797_v10 }
 0x4af   : > { %v6577_v47 = vpop.f32.mrf.mxu3  ;;  %11665 = vrcp.f32 %v6730_v11 }
 0x4b4   : > { %v11664_v40 = vpop.eup %11663 }
 0x4b5   : > { %v6809_v41 = vmul.f32 %v11664_v40, %v6805_v36  ;;  %v11666_v50 = vpop.eup %11665 }
 0x4b6   : > { %v6777_v16 = vmul.f32 %v11666_v50, %v6730_v11  ;;  %vm6782_vm0 = vweird.f32 %v11666_v50 }
 0x4b7   : > { %v6588_v49 = vpop.f32.mrf.mxu0  ;;  %v6817_v15 = vadd.f32 %v6813_v46, %v6809_v41  ;;  %vm6783_vm2 = vmor %vm6781_vm1, %vm6782_vm0 }
 0x4b8   : > { %v6601_v52 = vpop.f32.mrf.mxu1  ;;  %v6589_v32 = vadd.f32 %v6588_v49, %v4074_v18  ;;  %v6778_v3 = vsub.f32 1.0, %v6777_v16 }
 0x4b9   : > { %6821 = vst [vmem:[#allocation2 + $0x18] sm:$0xff] %v6817_v15 }
 0x4ba   : > { %v6602_v57 = vadd.f32 %v6601_v52, %v6589_v32  ;;  %v6779_v0 = vmul.f32 %v11666_v50, %v6778_v3 }
 0x4bc   : > { %v6780_v7 = vadd.f32 %v11666_v50, %v6779_v0 }
 0x4be   : > { %v6784_v62 = vsel %vm6783_vm2, %v11666_v50, %v6780_v7 }
 0x4bf   : > { %v6590_v55 = vpop.f32.mrf.mxu0  ;;  %v6789_v13 = vsel %vm6786_vm3, %v6788_v8, %v6784_v62 }
 0x4c0   : > { %v6603_v33 = vpop.f32.mrf.mxu1  ;;  %v6806_v14 = vsub.f32 1.0, %v6789_v13  ;;  %v6814_v21 = vmul.f32 %v11674_v48, %v6789_v13 }
 0x4c5   : > { %v6614_v1 = vpop.f32.mrf.mxu2 }
 0x4c6   : > { %v6615_v2 = vadd.f32 %v6614_v1, %v6602_v57 }
 0x4c7   : > { %v6627_v19 = vpop.f32.mrf.mxu3 }
 0x4c8   : > { %v6628_v5 = vadd.f32 %v6627_v19, %v6615_v2 }
 0x4ca   : > { %v6794_v51 = vmul.f32 %v6709_v44, %v6628_v5 }
 0x4cc   : > { %v6798_v45 = vadd.f32 %v6794_v51, %v13249_v27 }
 0x4cd   : > { %v6616_v58 = vpop.f32.mrf.mxu2 }
 0x4ce   : > { %11667 = vtanh.f32 %v6798_v45 }
 0x4cf   : > { %v6629_v12 = vpop.f32.mrf.mxu3 }
 0x4d4   : > { %v11668_v9 = vpop.eup %11667 }
 0x4d5   : > { %v6810_v20 = vmul.f32 %v11668_v9, %v6806_v14  ;;  %6826 = sbr.rel (%p10534_p1) target bundleno = 1417 (0x589), region = 100 }
 0x4d7   : > { %v6818_v23 = vadd.f32 %v6814_v21, %v6810_v20 }
 0x4d9   : > { %6822 = vst [vmem:[#allocation2 + $0x8] sm:$0xff] %v6818_v23 }
 0x4da   : > { %v11454_v22 = vld [vmem:[#allocation15 + $0x38] sm:$0xff]  ;;  %v10535_v25 = vmul.f32 -1.442695, %v13335_v6  ;;  %v10536_v38 = vmul.f32 -1.442695, %v13356_v59  ;;  %v11453_v24 = vld [vmem:[#allocation15 + $0x30] sm:$0xff] }
 0x4db   : > { %v11462_v35 = vld [vmem:[#allocation15 + $0x78] sm:$0xff]  ;;  %7171 = vmatpush.bf16.msra.mxu0 %v11454_v22  ;;  %v11461_v29 = vld [vmem:[#allocation15 + $0x70] sm:$0xff]  ;;  %v10537_v10 = vmul.f32 -1.442695, %v6817_v15  ;;  %v10538_v56 = vmul.f32 -1.442695, %v6818_v23 }
 0x4dc   : > { %v11470_v27 = vld [vmem:[#allocation15 + $0xb8] sm:$0xff]  ;;  %7184 = vmatpush.bf16.msra.mxu1 %v11462_v35  ;;  %11676 = vpow2.f32 %v10535_v25  ;;  %v11469_v11 = vld [vmem:[#allocation15 + $0xb0] sm:$0xff]  ;;  %v11452_v6 = vld [vmem:[#allocation15 + $0x28] sm:$0xff] }
 0x4dd   : > { %v11478_v26 = vld [vmem:[#allocation15 + $0xf8] sm:$0xff]  ;;  %7197 = vmatpush.bf16.msra.mxu2 %v11470_v27  ;;  %v11477_v30 = vld [vmem:[#allocation15 + $0xf0] sm:$0xff]  ;;  %11678 = vpow2.f32 %v10536_v38  ;;  %v11460_v47 = vld [vmem:[#allocation15 + $0x68] sm:$0xff] }
 0x4de   : > { %7210 = vmatpush.bf16.msra.mxu3 %v11478_v26  ;;  %11680 = vpow2.f32 %v10537_v10  ;;  %v11468_v59 = vld [vmem:[#allocation15 + $0xa8] sm:$0xff]  ;;  %v11451_v40 = vld [vmem:[#allocation15 + $0x20] sm:$0xff]  ;;  %v11450_v17 = vld [vmem:[#allocation15 + $0x18] sm:$0xff] }
 0x4df   : > { %11682 = vpow2.f32 %v10538_v56  ;;  %7172 = vmatpush.bf16.msra.mxu0 %v11453_v24  ;;  %v11476_v31 = vld [vmem:[#allocation15 + $0xe8] sm:$0xff]  ;;  %v11459_v41 = vld [vmem:[#allocation15 + $0x60] sm:$0xff]  ;;  %v11458_v52 = vld [vmem:[#allocation15 + $0x58] sm:$0xff] }
 0x4e0   : > { %7185 = vmatpush.bf16.msra.mxu1 %v11461_v29  ;;  %v11467_v49 = vld [vmem:[#allocation15 + $0xa0] sm:$0xff]  ;;  %v11466_v16 = vld [vmem:[#allocation15 + $0x98] sm:$0xff]  ;;  %v11449_v61 = vld [vmem:[#allocation15 + $0x10] sm:$0xff] }
 0x4e1   : > { %7198 = vmatpush.bf16.msra.mxu2 %v11469_v11  ;;  %v11475_v50 = vld [vmem:[#allocation15 + $0xe0] sm:$0xff]  ;;  %v11474_v32 = vld [vmem:[#allocation15 + $0xd8] sm:$0xff]  ;;  %v11457_v60 = vld [vmem:[#allocation15 + $0x50] sm:$0xff] }
 0x4e2   : > { %7211 = vmatpush.bf16.msra.mxu3 %v11477_v30  ;;  %v11677_v34 = vpop.eup %11676  ;;  %v11465_v1 = vld [vmem:[#allocation15 + $0x90] sm:$0xff]  ;;  %v11448_v45 = vld [vmem:[#allocation15 + $0x8] sm:$0xff]  ;;  %v11447_v24 = vld [vmem:[#allocation15] sm:$0xff] }
 0x4e3   : > { %v11679_v37 = vpop.eup %11678  ;;  %v13374_v36 = vadd.f32 1.0, %v11677_v34  ;;  %7173 = vmatpush.bf16.msra.mxu0 %v11452_v6  ;;  %v11473_v2 = vld [vmem:[#allocation15 + $0xd0] sm:$0xff]  ;;  %v11456_v62 = vld [vmem:[#allocation15 + $0x48] sm:$0xff]  ;;  %v11455_v29 = vld [vmem:[#allocation15 + $0x40] sm:$0xff] }
 0x4e4   : > { %v11681_v39 = vpop.eup %11680  ;;  %7186 = vmatpush.bf16.msra.mxu1 %v11460_v47  ;;  %v13376_v42 = vadd.f32 1.0, %v11679_v37  ;;  %v11464_v13 = vld [vmem:[#allocation15 + $0x88] sm:$0xff]  ;;  %v11463_v30 = vld [vmem:[#allocation15 + $0x80] sm:$0xff] }
 0x4e5   : > { %v11683_v46 = vpop.eup %11682  ;;  %7199 = vmatpush.bf16.msra.mxu2 %v11468_v59  ;;  %11684 = vrcp.f32 %v13374_v36  ;;  %v13380_v15 = vadd.f32 1.0, %v11681_v39  ;;  %v6852_v54 = vand.u32 2147483647, %v13374_v36  ;;  %v6854_v3 = vand.u32 2147483648, %v13374_v36  ;;  %v11472_v14 = vld [vmem:[#allocation15 + $0xc8] sm:$0xff]  ;;  %v11471_v56 = vld [vmem:[#allocation15 + $0xc0] sm:$0xff] }
 0x4e6   : > { %7212 = vmatpush.bf16.msra.mxu3 %v11476_v31  ;;  %11686 = vrcp.f32 %v13376_v42  ;;  %v13382_v18 = vadd.f32 1.0, %v11683_v46  ;;  %v6867_v57 = vand.u32 2147483647, %v13376_v42  ;;  %v6869_v28 = vand.u32 2147483648, %v13376_v42 }
 0x4e7   : > { %7174 = vmatpush.bf16.msra.mxu0 %v11451_v40  ;;  %11688 = vrcp.f32 %v13380_v15  ;;  %vm6848_vm4 = vweird.f32 %v13374_v36  ;;  %vm6863_vm5 = vweird.f32 %v13376_v42  ;;  %vm13401_vm7 = vcmp.eq.f32.partialorder %v6852_v54, 8.507059e+37 }
 0x4e8   : > { %7187 = vmatpush.bf16.msra.mxu1 %v11459_v41  ;;  %11690 = vrcp.f32 %v13382_v18  ;;  %v6855_v5 = vor.u32 1.1754944e-38, %v6854_v3  ;;  %vm13408_vm9 = vcmp.eq.f32.partialorder %v6867_v57, 8.507059e+37  ;;  %v6870_v51 = vor.u32 1.1754944e-38, %v6869_v28 }
 0x4e9   : > { %7200 = vmatpush.bf16.msra.mxu2 %v11467_v49  ;;  %vm6878_vm10 = vweird.f32 %v13380_v15  ;;  %v6882_v12 = vand.u32 2147483647, %v13380_v15  ;;  %v6884_v48 = vand.u32 2147483648, %v13380_v15  ;;  %vm6893_vm12 = vweird.f32 %v13382_v18 }
 0x4ea   : > { %7213 = vmatpush.bf16.msra.mxu3 %v11475_v50  ;;  %v6899_v27 = vand.u32 2147483648, %v13382_v18  ;;  %v6897_v38 = vand.u32 2147483647, %v13382_v18 }
 0x4eb   : > { %v13388_v55 = vpop.eup %11684  ;;  %7175 = vmatpush.bf16.msra.mxu0 %v11450_v17  ;;  %v6885_v31 = vor.u32 1.1754944e-38, %v6884_v48  ;;  %vm6883_vm1 = vcmp.eq.f32.partialorder %v6882_v12, 8.507059e+37 }
 0x4ec   : > { %v13392_v33 = vpop.eup %11686  ;;  %7188 = vmatpush.bf16.msra.mxu1 %v11458_v52  ;;  %v6844_v0 = vmul.f32 %v13388_v55, %v13374_v36  ;;  %vm6849_vm6 = vweird.f32 %v13388_v55  ;;  %v6900_v40 = vor.u32 1.1754944e-38, %v6899_v27  ;;  %vm6898_vm3 = vcmp.eq.f32.partialorder %v6897_v38, 8.507059e+37 }
 0x4ed   : > { %7201 = vmatpush.bf16.msra.mxu2 %v11466_v16  ;;  %v6859_v19 = vmul.f32 %v13392_v33, %v13376_v42  ;;  %v13405_v44 = vpop.eup %11688  ;;  %vm6864_vm8 = vweird.f32 %v13392_v33  ;;  %vm13423_vm11 = vmor %vm6848_vm4, %vm6849_vm6  ;;  %v11675_v16 = vld [vmem:[#allocation17] ss:$0 sm:$0xff] }
 0x4ee   : > { %7214 = vmatpush.bf16.msra.mxu3 %v11474_v32  ;;  %v6845_v43 = vsub.f32 1.0, %v6844_v0  ;;  %v13412_v53 = vpop.eup %11690  ;;  %v6874_v8 = vmul.f32 %v13405_v44, %v13380_v15  ;;  %vm13437_vm13 = vmor %vm6863_vm5, %vm6864_vm8  ;;  %vm6879_vm14 = vweird.f32 %v13405_v44 }
 0x4ef   : > { %v6860_v7 = vsub.f32 1.0, %v6859_v19  ;;  %7176 = vmatpush.bf16.msra.mxu0 %v11449_v61  ;;  %v6889_v21 = vmul.f32 %v13412_v53, %v13382_v18  ;;  %vm6894_vm15 = vweird.f32 %v13412_v53  ;;  %vm13459_vm0 = vmor %vm6878_vm10, %vm6879_vm14 }
 0x4f0   : > { %7189 = vmatpush.bf16.msra.mxu1 %v11457_v60  ;;  %v6846_v58 = vmul.f32 %v13388_v55, %v6845_v43  ;;  %v6875_v35 = vsub.f32 1.0, %v6874_v8  ;;  %vm13471_vm2 = vmor %vm6893_vm12, %vm6894_vm15 }
 0x4f1   : > { %7202 = vmatpush.bf16.msra.mxu2 %v11465_v1  ;;  %v6861_v20 = vmul.f32 %v13392_v33, %v6860_v7  ;;  %v6890_v26 = vsub.f32 1.0, %v6889_v21 }
 0x4f2   : > { %7215 = vmatpush.bf16.msra.mxu3 %v11473_v2  ;;  %v6847_v23 = vadd.f32 %v13388_v55, %v6846_v58  ;;  %v6876_v11 = vmul.f32 %v13405_v44, %v6875_v35 }
 0x4f3   : > { %v6862_v25 = vadd.f32 %v13392_v33, %v6861_v20  ;;  %7177 = vmatpush.bf16.msra.mxu0 %v11448_v45  ;;  %v6891_v34 = vmul.f32 %v13412_v53, %v6890_v26 }
 0x4f4   : > { %7190 = vmatpush.bf16.msra.mxu1 %v11456_v62  ;;  %v6851_v10 = vsel %vm13423_vm11, %v13388_v55, %v6847_v23  ;;  %v6877_v36 = vadd.f32 %v13405_v44, %v6876_v11 }
 0x4f5   : > { %7203 = vmatpush.bf16.msra.mxu2 %v11464_v13  ;;  %v6856_v6 = vsel %vm13401_vm7, %v6855_v5, %v6851_v10  ;;  %v6866_v47 = vsel %vm13437_vm13, %v13392_v33, %v6862_v25  ;;  %v6892_v46 = vadd.f32 %v13412_v53, %v6891_v34 }
 0x4f6   : > { %7216 = vmatpush.bf16.msra.mxu3 %v11472_v14  ;;  %6903 = vst [vmem:[#allocation19] sm:$0xff] %v6856_v6  ;;  %v6871_v37 = vsel %vm13408_vm9, %v6870_v51, %v6866_v47  ;;  %v6907_v41 = vpack.c.bf16 %v6856_v6, %v6856_v6  ;;  %v6881_v49 = vsel %vm13459_vm0, %v13405_v44, %v6877_v36 }
 0x4f7   : > { %6904 = vst [vmem:[#allocation19 + $0x8] sm:$0xff] %v6871_v37  ;;  %v6908_v42 = vpack.c.bf16 %v6871_v37, %v6871_v37  ;;  %7178 = vmatpush.bf16.msra.mxu0 %v11447_v24  ;;  %v6886_v50 = vsel %vm6883_vm1, %v6885_v31, %v6881_v49  ;;  %v6896_v15 = vsel %vm13471_vm2, %v13412_v53, %v6892_v46 }
 0x4f8   : > { %7191 = vmatpush.bf16.msra.mxu1 %v11455_v29  ;;  %6905 = vst [vmem:[#allocation19 + $0x10] sm:$0xff] %v6886_v50  ;;  %v6909_v18 = vpack.c.bf16 %v6886_v50, %v6886_v50  ;;  %v6901_v17 = vsel %vm6898_vm3, %v6900_v40, %v6896_v15 }
 0x4f9   : > { %7204 = vmatpush.bf16.msra.mxu2 %v11463_v30  ;;  %6906 = vst [vmem:[#allocation19 + $0x18] sm:$0xff] %v6901_v17  ;;  %v6910_v52 = vpack.c.bf16 %v6901_v17, %v6901_v17 }
 0x4fa   : > { %7217 = vmatpush.bf16.msra.mxu3 %v11471_v56  ;;  %7179 = vmatmul.bf16.vlgmr.msra.gmra.mxu0 %v6907_v41 }
 0x4fb   : > { %7192 = vmatmul.bf16.vlgmr.msra.gmra.mxu1 %v6908_v42 }
 0x4fc   : > { %7205 = vmatmul.bf16.vlgmr.msra.gmra.mxu2 %v6909_v18 }
 0x4fd   : > { %7218 = vmatmul.bf16.vlgmr.msra.gmra.mxu3 %v6910_v52 }
 0x577   : > { %v7180_v32 = vpop.f32.mrf.mxu0 }
 0x578   : > { %v7193_v54 = vpop.f32.mrf.mxu1  ;;  %v7181_v3 = vadd.f32 %v11675_v16, %v7180_v32 }
 0x57a   : > { %v7194_v55 = vadd.f32 %v7193_v54, %v7181_v3 }
 0x57f   : > { %v7206_v57 = vpop.f32.mrf.mxu2  ;;  %v7182_v61 = vpop.f32.mrf.mxu0 }
 0x580   : > { %v7207_v28 = vadd.f32 %v7206_v57, %v7194_v55  ;;  %v7219_v33 = vpop.f32.mrf.mxu3  ;;  %v7195_v60 = vpop.f32.mrf.mxu1 }
 0x582   : > { %v7220_v0 = vadd.f32 %v7219_v33, %v7207_v28 }
 0x584   : > { %7223 = vst [vmem:[#allocation21] sm:$0xff] %v7220_v0 }
 0x587   : > { %v7208_v1 = vpop.f32.mrf.mxu2 }
 0x588   : > { %v7221_v2 = vpop.f32.mrf.mxu3 }
 0x589 PF: > { %p11574_p3 = scmp.eq.s32.totalorder %s12211_s24, 2  ;;  %s12124_s15 = smov [#allocation19]  }
 0x58a   : > { %s7242_s13 = sshll.u32 %s12124_s15, 4  ;;  %s7244_s4 = sshll.u32 %s13529_s10, 4  ;;  %s7243_s13 = int_to_ptr.vmem [resolvable:$true] %s7242_s13  ;;  %s7245_s4 = int_to_ptr.hbm [resolvable:$true] %s7244_s4 }
 0x58b   : > { %11519 = dma.vmem_to_hbm [thread:$0]  (%p11574_p3), %s7243_s13, 512, %s7245_s4, [#allocation20]  }
 0x58c   : > { %s7232_s22 = sshll.u32 %s13528_s9, 4  ;;  %s12125_s28 = smov [#allocation18]   ;;  %s7233_s22 = int_to_ptr.hbm [resolvable:$true] %s7232_s22 }
 0x58d   : > { %s7230_s14 = sshll.u32 %s12125_s28, 4  ;;  %s12126_s12 = smov [#allocation21]   ;;  %s7231_s14 = int_to_ptr.vmem [resolvable:$true] %s7230_s14 }
 0x58e   : > { %11517 = dma.vmem_to_hbm [thread:$0]  (%p11574_p3), %s7231_s14, 512, %s7233_s22, [#allocation5]  }
 0x58f   : > { %s7254_s16 = sshll.u32 %s12126_s12, 4  ;;  %s7256_s17 = sshll.u32 %s13530_s11, 4  ;;  %s7255_s16 = int_to_ptr.vmem [resolvable:$true] %s7254_s16  ;;  %s7257_s17 = int_to_ptr.hbm [resolvable:$true] %s7256_s17 }
 0x590   : > { %11521 = dma.vmem_to_hbm [thread:$0]  (%p11574_p3), %s7255_s16, 128, %s7257_s17, [#allocation20]  }
 0x591   : > { %12087 = dma.done.wait (%p11574_p3), [#allocation5], 512  }
 0x592   : > { %12089 = vsyncadd (%p11574_p3), [#allocation5], 4294966784 }
 0x593   : > { %12091 = dma.done.wait (%p11574_p3), [#allocation20], 640  }
 0x594   : > { %12093 = vsyncadd (%p11574_p3), [#allocation20], 4294966656 }
 0x595 PF: > { %p28_p4 = scmp.ge.s32.totalorder %s12270_s29, 5   ;;  %s13557_s17 = smov %s12100_s18 }
 0x596   : > { %s13558_s18 = smov %s12104_s19  ;;  %s13559_s19 = smov %s12282_s23 }
 0x597   : > { %s13560_s20 = smov %s12270_s29  ;;  %30 = sbr.rel (!%p28_p4) target bundleno = 13 (0xd), region = 150 }
 0x59c   :  { %7280 = vsyncpa [#allocation4], 1 }
 0x59d   :  { %7282 = vsyncpa [#allocation4 + $0x1], 1 }
 0x59e   :  { %7283 = vsyncpa [#allocation7], 1 }
 0x59f   :  { %7284 = vsyncpa [#allocation10], 1 }
 0x5a0   :  { %7286 = vsyncpa [#allocation10 + $0x1], 1 }
 0x5a1   :  { %7287 = vsyncpa [#allocation13], 1 }
 0x5a2   :  { %7288 = vsyncpa [#allocation16], 1 }
 0x5a3   :  { %7289 = vsyncpa [#allocation5], 1 }
 0x5a4   :  { %7291 = vsyncpa [#allocation5 + $0x1], 1 }
 0x5a5   :  { %7292 = vsyncpa [#allocation20], 1 }

</bundles_post_ra>
